<compile_context>
chip_gen: v7x
topology: tpu7x:2x2x1
jax: 0.10.0
libtpu: 0.0.40
codegen_flags: <defaults>
</compile_context>

<pallas_src>
import functools

import jax
import jax.numpy as jnp
from jax.experimental import pallas as pl
from jax.experimental.pallas import tpu as pltpu

TP_WEIGHT = 1.0
CE_WEIGHT = 0.1
NORM_WEIGHT = 1.0


# ---------------------------------------------------------------------------
# Fused kernel: pairwise distances -> triplet hinge loss (AvgNonZeroReducer)
#               + label-smoothed softmax cross entropy.
# ---------------------------------------------------------------------------
def _fused_loss_kernel(delta_ref, deltat_ref, pmask_ref, logits_ref,
                       labels_ref, tpavg_ref, cnt_ref, ce_ref, *,
                       margin, scale, lamda, balance, dist_eps,
                       ce_scale, ce_eps, num_classes):
    f32 = jnp.float32

    # ---------------- Triplet branch ----------------
    # delta  : [p, n2, c]  (pair index a=i*n+j on sublanes, feature on lanes)
    # deltat : [p, c, n2]  (feature on sublanes, pair index on lanes)
    d = delta_ref[...]
    dt = deltat_ref[...]
    dsq_col = jnp.sum(d * d, axis=2, keepdims=True)        # [p, n2, 1]
    dsq_row = jnp.sum(dt * dt, axis=1, keepdims=True)      # [p, 1, n2]
    d_col = jnp.sqrt(jnp.maximum(dsq_col, 0.0) + dist_eps)  # ap distances
    d_row = jnp.sqrt(jnp.maximum(dsq_row, 0.0) + dist_eps)  # an distances

    diff = d_col - d_row + margin                            # [p, n2, n2]
    hinge = jnp.maximum(diff, 0.0)
    if lamda == 1.0:
        powed = balance * hinge
    elif lamda == 2.0:
        bh = balance * hinge
        powed = bh * bh
    else:
        powed = jnp.where(hinge > 0.0, jnp.power(balance * hinge, lamda), 0.0)

    pmask = pmask_ref[...]                                   # [1, n2, n2]
    loss_elem = (scale * powed) * pmask
    nz_elem = pmask * (hinge > 0.0).astype(f32)              # reuse predicate

    loss_sum = jnp.sum(jnp.sum(loss_elem, axis=2, keepdims=True),
                       axis=1, keepdims=True)                # [p, 1, 1]
    cnt = jnp.sum(jnp.sum(nz_elem, axis=2, keepdims=True),
                  axis=1, keepdims=True)                     # [p, 1, 1]
    # AvgNonZeroReducer: loss_sum / (loss_num + 1e-9), 0 where loss_num == 0.
    tpavg_ref[...] = jnp.where(cnt == 0.0, 0.0, loss_sum / (cnt + 1e-9))
    cnt_ref[...] = cnt

    # ---------------- Cross-entropy branch ----------------
    # logits kept in the module's native [n, C, p] layout (no host transpose);
    # classes sit on the sublane axis, parts on lanes.
    s = logits_ref[...] * ce_scale                           # [n, C, p]
    m = jnp.max(s, axis=1, keepdims=True)                    # [n, 1, p]
    lse = m + jnp.log(jnp.sum(jnp.exp(s - m), axis=1, keepdims=True))
    cls = jax.lax.broadcasted_iota(jnp.int32, s.shape, 1)
    onehot = (cls == labels_ref[...]).astype(f32)            # labels [n, 1, 1]
    s_y = jnp.sum(s * onehot, axis=1, keepdims=True)
    s_mean = jnp.sum(s, axis=1, keepdims=True) * (1.0 / num_classes)
    # -(sum_c q_c log_softmax(s)_c), q = (1-eps)*onehot + eps/C
    per = lse - (1.0 - ce_eps) * s_y - ce_eps * s_mean       # [n, 1, p]
    ce_ref[...] = jnp.sum(per, axis=2, keepdims=True)        # [n, 1, 1]


def _fused_loss_call(delta, deltat, pair_mask, logits, labels3, *,
                     margin, scale, lamda, balance, num_classes):
    p = delta.shape[0]
    n = logits.shape[0]
    kernel = functools.partial(
        _fused_loss_kernel, margin=margin, scale=scale, lamda=lamda,
        balance=balance, dist_eps=1e-9, ce_scale=16.0, ce_eps=0.1,
        num_classes=num_classes)

    def full(shape):
        return pl.BlockSpec(shape, lambda i: (0,) * len(shape))

    return pl.pallas_call(
        kernel,
        out_shape=(jax.ShapeDtypeStruct((p, 1, 1), jnp.float32),
                   jax.ShapeDtypeStruct((p, 1, 1), jnp.float32),
                   jax.ShapeDtypeStruct((n, 1, 1), jnp.float32)),
        grid=(1,),
        in_specs=[full(delta.shape), full(deltat.shape), full(pair_mask.shape),
                  full(logits.shape), full(labels3.shape)],
        out_specs=(full((p, 1, 1)), full((p, 1, 1)), full((n, 1, 1))),
        compiler_params=pltpu.CompilerParams(
            dimension_semantics=("arbitrary",)),
    )(delta, deltat, pair_mask, logits, labels3)


# ---------------------------------------------------------------------------
# LossAggregator forward
# ---------------------------------------------------------------------------
def make_loss_aggregator(margin, scale, lamda):
    """Jitted forward matching LossAggregator(margin, scale, lamda):
    forward(TP_feat [n,c,p], CE_feat [n,C,p], labels [n], Norm_loss) ->
      ((loss_sum, TP_mean, CE_mean, Norm_loss), mined_triplets)."""
    margin = float(margin)
    scale = float(scale)
    lamda = float(lamda)
    balance = float(margin ** (1.0 / lamda) / margin)

    def forward(tp_feat, ce_feat, labels, norm_loss=0.0):
        n, c, p = tp_feat.shape
        _, num_classes, p_ce = ce_feat.shape
        n2 = n * n

        # ---- layout-only prep (tiny XLA ops feeding the single kernel) ----
        x = jnp.transpose(tp_feat, (2, 0, 1)).astype(jnp.float32)  # [p, n, c]
        x_i = jnp.repeat(x, n, axis=1)          # anchor  x[a // n]   [p,n2,c]
        x_j = jnp.tile(x, (1, n, 1))            # partner x[a %  n]   [p,n2,c]
        delta = x_i - x_j                        # [p, n2, c]
        deltat = jnp.transpose(delta, (0, 2, 1))  # [p, c, n2]

        lab = labels.astype(jnp.int32)
        same = lab[:, None] == lab[None, :]
        eye = jnp.eye(n, dtype=bool)
        pos = jnp.logical_and(same, jnp.logical_not(eye))  # matches \ diag
        neg = jnp.logical_not(same)                        # diffenc (diag False)
        pair_mask = (pos.reshape(1, n2, 1).astype(jnp.float32) *
                     neg.reshape(1, 1, n2).astype(jnp.float32))  # [1, n2, n2]

        logits = ce_feat.astype(jnp.float32)               # [n, C, p] raw layout
        labels3 = lab.reshape(n, 1, 1)

        tp_avg_pp, cnt_pp, ce_rows = _fused_loss_call(
            delta, deltat, pair_mask, logits, labels3,
            margin=margin, scale=scale, lamda=lamda, balance=balance,
            num_classes=num_classes)

        # Final 8/16-element reductions fuse with the weighted sum below.
        tp_mean = jnp.mean(tp_avg_pp)             # TP_loss.mean() over parts
        mined = jnp.sum(cnt_pp)                   # loss_num.sum()
        ce_mean = jnp.sum(ce_rows) / (n * p_ce)   # F.cross_entropy 'mean'

        norm_loss = jnp.asarray(norm_loss, jnp.float32)
        loss_sum = (tp_mean * TP_WEIGHT + ce_mean * CE_WEIGHT
                    + norm_loss * NORM_WEIGHT)
        # TODO(synk): PyTorch converts mined_triplets to a Python float via
        # .item(); there is no in-graph equivalent, so a JAX scalar is returned.
        return (loss_sum, tp_mean, ce_mean, norm_loss), mined

    return jax.jit(forward)


# ----------------------------------- main -----------------------------------
if __name__ == "__main__":
    key = jax.random.PRNGKey(0)
    k_tp, k_ce = jax.random.split(key, 2)

    N, EMB_C, NUM_CLASSES, P = 8, 32, 16, 16
    tp_feat = jax.random.normal(k_tp, (N, EMB_C, P), jnp.float32)
    ce_feat = jax.random.normal(k_ce, (N, NUM_CLASSES, P), jnp.float32)
    labels = jnp.array([0, 0, 1, 1, 2, 2, 3, 3], jnp.int32)  # positives exist

    fwd = make_loss_aggregator(margin=0.2, scale=16.0, lamda=1.0)
    (loss_sum, tp_mean, ce_mean, norm_loss), mined = fwd(tp_feat, ce_feat,
                                                         labels)
    (loss_sum, tp_mean, ce_mean, norm_loss, mined) = jax.block_until_ready(
        (loss_sum, tp_mean, ce_mean, norm_loss, mined))

    vals = jnp.stack([loss_sum, tp_mean, ce_mean, norm_loss, mined])
    assert bool(jnp.all(jnp.isfinite(vals))), vals
    assert float(tp_mean) >= 0.0
    assert float(ce_mean) >= 0.0
    assert float(mined) >= 0.0
    print("KERNEL_OK")
</pallas_src>

<mosaic_0001>
module attributes {stable_mosaic.version = 11 : i64} {
  func.func @_fused_loss_kernel(%arg0: i32, %arg1: memref<16x64x32xf32, #tpu.memory_space<vmem>>, %arg2: memref<16x32x64xf32, #tpu.memory_space<vmem>>, %arg3: memref<1x64x64xf32, #tpu.memory_space<vmem>>, %arg4: memref<8x16x16xf32, #tpu.memory_space<vmem>>, %arg5: memref<8x1x1xi32, #tpu.memory_space<vmem>>, %arg6: memref<16x1x1xf32, #tpu.memory_space<vmem>>, %arg7: memref<16x1x1xf32, #tpu.memory_space<vmem>>, %arg8: memref<8x1x1xf32, #tpu.memory_space<vmem>>) attributes {dimension_semantics = [#tpu.dimension_semantics<arbitrary>], iteration_bounds = array<i64: 1>, scalar_prefetch = 0 : i64, scratch_operands = 0 : i64, tpu.core_type = #tpu.core_type<tc>, window_params = [{pipeline_mode = #tpu.pipeline_mode<synchronous>, transform_indices = @transform_0, window_bounds = array<i64: 16, 64, 32>}, {pipeline_mode = #tpu.pipeline_mode<synchronous>, transform_indices = @transform_1, window_bounds = array<i64: 16, 32, 64>}, {pipeline_mode = #tpu.pipeline_mode<synchronous>, transform_indices = @transform_2, window_bounds = array<i64: 1, 64, 64>}, {pipeline_mode = #tpu.pipeline_mode<synchronous>, transform_indices = @transform_3, window_bounds = array<i64: 8, 16, 16>}, {pipeline_mode = #tpu.pipeline_mode<synchronous>, transform_indices = @transform_4, window_bounds = array<i64: 8, 1, 1>}, {pipeline_mode = #tpu.pipeline_mode<synchronous>, transform_indices = @transform_5, window_bounds = array<i64: 16, 1, 1>}, {pipeline_mode = #tpu.pipeline_mode<synchronous>, transform_indices = @transform_6, window_bounds = array<i64: 16, 1, 1>}, {pipeline_mode = #tpu.pipeline_mode<synchronous>, transform_indices = @transform_7, window_bounds = array<i64: 8, 1, 1>}]} {
    %c0 = arith.constant 0 : index
    %c0_0 = arith.constant 0 : index
    %c0_1 = arith.constant 0 : index
    %0 = vector.load %arg1[%c0, %c0_0, %c0_1] : memref<16x64x32xf32, #tpu.memory_space<vmem>>, vector<16x64x32xf32>
    %c0_2 = arith.constant 0 : index
    %c0_3 = arith.constant 0 : index
    %c0_4 = arith.constant 0 : index
    %1 = vector.load %arg2[%c0_2, %c0_3, %c0_4] : memref<16x32x64xf32, #tpu.memory_space<vmem>>, vector<16x32x64xf32>
    %2 = arith.mulf %0, %0 : vector<16x64x32xf32>
    %cst = arith.constant dense<0.000000e+00> : vector<16x64xf32>
    %3 = vector.multi_reduction <add>, %2, %cst [2] : vector<16x64x32xf32> to vector<16x64xf32>
    %4 = vector.shape_cast %3 : vector<16x64xf32> to vector<16x64x1xf32>
    %5 = arith.mulf %1, %1 : vector<16x32x64xf32>
    %cst_5 = arith.constant dense<0.000000e+00> : vector<16x64xf32>
    %6 = vector.multi_reduction <add>, %5, %cst_5 [1] : vector<16x32x64xf32> to vector<16x64xf32>
    %7 = vector.shape_cast %6 : vector<16x64xf32> to vector<16x1x64xf32>
    %cst_6 = arith.constant 0.000000e+00 : f32
    %8 = vector.broadcast %cst_6 : f32 to vector<16x64x1xf32>
    %9 = arith.maximumf %4, %8 : vector<16x64x1xf32>
    %cst_7 = arith.constant 9.99999971E-10 : f32
    %10 = vector.broadcast %cst_7 : f32 to vector<16x64x1xf32>
    %11 = arith.addf %9, %10 : vector<16x64x1xf32>
    %12 = math.sqrt %11 : vector<16x64x1xf32>
    %cst_8 = arith.constant 0.000000e+00 : f32
    %13 = vector.broadcast %cst_8 : f32 to vector<16x1x64xf32>
    %14 = arith.maximumf %7, %13 : vector<16x1x64xf32>
    %cst_9 = arith.constant 9.99999971E-10 : f32
    %15 = vector.broadcast %cst_9 : f32 to vector<16x1x64xf32>
    %16 = arith.addf %14, %15 : vector<16x1x64xf32>
    %17 = math.sqrt %16 : vector<16x1x64xf32>
    %18 = vector.broadcast %12 : vector<16x64x1xf32> to vector<16x64x64xf32>
    %19 = vector.broadcast %17 : vector<16x1x64xf32> to vector<16x64x64xf32>
    %20 = arith.subf %18, %19 : vector<16x64x64xf32>
    %cst_10 = arith.constant 2.000000e-01 : f32
    %21 = vector.broadcast %cst_10 : f32 to vector<16x64x64xf32>
    %22 = arith.addf %20, %21 : vector<16x64x64xf32>
    %cst_11 = arith.constant 0.000000e+00 : f32
    %23 = vector.broadcast %cst_11 : f32 to vector<16x64x64xf32>
    %24 = arith.maximumf %22, %23 : vector<16x64x64xf32>
    %cst_12 = arith.constant 1.000000e+00 : f32
    %25 = vector.broadcast %cst_12 : f32 to vector<16x64x64xf32>
    %26 = arith.mulf %25, %24 : vector<16x64x64xf32>
    %c0_13 = arith.constant 0 : index
    %c0_14 = arith.constant 0 : index
    %c0_15 = arith.constant 0 : index
    %27 = vector.load %arg3[%c0_13, %c0_14, %c0_15] : memref<1x64x64xf32, #tpu.memory_space<vmem>>, vector<1x64x64xf32>
    %cst_16 = arith.constant 1.600000e+01 : f32
    %28 = vector.broadcast %cst_16 : f32 to vector<16x64x64xf32>
    %29 = arith.mulf %28, %26 : vector<16x64x64xf32>
    %30 = vector.broadcast %27 : vector<1x64x64xf32> to vector<16x64x64xf32>
    %31 = arith.mulf %29, %30 : vector<16x64x64xf32>
    %cst_17 = arith.constant 0.000000e+00 : f32
    %32 = vector.broadcast %cst_17 : f32 to vector<16x64x64xf32>
    %33 = arith.cmpf ogt, %24, %32 : vector<16x64x64xf32>
    %34 = arith.extui %33 : vector<16x64x64xi1> to vector<16x64x64xi32>
    %35 = arith.sitofp %34 : vector<16x64x64xi32> to vector<16x64x64xf32>
    %36 = vector.broadcast %27 : vector<1x64x64xf32> to vector<16x64x64xf32>
    %37 = arith.mulf %36, %35 : vector<16x64x64xf32>
    %cst_18 = arith.constant dense<0.000000e+00> : vector<16x64xf32>
    %38 = vector.multi_reduction <add>, %31, %cst_18 [2] : vector<16x64x64xf32> to vector<16x64xf32>
    %39 = vector.shape_cast %38 : vector<16x64xf32> to vector<16x64x1xf32>
    %cst_19 = arith.constant dense<0.000000e+00> : vector<16x1xf32>
    %40 = vector.multi_reduction <add>, %39, %cst_19 [1] : vector<16x64x1xf32> to vector<16x1xf32>
    %41 = vector.shape_cast %40 : vector<16x1xf32> to vector<16x1x1xf32>
    %cst_20 = arith.constant dense<0.000000e+00> : vector<16x64xf32>
    %42 = vector.multi_reduction <add>, %37, %cst_20 [2] : vector<16x64x64xf32> to vector<16x64xf32>
    %43 = vector.shape_cast %42 : vector<16x64xf32> to vector<16x64x1xf32>
    %cst_21 = arith.constant dense<0.000000e+00> : vector<16x1xf32>
    %44 = vector.multi_reduction <add>, %43, %cst_21 [1] : vector<16x64x1xf32> to vector<16x1xf32>
    %45 = vector.shape_cast %44 : vector<16x1xf32> to vector<16x1x1xf32>
    %cst_22 = arith.constant 0.000000e+00 : f32
    %46 = vector.broadcast %cst_22 : f32 to vector<16x1x1xf32>
    %47 = arith.cmpf oeq, %45, %46 : vector<16x1x1xf32>
    %cst_23 = arith.constant 9.99999971E-10 : f32
    %48 = vector.broadcast %cst_23 : f32 to vector<16x1x1xf32>
    %49 = arith.addf %45, %48 : vector<16x1x1xf32>
    %50 = arith.divf %41, %49 : vector<16x1x1xf32>
    %cst_24 = arith.constant 0.000000e+00 : f32
    %51 = vector.broadcast %cst_24 : f32 to vector<16x1x1xf32>
    %52 = arith.select %47, %51, %50 : vector<16x1x1xi1>, vector<16x1x1xf32>
    %c0_25 = arith.constant 0 : index
    %c0_26 = arith.constant 0 : index
    %c0_27 = arith.constant 0 : index
    %53 = vector.load %arg6[%c0_25, %c0_26, %c0_27] : memref<16x1x1xf32, #tpu.memory_space<vmem>>, vector<16x1x1xf32>
    tpu.vector_store %arg6[%c0_25, %c0_26, %c0_27], %52 {strides = array<i32>} : memref<16x1x1xf32, #tpu.memory_space<vmem>>, vector<16x1x1xf32>,
    %c0_28 = arith.constant 0 : index
    %c0_29 = arith.constant 0 : index
    %c0_30 = arith.constant 0 : index
    %54 = vector.load %arg7[%c0_28, %c0_29, %c0_30] : memref<16x1x1xf32, #tpu.memory_space<vmem>>, vector<16x1x1xf32>
    tpu.vector_store %arg7[%c0_28, %c0_29, %c0_30], %45 {strides = array<i32>} : memref<16x1x1xf32, #tpu.memory_space<vmem>>, vector<16x1x1xf32>,
    %c0_31 = arith.constant 0 : index
    %c0_32 = arith.constant 0 : index
    %c0_33 = arith.constant 0 : index
    %55 = vector.load %arg4[%c0_31, %c0_32, %c0_33] : memref<8x16x16xf32, #tpu.memory_space<vmem>>, vector<8x16x16xf32>
    %cst_34 = arith.constant 1.600000e+01 : f32
    %56 = vector.broadcast %cst_34 : f32 to vector<8x16x16xf32>
    %57 = arith.mulf %55, %56 : vector<8x16x16xf32>
    %cst_35 = arith.constant dense<0xFF800000> : vector<8x16xf32>
    %58 = vector.multi_reduction <maximumf>, %57, %cst_35 [1] : vector<8x16x16xf32> to vector<8x16xf32>
    %59 = vector.shape_cast %58 : vector<8x16xf32> to vector<8x1x16xf32>
    %60 = vector.broadcast %59 : vector<8x1x16xf32> to vector<8x16x16xf32>
    %61 = arith.subf %57, %60 : vector<8x16x16xf32>
    %62 = math.exp %61 : vector<8x16x16xf32>
    %cst_36 = arith.constant dense<0.000000e+00> : vector<8x16xf32>
    %63 = vector.multi_reduction <add>, %62, %cst_36 [1] : vector<8x16x16xf32> to vector<8x16xf32>
    %64 = vector.shape_cast %63 : vector<8x16xf32> to vector<8x1x16xf32>
    %65 = math.log %64 : vector<8x1x16xf32>
    %66 = arith.addf %59, %65 : vector<8x1x16xf32>
    %67 = tpu.iota {dimensions = array<i32: 1>} : vector<8x16x16xi32>
    %c0_37 = arith.constant 0 : index
    %c0_38 = arith.constant 0 : index
    %c0_39 = arith.constant 0 : index
    %68 = vector.load %arg5[%c0_37, %c0_38, %c0_39] : memref<8x1x1xi32, #tpu.memory_space<vmem>>, vector<8x1x1xi32>
    %69 = vector.broadcast %68 : vector<8x1x1xi32> to vector<8x16x16xi32>
    %70 = arith.cmpi eq, %67, %69 : vector<8x16x16xi32>
    %71 = arith.extui %70 : vector<8x16x16xi1> to vector<8x16x16xi32>
    %72 = arith.sitofp %71 : vector<8x16x16xi32> to vector<8x16x16xf32>
    %73 = arith.mulf %57, %72 : vector<8x16x16xf32>
    %cst_40 = arith.constant dense<0.000000e+00> : vector<8x16xf32>
    %74 = vector.multi_reduction <add>, %73, %cst_40 [1] : vector<8x16x16xf32> to vector<8x16xf32>
    %75 = vector.shape_cast %74 : vector<8x16xf32> to vector<8x1x16xf32>
    %cst_41 = arith.constant dense<0.000000e+00> : vector<8x16xf32>
    %76 = vector.multi_reduction <add>, %57, %cst_41 [1] : vector<8x16x16xf32> to vector<8x16xf32>
    %77 = vector.shape_cast %76 : vector<8x16xf32> to vector<8x1x16xf32>
    %cst_42 = arith.constant 6.250000e-02 : f32
    %78 = vector.broadcast %cst_42 : f32 to vector<8x1x16xf32>
    %79 = arith.mulf %77, %78 : vector<8x1x16xf32>
    %cst_43 = arith.constant 0.899999976 : f32
    %80 = vector.broadcast %cst_43 : f32 to vector<8x1x16xf32>
    %81 = arith.mulf %80, %75 : vector<8x1x16xf32>
    %82 = arith.subf %66, %81 : vector<8x1x16xf32>
    %cst_44 = arith.constant 1.000000e-01 : f32
    %83 = vector.broadcast %cst_44 : f32 to vector<8x1x16xf32>
    %84 = arith.mulf %83, %79 : vector<8x1x16xf32>
    %85 = arith.subf %82, %84 : vector<8x1x16xf32>
    %cst_45 = arith.constant dense<0.000000e+00> : vector<8x1xf32>
    %86 = vector.multi_reduction <add>, %85, %cst_45 [2] : vector<8x1x16xf32> to vector<8x1xf32>
    %87 = vector.shape_cast %86 : vector<8x1xf32> to vector<8x1x1xf32>
    %c0_46 = arith.constant 0 : index
    %c0_47 = arith.constant 0 : index
    %c0_48 = arith.constant 0 : index
    %88 = vector.load %arg8[%c0_46, %c0_47, %c0_48] : memref<8x1x1xf32, #tpu.memory_space<vmem>>, vector<8x1x1xf32>
    tpu.vector_store %arg8[%c0_46, %c0_47, %c0_48], %87 {strides = array<i32>} : memref<8x1x1xf32, #tpu.memory_space<vmem>>, vector<8x1x1xf32>,
    return
  }
  func.func @transform_0(%arg0: i32) -> (i32, i32, i32) {
    %c0_i32 = arith.constant 0 : i32
    %c0_i32_0 = arith.constant 0 : i32
    %c0_i32_1 = arith.constant 0 : i32
    %c0_i32_2 = arith.constant 0 : i32
    return %c0_i32, %c0_i32_0, %c0_i32_1 : i32, i32, i32
  }
  func.func @transform_1(%arg0: i32) -> (i32, i32, i32) {
    %c0_i32 = arith.constant 0 : i32
    %c0_i32_0 = arith.constant 0 : i32
    %c0_i32_1 = arith.constant 0 : i32
    %c0_i32_2 = arith.constant 0 : i32
    return %c0_i32, %c0_i32_0, %c0_i32_1 : i32, i32, i32
  }
  func.func @transform_2(%arg0: i32) -> (i32, i32, i32) {
    %c0_i32 = arith.constant 0 : i32
    %c0_i32_0 = arith.constant 0 : i32
    %c0_i32_1 = arith.constant 0 : i32
    %c0_i32_2 = arith.constant 0 : i32
    return %c0_i32, %c0_i32_0, %c0_i32_1 : i32, i32, i32
  }
  func.func @transform_3(%arg0: i32) -> (i32, i32, i32) {
    %c0_i32 = arith.constant 0 : i32
    %c0_i32_0 = arith.constant 0 : i32
    %c0_i32_1 = arith.constant 0 : i32
    %c0_i32_2 = arith.constant 0 : i32
    return %c0_i32, %c0_i32_0, %c0_i32_1 : i32, i32, i32
  }
  func.func @transform_4(%arg0: i32) -> (i32, i32, i32) {
    %c0_i32 = arith.constant 0 : i32
    %c0_i32_0 = arith.constant 0 : i32
    %c0_i32_1 = arith.constant 0 : i32
    %c0_i32_2 = arith.constant 0 : i32
    return %c0_i32, %c0_i32_0, %c0_i32_1 : i32, i32, i32
  }
  func.func @transform_5(%arg0: i32) -> (i32, i32, i32) {
    %c0_i32 = arith.constant 0 : i32
    %c0_i32_0 = arith.constant 0 : i32
    %c0_i32_1 = arith.constant 0 : i32
    %c0_i32_2 = arith.constant 0 : i32
    return %c0_i32, %c0_i32_0, %c0_i32_1 : i32, i32, i32
  }
  func.func @transform_6(%arg0: i32) -> (i32, i32, i32) {
    %c0_i32 = arith.constant 0 : i32
    %c0_i32_0 = arith.constant 0 : i32
    %c0_i32_1 = arith.constant 0 : i32
    %c0_i32_2 = arith.constant 0 : i32
    return %c0_i32, %c0_i32_0, %c0_i32_1 : i32, i32, i32
  }
  func.func @transform_7(%arg0: i32) -> (i32, i32, i32) {
    %c0_i32 = arith.constant 0 : i32
    %c0_i32_0 = arith.constant 0 : i32
    %c0_i32_1 = arith.constant 0 : i32
    %c0_i32_2 = arith.constant 0 : i32
    return %c0_i32, %c0_i32_0, %c0_i32_1 : i32, i32, i32
  }
}

</mosaic_0001>

<bundles_post_ra>
// kernel: forward.1
= control target key start
LH: loop header
LB: loop body
LE: loop exit
PB: predicated region body
PF: predicated region fallthrough
CT: control target
= control target key end

     0   :  { %vm343_vm0 = vcmask 261120   ;;  %vm792_vm1 = vcmask 523264   ;;  %s12084_s0 = inlined_call_operand.vmem [shape: f32[16,64,32], index: 0, kind: input, shape index: {}]   ;;  %s12085_s1 = inlined_call_operand.vmem [shape: f32[16,32,64], index: 1, kind: input, shape index: {}]   ;;  %s12086_s2 = inlined_call_operand.vmem [shape: f32[1,64,64], index: 2, kind: input, shape index: {}]   ;;  %s12087_s6 = inlined_call_operand.vmem [shape: f32[16,1,1], index: 6, kind: output, shape index: {1}]   ;;  %s12088_s4 = inlined_call_operand.vmem [shape: s32[8,1,1], index: 4, kind: input, shape index: {}]   ;;  %s12089_s5 = inlined_call_operand.vmem [shape: f32[16,1,1], index: 5, kind: output, shape index: {0}]   ;;  %s12090_s3 = inlined_call_operand.vmem [shape: f32[8,16,16], index: 3, kind: input, shape index: {}]   ;;  %s12091_s7 = inlined_call_operand.vmem [shape: f32[8,1,1], index: 7, kind: output, shape index: {2}]  }
   0x1   :  { %v25_v0 = vld [vmem:[%s12084_s0 + $0x10] sm:$0xff]  ;;  %v23_v1 = vld [vmem:[%s12084_s0] sm:$0xff]  ;;  %v26_v2 = vld [vmem:[%s12084_s0 + $0x18] sm:$0xff] }
   0x2   :  { %v217_v3 = vmul.f32 %v25_v0, %v25_v0  ;;  %v215_v4 = vmul.f32 %v23_v1, %v23_v1  ;;  %v218_v5 = vmul.f32 %v26_v2, %v26_v2  ;;  %v24_v6 = vld [vmem:[%s12084_s0 + $0x8] sm:$0xff]  ;;  %v27_v9 = vld [vmem:[%s12084_s0 + $0x20] sm:$0xff]  ;;  %v30_v16 = vld [vmem:[%s12084_s0 + $0x38] sm:$0xff] }
   0x3   :  { %v216_v7 = vmul.f32 %v24_v6, %v24_v6  ;;  %v28_v8 = vld [vmem:[%s12084_s0 + $0x28] sm:$0xff]  ;;  %v219_v15 = vmul.f32 %v27_v9, %v27_v9  ;;  %v29_v17 = vld [vmem:[%s12084_s0 + $0x30] sm:$0xff]  ;;  %v222_v20 = vmul.f32 %v30_v16, %v30_v16  ;;  %v31_v23 = vld [vmem:[%s12084_s0 + $0x40] sm:$0xff] }
   0x4   :  { %v350_v10 = vsel %vm343_vm0, %v217_v3, 0.0  ;;  %v344_v11 = vsel %vm343_vm0, %v215_v4, 0.0  ;;  %v353_v12 = vsel %vm343_vm0, %v218_v5, 0.0  ;;  %v220_v14 = vmul.f32 %v28_v8, %v28_v8  ;;  %v32_v22 = vld [vmem:[%s12084_s0 + $0x48] sm:$0xff]  ;;  %v34_v28 = vld [vmem:[%s12084_s0 + $0x58] sm:$0xff]  ;;  %v33_v29 = vld [vmem:[%s12084_s0 + $0x50] sm:$0xff] }
   0x5   :  { %351 = vadd.xlane.f32.xlu1 %v350_v10  ;;  %345 = vadd.xlane.f32.xlu0 %v344_v11  ;;  %v347_v13 = vsel %vm343_vm0, %v216_v7, 0.0  ;;  %v356_v19 = vsel %vm343_vm0, %v219_v15, 0.0  ;;  %v221_v21 = vmul.f32 %v29_v17, %v29_v17  ;;  %v365_v24 = vsel %vm343_vm0, %v222_v20, 0.0  ;;  %v36_v34 = vld [vmem:[%s12084_s0 + $0x68] sm:$0xff]  ;;  %v35_v35 = vld [vmem:[%s12084_s0 + $0x60] sm:$0xff]  ;;  %v38_v40 = vld [vmem:[%s12084_s0 + $0x78] sm:$0xff] }
   0x6   :  { %v359_v18 = vsel %vm343_vm0, %v220_v14, 0.0  ;;  %v224_v26 = vmul.f32 %v32_v22, %v32_v22  ;;  %v223_v27 = vmul.f32 %v31_v23, %v31_v23  ;;  %v226_v32 = vmul.f32 %v34_v28, %v34_v28  ;;  %v37_v41 = vld [vmem:[%s12084_s0 + $0x70] sm:$0xff]  ;;  %v40_v46 = vld [vmem:[%s12084_s0 + $0x88] sm:$0xff]  ;;  %v39_v47 = vld [vmem:[%s12084_s0 + $0x80] sm:$0xff] }
   0x7   :  { %v362_v25 = vsel %vm343_vm0, %v221_v21, 0.0  ;;  %v225_v33 = vmul.f32 %v33_v29, %v33_v29  ;;  %v228_v38 = vmul.f32 %v36_v34, %v36_v34  ;;  %v227_v39 = vmul.f32 %v35_v35, %v35_v35  ;;  %v42_v52 = vld [vmem:[%s12084_s0 + $0x98] sm:$0xff]  ;;  %v41_v53 = vld [vmem:[%s12084_s0 + $0x90] sm:$0xff]  ;;  %v44_v58 = vld [vmem:[%s12084_s0 + $0xa8] sm:$0xff] }
   0x8   :  { %v371_v30 = vsel %vm343_vm0, %v224_v26, 0.0  ;;  %v368_v31 = vsel %vm343_vm0, %v223_v27, 0.0  ;;  %v377_v36 = vsel %vm343_vm0, %v226_v32, 0.0  ;;  %v230_v44 = vmul.f32 %v38_v40, %v38_v40  ;;  %v43_v59 = vld [vmem:[%s12084_s0 + $0xa0] sm:$0xff]  ;;  %v46_v0 = vld [vmem:[%s12084_s0 + $0xb8] sm:$0xff]  ;;  %v45_v1 = vld [vmem:[%s12084_s0 + $0xb0] sm:$0xff] }
   0x9   :  { %354 = vadd.xlane.f32.xlu1 %v353_v12  ;;  %348 = vadd.xlane.f32.xlu0 %v347_v13  ;;  %v374_v37 = vsel %vm343_vm0, %v225_v33, 0.0  ;;  %v383_v42 = vsel %vm343_vm0, %v228_v38, 0.0  ;;  %v380_v43 = vsel %vm343_vm0, %v227_v39, 0.0  ;;  %v229_v45 = vmul.f32 %v37_v41, %v37_v41  ;;  %v48_v6 = vld [vmem:[%s12084_s0 + $0xc8] sm:$0xff]  ;;  %v47_v7 = vld [vmem:[%s12084_s0 + $0xc0] sm:$0xff]  ;;  %v50_v12 = vld [vmem:[%s12084_s0 + $0xd8] sm:$0xff] }
   0xa   :  { %v389_v48 = vsel %vm343_vm0, %v230_v44, 0.0  ;;  %v232_v50 = vmul.f32 %v40_v46, %v40_v46  ;;  %v231_v51 = vmul.f32 %v39_v47, %v39_v47  ;;  %v234_v56 = vmul.f32 %v42_v52, %v42_v52  ;;  %v49_v13 = vld [vmem:[%s12084_s0 + $0xd0] sm:$0xff] }
   0xb   :  { %v386_v49 = vsel %vm343_vm0, %v229_v45, 0.0  ;;  %v233_v57 = vmul.f32 %v41_v53, %v41_v53  ;;  %v236_v62 = vmul.f32 %v44_v58, %v44_v58  ;;  %v235_v63 = vmul.f32 %v43_v59, %v43_v59 }
   0xc   :  { %v395_v54 = vsel %vm343_vm0, %v232_v50, 0.0  ;;  %v392_v55 = vsel %vm343_vm0, %v231_v51, 0.0  ;;  %v401_v60 = vsel %vm343_vm0, %v234_v56, 0.0  ;;  %v238_v4 = vmul.f32 %v46_v0, %v46_v0 }
   0xd   :  { %360 = vadd.xlane.f32.xlu1 %v359_v18  ;;  %357 = vadd.xlane.f32.xlu0 %v356_v19  ;;  %v398_v61 = vsel %vm343_vm0, %v233_v57, 0.0  ;;  %v407_v2 = vsel %vm343_vm0, %v236_v62, 0.0  ;;  %v404_v3 = vsel %vm343_vm0, %v235_v63, 0.0  ;;  %v237_v5 = vmul.f32 %v45_v1, %v45_v1  ;;  %v52_v18 = vld [vmem:[%s12084_s0 + $0xe8] sm:$0xff]  ;;  %v51_v19 = vld [vmem:[%s12084_s0 + $0xe0] sm:$0xff] }
   0xe   :  { %v413_v8 = vsel %vm343_vm0, %v238_v4, 0.0  ;;  %v240_v10 = vmul.f32 %v48_v6, %v48_v6  ;;  %v239_v11 = vmul.f32 %v47_v7, %v47_v7  ;;  %v242_v16 = vmul.f32 %v50_v12, %v50_v12 }
   0xf   :  { %v410_v9 = vsel %vm343_vm0, %v237_v5, 0.0  ;;  %v241_v17 = vmul.f32 %v49_v13, %v49_v13  ;;  %v244_v22 = vmul.f32 %v52_v18, %v52_v18  ;;  %v243_v23 = vmul.f32 %v51_v19, %v51_v19  ;;  %v155_v18 = vld [vmem:[%s12085_s1 + $0x20] sm:$0xff]  ;;  %v156_v19 = vld [vmem:[%s12085_s1 + $0x28] sm:$0xff] }
  0x10   :  { %v419_v14 = vsel %vm343_vm0, %v240_v10, 0.0  ;;  %v416_v15 = vsel %vm343_vm0, %v239_v11, 0.0  ;;  %v425_v20 = vsel %vm343_vm0, %v242_v16, 0.0  ;;  %v151_v16 = vld [vmem:[%s12085_s1] sm:$0xff] }
  0x11   :  { %366 = vadd.xlane.f32.xlu1 %v365_v24  ;;  %363 = vadd.xlane.f32.xlu0 %v362_v25  ;;  %v422_v21 = vsel %vm343_vm0, %v241_v17, 0.0  ;;  %v54_v24 = vld [vmem:[%s12084_s0 + $0xf8] sm:$0xff]  ;;  %v53_v25 = vld [vmem:[%s12084_s0 + $0xf0] sm:$0xff]  ;;  %v431_v26 = vsel %vm343_vm0, %v244_v22, 0.0  ;;  %v428_v27 = vsel %vm343_vm0, %v243_v23, 0.0  ;;  %v152_v17 = vld [vmem:[%s12085_s1 + $0x8] sm:$0xff] }
  0x12   :  { %v246_v28 = vmul.f32 %v54_v24, %v54_v24  ;;  %v245_v29 = vmul.f32 %v53_v25, %v53_v25  ;;  %v74_v24 = vld [vmem:[%s12084_s0 + $0x198] sm:$0xff]  ;;  %v73_v25 = vld [vmem:[%s12084_s0 + $0x190] sm:$0xff] }
  0x14   :  { %v437_v32 = vsel %vm343_vm0, %v246_v28, 0.0  ;;  %v434_v33 = vsel %vm343_vm0, %v245_v29, 0.0  ;;  %v153_v28 = vld [vmem:[%s12085_s1 + $0x10] sm:$0xff]  ;;  %v732_v29 = vmul.f32 %v155_v18, %v155_v18 }
  0x15   :  { %372 = vadd.xlane.f32.xlu1 %v371_v30  ;;  %369 = vadd.xlane.f32.xlu0 %v368_v31  ;;  %v56_v30 = vld [vmem:[%s12084_s0 + $0x108] sm:$0xff]  ;;  %v55_v31 = vld [vmem:[%s12084_s0 + $0x100] sm:$0xff] }
  0x16   :  { %v248_v34 = vmul.f32 %v56_v30, %v56_v30  ;;  %v247_v35 = vmul.f32 %v55_v31, %v55_v31  ;;  %v733_v30 = vmul.f32 %v156_v19, %v156_v19  ;;  %v157_v31 = vld [vmem:[%s12085_s1 + $0x30] sm:$0xff]  ;;  %v162_v19 = vld [vmem:[%s12085_s1 + $0x58] sm:$0xff] }
  0x18   :  { %v443_v38 = vsel %vm343_vm0, %v248_v34, 0.0  ;;  %v440_v39 = vsel %vm343_vm0, %v247_v35, 0.0  ;;  %v265_v34 = vmul.f32 %v73_v25, %v73_v25 }
  0x19   :  { %378 = vadd.xlane.f32.xlu1 %v377_v36  ;;  %375 = vadd.xlane.f32.xlu0 %v374_v37  ;;  %v58_v36 = vld [vmem:[%s12084_s0 + $0x118] sm:$0xff]  ;;  %v57_v37 = vld [vmem:[%s12084_s0 + $0x110] sm:$0xff] }
  0x1a   :  { %v250_v40 = vmul.f32 %v58_v36, %v58_v36  ;;  %v249_v41 = vmul.f32 %v57_v37, %v57_v37  ;;  %v76_v36 = vld [vmem:[%s12084_s0 + $0x1a8] sm:$0xff]  ;;  %v75_v37 = vld [vmem:[%s12084_s0 + $0x1a0] sm:$0xff] }
  0x1c   :  { %v449_v44 = vsel %vm343_vm0, %v250_v40, 0.0  ;;  %v446_v45 = vsel %vm343_vm0, %v249_v41, 0.0  ;;  %v154_v41 = vld [vmem:[%s12085_s1 + $0x18] sm:$0xff] }
  0x1d   :  { %384 = vadd.xlane.f32.xlu1 %v383_v42  ;;  %381 = vadd.xlane.f32.xlu0 %v380_v43  ;;  %v60_v42 = vld [vmem:[%s12084_s0 + $0x128] sm:$0xff]  ;;  %v59_v43 = vld [vmem:[%s12084_s0 + $0x120] sm:$0xff] }
  0x1e   :  { %v252_v46 = vmul.f32 %v60_v42, %v60_v42  ;;  %v251_v47 = vmul.f32 %v59_v43, %v59_v43  ;;  %v734_v42 = vmul.f32 %v157_v31, %v157_v31  ;;  %v806_v43 = vsel %vm792_vm1, %v732_v29, 0.0  ;;  %v84_v29 = vld [vmem:[%s12084_s0 + $0x1e8] sm:$0xff]  ;;  %v83_v31 = vld [vmem:[%s12084_s0 + $0x1e0] sm:$0xff] }
  0x20   :  { %v455_v50 = vsel %vm343_vm0, %v252_v46, 0.0  ;;  %v452_v51 = vsel %vm343_vm0, %v251_v47, 0.0  ;;  %v268_v47 = vmul.f32 %v76_v36, %v76_v36 }
  0x21   :  { %390 = vadd.xlane.f32.xlu1 %v389_v48  ;;  %387 = vadd.xlane.f32.xlu0 %v386_v49  ;;  %v62_v48 = vld [vmem:[%s12084_s0 + $0x138] sm:$0xff]  ;;  %v61_v49 = vld [vmem:[%s12084_s0 + $0x130] sm:$0xff] }
  0x22   :  { %v254_v52 = vmul.f32 %v62_v48, %v62_v48  ;;  %v253_v53 = vmul.f32 %v61_v49, %v61_v49  ;;  %v267_v48 = vmul.f32 %v75_v37, %v75_v37  ;;  %v78_v49 = vld [vmem:[%s12084_s0 + $0x1b8] sm:$0xff] }
  0x24   :  { %v461_v56 = vsel %vm343_vm0, %v254_v52, 0.0  ;;  %v458_v57 = vsel %vm343_vm0, %v253_v53, 0.0  ;;  %v731_v52 = vmul.f32 %v154_v41, %v154_v41  ;;  %v86_v41 = vld [vmem:[%s12084_s0 + $0x1f8] sm:$0xff] }
  0x25   :  { %396 = vadd.xlane.f32.xlu1 %v395_v54  ;;  %393 = vadd.xlane.f32.xlu0 %v392_v55  ;;  %v64_v54 = vld [vmem:[%s12084_s0 + $0x148] sm:$0xff]  ;;  %v63_v55 = vld [vmem:[%s12084_s0 + $0x140] sm:$0xff] }
  0x26   :  { %v256_v58 = vmul.f32 %v64_v54, %v64_v54  ;;  %v255_v59 = vmul.f32 %v63_v55, %v63_v55  ;;  %v159_v55 = vld [vmem:[%s12085_s1 + $0x40] sm:$0xff] }
  0x28   :  { %v467_v62 = vsel %vm343_vm0, %v256_v58, 0.0  ;;  %v464_v63 = vsel %vm343_vm0, %v255_v59, 0.0  ;;  %v809_v59 = vsel %vm792_vm1, %v734_v42, 0.0 }
  0x29   :  { %402 = vadd.xlane.f32.xlu1 %v401_v60  ;;  %399 = vadd.xlane.f32.xlu0 %v398_v61  ;;  %v66_v60 = vld [vmem:[%s12084_s0 + $0x158] sm:$0xff]  ;;  %v65_v61 = vld [vmem:[%s12084_s0 + $0x150] sm:$0xff] }
  0x2a   :  { %v258_v0 = vmul.f32 %v66_v60, %v66_v60  ;;  %v257_v1 = vmul.f32 %v65_v61, %v65_v61  ;;  %v270_v60 = vmul.f32 %v78_v49, %v78_v49  ;;  %v503_v61 = vsel %vm343_vm0, %v268_v47, 0.0  ;;  %v165_v47 = vld [vmem:[%s12085_s1 + $0x70] sm:$0xff] }
  0x2c   :  { %v473_v4 = vsel %vm343_vm0, %v258_v0, 0.0  ;;  %v470_v5 = vsel %vm343_vm0, %v257_v1, 0.0  ;;  %v500_v1 = vsel %vm343_vm0, %v267_v48, 0.0  ;;  %v278_v48 = vmul.f32 %v86_v41, %v86_v41  ;;  %v102_v41 = vld [vmem:[%s12084_s0 + $0x278] sm:$0xff] }
  0x2d   :  { %408 = vadd.xlane.f32.xlu1 %v407_v2  ;;  %405 = vadd.xlane.f32.xlu0 %v404_v3  ;;  %v68_v2 = vld [vmem:[%s12084_s0 + $0x168] sm:$0xff]  ;;  %v67_v3 = vld [vmem:[%s12084_s0 + $0x160] sm:$0xff] }
  0x2e   :  { %v260_v6 = vmul.f32 %v68_v2, %v68_v2  ;;  %v259_v7 = vmul.f32 %v67_v3, %v67_v3  ;;  %v798_v3 = vsel %vm792_vm1, %v731_v52, 0.0 }
  0x30   :  { %v479_v11 = vsel %vm343_vm0, %v260_v6, 0.0  ;;  %v476_v12 = vsel %vm343_vm0, %v259_v7, 0.0  ;;  %v80_v6 = vld [vmem:[%s12084_s0 + $0x1c8] sm:$0xff]  ;;  %v79_v7 = vld [vmem:[%s12084_s0 + $0x1c0] sm:$0xff] }
  0x31   :  { %414 = vadd.xlane.f32.xlu1 %v413_v8  ;;  %411 = vadd.xlane.f32.xlu0 %v410_v9  ;;  %v70_v8 = vld [vmem:[%s12084_s0 + $0x178] sm:$0xff]  ;;  %v69_v9 = vld [vmem:[%s12084_s0 + $0x170] sm:$0xff] }
  0x32   :  { %v262_v10 = vmul.f32 %v70_v8, %v70_v8  ;;  %v261_v13 = vmul.f32 %v69_v9, %v69_v9  ;;  %v509_v9 = vsel %vm343_vm0, %v270_v60, 0.0  ;;  %v166_v60 = vld [vmem:[%s12085_s1 + $0x78] sm:$0xff] }
  0x34   :  { %v482_v22 = vsel %vm343_vm0, %v261_v13, 0.0 }
  0x35   :  { %420 = vadd.xlane.f32.xlu1 %v419_v14  ;;  %417 = vadd.xlane.f32.xlu0 %v416_v15  ;;  %v72_v14 = vld [vmem:[%s12084_s0 + $0x188] sm:$0xff]  ;;  %v71_v15 = vld [vmem:[%s12084_s0 + $0x180] sm:$0xff] }
  0x36   :  { %v263_v23 = vmul.f32 %v71_v15, %v71_v15  ;;  %v272_v15 = vmul.f32 %v80_v6, %v80_v6  ;;  %v743_v6 = vmul.f32 %v166_v60, %v166_v60 }
  0x38   :  { %v488_v35 = vsel %vm343_vm0, %v263_v23, 0.0 }
  0x39   :  { %426 = vadd.xlane.f32.xlu1 %v425_v20  ;;  %423 = vadd.xlane.f32.xlu0 %v422_v21  ;;  %v485_v20 = vsel %vm343_vm0, %v262_v10, 0.0  ;;  %v264_v21 = vmul.f32 %v72_v14, %v72_v14 }
  0x3d   :  { %432 = vadd.xlane.f32.xlu1 %v431_v26  ;;  %429 = vadd.xlane.f32.xlu0 %v428_v27  ;;  %v728_v26 = vmul.f32 %v151_v16, %v151_v16  ;;  %v729_v27 = vmul.f32 %v152_v17, %v152_v17  ;;  %v271_v16 = vmul.f32 %v79_v7, %v79_v7  ;;  %v82_v17 = vld [vmem:[%s12084_s0 + $0x1d8] sm:$0xff] }
  0x3f   :  { %v794_v40 = vsel %vm792_vm1, %v729_v27, 0.0  ;;  %v512_v27 = vsel %vm343_vm0, %v271_v16, 0.0  ;;  %v94_v16 = vld [vmem:[%s12084_s0 + $0x238] sm:$0xff] }
  0x41   :  { %438 = vadd.xlane.f32.xlu1 %v437_v32  ;;  %435 = vadd.xlane.f32.xlu0 %v434_v33  ;;  %v491_v32 = vsel %vm343_vm0, %v264_v21, 0.0  ;;  %v266_v33 = vmul.f32 %v74_v24, %v74_v24  ;;  %v739_v24 = vmul.f32 %v162_v19, %v162_v19  ;;  %v93_v19 = vld [vmem:[%s12084_s0 + $0x230] sm:$0xff] }
  0x43   :  { %v497_v46 = vsel %vm343_vm0, %v266_v33, 0.0  ;;  %v163_v33 = vld [vmem:[%s12085_s1 + $0x60] sm:$0xff]  ;;  %v824_v37 = vsel %vm792_vm1, %v739_v24, 0.0 }
  0x45   :  { %444 = vadd.xlane.f32.xlu1 %v443_v38  ;;  %441 = vadd.xlane.f32.xlu0 %v440_v39  ;;  %v730_v38 = vmul.f32 %v153_v28, %v153_v28  ;;  %v793_v39 = vsel %vm792_vm1, %v728_v26, 0.0  ;;  %v515_v26 = vsel %vm343_vm0, %v272_v15, 0.0  ;;  %v91_v15 = vld [vmem:[%s12084_s0 + $0x220] sm:$0xff] }
  0x47   :  { %v796_v53 = vsel %vm792_vm1, %v730_v38, 0.0 }
  0x49   :  { %450 = vadd.xlane.f32.xlu1 %v449_v44  ;;  %447 = vadd.xlane.f32.xlu0 %v446_v45  ;;  %v807_v44 = vsel %vm792_vm1, %v733_v30, 0.0  ;;  %v158_v45 = vld [vmem:[%s12085_s1 + $0x38] sm:$0xff] }
  0x4a   :  { %v808_v54 = vadd.f32 %v807_v44, %v806_v43  ;;  %v735_v58 = vmul.f32 %v158_v45, %v158_v45  ;;  %v85_v43 = vld [vmem:[%s12084_s0 + $0x1f0] sm:$0xff]  ;;  %v740_v44 = vmul.f32 %v163_v33, %v163_v33 }
  0x4b   :  { %v277_v52 = vmul.f32 %v85_v43, %v85_v43 }
  0x4c   :  { %v811_v8 = vsel %vm792_vm1, %v735_v58, 0.0 }
  0x4d   :  { %456 = vadd.xlane.f32.xlu1 %v455_v50  ;;  %453 = vadd.xlane.f32.xlu0 %v452_v51  ;;  %v795_v50 = vadd.f32 %v794_v40, %v793_v39  ;;  %v494_v51 = vsel %vm343_vm0, %v265_v34, 0.0  ;;  %v164_v34 = vld [vmem:[%s12085_s1 + $0x68] sm:$0xff]  ;;  %v275_v40 = vmul.f32 %v83_v31, %v83_v31  ;;  %v285_v31 = vmul.f32 %v93_v19, %v93_v19 }
  0x4e   :  { %v741_v45 = vmul.f32 %v164_v34, %v164_v34 }
  0x50   :  { %v833_v58 = vsel %vm792_vm1, %v741_v45, 0.0 }
  0x51   :  { %462 = vadd.xlane.f32.xlu1 %v461_v56  ;;  %459 = vadd.xlane.f32.xlu0 %v458_v57  ;;  %v160_v56 = vld [vmem:[%s12085_s1 + $0x48] sm:$0xff]  ;;  %v77_v57 = vld [vmem:[%s12084_s0 + $0x1b0] sm:$0xff] }
  0x52   :  { %v737_v0 = vmul.f32 %v160_v56, %v160_v56  ;;  %v269_v2 = vmul.f32 %v77_v57, %v77_v57  ;;  %v742_v56 = vmul.f32 %v165_v47, %v165_v47  ;;  %v832_v57 = vsel %vm792_vm1, %v740_v44, 0.0  ;;  %v104_v47 = vld [vmem:[%s12084_s0 + $0x288] sm:$0xff] }
  0x54   :  { %v820_v13 = vsel %vm792_vm1, %v737_v0, 0.0  ;;  %v506_v14 = vsel %vm343_vm0, %v269_v2, 0.0  ;;  %v530_v0 = vsel %vm343_vm0, %v277_v52, 0.0  ;;  %v90_v2 = vld [vmem:[%s12084_s0 + $0x218] sm:$0xff]  ;;  %v835_v7 = vsel %vm792_vm1, %v742_v56, 0.0 }
  0x55   :  { %468 = vadd.xlane.f32.xlu1 %v467_v62  ;;  %465 = vadd.xlane.f32.xlu0 %v464_v63  ;;  %v797_v62 = vadd.f32 %v796_v53, %v795_v50  ;;  %v736_v63 = vmul.f32 %v159_v55, %v159_v55  ;;  %v88_v53 = vld [vmem:[%s12084_s0 + $0x208] sm:$0xff]  ;;  %v87_v55 = vld [vmem:[%s12084_s0 + $0x200] sm:$0xff]  ;;  %v106_v52 = vld [vmem:[%s12084_s0 + $0x298] sm:$0xff] }
  0x57   :  { %v799_v10 = vadd.f32 %v798_v3, %v797_v62  ;;  %v280_v62 = vmul.f32 %v88_v53, %v88_v53  ;;  %v89_v3 = vld [vmem:[%s12084_s0 + $0x210] sm:$0xff] }
  0x59   :  { %474 = vadd.xlane.f32.xlu1 %v473_v4  ;;  %471 = vadd.xlane.f32.xlu0 %v470_v5  ;;  %v810_v4 = vadd.f32 %v809_v59, %v808_v54  ;;  %v161_v5 = vld [vmem:[%s12085_s1 + $0x50] sm:$0xff]  ;;  %v800_v23 = vrot.slane %v799_v10, 4 }
  0x5b   :  { %v812_v18 = vadd.f32 %v811_v8, %v810_v4  ;;  %v801_v36 = vadd.f32 %v800_v23, %v799_v10  ;;  %v281_v10 = vmul.f32 %v89_v3, %v89_v3  ;;  %v298_v3 = vmul.f32 %v106_v52, %v106_v52  ;;  %v124_v52 = vld [vmem:[%s12084_s0 + $0x328] sm:$0xff] }
  0x5d   :  { %480 = vadd.xlane.f32.xlu1 %v479_v11  ;;  %477 = vadd.xlane.f32.xlu0 %v476_v12  ;;  %v738_v11 = vmul.f32 %v161_v5, %v161_v5  ;;  %v819_v12 = vsel %vm792_vm1, %v736_v63, 0.0  ;;  %v813_v30 = vrot.slane %v812_v18, 4  ;;  %v802_v49 = vrot.slane %v801_v36, 2 }
  0x5e   :  { %v821_v21 = vadd.f32 %v820_v13, %v819_v12  ;;  %v834_v5 = vadd.f32 %v833_v58, %v832_v57  ;;  %v539_v13 = vsel %vm343_vm0, %v280_v62, 0.0  ;;  %v294_v57 = vmul.f32 %v102_v41, %v102_v41  ;;  %v119_v41 = vld [vmem:[%s12084_s0 + $0x300] sm:$0xff] }
  0x5f   :  { %v822_v25 = vsel %vm792_vm1, %v738_v11, 0.0  ;;  %v814_v42 = vadd.f32 %v813_v30, %v812_v18  ;;  %v803_v63 = vadd.f32 %v802_v49, %v801_v36  ;;  %v92_v11 = vld [vmem:[%s12084_s0 + $0x228] sm:$0xff]  ;;  %v542_v30 = vsel %vm343_vm0, %v281_v10, 0.0 }
  0x60   :  { %v836_v18 = vadd.f32 %v835_v7, %v834_v5  ;;  %v100_v36 = vld [vmem:[%s12084_s0 + $0x268] sm:$0xff]  ;;  %v554_v49 = vsel %vm343_vm0, %v285_v31, 0.0  ;;  %v296_v62 = vmul.f32 %v104_v47, %v104_v47  ;;  %v110_v5 = vld [vmem:[%s12084_s0 + $0x2b8] sm:$0xff] }
  0x61   :  { %486 = vadd.xlane.f32.xlu1 %v485_v20  ;;  %483 = vadd.xlane.f32.xlu0 %v482_v22  ;;  %v81_v20 = vld [vmem:[%s12084_s0 + $0x1d0] sm:$0xff]  ;;  %v274_v22 = vmul.f32 %v82_v17, %v82_v17  ;;  %v815_v54 = vrot.slane %v814_v42, 2  ;;  %v804_v12 = vrot.slane %v803_v63, 1  ;;  %v302_v19 = vmul.f32 %v110_v5, %v110_v5 }
  0x62   :  { %v273_v28 = vmul.f32 %v81_v20, %v81_v20  ;;  %v837_v20 = vsel %vm792_vm1, %v743_v6, 0.0 }
  0x63   :  { %v521_v38 = vsel %vm343_vm0, %v274_v22, 0.0  ;;  %v816_v4 = vadd.f32 %v815_v54, %v814_v42  ;;  %v96_v22 = vld [vmem:[%s12084_s0 + $0x248] sm:$0xff]  ;;  %v838_v34 = vadd.f32 %v837_v20, %v836_v18  ;;  %v101_v42 = vld [vmem:[%s12084_s0 + $0x270] sm:$0xff]  ;;  %v111_v20 = vld [vmem:[%s12084_s0 + $0x2c0] sm:$0xff] }
  0x64   :  { %v518_v39 = vsel %vm343_vm0, %v273_v28, 0.0  ;;  %v98_v28 = vld [vmem:[%s12084_s0 + $0x258] sm:$0xff]  ;;  %v293_v58 = vmul.f32 %v101_v42, %v101_v42 }
  0x65   :  { %492 = vadd.xlane.f32.xlu1 %v491_v32  ;;  %489 = vadd.xlane.f32.xlu0 %v488_v35  ;;  %v823_v32 = vadd.f32 %v822_v25, %v821_v21  ;;  %v276_v35 = vmul.f32 %v84_v29, %v84_v29  ;;  %v817_v17 = vrot.slane %v816_v4, 1  ;;  %v284_v21 = vmul.f32 %v92_v11, %v92_v11 }
  0x66   :  { %v283_v25 = vmul.f32 %v91_v15, %v91_v15  ;;  %v805_v29 = vadd.f32 %v804_v12, %v803_v63  ;;  %v839_v54 = vrot.slane %v838_v34, 4  ;;  %v108_v63 = vld [vmem:[%s12084_s0 + $0x2a8] sm:$0xff] }
  0x67   :  { %v527_v50 = vsel %vm343_vm0, %v276_v35, 0.0  ;;  %v818_v33 = vadd.f32 %v817_v17, %v816_v4  ;;  %v288_v35 = vmul.f32 %v96_v22, %v96_v22  ;;  %v107_v4 = vld [vmem:[%s12084_s0 + $0x2a0] sm:$0xff]  ;;  %v300_v15 = vmul.f32 %v108_v63, %v108_v63  ;;  %v113_v22 = vld [vmem:[%s12084_s0 + $0x2d0] sm:$0xff] }
  0x68   :  { %v548_v44 = vsel %vm343_vm0, %v283_v25, 0.0  ;;  %v840_v11 = vadd.f32 %v839_v54, %v838_v34  ;;  %v6400_v17 = vsel %vm343_vm0, %v296_v62, 0.0  ;;  %v299_v18 = vmul.f32 %v107_v4, %v107_v4  ;;  %v117_v34 = vld [vmem:[%s12084_s0 + $0x2f0] sm:$0xff] }
  0x69   :  { %498 = vadd.xlane.f32.xlu1 %v497_v46  ;;  %495 = vadd.xlane.f32.xlu0 %v494_v51  ;;  %v825_v46 = vadd.f32 %v824_v37, %v823_v32  ;;  %v524_v51 = vsel %vm343_vm0, %v275_v40, 0.0  ;;  %v97_v32 = vld [vmem:[%s12084_s0 + $0x250] sm:$0xff]  ;;  %v551_v37 = vsel %vm343_vm0, %v284_v21, 0.0  ;;  %v99_v40 = vld [vmem:[%s12084_s0 + $0x260] sm:$0xff]  ;;  %v2154_v53 = vmax.f32 %v818_v33, 0.0  ;;  %v114_v21 = vld [vmem:[%s12084_s0 + $0x2d8] sm:$0xff] }
  0x6a   :  { %v291_v56 = vmul.f32 %v99_v40, %v99_v40  ;;  %v6415_v25 = vsel %vm343_vm0, %v298_v3, 0.0  ;;  %v118_v33 = vld [vmem:[%s12084_s0 + $0x2f8] sm:$0xff]  ;;  %v120_v40 = vld [vmem:[%s12084_s0 + $0x308] sm:$0xff]  ;;  %v6448_v42 = vsel %vm343_vm0, %v299_v18, 0.0  ;;  %v316_v4 = vmul.f32 %v124_v52, %v124_v52 }
  0x6b   :  { %v826_v59 = vrot.slane %v825_v46, 4  ;;  %v6385_v10 = vadd.f32 1e-09, %v2154_v53 }
  0x6c   :  { %v6388_v12 = vsel %vm343_vm0, %v291_v56, 0.0  ;;  %v312_v56 = vmul.f32 %v120_v40, %v120_v40 }
  0x6d   :  { %504 = vadd.xlane.f32.xlu1 %v503_v61  ;;  %501 = vadd.xlane.f32.xlu0 %v500_v1  ;;  %v533_v61 = vsel %vm343_vm0, %v278_v48, 0.0  ;;  %v279_v1 = vmul.f32 %v87_v55, %v87_v55  ;;  %v827_v8 = vadd.f32 %v826_v59, %v825_v46  ;;  %v289_v46 = vmul.f32 %v97_v32, %v97_v32  ;;  %v105_v59 = vld [vmem:[%s12084_s0 + $0x290] sm:$0xff]  ;;  %v115_v32 = vld [vmem:[%s12084_s0 + $0x2e0] sm:$0xff] }
  0x6e   :  { %v2153_v48 = vmax.f32 %v805_v29, 0.0  ;;  %v563_v55 = vsel %vm343_vm0, %v288_v35, 0.0  ;;  %v841_v35 = vrot.slane %v840_v11, 2  ;;  %vm2194_vm4 = vcmp.eq.f32.partialorder %v6385_v10, inf }
  0x6f   :  { %v828_v23 = vrot.slane %v827_v8, 2  ;;  %vm2196_vm5 = vcmp.eq.f32.partialorder %v6385_v10, 0.0 }
  0x70   :  { %v6377_v6 = vadd.f32 1e-09, %v2153_v48  ;;  %v307_v48 = vmul.f32 %v115_v32, %v115_v32 }
  0x71   :  { %510 = vadd.xlane.f32.xlu1 %v509_v9  ;;  %507 = vadd.xlane.f32.xlu0 %v506_v14  ;;  %v282_v9 = vmul.f32 %v90_v2, %v90_v2  ;;  %v536_v14 = vsel %vm343_vm0, %v279_v1, 0.0  ;;  %v829_v43 = vadd.f32 %v828_v23, %v827_v8  ;;  %v6369_v1 = vsel %vm343_vm0, %v289_v46, 0.0 }
  0x72   :  { %v297_v8 = vmul.f32 %v105_v59, %v105_v59  ;;  %5518 = vrsqrt.f32 %v6377_v6  ;;  %vm2187_vm2 = vcmp.eq.f32.partialorder %v6377_v6, inf  ;;  %vm2189_vm3 = vcmp.eq.f32.partialorder %v6377_v6, 0.0 }
  0x73   :  { %v545_v24 = vsel %vm343_vm0, %v282_v9, 0.0  ;;  %v109_v9 = vld [vmem:[%s12084_s0 + $0x2b0] sm:$0xff]  ;;  %5520 = vrsqrt.f32 %v6385_v10 }
  0x75   :  { %516 = vadd.xlane.f32.xlu1 %v515_v26  ;;  %513 = vadd.xlane.f32.xlu0 %v512_v27  ;;  %v286_v26 = vmul.f32 %v94_v16, %v94_v16  ;;  %v95_v27 = vld [vmem:[%s12084_s0 + $0x240] sm:$0xff]  ;;  %v112_v16 = vld [vmem:[%s12084_s0 + $0x2c8] sm:$0xff] }
  0x76   :  { %v304_v31 = vmul.f32 %v112_v16, %v112_v16  ;;  %v126_v16 = vld [vmem:[%s12084_s0 + $0x338] sm:$0xff] }
  0x77   :  { %v557_v45 = vsel %vm343_vm0, %v286_v26, 0.0  ;;  %v301_v26 = vmul.f32 %v109_v9, %v109_v9  ;;  %v6493_v9 = vsel %vm343_vm0, %v307_v48, 0.0  ;;  %v318_v32 = vmul.f32 %v126_v16, %v126_v16  ;;  %v131_v48 = vld [vmem:[%s12084_s0 + $0x360] sm:$0xff] }
  0x79   :  { %522 = vadd.xlane.f32.xlu1 %v521_v38  ;;  %519 = vadd.xlane.f32.xlu0 %v518_v39  ;;  %v287_v38 = vmul.f32 %v95_v27, %v95_v27  ;;  %v290_v39 = vmul.f32 %v98_v28, %v98_v28  ;;  %v116_v27 = vld [vmem:[%s12084_s0 + $0x2e8] sm:$0xff]  ;;  %v6457_v47 = vsel %vm343_vm0, %v301_v26, 0.0  ;;  %v2190_v26 = vand.u32 2147483648, %v6377_v6 }
  0x7b   :  { %v560_v60 = vsel %vm343_vm0, %v287_v38, 0.0  ;;  %v306_v38 = vmul.f32 %v114_v21, %v114_v21 }
  0x7d   :  { %528 = vadd.xlane.f32.xlu1 %v527_v50  ;;  %525 = vadd.xlane.f32.xlu0 %v524_v51  ;;  %v292_v50 = vmul.f32 %v100_v36, %v100_v36  ;;  %v103_v51 = vld [vmem:[%s12084_s0 + $0x280] sm:$0xff]  ;;  %v6439_v36 = vsel %vm343_vm0, %v300_v15, 0.0 }
  0x7e   :  { %v295_v2 = vmul.f32 %v103_v51, %v103_v51  ;;  %v121_v51 = vld [vmem:[%s12084_s0 + $0x310] sm:$0xff] }
  0x7f   :  { %v6380_v7 = vsel %vm343_vm0, %v292_v50, 0.0  ;;  %v309_v50 = vmul.f32 %v117_v34, %v117_v34  ;;  %v313_v3 = vmul.f32 %v121_v51, %v121_v51  ;;  %v6566_v51 = vsel %vm343_vm0, %v318_v32, 0.0 }
  0x81   :  { %534 = vadd.xlane.f32.xlu1 %v533_v61  ;;  %531 = vadd.xlane.f32.xlu0 %v530_v0  ;;  %v6363_v61 = vsel %vm343_vm0, %v290_v39, 0.0  ;;  %v830_v0 = vrot.slane %v829_v43, 1  ;;  %v305_v39 = vmul.f32 %v113_v22, %v113_v22  ;;  %v6499_v15 = vsel %vm343_vm0, %v309_v50, 0.0  ;;  %v5519_v22 = vpop.eup %5518 }
  0x82   :  { %v2197_v50 = vand.u32 2147483648, %v6385_v10 }
  0x83   :  { %v831_v23 = vadd.f32 %v830_v0, %v829_v43  ;;  %v6451_v43 = vsel %vm343_vm0, %v302_v19, 0.0  ;;  %v6479_v62 = vsel %vm343_vm0, %v305_v39, 0.0  ;;  %v123_v0 = vld [vmem:[%s12084_s0 + $0x320] sm:$0xff]  ;;  %v130_v39 = vld [vmem:[%s12084_s0 + $0x358] sm:$0xff] }
  0x85   :  { %540 = vadd.xlane.f32.xlu1 %v539_v13  ;;  %537 = vadd.xlane.f32.xlu0 %v536_v14  ;;  %v6391_v13 = vsel %vm343_vm0, %v294_v57, 0.0  ;;  %v6394_v14 = vsel %vm343_vm0, %v293_v58, 0.0  ;;  %v2155_v46 = vmax.f32 %v831_v23, 0.0  ;;  %v311_v57 = vmul.f32 %v119_v41, %v119_v41 }
  0x86   :  { %v842_v58 = vadd.f32 %v841_v35, %v840_v11 }
  0x87   :  { %v6487_v5 = vadd.f32 1e-09, %v2155_v46  ;;  %v132_v46 = vld [vmem:[%s12084_s0 + $0x368] sm:$0xff] }
  0x88   :  { %v843_v21 = vrot.slane %v842_v58, 1 }
  0x89   :  { %546 = vadd.xlane.f32.xlu1 %v545_v24  ;;  %543 = vadd.xlane.f32.xlu0 %v542_v30  ;;  %v6412_v24 = vsel %vm343_vm0, %v295_v2, 0.0  ;;  %v6426_v30 = vsel %vm343_vm0, %v297_v8, 0.0  ;;  %5522 = vrsqrt.f32 %v6487_v5  ;;  %vm2201_vm6 = vcmp.eq.f32.partialorder %v6487_v5, inf }
  0x8a   :  { %vm2203_vm7 = vcmp.eq.f32.partialorder %v6487_v5, 0.0 }
  0x8d   :  { %552 = vadd.xlane.f32.xlu1 %v551_v37  ;;  %549 = vadd.xlane.f32.xlu0 %v548_v44  ;;  %v303_v37 = vmul.f32 %v111_v20, %v111_v20  ;;  %v308_v44 = vmul.f32 %v116_v27, %v116_v27  ;;  %v315_v20 = vmul.f32 %v123_v0, %v123_v0  ;;  %v5521_v27 = vpop.eup %5520 }
  0x8f   :  { %v6473_v59 = vsel %vm343_vm0, %v303_v37, 0.0  ;;  %v6485_v2 = vsel %vm343_vm0, %v308_v44, 0.0  ;;  %v128_v37 = vld [vmem:[%s12084_s0 + $0x348] sm:$0xff]  ;;  %v844_v44 = vadd.f32 %v843_v21, %v842_v58  ;;  %v134_v58 = vld [vmem:[%s12084_s0 + $0x378] sm:$0xff]  ;;  %v323_v21 = vmul.f32 %v131_v48, %v131_v48 }
  0x90   :  { %v320_v52 = vmul.f32 %v128_v37, %v128_v37 }
  0x91   :  { %558 = vadd.xlane.f32.xlu1 %v557_v45  ;;  %555 = vadd.xlane.f32.xlu0 %v554_v49  ;;  %v122_v45 = vld [vmem:[%s12084_s0 + $0x318] sm:$0xff]  ;;  %v310_v49 = vmul.f32 %v118_v33, %v118_v33  ;;  %v125_v33 = vld [vmem:[%s12084_s0 + $0x330] sm:$0xff] }
  0x92   :  { %v6421_v28 = vpop.xlane.xlu1 %351  ;;  %v6423_v29 = vpop.xlane.xlu0 %345  ;;  %v314_v63 = vmul.f32 %v122_v45, %v122_v45  ;;  %v317_v45 = vmul.f32 %v125_v33, %v125_v33  ;;  %v6595_v33 = vsel %vm343_vm0, %v320_v52, 0.0  ;;  %v6637_v52 = vsel %vm343_vm0, %v323_v21, 0.0 }
  0x93   :  { %v1003_v8 = vmax.f32 %v6421_v28, 0.0  ;;  %v6496_v11 = vsel %vm343_vm0, %v310_v49, 0.0  ;;  %v6521_v28 = vsel %vm343_vm0, %v313_v3, 0.0  ;;  %v1001_v35 = vmax.f32 %v6423_v29, 0.0  ;;  %12445 = vst [vmem:[#allocation2_spill] sm:$0xff] %v6637_v52 }
  0x94   :  { %v6515_v23 = vsel %vm343_vm0, %v314_v63, 0.0  ;;  %v2186_v29 = vmul.f32 %v5519_v22, %v6377_v6  ;;  %v2193_v49 = vmul.f32 %v5521_v27, %v6385_v10  ;;  %v326_v27 = vmul.f32 %v134_v58, %v134_v58 }
  0x95   :  { %564 = vadd.xlane.f32.xlu1 %v563_v55  ;;  %561 = vadd.xlane.f32.xlu0 %v560_v60  ;;  %v6470_v55 = vsel %vm343_vm0, %v304_v31, 0.0  ;;  %v6476_v60 = vsel %vm343_vm0, %v306_v38, 0.0  ;;  %v6524_v31 = vsel %vm343_vm0, %v316_v4, 0.0  ;;  %v6530_v34 = vadd.f32 1e-09, %v1003_v8  ;;  %v127_v38 = vld [vmem:[%s12084_s0 + $0x340] sm:$0xff] }
  0x96   :  { %v6465_v53 = vpop.xlane.xlu1 %354  ;;  %v6467_v54 = vpop.xlane.xlu0 %348  ;;  %v6572_v63 = vadd.f32 1e-09, %v1001_v35  ;;  %v133_v4 = vld [vmem:[%s12084_s0 + $0x370] sm:$0xff]  ;;  %v2188_v22 = vsel %vm2187_vm2, %v6377_v6, %v2186_v29  ;;  %v2195_v32 = vsel %vm2194_vm4, %v6385_v10, %v2193_v49  ;;  %v135_v29 = vld [vmem:[%s12084_s0 + $0x380] sm:$0xff] }
  0x97   :  { %5524 = vrsqrt.f32 %v6530_v34  ;;  %v1004_v0 = vmax.f32 %v6465_v53, 0.0  ;;  %v2156_v53 = vmax.f32 %v844_v44, 0.0  ;;  %v138_v44 = vld [vmem:[%s12084_s0 + $0x398] sm:$0xff]  ;;  %v139_v6 = vld [vmem:[%s12084_s0 + $0x3a0] sm:$0xff]  ;;  %v327_v10 = vmul.f32 %v135_v29, %v135_v29 }
  0x98   :  { %5526 = vrsqrt.f32 %v6572_v63  ;;  %vm1273_vm8 = vcmp.eq.f32.partialorder %v6530_v34, inf  ;;  %vm1275_vm9 = vcmp.eq.f32.partialorder %v6530_v34, 0.0  ;;  %vm1259_vm10 = vcmp.eq.f32.partialorder %v6572_v63, inf }
  0x99   :  { %570 = vadd.xlane.f32.xlu1 %v6363_v61  ;;  %567 = vadd.xlane.f32.xlu0 %v6369_v1  ;;  %v6509_v61 = vsel %vm343_vm0, %v312_v56, 0.0  ;;  %v6512_v1 = vsel %vm343_vm0, %v311_v57, 0.0  ;;  %v319_v56 = vmul.f32 %v127_v38, %v127_v38  ;;  %v322_v57 = vmul.f32 %v130_v39, %v130_v39 }
  0x9a   :  { %v6504_v18 = vpop.xlane.xlu1 %360  ;;  %v6506_v19 = vpop.xlane.xlu0 %357  ;;  %v325_v38 = vmul.f32 %v133_v4, %v133_v4  ;;  %v6607_v39 = vadd.f32 1e-09, %v1004_v0  ;;  %vm1261_vm11 = vcmp.eq.f32.partialorder %v6572_v63, 0.0 }
  0x9b   :  { %v6598_v35 = vsel %vm343_vm0, %v319_v56, 0.0  ;;  %v6601_v37 = vsel %vm343_vm0, %v322_v57, 0.0  ;;  %v140_v56 = vld [vmem:[%s12084_s0 + $0x3a8] sm:$0xff]  ;;  %v6649_v57 = vadd.f32 1e-09, %v2156_v53  ;;  %v1006_v0 = vmax.f32 %v6504_v18, 0.0 }
  0x9c   :  { %v6661_v21 = vsel %vm343_vm0, %v325_v38, 0.0  ;;  %v141_v53 = vld [vmem:[%s12084_s0 + $0x3b0] sm:$0xff]  ;;  %5528 = vrsqrt.f32 %v6607_v39  ;;  %v332_v18 = vmul.f32 %v140_v56, %v140_v56  ;;  %vm1280_vm12 = vcmp.eq.f32.partialorder %v6607_v39, inf }
  0x9d   :  { %576 = vadd.xlane.f32.xlu1 %v6380_v7  ;;  %573 = vadd.xlane.f32.xlu0 %v6388_v12  ;;  %v6549_v7 = vsel %vm343_vm0, %v315_v20, 0.0  ;;  %v129_v12 = vld [vmem:[%s12084_s0 + $0x350] sm:$0xff]  ;;  %v324_v20 = vmul.f32 %v132_v46, %v132_v46  ;;  %12447 = vst [vmem:[#allocation4_spill] sm:$0xff] %v6661_v21  ;;  %5530 = vrsqrt.f32 %v6649_v57  ;;  %vm2208_vm13 = vcmp.eq.f32.partialorder %v6649_v57, inf }
  0x9e   :  { %v6544_v40 = vpop.xlane.xlu1 %366  ;;  %v6546_v41 = vpop.xlane.xlu0 %363  ;;  %v321_v3 = vmul.f32 %v129_v12, %v129_v12  ;;  %vm1282_vm15 = vcmp.eq.f32.partialorder %v6607_v39, 0.0 }
  0x9f   :  { %v6634_v49 = vsel %vm343_vm0, %v324_v20, 0.0  ;;  %v142_v20 = vld [vmem:[%s12084_s0 + $0x3b8] sm:$0xff] }
  0xa0   :  { %v6612_v12 = vsel %vm343_vm0, %v321_v3, 0.0  ;;  %v6655_v3 = vsel %vm343_vm0, %v326_v27, 0.0  ;;  %v334_v29 = vmul.f32 %v142_v20, %v142_v20  ;;  %v143_v20 = vld [vmem:[%s12084_s0 + $0x3c0] sm:$0xff] }
  0xa1   :  { %582 = vadd.xlane.f32.xlu1 %v6391_v13  ;;  %579 = vadd.xlane.f32.xlu0 %v6394_v14  ;;  %v1002_v13 = vmax.f32 %v6467_v54, 0.0  ;;  %v6589_v14 = vsel %vm343_vm0, %v317_v45, 0.0  ;;  %v136_v54 = vld [vmem:[%s12084_s0 + $0x388] sm:$0xff]  ;;  %v137_v45 = vld [vmem:[%s12084_s0 + $0x390] sm:$0xff]  ;;  %12446 = vst [vmem:[#allocation3_spill] sm:$0xff] %v6655_v3  ;;  %v335_v21 = vmul.f32 %v143_v20, %v143_v20 }
  0xa2   :  { %v6580_v8 = vpop.xlane.xlu1 %372  ;;  %v6582_v16 = vpop.xlane.xlu0 %369  ;;  %v328_v4 = vmul.f32 %v136_v54, %v136_v54 }
  0xa3   :  { %v6651_v58 = vadd.f32 1e-09, %v1002_v13  ;;  %v331_v13 = vmul.f32 %v139_v6, %v139_v6 }
  0xa5   :  { %588 = vadd.xlane.f32.xlu1 %v6400_v17  ;;  %585 = vadd.xlane.f32.xlu0 %v6412_v24  ;;  %v6627_v17 = vsel %vm2189_vm3, %v2190_v26, %v2188_v22  ;;  %v5523_v24 = vpop.eup %5522  ;;  %v6647_v26 = vsel %vm2196_vm5, %v2197_v50, %v2195_v32  ;;  %v330_v50 = vmul.f32 %v138_v44, %v138_v44  ;;  %v1005_v32 = vmax.f32 %v6506_v19, 0.0  ;;  %v144_v44 = vld [vmem:[%s12084_s0 + $0x3c8] sm:$0xff] }
  0xa6   :  { %v6629_v46 = vpop.xlane.xlu1 %378  ;;  %v6631_v48 = vpop.xlane.xlu0 %375  ;;  %v329_v22 = vmul.f32 %v137_v45, %v137_v45  ;;  %v2200_v27 = vmul.f32 %v5523_v24, %v6487_v5  ;;  %5532 = vrsqrt.f32 %v6651_v58  ;;  %v6684_v19 = vsel %vm343_vm0, %v328_v4, 0.0 }
  0xa7   :  { %12448 = vst [vmem:[#allocation5_spill] sm:$0xff] %v6684_v19  ;;  %v333_v45 = vmul.f32 %v141_v53, %v141_v53  ;;  %v6687_v24 = vsel %vm343_vm0, %v327_v10, 0.0  ;;  %v6690_v56 = vsel %vm343_vm0, %v330_v50, 0.0  ;;  %v2204_v4 = vand.u32 2147483648, %v6487_v5  ;;  %v148_v53 = vld [vmem:[%s12084_s0 + $0x3e8] sm:$0xff] }
  0xa8   :  { %12449 = vst [vmem:[#allocation6_spill] sm:$0xff] %v6687_v24  ;;  %12450 = vst [vmem:[#allocation7_spill] sm:$0xff] %v6690_v56  ;;  %v6693_v6 = vsel %vm343_vm0, %v329_v22, 0.0  ;;  %v6705_v10 = vsel %vm343_vm0, %v332_v18, 0.0  ;;  %v336_v50 = vmul.f32 %v144_v44, %v144_v44  ;;  %v145_v22 = vld [vmem:[%s12084_s0 + $0x3d0] sm:$0xff]  ;;  %v6730_v56 = vsel %vm343_vm0, %v334_v29, 0.0 }
  0xa9   :  { %594 = vadd.xlane.f32.xlu1 %v6415_v25  ;;  %591 = vadd.xlane.f32.xlu0 %v6426_v30  ;;  %v5525_v25 = vpop.eup %5524  ;;  %v6681_v30 = vadd.f32 1e-09, %v1006_v0  ;;  %12451 = vst [vmem:[#allocation8_spill] sm:$0xff] %v6693_v6  ;;  %v146_v0 = vld [vmem:[%s12084_s0 + $0x3d8] sm:$0xff]  ;;  %12452 = vst [vmem:[#allocation9_spill] sm:$0xff] %v6705_v10  ;;  %v147_v6 = vld [vmem:[%s12084_s0 + $0x3e0] sm:$0xff]  ;;  %v337_v29 = vmul.f32 %v145_v22, %v145_v22 }
  0xaa   :  { %v6671_v38 = vpop.xlane.xlu1 %384  ;;  %v6673_v54 = vpop.xlane.xlu0 %381  ;;  %v6727_v10 = vsel %vm343_vm0, %v331_v13, 0.0  ;;  %12454 = vst [vmem:[#allocation11_spill] sm:$0xff] %v6730_v56  ;;  %v150_v24 = vld [vmem:[%s12084_s0 + $0x3f8] sm:$0xff]  ;;  %v338_v3 = vmul.f32 %v146_v0, %v146_v0  ;;  %v149_v13 = vld [vmem:[%s12084_s0 + $0x3f0] sm:$0xff]  ;;  %v340_v56 = vmul.f32 %v148_v53, %v148_v53  ;;  %v1276_v22 = vand.u32 2147483648, %v6530_v34  ;;  %v167_v53 = vld [vmem:[%s12085_s1 + $0x80] sm:$0xff] }
  0xab   :  { %12453 = vst [vmem:[#allocation10_spill] sm:$0xff] %v6727_v10  ;;  %v5527_v19 = vpop.eup %5526  ;;  %5534 = vrsqrt.f32 %v6681_v30  ;;  %v339_v10 = vmul.f32 %v147_v6, %v147_v6  ;;  %v342_v20 = vmul.f32 %v150_v24, %v150_v24  ;;  %vm1266_vm14 = vcmp.eq.f32.partialorder %v6651_v58, inf }
  0xac   :  { %v6766_v24 = vsel %vm343_vm0, %v338_v3, 0.0  ;;  %v168_v3 = vld [vmem:[%s12085_s1 + $0x88] sm:$0xff]  ;;  %vm1294_vm2 = vcmp.eq.f32.partialorder %v6681_v30, inf  ;;  %vm2210_vm3 = vcmp.eq.f32.partialorder %v6649_v57, 0.0  ;;  %vm1296_vm4 = vcmp.eq.f32.partialorder %v6681_v30, 0.0 }
  0xad   :  { %600 = vadd.xlane.f32.xlu1 %v6439_v36  ;;  %597 = vadd.xlane.f32.xlu0 %v6448_v42  ;;  %v2202_v36 = vsel %vm2201_vm6, %v6487_v5, %v2200_v27  ;;  %v6720_v42 = vadd.f32 1e-09, %v1005_v32  ;;  %v1272_v27 = vmul.f32 %v5525_v25, %v6530_v34  ;;  %v6738_v32 = vsel %vm343_vm0, %v333_v45, 0.0 }
  0xae   :  { %v6722_v18 = vpop.xlane.xlu1 %390  ;;  %v6724_v44 = vpop.xlane.xlu0 %387  ;;  %v6745_v52 = vsel %vm2203_vm7, %v2204_v4, %v2202_v36  ;;  %v1008_v25 = vmax.f32 %v6544_v40, 0.0  ;;  %v6751_v45 = vsel %vm343_vm0, %v336_v50, 0.0  ;;  %v341_v5 = vmul.f32 %v149_v13, %v149_v13 }
  0xaf   :  { %12455 = vst [vmem:[#allocation12_spill] sm:$0xff] %v6745_v52  ;;  %5536 = vrsqrt.f32 %v6720_v42  ;;  %v1258_v4 = vmul.f32 %v5527_v19, %v6572_v63  ;;  %v1274_v40 = vsel %vm1273_vm8, %v6530_v34, %v1272_v27  ;;  %v6763_v50 = vsel %vm343_vm0, %v335_v21, 0.0 }
  0xb0   :  { %v6773_v19 = vsel %vm343_vm0, %v337_v29, 0.0  ;;  %v6776_v27 = vsel %vm343_vm0, %v340_v56, 0.0  ;;  %v6785_v13 = vadd.f32 1e-09, %v1008_v25  ;;  %v6790_v29 = vsel %vm343_vm0, %v342_v20, 0.0 }
  0xb1   :  { %606 = vadd.xlane.f32.xlu1 %v6451_v43  ;;  %603 = vadd.xlane.f32.xlu0 %v6457_v47  ;;  %v5529_v43 = vpop.eup %5528  ;;  %v1007_v47 = vmax.f32 %v6546_v41, 0.0  ;;  %12456 = vst [vmem:[#allocation13_spill] sm:$0xff] %v6776_v27  ;;  %v6779_v41 = vsel %vm343_vm0, %v339_v10, 0.0  ;;  %12458 = vst [vmem:[#allocation15_spill] sm:$0xff] %v6790_v29  ;;  %v1277_v56 = vsel %vm1275_vm9, %v1276_v22, %v1274_v40  ;;  %v6798_v52 = vsel %vm343_vm0, %v341_v5, 0.0  ;;  %v169_v40 = vld [vmem:[%s12085_s1 + $0x90] sm:$0xff] }
  0xb2   :  { %v6755_v0 = vpop.xlane.xlu1 %396  ;;  %v6757_v6 = vpop.xlane.xlu0 %393  ;;  %12457 = vst [vmem:[#allocation14_spill] sm:$0xff] %v6779_v41  ;;  %12459 = vst [vmem:[#allocation16_spill] sm:$0xff] %v6798_v52  ;;  %v1260_v25 = vsel %vm1259_vm10, %v6572_v63, %v1258_v4  ;;  %v1279_v41 = vmul.f32 %v5529_v43, %v6607_v39  ;;  %v1262_v20 = vand.u32 2147483648, %v6572_v63  ;;  %v6809_v22 = vmul.f32 %v168_v3, %v168_v3 }
  0xb3   :  { %v5531_v36 = vpop.eup %5530  ;;  %v6802_v27 = vadd.f32 1e-09, %v1007_v47  ;;  %v2299_v4 = vsub.f32 %v1277_v56, %v6627_v17  ;;  %5538 = vrsqrt.f32 %v6785_v13  ;;  %v170_v56 = vld [vmem:[%s12085_s1 + $0x98] sm:$0xff]  ;;  %vm1268_vm0 = vcmp.eq.f32.partialorder %v6651_v58, 0.0 }
  0xb4   :  { %v5533_v21 = vpop.eup %5532  ;;  %v2207_v43 = vmul.f32 %v5531_v36, %v6649_v57  ;;  %v1281_v63 = vsel %vm1280_vm12, %v6607_v39, %v1279_v41  ;;  %v2211_v36 = vand.u32 2147483648, %v6649_v57  ;;  %v1011_v29 = vmax.f32 %v6631_v48, 0.0 }
  0xb5   :  { %612 = vadd.xlane.f32.xlu1 %v6470_v55  ;;  %609 = vadd.xlane.f32.xlu0 %v6473_v59  ;;  %v744_v55 = vmul.f32 %v167_v53, %v167_v53  ;;  %v1010_v59 = vmax.f32 %v6580_v8, 0.0  ;;  %v1265_v5 = vmul.f32 %v5533_v21, %v6651_v58  ;;  %v5535_v47 = vpop.eup %5534  ;;  %v1263_v8 = vsel %vm1261_vm11, %v1262_v20, %v1260_v25 }
  0xb6   :  { %v6793_v10 = vpop.xlane.xlu1 %402  ;;  %v6795_v34 = vpop.xlane.xlu0 %399  ;;  %v6827_v21 = vmul.f32 %v169_v40, %v169_v40  ;;  %5540 = vrsqrt.f32 %v6802_v27  ;;  %v2297_v41 = vsub.f32 %v1263_v8, %v6627_v17  ;;  %v6839_v52 = vadd.f32 0.2, %v2299_v4 }
  0xb7   :  { %v1267_v20 = vsel %vm1266_vm14, %v6651_v58, %v1265_v5  ;;  %v1293_v40 = vmul.f32 %v5535_v47, %v6681_v30  ;;  %v1009_v5 = vmax.f32 %v6582_v16, 0.0  ;;  %vm1287_vm5 = vcmp.eq.f32.partialorder %v6720_v42, inf }
  0xb8   :  { %12460 = vst [vmem:[#allocation17_spill] sm:$0xff] %v6827_v21  ;;  %12461 = vst [vmem:[#allocation18_spill] sm:$0xff] %v6839_v52  ;;  %v2209_v21 = vsel %vm2208_vm13, %v6649_v57, %v2207_v43  ;;  %v6861_v43 = vadd.f32 0.2, %v2297_v41  ;;  %v1290_v41 = vand.u32 2147483648, %v6720_v42  ;;  %vm1289_vm6 = vcmp.eq.f32.partialorder %v6720_v42, 0.0 }
  0xb9   :  { %618 = vadd.xlane.f32.xlu1 %v6476_v60  ;;  %615 = vadd.xlane.f32.xlu0 %v6479_v62  ;;  %v6830_v60 = vadd.f32 1e-09, %v1010_v59  ;;  %v1283_v62 = vand.u32 2147483648, %v6607_v39  ;;  %v5537_v25 = vpop.eup %5536  ;;  %v1269_v39 = vand.u32 2147483648, %v6651_v58  ;;  %vm1308_vm7 = vcmp.eq.f32.partialorder %v6785_v13, inf }
  0xba   :  { %v6820_v53 = vpop.xlane.xlu1 %408  ;;  %v6822_v3 = vpop.xlane.xlu0 %405  ;;  %v1286_v47 = vmul.f32 %v5537_v25, %v6720_v42  ;;  %12463 = vst [vmem:[#allocation20_spill] sm:$0xff] %v6861_v43  ;;  %v6874_v25 = vadd.f32 1e-09, %v1009_v5  ;;  %vm1310_vm8 = vcmp.eq.f32.partialorder %v6785_v13, 0.0  ;;  %vm1301_vm9 = vcmp.eq.f32.partialorder %v6802_v27, inf }
  0xbb   :  { %v1284_v59 = vsel %vm1282_vm15, %v1283_v62, %v1281_v63  ;;  %5542 = vrsqrt.f32 %v6830_v60  ;;  %v1270_v58 = vsel %vm1268_vm0, %v1269_v39, %v1267_v20  ;;  %v12093_v63 = vmax.f32 %v6839_v52, 0.0 }
  0xbc   :  { %v2300_v16 = vsub.f32 %v1284_v59, %v6627_v17  ;;  %v1295_v62 = vsel %vm1294_vm2, %v6681_v30, %v1293_v40  ;;  %v1014_v20 = vmax.f32 %v6671_v38, 0.0  ;;  %v1288_v39 = vsel %vm1287_vm5, %v6720_v42, %v1286_v47 }
  0xbd   :  { %624 = vadd.xlane.f32.xlu1 %v6485_v2  ;;  %621 = vadd.xlane.f32.xlu0 %v6493_v9  ;;  %v6856_v2 = vmul.f32 %v170_v56, %v170_v56  ;;  %v1012_v9 = vmax.f32 %v6629_v46, 0.0  ;;  %v1297_v46 = vand.u32 2147483648, %v6681_v30  ;;  %v6872_v56 = vsel %vm792_vm1, %v744_v55, 0.0  ;;  %v5539_v48 = vpop.eup %5538 }
  0xbe   :  { %v6850_v8 = vpop.xlane.xlu1 %414  ;;  %v6852_v4 = vpop.xlane.xlu0 %411  ;;  %12464 = vst [vmem:[#allocation21_spill] sm:$0xff] %v6872_v56  ;;  %v12095_v38 = vmax.f32 %v6861_v43, 0.0  ;;  %v6889_v5 = vadd.f32 0.2, %v2300_v16  ;;  %v6909_v47 = vsel %vm792_vm1, %v6809_v22, 0.0  ;;  %v1307_v16 = vmul.f32 %v5539_v48, %v6785_v13 }
  0xbf   :  { %12462 = vst [vmem:[#allocation19_spill] sm:$0xff] %v6856_v2  ;;  %v1298_v40 = vsel %vm1296_vm4, %v1297_v46, %v1295_v62  ;;  %v6882_v30 = vadd.f32 1e-09, %v1012_v9  ;;  %v2691_v2 = vmul.f32 16.0, %v12093_v63  ;;  %v6900_v9 = vld [vmem:[%s12086_s2 + $0x10] sm:$0xff]  ;;  %12467 = vst [vmem:[#allocation24_spill] sm:$0xff] %v6909_v47  ;;  %5544 = vrsqrt.f32 %v6874_v25 }
  0xc0   :  { %12465 = vst [vmem:[#allocation22_spill] sm:$0xff] %v6889_v5  ;;  %v5541_v56 = vpop.eup %5540  ;;  %v2689_v57 = vmul.f32 16.0, %v12095_v38  ;;  %v12094_v22 = vmax.f32 %v6889_v5, 0.0  ;;  %v6932_v46 = vld [vmem:[%s12086_s2] sm:$0xff]  ;;  %vm1303_vm10 = vcmp.eq.f32.partialorder %v6802_v27, 0.0  ;;  %vm1322_vm11 = vcmp.eq.f32.partialorder %v6830_v60, inf }
  0xc1   :  { %630 = vadd.xlane.f32.xlu1 %v6496_v11  ;;  %627 = vadd.xlane.f32.xlu0 %v6499_v15  ;;  %v1013_v11 = vmax.f32 %v6673_v54, 0.0  ;;  %v2298_v15 = vsub.f32 %v1270_v58, %v6627_v17  ;;  %v6893_v54 = vadd.f32 1e-09, %v1011_v29  ;;  %v6905_v58 = vsel %vm2210_vm3, %v2211_v36, %v2209_v21  ;;  %v12484_v47 = vld [vmem:[#allocation4_spill] sm:$0xff] }
  0xc2   :  { %v6884_v55 = vpop.xlane.xlu1 %420  ;;  %v6886_v59 = vpop.xlane.xlu0 %417  ;;  %12466 = vst [vmem:[#allocation23_spill] sm:$0xff] %v6905_v58  ;;  %v6911_v29 = vadd.f32 1e-09, %v1014_v20  ;;  %5546 = vrsqrt.f32 %v6882_v30  ;;  %v2819_v36 = vmul.f32 %v2691_v2, %v6900_v9  ;;  %v1016_v2 = vmax.f32 %v6722_v18, 0.0 }
  0xc3   :  { %v6916_v62 = vadd.f32 1e-09, %v1013_v11  ;;  %v6918_v42 = vadd.f32 0.2, %v2298_v15  ;;  %5548 = vrsqrt.f32 %v6893_v54  ;;  %v1309_v11 = vsel %vm1308_vm7, %v6785_v13, %v1307_v16 }
  0xc4   :  { %5550 = vrsqrt.f32 %v6911_v29  ;;  %v1015_v15 = vmax.f32 %v6724_v44, 0.0  ;;  %v2817_v18 = vmul.f32 %v2689_v57, %v6932_v46  ;;  %v6967_v63 = vadd.f32 1e-09, %v1016_v2 }
  0xc5   :  { %636 = vadd.xlane.f32.xlu1 %v6509_v61  ;;  %633 = vadd.xlane.f32.xlu0 %v6512_v1  ;;  %v2302_v61 = vsub.f32 %v1298_v40, %v6627_v17  ;;  %v1291_v1 = vsel %vm1289_vm6, %v1290_v41, %v1288_v39  ;;  %12468 = vst [vmem:[#allocation25_spill] sm:$0xff] %v6918_v42  ;;  %v5543_v21 = vpop.eup %5542  ;;  %5552 = vrsqrt.f32 %v6916_v62  ;;  %v1311_v40 = vand.u32 2147483648, %v6785_v13 }
  0xc6   :  { %v2301_v20 = vsub.f32 %v1291_v1, %v6627_v17  ;;  %v1300_v41 = vmul.f32 %v5541_v56, %v6802_v27  ;;  %v6939_v48 = vpop.xlane.xlu1 %426  ;;  %v12096_v56 = vmax.f32 %v6918_v42, 0.0  ;;  %v2692_v39 = vmul.f32 16.0, %v12094_v22  ;;  %v6973_v22 = vld [vmem:[%s12086_s2 + $0x18] sm:$0xff]  ;;  %v7124_v42 = vld [vmem:[%s12086_s2 + $0x30] sm:$0xff] }
  0xc7   :  { %v1312_v44 = vsel %vm1310_vm8, %v1311_v40, %v1309_v11  ;;  %v1321_v57 = vmul.f32 %v5543_v21, %v6830_v60  ;;  %v1017_v13 = vmax.f32 %v6757_v6, 0.0  ;;  %v1019_v38 = vmax.f32 %v6795_v34, 0.0 }
  0xc8   :  { %v6961_v1 = vadd.f32 0.2, %v2301_v20  ;;  %v1302_v16 = vsel %vm1301_vm9, %v6802_v27, %v1300_v41  ;;  %v6977_v20 = vadd.f32 1e-09, %v1015_v15  ;;  %v2690_v21 = vmul.f32 16.0, %v12096_v56 }
  0xc9   :  { %642 = vadd.xlane.f32.xlu1 %v6515_v23  ;;  %639 = vadd.xlane.f32.xlu0 %v6521_v28  ;;  %v6941_v23 = vpop.xlane.xlu0 %423  ;;  %v6943_v28 = vadd.f32 0.2, %v2302_v61  ;;  %v6956_v61 = vsel %vm792_vm1, %v2819_v36, 0.0  ;;  %v1018_v36 = vmax.f32 %v6755_v0, 0.0  ;;  %v1020_v0 = vmax.f32 %v6793_v10, 0.0  ;;  %v5545_v15 = vpop.eup %5544 }
  0xca   :  { %12470 = vst [vmem:[#allocation27_spill] sm:$0xff] %v6961_v1  ;;  %v6984_v41 = vpop.xlane.xlu1 %432  ;;  %v2304_v11 = vsub.f32 %v1312_v44, %v6627_v17  ;;  %v2820_v6 = vmul.f32 %v2692_v39, %v6973_v22  ;;  %v1323_v10 = vsel %vm1322_vm11, %v6830_v60, %v1321_v57  ;;  %v1022_v44 = vmax.f32 %v6820_v53, 0.0  ;;  %v7013_v57 = vld [vmem:[%s12086_s2 + $0x28] sm:$0xff] }
  0xcb   :  { %12469 = vst [vmem:[#allocation26_spill] sm:$0xff] %v6943_v28  ;;  %5554 = vrsqrt.f32 %v6967_v63  ;;  %vm1324_vm12 = vcmp.eq.f32.partialorder %v6830_v60, 0.0  ;;  %v7027_v5 = vadd.f32 1e-09, %v1019_v38  ;;  %v7042_v38 = vsel %vm792_vm1, %v2817_v18, 0.0 }
  0xcc   :  { %v5547_v56 = vpop.eup %5546  ;;  %5556 = vrsqrt.f32 %v6977_v20  ;;  %v7059_v18 = vsel %vm792_vm1, %v2820_v6, 0.0  ;;  %vm1315_vm13 = vcmp.eq.f32.partialorder %v6874_v25, inf  ;;  %vm1317_vm14 = vcmp.eq.f32.partialorder %v6874_v25, 0.0 }
  0xcd   :  { %648 = vadd.xlane.f32.xlu1 %v6524_v31  ;;  %645 = vadd.xlane.f32.xlu0 %v6549_v7  ;;  %v1304_v7 = vand.u32 2147483648, %v6802_v27  ;;  %v6986_v2 = vpop.xlane.xlu0 %429  ;;  %v6996_v31 = vadd.f32 1e-09, %v1018_v36  ;;  %v5549_v39 = vpop.eup %5548  ;;  %v7019_v27 = vadd.f32 1e-09, %v1020_v0  ;;  %vm1336_vm15 = vcmp.eq.f32.partialorder %v6882_v30, inf }
  0xce   :  { %v7017_v36 = vpop.eup %5550  ;;  %vm1329_vm0 = vcmp.eq.f32.partialorder %v6893_v54, inf  ;;  %vm1338_vm2 = vcmp.eq.f32.partialorder %v6882_v30, 0.0  ;;  %vm1331_vm3 = vcmp.eq.f32.partialorder %v6893_v54, 0.0  ;;  %vm1350_vm4 = vcmp.eq.f32.partialorder %v6911_v29, inf }
  0xcf   :  { %v1305_v40 = vsel %vm1303_vm10, %v1304_v7, %v1302_v16  ;;  %v7002_v16 = vld [vmem:[%s12086_s2 + $0x8] sm:$0xff]  ;;  %v7008_v7 = vadd.f32 1e-09, %v1017_v13  ;;  %v7024_v13 = vpop.eup %5552  ;;  %5558 = vrsqrt.f32 %v6996_v31  ;;  %vm1343_vm5 = vcmp.eq.f32.partialorder %v6916_v62, inf }
  0xd0   :  { %v2303_v53 = vsub.f32 %v1305_v40, %v6627_v17  ;;  %v2818_v17 = vmul.f32 %v2690_v21, %v7002_v16  ;;  %vm1352_vm6 = vcmp.eq.f32.partialorder %v6911_v29, 0.0  ;;  %vm1345_vm7 = vcmp.eq.f32.partialorder %v6916_v62, 0.0 }
  0xd1   :  { %654 = vadd.xlane.f32.xlu1 %v6566_v51  ;;  %651 = vadd.xlane.f32.xlu0 %v6589_v14  ;;  %v12471_v51 = vmax.f32 %v6943_v28, 0.0  ;;  %v1325_v14 = vand.u32 2147483648, %v6830_v60  ;;  %v7022_v28 = vadd.f32 0.2, %v2304_v11  ;;  %v12473_v60 = vmax.f32 %v6961_v1, 0.0  ;;  %v7037_v11 = vpop.xlane.xlu1 %438  ;;  %v7039_v40 = vpop.xlane.xlu0 %435 }
  0xd2   :  { %5560 = vrsqrt.f32 %v7008_v7  ;;  %v7051_v21 = vadd.f32 0.2, %v2303_v53  ;;  %v1335_v53 = vmul.f32 %v5547_v56, %v6882_v30  ;;  %v1318_v56 = vand.u32 2147483648, %v6874_v25 }
  0xd3   :  { %v2694_v34 = vmul.f32 16.0, %v12471_v51  ;;  %v1021_v51 = vmax.f32 %v6822_v3, 0.0  ;;  %12472 = vst [vmem:[#allocation28_spill] sm:$0xff] %v7022_v28  ;;  %v1326_v52 = vsel %vm1324_vm12, %v1325_v14, %v1323_v10  ;;  %v2693_v0 = vmul.f32 16.0, %v12473_v60 }
  0xd4   :  { %v7035_v3 = vadd.f32 1e-09, %v1022_v44  ;;  %12475 = vst [vmem:[#allocation30_spill] sm:$0xff] %v7051_v21  ;;  %v2306_v10 = vsub.f32 %v1326_v52, %v6647_v26  ;;  %v1314_v44 = vmul.f32 %v5545_v15, %v6874_v25  ;;  %5562 = vrsqrt.f32 %v7019_v27 }
  0xd5   :  { %660 = vadd.xlane.f32.xlu1 %v6595_v33  ;;  %657 = vadd.xlane.f32.xlu0 %v6598_v35  ;;  %v2822_v33 = vmul.f32 %v2694_v34, %v7013_v57  ;;  %v7048_v35 = vld [vmem:[%s12086_s2 + $0x20] sm:$0xff]  ;;  %v7056_v14 = vadd.f32 1e-09, %v1021_v51  ;;  %v12102_v34 = vmax.f32 %v7022_v28, 0.0  ;;  %5564 = vrsqrt.f32 %v7027_v5 }
  0xd6   :  { %12474 = vst [vmem:[#allocation29_spill] sm:$0xff] %v7035_v3  ;;  %v1024_v60 = vmax.f32 %v6850_v8, 0.0  ;;  %v7067_v52 = vsel %vm792_vm1, %v2818_v17, 0.0  ;;  %v7070_v15 = vmul.f32 %v2693_v0, %v7048_v35  ;;  %5566 = vrsqrt.f32 %v7035_v3  ;;  %v7085_v0 = vpop.xlane.xlu1 %444  ;;  %v7092_v8 = vpop.eup %5554 }
  0xd7   :  { %12476 = vst [vmem:[#allocation31_spill] sm:$0xff] %v7056_v14  ;;  %v7074_v6 = vsel %vm792_vm1, %v2822_v33, 0.0  ;;  %v1328_v51 = vmul.f32 %v5549_v39, %v6893_v54  ;;  %5568 = vrsqrt.f32 %v7056_v14  ;;  %v1023_v17 = vmax.f32 %v6852_v4, 0.0  ;;  %v7087_v33 = vpop.xlane.xlu0 %441  ;;  %v12480_v39 = vld [vmem:[#allocation2_spill] sm:$0xff]  ;;  %v7104_v43 = vpop.eup %5556 }
  0xd8   :  { %12477 = vst [vmem:[#allocation32_spill] sm:$0xff] %v7074_v6  ;;  %v2696_v1 = vmul.f32 16.0, %v12102_v34  ;;  %v1025_v4 = vmax.f32 %v6886_v59, 0.0  ;;  %v1337_v34 = vsel %vm1336_vm15, %v6882_v30, %v1335_v53  ;;  %vm1364_vm8 = vcmp.eq.f32.partialorder %v6967_v63, inf }
  0xd9   :  { %666 = vadd.xlane.f32.xlu1 %v6601_v37  ;;  %663 = vadd.xlane.f32.xlu0 %v6612_v12  ;;  %v7079_v37 = vadd.f32 0.2, %v2306_v10  ;;  %v1316_v12 = vsel %vm1315_vm13, %v6874_v25, %v1314_v44  ;;  %v7094_v10 = vadd.f32 1e-09, %v1024_v60  ;;  %v1026_v44 = vmax.f32 %v6884_v55, 0.0  ;;  %v7109_v55 = vld [vmem:[%s12086_s2 + $0x38] sm:$0xff] }
  0xda   :  { %v1319_v28 = vsel %vm1317_vm14, %v1318_v56, %v1316_v12  ;;  %v1330_v59 = vsel %vm1329_vm0, %v6893_v54, %v1328_v51  ;;  %v7116_v12 = vpop.eup %5558  ;;  %v7118_v53 = vadd.f32 1e-09, %v1023_v17  ;;  %v1028_v56 = vmax.f32 %v6939_v48, 0.0  ;;  %v12483_v51 = vld [vmem:[#allocation3_spill] sm:$0xff]  ;;  %v7141_v6 = vpop.xlane.xlu1 %450 }
  0xdb   :  { %12478 = vst [vmem:[#allocation33_spill] sm:$0xff] %v7079_v37  ;;  %12479 = vst [vmem:[#allocation34_spill] sm:$0xff] %v7094_v10  ;;  %v2305_v17 = vsub.f32 %v1319_v28, %v6647_v26  ;;  %5570 = vrsqrt.f32 %v7094_v10  ;;  %v7143_v14 = vpop.xlane.xlu0 %447  ;;  %v1030_v28 = vmax.f32 %v6984_v41, 0.0  ;;  %v12489_v41 = vld [vmem:[#allocation6_spill] sm:$0xff]  ;;  %vm1366_vm9 = vcmp.eq.f32.partialorder %v6967_v63, 0.0 }
  0xdc   :  { %v7128_v25 = vpop.eup %5560  ;;  %5572 = vrsqrt.f32 %v7118_v53  ;;  %v7156_v10 = vadd.f32 1e-09, %v1028_v56  ;;  %vm1357_vm10 = vcmp.eq.f32.partialorder %v6977_v20, inf  ;;  %vm1359_vm11 = vcmp.eq.f32.partialorder %v6977_v20, 0.0 }
  0xdd   :  { %672 = vadd.xlane.f32.xlu1 %v6634_v49  ;;  %669 = vadd.xlane.f32.xlu0 %v12480_v39  ;;  %v12481_v49 = vmax.f32 %v7051_v21, 0.0  ;;  %v1339_v39 = vand.u32 2147483648, %v6882_v30  ;;  %v7130_v21 = vadd.f32 1e-09, %v1026_v44  ;;  %v7139_v30 = vadd.f32 1e-09, %v1025_v4 }
  0xde   :  { %v7136_v58 = vpop.eup %5562  ;;  %v2824_v44 = vmul.f32 %v2696_v1, %v7109_v55  ;;  %12487 = vst [vmem:[#allocation4_spill] sm:$0xff] %v7156_v10  ;;  %v1029_v1 = vmax.f32 %v6986_v2, 0.0  ;;  %v7173_v2 = vsel %vm792_vm1, %v7070_v15, 0.0  ;;  %v7191_v15 = vpop.xlane.xlu1 %456  ;;  %vm1378_vm12 = vcmp.eq.f32.partialorder %v6996_v31, inf }
  0xdf   :  { %v2695_v60 = vmul.f32 16.0, %v12481_v49  ;;  %v1332_v49 = vand.u32 2147483648, %v6893_v54  ;;  %12482 = vst [vmem:[#allocation2_spill] sm:$0xff] %v7130_v21  ;;  %v1340_v48 = vsel %vm1338_vm2, %v1339_v39, %v1337_v34  ;;  %12485 = vst [vmem:[#allocation3_spill] sm:$0xff] %v7139_v30  ;;  %v7146_v3 = vpop.eup %5564  ;;  %v12486_v34 = vmax.f32 %v7079_v37, 0.0 }
  0xe0   :  { %v7153_v4 = vpop.eup %5566  ;;  %5574 = vrsqrt.f32 %v7130_v21  ;;  %v7176_v56 = vsel %vm792_vm1, %v2824_v44, 0.0  ;;  %v7193_v44 = vpop.xlane.xlu0 %453  ;;  %vm1380_vm13 = vcmp.eq.f32.partialorder %v6996_v31, 0.0  ;;  %vm1371_vm14 = vcmp.eq.f32.partialorder %v7008_v7, inf }
  0xe1   :  { %678 = vadd.xlane.f32.xlu1 %v12483_v51  ;;  %675 = vadd.xlane.f32.xlu0 %v12484_v47  ;;  %v1333_v51 = vsel %vm1331_vm3, %v1332_v49, %v1330_v59  ;;  %v1027_v47 = vmax.f32 %v6941_v23, 0.0  ;;  %v2823_v54 = vmul.f32 %v2695_v60, %v7124_v42  ;;  %v2698_v39 = vmul.f32 16.0, %v12486_v34  ;;  %v12488_v23 = vld [vmem:[#allocation5_spill] sm:$0xff]  ;;  %v7168_v37 = vpop.eup %5568 }
  0xe2   :  { %v2308_v59 = vsub.f32 %v1340_v48, %v6647_v26  ;;  %v7163_v60 = vadd.f32 0.2, %v2305_v17  ;;  %v2307_v49 = vsub.f32 %v1333_v51, %v6647_v26  ;;  %v1349_v34 = vmul.f32 %v7017_v36, %v6911_v29 }
  0xe3   :  { %5576 = vrsqrt.f32 %v7139_v30  ;;  %v1342_v17 = vmul.f32 %v7024_v13, %v6916_v62  ;;  %v7180_v48 = vadd.f32 1e-09, %v1027_v47  ;;  %v7182_v51 = vadd.f32 1e-09, %v1030_v28  ;;  %v12496_v13 = vld [vmem:[#allocation7_spill] sm:$0xff]  ;;  %v12497_v47 = vld [vmem:[#allocation8_spill] sm:$0xff] }
  0xe4   :  { %12490 = vst [vmem:[#allocation5_spill] sm:$0xff] %v7163_v60  ;;  %v7185_v36 = vsel %vm792_vm1, %v2823_v54, 0.0  ;;  %5578 = vrsqrt.f32 %v7156_v10  ;;  %v7195_v30 = vadd.f32 0.2, %v2308_v59  ;;  %v12122_v28 = vmax.f32 %v7163_v60, 0.0 }
  0xe5   :  { %684 = vadd.xlane.f32.xlu1 %v12488_v23  ;;  %681 = vadd.xlane.f32.xlu0 %v12489_v41  ;;  %12491 = vst [vmem:[#allocation6_spill] sm:$0xff] %v7180_v48  ;;  %12492 = vst [vmem:[#allocation35_spill] sm:$0xff] %v7182_v51  ;;  %v2826_v23 = vmul.f32 %v2698_v39, %v7002_v16  ;;  %v7189_v41 = vadd.f32 1e-09, %v1029_v1  ;;  %v7201_v54 = vadd.f32 0.2, %v2307_v49  ;;  %5580 = vrsqrt.f32 %v7180_v48 }
  0xe6   :  { %12493 = vst [vmem:[#allocation36_spill] sm:$0xff] %v7185_v36  ;;  %12495 = vst [vmem:[#allocation38_spill] sm:$0xff] %v7195_v30  ;;  %v1351_v39 = vsel %vm1350_vm4, %v6911_v29, %v1349_v34  ;;  %v1032_v1 = vmax.f32 %v7037_v11, 0.0  ;;  %v1031_v10 = vmax.f32 %v7039_v40, 0.0  ;;  %v1353_v59 = vand.u32 2147483648, %v6911_v29  ;;  %v7215_v34 = vpop.eup %5570 }
  0xe7   :  { %12494 = vst [vmem:[#allocation37_spill] sm:$0xff] %v7189_v41  ;;  %12498 = vst [vmem:[#allocation7_spill] sm:$0xff] %v7201_v54  ;;  %v1344_v21 = vsel %vm1343_vm5, %v6916_v62, %v1342_v17  ;;  %v1346_v49 = vand.u32 2147483648, %v6916_v62  ;;  %v1363_v40 = vmul.f32 %v7092_v8, %v6967_v63  ;;  %5582 = vrsqrt.f32 %v7182_v51  ;;  %v12500_v17 = vld [vmem:[#allocation9_spill] sm:$0xff]  ;;  %v7227_v36 = vpop.eup %5572 }
  0xe8   :  { %v1354_v11 = vsel %vm1352_vm6, %v1353_v59, %v1351_v39  ;;  %v2697_v29 = vmul.f32 16.0, %v12122_v28  ;;  %5584 = vrsqrt.f32 %v7189_v41  ;;  %v7230_v62 = vadd.f32 1e-09, %v1032_v1  ;;  %v7235_v59 = vpop.xlane.xlu1 %462  ;;  %v12503_v41 = vld [vmem:[#allocation11_spill] sm:$0xff] }
  0xe9   :  { %690 = vadd.xlane.f32.xlu1 %v12496_v13  ;;  %687 = vadd.xlane.f32.xlu0 %v12497_v47  ;;  %v7211_v13 = vsel %vm792_vm1, %v2826_v23, 0.0  ;;  %v12128_v47 = vmax.f32 %v7195_v30, 0.0  ;;  %v12501_v23 = vld [vmem:[#allocation10_spill] sm:$0xff]  ;;  %v7232_v39 = vadd.f32 1e-09, %v1031_v10  ;;  %v1034_v8 = vmax.f32 %v7085_v0, 0.0 }
  0xea   :  { %12499 = vst [vmem:[#allocation8_spill] sm:$0xff] %v7211_v13  ;;  %v1347_v13 = vsel %vm1345_vm7, %v1346_v49, %v1344_v21  ;;  %v1033_v28 = vmax.f32 %v7087_v33, 0.0  ;;  %v2310_v21 = vsub.f32 %v1354_v11, %v6647_v26  ;;  %v1356_v1 = vmul.f32 %v7104_v43, %v6977_v20 }
  0xeb   :  { %v1036_v10 = vmax.f32 %v7141_v6, 0.0  ;;  %v2700_v0 = vmul.f32 16.0, %v12128_v47  ;;  %v2309_v48 = vsub.f32 %v1347_v13, %v6647_v26  ;;  %v1365_v60 = vsel %vm1364_vm8, %v6967_v63, %v1363_v40 }
  0xec   :  { %v1035_v33 = vmax.f32 %v7143_v14, 0.0  ;;  %v2825_v11 = vmul.f32 %v2697_v29, %v6932_v46  ;;  %v12504_v43 = vmax.f32 %v7201_v54, 0.0  ;;  %v1367_v6 = vand.u32 2147483648, %v6967_v63 }
  0xed   :  { %696 = vadd.xlane.f32.xlu1 %v12500_v17  ;;  %693 = vadd.xlane.f32.xlu0 %v12501_v23  ;;  %v7237_v17 = vpop.xlane.xlu0 %459  ;;  %v7239_v23 = vpop.eup %5574  ;;  %5586 = vrsqrt.f32 %v7230_v62  ;;  %v7263_v13 = vadd.f32 1e-09, %v1034_v8  ;;  %v7267_v14 = vadd.f32 1e-09, %v1033_v28  ;;  %v1358_v40 = vsel %vm1357_vm10, %v6977_v20, %v1356_v1 }
  0xee   :  { %v7246_v49 = vpop.eup %5576  ;;  %v2699_v51 = vmul.f32 16.0, %v12504_v43  ;;  %v7272_v29 = vadd.f32 1e-09, %v1036_v10  ;;  %v7274_v43 = vpop.xlane.xlu1 %468  ;;  %v2828_v8 = vmul.f32 %v2700_v0, %v6973_v22  ;;  %v7279_v54 = vadd.f32 0.2, %v2309_v48 }
  0xef   :  { %12502 = vst [vmem:[#allocation9_spill] sm:$0xff] %v7246_v49  ;;  %v7260_v49 = vpop.eup %5578  ;;  %12505 = vst [vmem:[#allocation10_spill] sm:$0xff] %v7267_v14  ;;  %v1360_v63 = vand.u32 2147483648, %v6977_v20  ;;  %5588 = vrsqrt.f32 %v7232_v39  ;;  %v7285_v28 = vadd.f32 1e-09, %v1035_v33  ;;  %v1377_v1 = vmul.f32 %v7116_v12, %v6996_v31 }
  0xf0   :  { %12507 = vst [vmem:[#allocation39_spill] sm:$0xff] %v7272_v29  ;;  %12508 = vst [vmem:[#allocation40_spill] sm:$0xff] %v7279_v54  ;;  %v7282_v30 = vpop.eup %5580  ;;  %5590 = vrsqrt.f32 %v7263_v13  ;;  %v1037_v0 = vmax.f32 %v7193_v44, 0.0  ;;  %v7308_v33 = vsel %vm792_vm1, %v2828_v8, 0.0  ;;  %v12135_v12 = vmax.f32 %v7279_v54, 0.0 }
  0xf1   :  { %702 = vadd.xlane.f32.xlu1 %v12503_v41  ;;  %699 = vadd.xlane.f32.xlu0 %v6738_v32  ;;  %v7269_v32 = vadd.f32 0.2, %v2310_v21  ;;  %v1368_v41 = vsel %vm1366_vm9, %v1367_v6, %v1365_v60  ;;  %v7276_v47 = vpop.xlane.xlu0 %465  ;;  %12509 = vst [vmem:[#allocation41_spill] sm:$0xff] %v7285_v28  ;;  %v2827_v60 = vmul.f32 %v2699_v51, %v6900_v9  ;;  %v7295_v10 = vpop.eup %5582  ;;  %5592 = vrsqrt.f32 %v7267_v14 }
  0xf2   :  { %v2312_v48 = vsub.f32 %v1368_v41, %v6647_v26  ;;  %v1361_v21 = vsel %vm1359_vm11, %v1360_v63, %v1358_v40  ;;  %v7303_v20 = vpop.eup %5584  ;;  %5594 = vrsqrt.f32 %v7272_v29  ;;  %v1040_v44 = vmax.f32 %v7235_v59, 0.0  ;;  %v475_v6 = vpop.xlane.xlu1 %474 }
  0xf3   :  { %12506 = vst [vmem:[#allocation11_spill] sm:$0xff] %v7269_v32  ;;  %v12131_v51 = vmax.f32 %v7269_v32, 0.0  ;;  %5596 = vrsqrt.f32 %v7285_v28  ;;  %v1379_v8 = vsel %vm1378_vm12, %v6996_v31, %v1377_v1  ;;  %v1039_v63 = vmax.f32 %v7237_v17, 0.0  ;;  %v12514_v17 = vld [vmem:[#allocation14_spill] sm:$0xff] }
  0xf4   :  { %v7322_v40 = vadd.f32 0.2, %v2312_v48  ;;  %v1042_v48 = vmax.f32 %v7274_v43, 0.0  ;;  %v2701_v1 = vmul.f32 16.0, %v12135_v12  ;;  %v1044_v28 = vmax.f32 %v475_v6, 0.0  ;;  %v12518_v43 = vld [vmem:[#allocation15_spill] sm:$0xff] }
  0xf5   :  { %708 = vadd.xlane.f32.xlu1 %v6751_v45  ;;  %705 = vadd.xlane.f32.xlu0 %v6763_v50  ;;  %v1038_v45 = vmax.f32 %v7191_v15, 0.0  ;;  %v7300_v50 = vsel %vm792_vm1, %v2825_v11, 0.0  ;;  %v7315_v15 = vsel %vm792_vm1, %v2827_v60, 0.0  ;;  %v2311_v11 = vsub.f32 %v1361_v21, %v6647_v26  ;;  %v7320_v41 = vpop.xlane.xlu0 %471 }
  0xf6   :  { %12510 = vst [vmem:[#allocation42_spill] sm:$0xff] %v7322_v40  ;;  %v2702_v26 = vmul.f32 16.0, %v12131_v51  ;;  %v1381_v60 = vand.u32 2147483648, %v6996_v31  ;;  %v7335_v21 = vadd.f32 1e-09, %v1037_v0  ;;  %v481_v6 = vpop.xlane.xlu1 %480  ;;  %vm1373_vm15 = vcmp.eq.f32.partialorder %v7008_v7, 0.0 }
  0xf7   :  { %v7333_v59 = vpop.eup %5586  ;;  %v7344_v51 = vadd.f32 0.2, %v2311_v11  ;;  %v7347_v0 = vadd.f32 1e-09, %v1040_v44  ;;  %v7354_v31 = vadd.f32 1e-09, %v1039_v63 }
  0xf8   :  { %12512 = vst [vmem:[#allocation44_spill] sm:$0xff] %v7335_v21  ;;  %v1382_v32 = vsel %vm1380_vm13, %v1381_v60, %v1379_v8  ;;  %v1374_v11 = vand.u32 2147483648, %v7008_v7  ;;  %v7361_v44 = vadd.f32 1e-09, %v1042_v48  ;;  %vm1392_vm0 = vcmp.eq.f32.partialorder %v7019_v27, inf }
  0xf9   :  { %714 = vadd.xlane.f32.xlu1 %v6766_v24  ;;  %711 = vadd.xlane.f32.xlu0 %v6773_v19  ;;  %v1370_v24 = vmul.f32 %v7128_v25, %v7008_v7  ;;  %v7327_v19 = vadd.f32 1e-09, %v1038_v45  ;;  %v1041_v25 = vmax.f32 %v7276_v47, 0.0  ;;  %v12513_v45 = vld [vmem:[#allocation13_spill] sm:$0xff]  ;;  %v7351_v54 = vpop.eup %5588  ;;  %v2830_v47 = vmul.f32 %v2702_v26, %v7013_v57  ;;  %v478_v60 = vpop.xlane.xlu0 %477  ;;  %v12519_v26 = vld [vmem:[#allocation16_spill] sm:$0xff] }
  0xfa   :  { %12515 = vst [vmem:[#allocation13_spill] sm:$0xff] %v7344_v51  ;;  %v7358_v8 = vpop.eup %5590  ;;  %vm1385_vm2 = vcmp.eq.f32.partialorder %v7027_v5, inf  ;;  %vm1394_vm3 = vcmp.eq.f32.partialorder %v7019_v27, 0.0  ;;  %vm1387_vm4 = vcmp.eq.f32.partialorder %v7027_v5, 0.0  ;;  %vm1413_vm9 = vcmp.eq.f32.partialorder %v7118_v53, inf }
  0xfb   :  { %12511 = vst [vmem:[#allocation43_spill] sm:$0xff] %v7327_v19  ;;  %v1372_v12 = vsel %vm1371_vm14, %v7008_v7, %v1370_v24  ;;  %5598 = vrsqrt.f32 %v7327_v19  ;;  %v7367_v63 = vadd.f32 1e-09, %v1041_v25  ;;  %v2829_v19 = vmul.f32 %v2701_v1, %v7048_v35 }
  0xfc   :  { %5600 = vrsqrt.f32 %v7335_v21  ;;  %v12145_v21 = vmax.f32 %v7344_v51, 0.0  ;;  %v1375_v48 = vsel %vm1373_vm15, %v1374_v11, %v1372_v12  ;;  %v1043_v7 = vmax.f32 %v7320_v41, 0.0 }
  0xfd   :  { %720 = vadd.xlane.f32.xlu1 %v12513_v45  ;;  %717 = vadd.xlane.f32.xlu0 %v12514_v17  ;;  %v12516_v45 = vld [vmem:[#allocation12_spill] sm:$0xff]  ;;  %v7365_v17 = vpop.eup %5592  ;;  %5602 = vrsqrt.f32 %v7347_v0  ;;  %v12521_v25 = vmax.f32 %v7322_v40, 0.0  ;;  %v1045_v1 = vmax.f32 %v478_v60, 0.0  ;;  %v1391_v12 = vmul.f32 %v7136_v58, %v7019_v27 }
  0xfe   :  { %v2314_v24 = vsub.f32 %v1382_v32, %v12516_v45  ;;  %12517 = vst [vmem:[#allocation14_spill] sm:$0xff] %v7365_v17  ;;  %v7373_v29 = vpop.eup %5594  ;;  %v7376_v32 = vadd.f32 1e-09, %v1044_v28  ;;  %5604 = vrsqrt.f32 %v7354_v31  ;;  %v2313_v28 = vsub.f32 %v1375_v48, %v12516_v45 }
  0xff   :  { %v2704_v17 = vmul.f32 16.0, %v12521_v25  ;;  %v7381_v14 = vpop.eup %5596  ;;  %5606 = vrsqrt.f32 %v7361_v44  ;;  %v1384_v41 = vmul.f32 %v7146_v3, %v7027_v5  ;;  %v7399_v58 = vsel %vm792_vm1, %v2829_v19, 0.0  ;;  %v487_v19 = vpop.xlane.xlu1 %486 }
 0x100   :  { %12520 = vst [vmem:[#allocation12_spill] sm:$0xff] %v7376_v32  ;;  %v7387_v11 = vadd.f32 0.2, %v2314_v24  ;;  %5608 = vrsqrt.f32 %v7367_v63  ;;  %v2703_v60 = vmul.f32 16.0, %v12145_v21  ;;  %v7404_v24 = vadd.f32 1e-09, %v1043_v7 }
 0x101   :  { %726 = vadd.xlane.f32.xlu1 %v12518_v43  ;;  %723 = vadd.xlane.f32.xlu0 %v12519_v26  ;;  %v1046_v43 = vmax.f32 %v481_v6, 0.0  ;;  %v7396_v6 = vsel %vm792_vm1, %v2830_v47, 0.0  ;;  %5610 = vrsqrt.f32 %v7376_v32  ;;  %v2832_v3 = vmul.f32 %v2704_v17, %v7109_v55  ;;  %v484_v26 = vpop.xlane.xlu0 %483 }
 0x102   :  { %12522 = vst [vmem:[#allocation15_spill] sm:$0xff] %v7387_v11  ;;  %12523 = vst [vmem:[#allocation16_spill] sm:$0xff] %v7404_v24  ;;  %v1393_v47 = vsel %vm1392_vm0, %v7019_v27, %v1391_v12  ;;  %v7415_v25 = vadd.f32 0.2, %v2313_v28  ;;  %v1395_v7 = vand.u32 2147483648, %v7019_v27  ;;  %v1386_v17 = vsel %vm1385_vm2, %v7027_v5, %v1384_v41  ;;  %v12527_v12 = vld [vmem:[#allocation29_spill] sm:$0xff] }
 0x103   :  { %v1405_v28 = vmul.f32 %v7153_v4, %v12527_v12  ;;  %5612 = vrsqrt.f32 %v7404_v24  ;;  %v7432_v41 = vsel %vm792_vm1, %v2832_v3, 0.0  ;;  %v12528_v40 = vmax.f32 %v7387_v11, 0.0  ;;  %v12529_v24 = vld [vmem:[#allocation31_spill] sm:$0xff] }
 0x104   :  { %12526 = vst [vmem:[#allocation47_spill] sm:$0xff] %v7415_v25  ;;  %v1396_v51 = vsel %vm1394_vm3, %v1395_v7, %v1393_v47  ;;  %vm1406_vm5 = vcmp.eq.f32.partialorder %v12527_v12, inf  ;;  %v1398_v3 = vmul.f32 %v7168_v37, %v12529_v24  ;;  %v1409_v37 = vand.u32 2147483648, %v12527_v12 }
 0x105   :  { %3461 = vadd.xlane.f32.xlu1 %v7067_v52  ;;  %3458 = vadd.xlane.f32.xlu0 %v7042_v38  ;;  %v7408_v52 = vadd.f32 1e-09, %v1046_v43  ;;  %v7410_v38 = vadd.f32 1e-09, %v1045_v1  ;;  %v7419_v21 = vpop.eup %5598  ;;  %v2831_v43 = vmul.f32 %v2703_v60, %v7124_v42  ;;  %v1388_v1 = vand.u32 2147483648, %v7027_v5  ;;  %v12530_v5 = vld [vmem:[#allocation32_spill] sm:$0xff] }
 0x106   :  { %v7428_v48 = vpop.eup %5600  ;;  %v2706_v4 = vmul.f32 16.0, %v12528_v40  ;;  %v2316_v40 = vsub.f32 %v1396_v51, %v12516_v45  ;;  %vm1408_vm6 = vcmp.eq.f32.partialorder %v12527_v12, 0.0  ;;  %vm1399_vm7 = vcmp.eq.f32.partialorder %v12529_v24, inf }
 0x107   :  { %12524 = vst [vmem:[#allocation45_spill] sm:$0xff] %v7408_v52  ;;  %12525 = vst [vmem:[#allocation46_spill] sm:$0xff] %v7410_v38  ;;  %5614 = vrsqrt.f32 %v7408_v52  ;;  %v1389_v27 = vsel %vm1387_vm4, %v1388_v1, %v1386_v17  ;;  %v7436_v60 = vpop.eup %5602  ;;  %v12531_v1 = vld [vmem:[#allocation34_spill] sm:$0xff]  ;;  %v7483_v52 = vpop.xlane.xlu1 %492  ;;  %vm1401_vm10 = vcmp.eq.f32.partialorder %v12529_v24, 0.0  ;;  %vm1415_vm12 = vcmp.eq.f32.partialorder %v7118_v53, 0.0 }
 0x108   :  { %v7444_v47 = vpop.eup %5604  ;;  %5616 = vrsqrt.f32 %v7410_v38  ;;  %v2315_v17 = vsub.f32 %v1389_v27, %v12516_v45  ;;  %v1419_v32 = vmul.f32 %v7215_v34, %v12531_v1  ;;  %v12534_v27 = vmax.f32 %v7415_v25, 0.0  ;;  %v12540_v25 = vld [vmem:[#allocation3_spill] sm:$0xff] }
 0x109   :  { %3467 = vadd.xlane.f32.xlu1 %v7059_v18  ;;  %3464 = vadd.xlane.f32.xlu0 %v6956_v61  ;;  %v1048_v61 = vmax.f32 %v487_v19, 0.0  ;;  %v1047_v18 = vmax.f32 %v484_v26, 0.0  ;;  %v7450_v19 = vsel %vm792_vm1, %v2831_v43, 0.0  ;;  %v1407_v26 = vsel %vm1406_vm5, %v12527_v12, %v1405_v28  ;;  %v7454_v7 = vpop.eup %5606 }
 0x10a   :  { %v2834_v28 = vmul.f32 %v2706_v4, %v7002_v16  ;;  %v2705_v34 = vmul.f32 16.0, %v12534_v27  ;;  %v1410_v38 = vsel %vm1408_vm6, %v1409_v37, %v1407_v26  ;;  %v1402_v12 = vand.u32 2147483648, %v12529_v24 }
 0x10b   :  { %v7464_v43 = vadd.f32 1e-09, %v1048_v61  ;;  %v7466_v11 = vadd.f32 1e-09, %v1047_v18  ;;  %v12535_v61 = vld [vmem:[#allocation36_spill] sm:$0xff]  ;;  %vm1420_vm8 = vcmp.eq.f32.partialorder %v12531_v1, inf  ;;  %v2318_v26 = vsub.f32 %v1410_v38, %v12516_v45 }
 0x10c   :  { %v7478_v18 = vadd.f32 0.2, %v2316_v40  ;;  %v7485_v4 = vadd.f32 0.2, %v2315_v17  ;;  %v1423_v37 = vand.u32 2147483648, %v12531_v1  ;;  %v1416_v27 = vand.u32 2147483648, %v7118_v53 }
 0x10d   :  { %3473 = vadd.xlane.f32.xlu1 %v12530_v5  ;;  %3470 = vadd.xlane.f32.xlu0 %v7173_v2  ;;  %v1412_v5 = vmul.f32 %v7227_v36, %v7118_v53  ;;  %v7462_v2 = vpop.eup %5608  ;;  %12532 = vst [vmem:[#allocation29_spill] sm:$0xff] %v7464_v43  ;;  %v1400_v36 = vsel %vm1399_vm7, %v12529_v24, %v1398_v3  ;;  %vm1422_vm11 = vcmp.eq.f32.partialorder %v12531_v1, 0.0  ;;  %v12539_v17 = vld [vmem:[#allocation2_spill] sm:$0xff]  ;;  %5618 = vrsqrt.f32 %v7464_v43  ;;  %v7515_v43 = vpop.xlane.xlu0 %489 }
 0x10e   :  { %v7470_v51 = vpop.eup %5610  ;;  %12536 = vst [vmem:[#allocation32_spill] sm:$0xff] %v7478_v18  ;;  %12537 = vst [vmem:[#allocation34_spill] sm:$0xff] %v7485_v4  ;;  %v1421_v3 = vsel %vm1420_vm8, %v12531_v1, %v1419_v32  ;;  %v1403_v40 = vsel %vm1401_vm10, %v1402_v12, %v1400_v36  ;;  %v1433_v24 = vmul.f32 %v7239_v23, %v12539_v17  ;;  %v12541_v32 = vld [vmem:[#allocation9_spill] sm:$0xff]  ;;  %v12543_v36 = vld [vmem:[#allocation8_spill] sm:$0xff]  ;;  %v7517_v38 = vadd.f32 0.2, %v2318_v26 }
 0x10f   :  { %12533 = vst [vmem:[#allocation31_spill] sm:$0xff] %v7470_v51  ;;  %v1426_v51 = vmul.f32 %v12541_v32, %v12540_v25  ;;  %v1424_v12 = vsel %vm1422_vm11, %v1423_v37, %v1421_v3  ;;  %v2833_v23 = vmul.f32 %v2705_v34, %v6932_v46  ;;  %v12160_v32 = vmax.f32 %v7485_v4, 0.0  ;;  %v12545_v26 = vld [vmem:[#allocation4_spill] sm:$0xff]  ;;  %v12546_v37 = vld [vmem:[#allocation6_spill] sm:$0xff] }
 0x110   :  { %12544 = vst [vmem:[#allocation3_spill] sm:$0xff] %v7517_v38  ;;  %vm1434_vm13 = vcmp.eq.f32.partialorder %v12539_v17, inf  ;;  %vm1427_vm14 = vcmp.eq.f32.partialorder %v12540_v25, inf  ;;  %v1437_v3 = vand.u32 2147483648, %v12539_v17  ;;  %vm1436_vm15 = vcmp.eq.f32.partialorder %v12539_v17, 0.0 }
 0x111   :  { %3479 = vadd.xlane.f32.xlu1 %v7176_v56  ;;  %3476 = vadd.xlane.f32.xlu0 %v12535_v61  ;;  %v1414_v56 = vsel %vm1413_vm9, %v7118_v53, %v1412_v5  ;;  %v7493_v61 = vpop.eup %5612  ;;  %v7508_v53 = vsel %vm792_vm1, %v2834_v28, 0.0  ;;  %v1435_v28 = vsel %vm1434_vm13, %v12539_v17, %v1433_v24  ;;  %v1428_v34 = vsel %vm1427_vm14, %v12540_v25, %v1426_v51  ;;  %v7550_v17 = vpop.xlane.xlu0 %495 }
 0x112   :  { %12538 = vst [vmem:[#allocation36_spill] sm:$0xff] %v7493_v61  ;;  %v7501_v5 = vpop.eup %5614  ;;  %v1417_v1 = vsel %vm1415_vm12, %v1416_v27, %v1414_v56  ;;  %v12161_v61 = vmax.f32 %v7478_v18, 0.0  ;;  %v1430_v56 = vand.u32 2147483648, %v12540_v25  ;;  %v1440_v27 = vmul.f32 %v7282_v30, %v12546_v37 }
 0x113   :  { %12542 = vst [vmem:[#allocation2_spill] sm:$0xff] %v7501_v5  ;;  %v7513_v5 = vpop.eup %5616  ;;  %v2319_v46 = vsub.f32 %v1417_v1, %v12516_v45  ;;  %vm1429_vm0 = vcmp.eq.f32.partialorder %v12540_v25, 0.0  ;;  %v1438_v51 = vsel %vm1436_vm15, %v1437_v3, %v1435_v28  ;;  %v12167_v30 = vmax.f32 %v7517_v38, 0.0  ;;  %v12550_v28 = vld [vmem:[#allocation35_spill] sm:$0xff] }
 0x114   :  { %v2708_v24 = vmul.f32 16.0, %v12161_v61  ;;  %vm1448_vm2 = vcmp.eq.f32.partialorder %v12545_v26, inf  ;;  %vm1441_vm3 = vcmp.eq.f32.partialorder %v12546_v37, inf  ;;  %v1444_v61 = vand.u32 2147483648, %v12546_v37 }
 0x115   :  { %3485 = vadd.xlane.f32.xlu1 %v12543_v36  ;;  %3482 = vadd.xlane.f32.xlu0 %v7300_v50  ;;  %v2317_v36 = vsub.f32 %v1403_v40, %v12516_v45  ;;  %v2320_v50 = vsub.f32 %v1424_v12, %v12516_v45  ;;  %v1447_v40 = vmul.f32 %v7260_v49, %v12545_v26  ;;  %v3505_v45 = vsel %vm792_vm1, %v2833_v23, 0.0  ;;  %v7543_v49 = vpop.xlane.xlu1 %498 }
 0x116   :  { %v1431_v12 = vsel %vm1429_vm0, %v1430_v56, %v1428_v34  ;;  %v7554_v25 = vadd.f32 0.2, %v2319_v46  ;;  %v12551_v34 = vld [vmem:[#allocation23_spill] sm:$0xff]  ;;  %vm1450_vm4 = vcmp.eq.f32.partialorder %v12545_v26, 0.0  ;;  %vm1443_vm5 = vcmp.eq.f32.partialorder %v12546_v37, 0.0 }
 0x117   :  { %v7546_v1 = vadd.f32 0.2, %v2320_v50  ;;  %v1449_v23 = vsel %vm1448_vm2, %v12545_v26, %v1447_v40  ;;  %v1461_v50 = vmul.f32 %v7295_v10, %v12550_v28  ;;  %v2322_v3 = vsub.f32 %v1438_v51, %v12551_v34 }
 0x118   :  { %12549 = vst [vmem:[#allocation4_spill] sm:$0xff] %v7554_v25  ;;  %v2321_v56 = vsub.f32 %v1431_v12, %v12551_v34  ;;  %vm1462_vm6 = vcmp.eq.f32.partialorder %v12550_v28, inf  ;;  %vm1464_vm7 = vcmp.eq.f32.partialorder %v12550_v28, 0.0  ;;  %vm1476_vm10 = vcmp.eq.f32.partialorder %v7230_v62, inf }
 0x119   :  { %3491 = vadd.xlane.f32.xlu1 %v7308_v33  ;;  %3488 = vadd.xlane.f32.xlu0 %v7315_v15  ;;  %v2707_v33 = vmul.f32 16.0, %v12160_v32  ;;  %v7541_v15 = vadd.f32 0.2, %v2317_v36  ;;  %12548 = vst [vmem:[#allocation8_spill] sm:$0xff] %v7546_v1  ;;  %v1442_v36 = vsel %vm1441_vm3, %v12546_v37, %v1440_v27  ;;  %v1451_v32 = vand.u32 2147483648, %v12545_v26  ;;  %v7579_v37 = vpop.xlane.xlu1 %504 }
 0x11a   :  { %v12164_v10 = vmax.f32 %v7546_v1, 0.0  ;;  %v1445_v27 = vsel %vm1443_vm5, %v1444_v61, %v1442_v36  ;;  %v1463_v26 = vsel %vm1462_vm6, %v12550_v28, %v1461_v50  ;;  %v7581_v12 = vadd.f32 0.2, %v2322_v3 }
 0x11b   :  { %12547 = vst [vmem:[#allocation9_spill] sm:$0xff] %v7541_v15  ;;  %v12162_v46 = vmax.f32 %v7541_v15, 0.0  ;;  %v1452_v40 = vsel %vm1450_vm4, %v1451_v32, %v1449_v23  ;;  %v2835_v51 = vmul.f32 %v2707_v33, %v6900_v9  ;;  %v7583_v61 = vadd.f32 0.2, %v2321_v56  ;;  %v7588_v23 = vpop.xlane.xlu0 %501 }
 0x11c   :  { %12552 = vst [vmem:[#allocation6_spill] sm:$0xff] %v7581_v12  ;;  %v1465_v32 = vand.u32 2147483648, %v12550_v28  ;;  %v2324_v33 = vsub.f32 %v1452_v40, %v12551_v34  ;;  %v2323_v36 = vsub.f32 %v1445_v27, %v12551_v34  ;;  %v2712_v3 = vmul.f32 16.0, %v12164_v10 }
 0x11d   :  { %3497 = vadd.xlane.f32.xlu1 %v7396_v6  ;;  %3494 = vadd.xlane.f32.xlu0 %v7399_v58  ;;  %v7564_v6 = vpop.eup %5618  ;;  %v2836_v58 = vmul.f32 %v2708_v24, %v6973_v22  ;;  %v2710_v22 = vmul.f32 16.0, %v12167_v30  ;;  %v12163_v24 = vmax.f32 %v7554_v25, 0.0  ;;  %12553 = vst [vmem:[#allocation35_spill] sm:$0xff] %v7583_v61  ;;  %v2709_v50 = vmul.f32 16.0, %v12162_v46 }
 0x11e   :  { %v1466_v56 = vsel %vm1464_vm7, %v1465_v32, %v1463_v26  ;;  %v12166_v27 = vmax.f32 %v7581_v12, 0.0  ;;  %v12165_v46 = vmax.f32 %v7583_v61, 0.0  ;;  %v1475_v32 = vmul.f32 %v7333_v59, %v7230_v62 }
 0x11f   :  { %v3514_v9 = vsel %vm792_vm1, %v2836_v58, 0.0  ;;  %v2838_v58 = vmul.f32 %v2710_v22, %v7013_v57  ;;  %v2711_v40 = vmul.f32 16.0, %v12163_v24  ;;  %v2326_v57 = vsub.f32 %v1466_v56, %v12551_v34  ;;  %v7622_v59 = vpop.xlane.xlu0 %507 }
 0x120   :  { %v2837_v22 = vmul.f32 %v2709_v50, %v7048_v35  ;;  %v1049_v10 = vmax.f32 %v7515_v43, 0.0  ;;  %v2714_v50 = vmul.f32 16.0, %v12166_v27  ;;  %v1479_v56 = vand.u32 2147483648, %v7230_v62 }
 0x121   :  { %3503 = vadd.xlane.f32.xlu1 %v7432_v41  ;;  %3500 = vadd.xlane.f32.xlu0 %v7450_v19  ;;  %v12554_v41 = vld [vmem:[#allocation37_spill] sm:$0xff]  ;;  %v1468_v43 = vmul.f32 %v7351_v54, %v7232_v39  ;;  %vm1478_vm11 = vcmp.eq.f32.partialorder %v7230_v62, 0.0  ;;  %vm1469_vm12 = vcmp.eq.f32.partialorder %v7232_v39, inf  ;;  %vm1471_vm13 = vcmp.eq.f32.partialorder %v7232_v39, 0.0 }
 0x122   :  { %v1454_v19 = vmul.f32 %v7303_v20, %v12554_v41  ;;  %vm1455_vm8 = vcmp.eq.f32.partialorder %v12554_v41, inf  ;;  %v3511_v20 = vsel %vm792_vm1, %v2835_v51, 0.0  ;;  %v1458_v26 = vand.u32 2147483648, %v12554_v41  ;;  %v7616_v51 = vpop.xlane.xlu1 %510 }
 0x123   :  { %vm1457_vm9 = vcmp.eq.f32.partialorder %v12554_v41, 0.0  ;;  %5620 = vrsqrt.f32 %v7466_v11  ;;  %v12562_v30 = vmax.f32 %v7483_v52, 0.0  ;;  %v7686_v52 = vld [vmem:[%s12086_s2 + $0x18] sm:$0xff]  ;;  %vm1490_vm14 = vcmp.eq.f32.partialorder %v7263_v13, inf }
 0x124   :  { %v1456_v28 = vsel %vm1455_vm8, %v12554_v41, %v1454_v19  ;;  %v2840_v19 = vmul.f32 %v2712_v3, %v7109_v55  ;;  %v1477_v41 = vsel %vm1476_vm10, %v7230_v62, %v1475_v32  ;;  %v2713_v3 = vmul.f32 16.0, %v12165_v46 }
 0x125   :  { %3509 = vadd.xlane.f32.xlu1 %v7508_v53  ;;  %3506 = vadd.xlane.f32.xlu0 %v3505_v45  ;;  %v7610_v53 = vadd.f32 0.2, %v2324_v33  ;;  %v7612_v45 = vadd.f32 0.2, %v2323_v36  ;;  %v1459_v24 = vsel %vm1457_vm9, %v1458_v26, %v1456_v28  ;;  %v2839_v33 = vmul.f32 %v2711_v40, %v7124_v42 }
 0x126   :  { %v2325_v36 = vsub.f32 %v1459_v24, %v12551_v34  ;;  %v7636_v40 = vadd.f32 0.2, %v2326_v57  ;;  %v3520_v24 = vsel %vm792_vm1, %v2838_v58, 0.0  ;;  %v3517_v28 = vsel %vm792_vm1, %v2837_v22, 0.0  ;;  %v7647_v57 = vpop.xlane.xlu1 %516  ;;  %v7653_v58 = vld [vmem:[%s12086_s2] sm:$0xff] }
 0x127   :  { %12555 = vst [vmem:[#allocation23_spill] sm:$0xff] %v7610_v53  ;;  %12556 = vst [vmem:[#allocation37_spill] sm:$0xff] %v7612_v45  ;;  %v1480_v32 = vsel %vm1478_vm11, %v1479_v56, %v1477_v41  ;;  %v3526_v46 = vsel %vm792_vm1, %v2840_v19, 0.0  ;;  %v3523_v54 = vsel %vm792_vm1, %v2839_v33, 0.0  ;;  %v2842_v62 = vmul.f32 %v2714_v50, %v7002_v16  ;;  %v7658_v33 = vpop.xlane.xlu0 %513 }
 0x128   :  { %12557 = vst [vmem:[#allocation48_spill] sm:$0xff] %v7636_v40  ;;  %v7641_v26 = vadd.f32 0.2, %v2325_v36  ;;  %v2328_v27 = vsub.f32 %v1480_v32, %v12551_v34  ;;  %v2841_v22 = vmul.f32 %v7653_v58, %v2713_v3  ;;  %v1470_v36 = vsel %vm1469_vm12, %v7232_v39, %v1468_v43  ;;  %v12560_v43 = vld [vmem:[#allocation21_spill] sm:$0xff] }
 0x129   :  { %3515 = vadd.xlane.f32.xlu1 %v3514_v9  ;;  %3512 = vadd.xlane.f32.xlu0 %v3511_v20  ;;  %v12168_v9 = vmax.f32 %v7610_v53, 0.0  ;;  %v12169_v20 = vmax.f32 %v7612_v45, 0.0  ;;  %v1472_v19 = vand.u32 2147483648, %v7232_v39  ;;  %v12171_v16 = vmax.f32 %v7636_v40, 0.0 }
 0x12a   :  { %12558 = vst [vmem:[#allocation49_spill] sm:$0xff] %v7641_v26  ;;  %v1051_v50 = vmax.f32 %v7550_v17, 0.0  ;;  %v7707_v45 = vadd.f32 1e-09, %v1049_v10  ;;  %vm1492_vm15 = vcmp.eq.f32.partialorder %v7263_v13, 0.0  ;;  %vm1532_vm12 = vcmp.eq.f32.partialorder %v7347_v0, inf }
 0x12b   :  { %v2716_v41 = vmul.f32 16.0, %v12168_v9  ;;  %v2715_v56 = vmul.f32 16.0, %v12169_v20  ;;  %v1473_v3 = vsel %vm1471_vm13, %v1472_v19, %v1470_v36  ;;  %v7674_v9 = vadd.f32 1e-09, %v12562_v30  ;;  %v12563_v19 = vld [vmem:[#allocation17_spill] sm:$0xff]  ;;  %v7692_v30 = vld [vmem:[%s12086_s2 + $0x10] sm:$0xff]  ;;  %v520_v40 = vpop.xlane.xlu0 %519 }
 0x12c   :  { %v1052_v20 = vmax.f32 %v7543_v49, 0.0  ;;  %v2327_v39 = vsub.f32 %v1473_v3, %v12551_v34  ;;  %v3529_v36 = vsel %vm792_vm1, %v2841_v22, 0.0  ;;  %v2718_v34 = vmul.f32 16.0, %v12171_v16 }
 0x12d   :  { %3521 = vadd.xlane.f32.xlu1 %v3520_v24  ;;  %3518 = vadd.xlane.f32.xlu0 %v3517_v28  ;;  %v7667_v24 = vadd.f32 0.2, %v2328_v27  ;;  %v12561_v28 = vld [vmem:[#allocation24_spill] sm:$0xff]  ;;  %v3532_v27 = vsel %vm792_vm1, %v2842_v62, 0.0  ;;  %v2844_v49 = vmul.f32 %v7686_v52, %v2716_v41  ;;  %v2843_v17 = vmul.f32 %v7692_v30, %v2715_v56  ;;  %v7699_v62 = vpop.xlane.xlu1 %522 }
 0x12e   :  { %v847_v32 = vadd.f32 %v12561_v28, %v12560_v43  ;;  %v848_v43 = vsel %vm792_vm1, %v12563_v19, 0.0  ;;  %v12565_v22 = vmax.f32 %v7641_v26, 0.0  ;;  %v7704_v28 = vadd.f32 0.2, %v2327_v39 }
 0x12f   :  { %12559 = vst [vmem:[#allocation50_spill] sm:$0xff] %v7667_v24  ;;  %5622 = vrsqrt.f32 %v7674_v9  ;;  %v7709_v56 = vadd.f32 1e-09, %v1052_v20  ;;  %v1054_v16 = vmax.f32 %v7579_v37, 0.0  ;;  %v3535_v10 = vsel %vm792_vm1, %v2843_v17, 0.0  ;;  %v7722_v37 = vld [vmem:[%s12086_s2 + $0x28] sm:$0xff] }
 0x130   :  { %v2717_v3 = vmul.f32 16.0, %v12565_v22  ;;  %12566 = vst [vmem:[#allocation21_spill] sm:$0xff] %v7704_v28  ;;  %v849_v19 = vadd.f32 %v848_v43, %v847_v32  ;;  %v1053_v22 = vmax.f32 %v7588_v23, 0.0  ;;  %v12173_v41 = vmax.f32 %v7704_v28, 0.0  ;;  %v12578_v28 = vld [vmem:[#allocation41_spill] sm:$0xff] }
 0x131   :  { %3527 = vadd.xlane.f32.xlu1 %v3526_v46  ;;  %3524 = vadd.xlane.f32.xlu0 %v3523_v54  ;;  %v12564_v46 = vld [vmem:[#allocation19_spill] sm:$0xff]  ;;  %v1056_v32 = vmax.f32 %v7616_v51, 0.0  ;;  %v3538_v43 = vsel %vm792_vm1, %v2844_v49, 0.0  ;;  %v2846_v20 = vmul.f32 %v7722_v37, %v2718_v34  ;;  %v12567_v23 = vmax.f32 %v7667_v24, 0.0 }
 0x132   :  { %v850_v54 = vsel %vm792_vm1, %v12564_v46, 0.0  ;;  %v7712_v46 = vadd.f32 1e-09, %v1051_v50  ;;  %v2845_v50 = vmul.f32 %v2717_v3, %v7048_v35  ;;  %5624 = vrsqrt.f32 %v7707_v45 }
 0x133   :  { %v851_v39 = vadd.f32 %v850_v54, %v849_v19  ;;  %v7731_v49 = vadd.f32 1e-09, %v1054_v16  ;;  %v1055_v17 = vmax.f32 %v7622_v59, 0.0  ;;  %5626 = vrsqrt.f32 %v7709_v56  ;;  %v529_v54 = vpop.xlane.xlu1 %528  ;;  %v7738_v19 = vpop.eup %5620 }
 0x134   :  { %v7735_v34 = vadd.f32 1e-09, %v1053_v22  ;;  %v1058_v35 = vmax.f32 %v7647_v57, 0.0  ;;  %5628 = vrsqrt.f32 %v7712_v46  ;;  %v1057_v16 = vmax.f32 %v7658_v33, 0.0 }
 0x135   :  { %3533 = vadd.xlane.f32.xlu1 %v3532_v27  ;;  %3530 = vadd.xlane.f32.xlu0 %v3529_v36  ;;  %v2720_v27 = vmul.f32 16.0, %v12567_v23  ;;  %v2719_v36 = vmul.f32 16.0, %v12173_v41  ;;  %v852_v51 = vrot.slane %v851_v39, 4  ;;  %v7741_v23 = vadd.f32 1e-09, %v1056_v32  ;;  %v526_v41 = vpop.xlane.xlu0 %525 }
 0x136   :  { %v3544_v59 = vsel %vm792_vm1, %v2846_v20, 0.0  ;;  %5630 = vrsqrt.f32 %v7731_v49  ;;  %v7753_v33 = vadd.f32 1e-09, %v1058_v35  ;;  %v1059_v32 = vmax.f32 %v520_v40, 0.0 }
 0x137   :  { %v853_v3 = vadd.f32 %v852_v51, %v851_v39  ;;  %v2848_v22 = vmul.f32 %v2720_v27, %v7109_v55  ;;  %v7749_v39 = vadd.f32 1e-09, %v1055_v17  ;;  %v1060_v51 = vmax.f32 %v7699_v62, 0.0 }
 0x138   :  { %5632 = vrsqrt.f32 %v7735_v34  ;;  %12569 = vst [vmem:[#allocation17_spill] sm:$0xff] %v7753_v33  ;;  %v1062_v55 = vmax.f32 %v529_v54, 0.0  ;;  %v1061_v27 = vmax.f32 %v526_v41, 0.0  ;;  %v1496_v24 = vmul.f32 %v7381_v14, %v12578_v28 }
 0x139   :  { %3539 = vadd.xlane.f32.xlu1 %v3538_v43  ;;  %3536 = vadd.xlane.f32.xlu0 %v3535_v10  ;;  %v3541_v43 = vsel %vm792_vm1, %v2845_v50, 0.0  ;;  %v2847_v10 = vmul.f32 %v2719_v36, %v7124_v42  ;;  %v854_v57 = vrot.slane %v853_v3, 2  ;;  %12568 = vst [vmem:[#allocation24_spill] sm:$0xff] %v7749_v39  ;;  %v7755_v50 = vpop.eup %5622  ;;  %5634 = vrsqrt.f32 %v7741_v23  ;;  %v535_v36 = vpop.xlane.xlu1 %534 }
 0x13a   :  { %v7758_v42 = vadd.f32 1e-09, %v1057_v16  ;;  %v3550_v17 = vsel %vm792_vm1, %v2848_v22, 0.0  ;;  %5636 = vrsqrt.f32 %v7749_v39  ;;  %v7763_v35 = vadd.f32 1e-09, %v1060_v51  ;;  %v532_v40 = vpop.xlane.xlu0 %531 }
 0x13b   :  { %v855_v20 = vadd.f32 %v854_v57, %v853_v3  ;;  %v3547_v62 = vsel %vm792_vm1, %v2847_v10, 0.0  ;;  %5638 = vrsqrt.f32 %v7753_v33  ;;  %v7766_v3 = vadd.f32 1e-09, %v1059_v32 }
 0x13c   :  { %12570 = vst [vmem:[#allocation19_spill] sm:$0xff] %v7758_v42  ;;  %12571 = vst [vmem:[#allocation51_spill] sm:$0xff] %v7763_v35  ;;  %v7768_v54 = vpop.eup %5624  ;;  %5640 = vrsqrt.f32 %v7758_v42  ;;  %v7771_v41 = vadd.f32 1e-09, %v1062_v55  ;;  %v7775_v22 = vadd.f32 1e-09, %v1061_v27  ;;  %v1489_v32 = vmul.f32 %v7358_v8, %v7263_v13 }
 0x13d   :  { %3545 = vadd.xlane.f32.xlu1 %v3544_v59  ;;  %3542 = vadd.xlane.f32.xlu0 %v3541_v43  ;;  %v856_v59 = vrot.slane %v855_v20, 1  ;;  %12572 = vst [vmem:[#allocation52_spill] sm:$0xff] %v7766_v3  ;;  %v7773_v43 = vpop.eup %5626  ;;  %v1064_v10 = vmax.f32 %v535_v36, 0.0  ;;  %v1063_v57 = vmax.f32 %v532_v40, 0.0  ;;  %5642 = vrsqrt.f32 %v7763_v35  ;;  %v12575_v27 = vld [vmem:[#allocation10_spill] sm:$0xff]  ;;  %v12577_v40 = vld [vmem:[#allocation39_spill] sm:$0xff] }
 0x13e   :  { %12573 = vst [vmem:[#allocation53_spill] sm:$0xff] %v7771_v41  ;;  %12574 = vst [vmem:[#allocation54_spill] sm:$0xff] %v7775_v22  ;;  %5644 = vrsqrt.f32 %v7766_v3  ;;  %v12576_v36 = vld [vmem:[#allocation14_spill] sm:$0xff]  ;;  %v1491_v61 = vsel %vm1490_vm14, %v7263_v13, %v1489_v32  ;;  %v1493_v14 = vand.u32 2147483648, %v7263_v13  ;;  %vm1483_vm0 = vcmp.eq.f32.partialorder %v12575_v27, inf }
 0x13f   :  { %v857_v16 = vadd.f32 %v856_v59, %v855_v20  ;;  %v7783_v20 = vpop.xlane.xlu1 %540  ;;  %5646 = vrsqrt.f32 %v7771_v41  ;;  %v1482_v59 = vmul.f32 %v12576_v36, %v12575_v27  ;;  %v7799_v26 = vadd.f32 1e-09, %v1064_v10  ;;  %v12580_v36 = vld [vmem:[#allocation43_spill] sm:$0xff] }
 0x140   :  { %5648 = vrsqrt.f32 %v7775_v22  ;;  %vm1504_vm2 = vcmp.eq.f32.partialorder %v12577_v40, inf  ;;  %vm1497_vm3 = vcmp.eq.f32.partialorder %v12578_v28, inf  ;;  %v1517_v12 = vmul.f32 %v7419_v21, %v12580_v36 }
 0x141   :  { %3551 = vadd.xlane.f32.xlu1 %v3550_v17  ;;  %3548 = vadd.xlane.f32.xlu0 %v3547_v62  ;;  %v2157_v51 = vmax.f32 %v857_v16, 0.0  ;;  %v7777_v17 = vpop.eup %5628  ;;  %v1503_v16 = vmul.f32 %v7373_v29, %v12577_v40  ;;  %v1484_v10 = vsel %vm1483_vm0, %v12575_v27, %v1482_v59  ;;  %v1498_v32 = vsel %vm1497_vm3, %v12578_v28, %v1496_v24  ;;  %v12583_v24 = vld [vmem:[#allocation44_spill] sm:$0xff]  ;;  %v172_v59 = vld [vmem:[%s12085_s1 + $0xa8] sm:$0xff] }
 0x142   :  { %v7787_v62 = vpop.eup %5630  ;;  %v7823_v13 = vsel %vm1492_vm15, %v1493_v14, %v1491_v61  ;;  %v1486_v1 = vand.u32 2147483648, %v12575_v27  ;;  %v1507_v15 = vand.u32 2147483648, %v12577_v40  ;;  %v1500_v38 = vand.u32 2147483648, %v12578_v28  ;;  %v171_v61 = vld [vmem:[%s12085_s1 + $0xa0] sm:$0xff] }
 0x143   :  { %v7785_v55 = vadd.f32 1e-09, %v2157_v51  ;;  %v7796_v8 = vpop.eup %5632  ;;  %v7801_v51 = vadd.f32 1e-09, %v1063_v57  ;;  %v1505_v57 = vsel %vm1504_vm2, %v12577_v40, %v1503_v16  ;;  %vm1485_vm4 = vcmp.eq.f32.partialorder %v12575_v27, 0.0  ;;  %v7841_v16 = vpop.xlane.xlu0 %537 }
 0x144   :  { %v7804_v53 = vpop.eup %5634  ;;  %vm1506_vm5 = vcmp.eq.f32.partialorder %v12577_v40, 0.0  ;;  %vm1499_vm6 = vcmp.eq.f32.partialorder %v12578_v28, 0.0  ;;  %v1510_v21 = vmul.f32 %v7428_v48, %v12583_v24  ;;  %v1487_v14 = vsel %vm1485_vm4, %v1486_v1, %v1484_v10 }
 0x145   :  { %5650 = vrsqrt.f32 %v7785_v55  ;;  %v7814_v29 = vpop.eup %5636  ;;  %v1508_v18 = vsel %vm1506_vm5, %v1507_v15, %v1505_v57  ;;  %v1501_v27 = vsel %vm1499_vm6, %v1500_v38, %v1498_v32  ;;  %vm1518_vm7 = vcmp.eq.f32.partialorder %v12580_v36, inf  ;;  %v173_v38 = vld [vmem:[%s12085_s1 + $0xb0] sm:$0xff]  ;;  %v174_v15 = vld [vmem:[%s12085_s1 + $0xb8] sm:$0xff] }
 0x146   :  { %12579 = vst [vmem:[#allocation10_spill] sm:$0xff] %v7814_v29  ;;  %v7821_v25 = vpop.eup %5638  ;;  %v1519_v28 = vsel %vm1518_vm7, %v12580_v36, %v1517_v12  ;;  %vm1520_vm8 = vcmp.eq.f32.partialorder %v12580_v36, 0.0  ;;  %v1531_v48 = vmul.f32 %v7436_v60, %v7347_v0  ;;  %v1524_v22 = vmul.f32 %v7444_v47, %v7354_v31 }
 0x147   :  { %12581 = vst [vmem:[#allocation14_spill] sm:$0xff] %v7821_v25  ;;  %v7828_v4 = vpop.eup %5640  ;;  %v1521_v1 = vand.u32 2147483648, %v12580_v36  ;;  %vm1511_vm9 = vcmp.eq.f32.partialorder %v12583_v24, inf  ;;  %v748_v12 = vmul.f32 %v171_v61, %v171_v61  ;;  %v749_v10 = vmul.f32 %v172_v59, %v172_v59  ;;  %v7874_v59 = vpop.xlane.xlu1 %546 }
 0x148   :  { %12582 = vst [vmem:[#allocation39_spill] sm:$0xff] %v7828_v4  ;;  %v7844_v40 = vpop.eup %5642  ;;  %vm2215_vm10 = vcmp.eq.f32.partialorder %v7785_v55, inf  ;;  %vm2217_vm11 = vcmp.eq.f32.partialorder %v7785_v55, 0.0  ;;  %v2218_v47 = vand.u32 2147483648, %v7785_v55  ;;  %v1512_v57 = vsel %vm1511_vm9, %v12583_v24, %v1510_v21  ;;  %v7878_v21 = vpop.xlane.xlu0 %543 }
 0x149   :  { %12584 = vst [vmem:[#allocation41_spill] sm:$0xff] %v7844_v40  ;;  %v7852_v41 = vpop.eup %5644  ;;  %v1535_v3 = vand.u32 2147483648, %v7347_v0  ;;  %vm1525_vm13 = vcmp.eq.f32.partialorder %v7354_v31, inf  ;;  %v750_v35 = vmul.f32 %v173_v38, %v173_v38  ;;  %v751_v4 = vmul.f32 %v174_v15, %v174_v15 }
 0x14a   :  { %12585 = vst [vmem:[#allocation43_spill] sm:$0xff] %v7852_v41  ;;  %v7862_v60 = vpop.eup %5646  ;;  %v1514_v41 = vand.u32 2147483648, %v12583_v24  ;;  %v1526_v40 = vsel %vm1525_vm13, %v7354_v31, %v1524_v22  ;;  %v1528_v42 = vand.u32 2147483648, %v7354_v31  ;;  %v858_v25 = vsel %vm792_vm1, %v748_v12, 0.0 }
 0x14b   :  { %12586 = vst [vmem:[#allocation44_spill] sm:$0xff] %v7862_v60  ;;  %v7868_v32 = vpop.eup %5648  ;;  %v1533_v60 = vsel %vm1532_vm12, %v7347_v0, %v1531_v48  ;;  %v859_v33 = vsel %vm792_vm1, %v749_v10, 0.0  ;;  %v1522_v29 = vsel %vm1520_vm8, %v1521_v1, %v1519_v28  ;;  %vm1513_vm14 = vcmp.eq.f32.partialorder %v12583_v24, 0.0 }
 0x14c   :  { %12587 = vst [vmem:[#allocation55_spill] sm:$0xff] %v7868_v32  ;;  %vm1534_vm15 = vcmp.eq.f32.partialorder %v7347_v0, 0.0  ;;  %vm1527_vm0 = vcmp.eq.f32.partialorder %v7354_v31, 0.0  ;;  %v1515_v48 = vsel %vm1513_vm14, %v1514_v41, %v1512_v57  ;;  %v860_v10 = vadd.f32 %v859_v33, %v858_v25 }
 0x14d   :  { %v1536_v38 = vsel %vm1534_vm15, %v1535_v3, %v1533_v60  ;;  %v1529_v15 = vsel %vm1527_vm0, %v1528_v42, %v1526_v40  ;;  %v861_v36 = vsel %vm792_vm1, %v750_v35, 0.0  ;;  %v863_v28 = vsel %vm792_vm1, %v751_v4, 0.0  ;;  %v7900_v42 = vpop.xlane.xlu0 %549 }
 0x14e   :  { %5652 = vrsqrt.f32 %v7799_v26  ;;  %vm1546_vm2 = vcmp.eq.f32.partialorder %v7361_v44, inf  ;;  %vm1548_vm3 = vcmp.eq.f32.partialorder %v7361_v44, 0.0  ;;  %vm1539_vm4 = vcmp.eq.f32.partialorder %v7367_v63, inf }
 0x14f   :  { %v5651_v61 = vpop.eup %5650  ;;  %5654 = vrsqrt.f32 %v7801_v51  ;;  %vm1541_vm5 = vcmp.eq.f32.partialorder %v7367_v63, 0.0  ;;  %vm1581_vm14 = vcmp.eq.f32.partialorder %v7466_v11, inf }
 0x150   :  { %v2214_v32 = vmul.f32 %v5651_v61, %v7785_v55  ;;  %v7897_v61 = vpop.xlane.xlu1 %552 }
 0x152   :  { %v2216_v22 = vsel %vm2215_vm10, %v7785_v55, %v2214_v32 }
 0x153   :  { %v2219_v12 = vsel %vm2217_vm11, %v2218_v47, %v2216_v22 }
 0x154   :  { %v2330_v24 = vsub.f32 %v7823_v13, %v2219_v12  ;;  %v2329_v0 = vsub.f32 %v1487_v14, %v2219_v12  ;;  %v2332_v1 = vsub.f32 %v1508_v18, %v2219_v12  ;;  %v2331_v31 = vsub.f32 %v1501_v27, %v2219_v12 }
 0x155   :  { %v2334_v39 = vsub.f32 %v1522_v29, %v2219_v12  ;;  %v2333_v32 = vsub.f32 %v1515_v48, %v2219_v12  ;;  %v2336_v41 = vsub.f32 %v1536_v38, %v2219_v12  ;;  %v2335_v3 = vsub.f32 %v1529_v15, %v2219_v12 }
 0x156   :  { %v7902_v25 = vadd.f32 0.2, %v2330_v24  ;;  %v7904_v33 = vadd.f32 0.2, %v2329_v0  ;;  %v7906_v4 = vadd.f32 0.2, %v2332_v1  ;;  %v862_v29 = vadd.f32 %v861_v36, %v860_v10  ;;  %v559_v24 = vpop.xlane.xlu1 %558  ;;  %v556_v1 = vpop.xlane.xlu0 %555 }
 0x157   :  { %v7908_v35 = vadd.f32 0.2, %v2331_v31  ;;  %v7910_v18 = vadd.f32 0.2, %v2334_v39  ;;  %v7912_v55 = vadd.f32 0.2, %v2333_v32 }
 0x158   :  { %12588 = vst [vmem:[#allocation56_spill] sm:$0xff] %v7902_v25  ;;  %12589 = vst [vmem:[#allocation57_spill] sm:$0xff] %v7904_v33  ;;  %v12205_v13 = vmax.f32 %v7902_v25, 0.0  ;;  %v12202_v14 = vmax.f32 %v7904_v33, 0.0  ;;  %v12201_v27 = vmax.f32 %v7906_v4, 0.0  ;;  %v1065_v39 = vmax.f32 %v7841_v16, 0.0 }
 0x159   :  { %12590 = vst [vmem:[#allocation58_spill] sm:$0xff] %v7906_v4  ;;  %12591 = vst [vmem:[#allocation59_spill] sm:$0xff] %v7908_v35  ;;  %v7917_v40 = vadd.f32 0.2, %v2336_v41  ;;  %v12200_v60 = vmax.f32 %v7908_v35, 0.0  ;;  %v12204_v47 = vmax.f32 %v7910_v18, 0.0  ;;  %v864_v41 = vadd.f32 %v863_v28, %v862_v29 }
 0x15a   :  { %12592 = vst [vmem:[#allocation60_spill] sm:$0xff] %v7910_v18  ;;  %12593 = vst [vmem:[#allocation61_spill] sm:$0xff] %v7912_v55  ;;  %v12203_v57 = vmax.f32 %v7912_v55, 0.0  ;;  %v7922_v22 = vadd.f32 0.2, %v2335_v3  ;;  %v2722_v48 = vmul.f32 16.0, %v12205_v13  ;;  %v565_v13 = vpop.xlane.xlu1 %564 }
 0x15b   :  { %12594 = vst [vmem:[#allocation62_spill] sm:$0xff] %v7917_v40  ;;  %v2721_v38 = vmul.f32 16.0, %v12202_v14  ;;  %v2724_v15 = vmul.f32 16.0, %v12201_v27  ;;  %v12596_v12 = vmax.f32 %v7783_v20, 0.0  ;;  %v1068_v36 = vmax.f32 %v7874_v59, 0.0  ;;  %v7943_v31 = vld [vmem:[%s12086_s2 + $0x8] sm:$0xff] }
 0x15c   :  { %12595 = vst [vmem:[#allocation63_spill] sm:$0xff] %v7922_v22  ;;  %v2723_v16 = vmul.f32 16.0, %v12200_v60  ;;  %v1067_v0 = vmax.f32 %v7878_v21, 0.0  ;;  %v2850_v32 = vmul.f32 %v7943_v31, %v2722_v48  ;;  %v2726_v59 = vmul.f32 16.0, %v12204_v47 }
 0x15d   :  { %v7934_v10 = vadd.f32 1e-09, %v12596_v12  ;;  %v2849_v20 = vmul.f32 %v7653_v58, %v2721_v38  ;;  %v2725_v3 = vmul.f32 16.0, %v12203_v57  ;;  %v12207_v12 = vmax.f32 %v7917_v40, 0.0  ;;  %v7961_v38 = vpop.eup %5652 }
 0x15e   :  { %v12209_v21 = vmax.f32 %v7922_v22, 0.0  ;;  %v3556_v60 = vsel %vm792_vm1, %v2850_v32, 0.0  ;;  %v2852_v14 = vmul.f32 %v7686_v52, %v2724_v15  ;;  %v2851_v48 = vmul.f32 %v7692_v30, %v2723_v16 }
 0x15f   :  { %12597 = vst [vmem:[#allocation64_spill] sm:$0xff] %v7934_v10  ;;  %v3553_v27 = vsel %vm792_vm1, %v2849_v20, 0.0  ;;  %5656 = vrsqrt.f32 %v7934_v10  ;;  %v7958_v28 = vadd.f32 1e-09, %v1065_v39  ;;  %v1070_v29 = vmax.f32 %v7897_v61, 0.0  ;;  %3557 = vadd.xlane.f32.xlu1 %v3556_v60  ;;  %v7972_v39 = vld [vmem:[%s12086_s2 + $0x20] sm:$0xff]  ;;  %v562_v60 = vpop.xlane.xlu0 %561 }
 0x160   :  { %3554 = vadd.xlane.f32.xlu0 %v3553_v27  ;;  %v7963_v57 = vadd.f32 1e-09, %v1068_v36  ;;  %v7965_v47 = vadd.f32 1e-09, %v1067_v0  ;;  %v1069_v32 = vmax.f32 %v7900_v42, 0.0  ;;  %v865_v20 = vrot.slane %v864_v41, 4 }
 0x161   :  { %12598 = vst [vmem:[#allocation65_spill] sm:$0xff] %v7958_v28  ;;  %v1072_v15 = vmax.f32 %v559_v24, 0.0  ;;  %v2854_v16 = vmul.f32 %v7722_v37, %v2726_v59  ;;  %v2853_v61 = vmul.f32 %v7972_v39, %v2725_v3  ;;  %v2728_v27 = vmul.f32 16.0, %v12207_v12 }
 0x162   :  { %12599 = vst [vmem:[#allocation66_spill] sm:$0xff] %v7963_v57  ;;  %12600 = vst [vmem:[#allocation67_spill] sm:$0xff] %v7965_v47  ;;  %v3562_v36 = vsel %vm792_vm1, %v2852_v14, 0.0  ;;  %v3559_v42 = vsel %vm792_vm1, %v2851_v48, 0.0  ;;  %v2727_v24 = vmul.f32 16.0, %v12209_v21  ;;  %v866_v0 = vadd.f32 %v865_v20, %v864_v41  ;;  %v7987_v14 = vpop.eup %5654 }
 0x163   :  { %5658 = vrsqrt.f32 %v7958_v28  ;;  %v7982_v59 = vadd.f32 1e-09, %v1070_v29  ;;  %v1071_v55 = vmax.f32 %v556_v1, 0.0  ;;  %3563 = vadd.xlane.f32.xlu1 %v3562_v36  ;;  %v7985_v3 = vadd.f32 1e-09, %v1069_v32  ;;  %12603 = vst [vmem:[#allocation70_spill] sm:$0xff] %v7987_v14 }
 0x164   :  { %3560 = vadd.xlane.f32.xlu0 %v3559_v42  ;;  %5660 = vrsqrt.f32 %v7963_v57  ;;  %v1074_v12 = vmax.f32 %v565_v13, 0.0  ;;  %v867_v40 = vrot.slane %v866_v0, 2  ;;  %v7990_v48 = vadd.f32 1e-09, %v1072_v15  ;;  %v7995_v29 = vld [vmem:[%s12086_s2 + $0x38] sm:$0xff]  ;;  %v8003_v13 = vld [vmem:[%s12086_s2 + $0x30] sm:$0xff]  ;;  %v571_v42 = vpop.xlane.xlu1 %570 }
 0x165   :  { %12601 = vst [vmem:[#allocation68_spill] sm:$0xff] %v7982_v59  ;;  %12602 = vst [vmem:[#allocation69_spill] sm:$0xff] %v7985_v3  ;;  %5662 = vrsqrt.f32 %v7965_v47  ;;  %v1073_v41 = vmax.f32 %v562_v60, 0.0  ;;  %v2856_v1 = vmul.f32 %v7995_v29, %v2728_v27  ;;  %v3568_v20 = vsel %vm792_vm1, %v2854_v16, 0.0 }
 0x166   :  { %12604 = vst [vmem:[#allocation71_spill] sm:$0xff] %v7990_v48  ;;  %v3565_v32 = vsel %vm792_vm1, %v2853_v61, 0.0  ;;  %v2855_v15 = vmul.f32 %v8003_v13, %v2727_v24  ;;  %v868_v36 = vadd.f32 %v867_v40, %v866_v0  ;;  %5664 = vrsqrt.f32 %v7982_v59  ;;  %v568_v61 = vpop.xlane.xlu0 %567 }
 0x167   :  { %v8007_v60 = vadd.f32 1e-09, %v1071_v55  ;;  %3569 = vadd.xlane.f32.xlu1 %v3568_v20  ;;  %5666 = vrsqrt.f32 %v7985_v3  ;;  %v8010_v16 = vadd.f32 1e-09, %v1074_v12  ;;  %v8015_v22 = vadd.f32 1e-09, %v1073_v41 }
 0x168   :  { %3566 = vadd.xlane.f32.xlu0 %v3565_v32  ;;  %v869_v27 = vrot.slane %v868_v36, 1  ;;  %5668 = vrsqrt.f32 %v7990_v48  ;;  %v1545_v40 = vmul.f32 %v7454_v7, %v7361_v44  ;;  %v1076_v55 = vmax.f32 %v571_v42, 0.0  ;;  %v8066_v33 = vpop.xlane.xlu1 %576 }
 0x169   :  { %12605 = vst [vmem:[#allocation72_spill] sm:$0xff] %v8007_v60  ;;  %12606 = vst [vmem:[#allocation73_spill] sm:$0xff] %v8010_v16  ;;  %v8012_v21 = vpop.eup %5656  ;;  %v3574_v24 = vsel %vm792_vm1, %v2856_v1, 0.0  ;;  %v3571_v0 = vsel %vm792_vm1, %v2855_v15, 0.0  ;;  %5670 = vrsqrt.f32 %v8007_v60  ;;  %v1075_v12 = vmax.f32 %v568_v61, 0.0 }
 0x16a   :  { %12607 = vst [vmem:[#allocation74_spill] sm:$0xff] %v8012_v21  ;;  %12608 = vst [vmem:[#allocation75_spill] sm:$0xff] %v8015_v22  ;;  %v870_v20 = vadd.f32 %v869_v27, %v868_v36  ;;  %5672 = vrsqrt.f32 %v8010_v16  ;;  %v1538_v32 = vmul.f32 %v7462_v2, %v7367_v63  ;;  %v1547_v1 = vsel %vm1546_vm2, %v7361_v44, %v1545_v40  ;;  %v12611_v27 = vld [vmem:[#allocation12_spill] sm:$0xff]  ;;  %v175_v2 = vld [vmem:[%s12085_s1 + $0xc0] sm:$0xff]  ;;  %v8068_v25 = vpop.xlane.xlu0 %573 }
 0x16b   :  { %3575 = vadd.xlane.f32.xlu1 %v3574_v24  ;;  %5674 = vrsqrt.f32 %v8015_v22  ;;  %v8032_v36 = vadd.f32 1e-09, %v1076_v55  ;;  %v1549_v42 = vand.u32 2147483648, %v7361_v44  ;;  %v12612_v24 = vld [vmem:[#allocation31_spill] sm:$0xff]  ;;  %v8044_v18 = vadd.f32 1e-09, %v1075_v12 }
 0x16c   :  { %3572 = vadd.xlane.f32.xlu0 %v3571_v0  ;;  %v2158_v41 = vmax.f32 %v870_v20, 0.0  ;;  %v1559_v0 = vmul.f32 %v12612_v24, %v12611_v27  ;;  %v12614_v40 = vld [vmem:[#allocation16_spill] sm:$0xff]  ;;  %v1540_v12 = vsel %vm1539_vm4, %v7367_v63, %v1538_v32  ;;  %v178_v44 = vld [vmem:[%s12085_s1 + $0xd8] sm:$0xff]  ;;  %v1542_v22 = vand.u32 2147483648, %v7367_v63  ;;  %v8104_v28 = vpop.xlane.xlu1 %582 }
 0x16d   :  { %v8026_v7 = vpop.eup %5658  ;;  %v12615_v55 = vld [vmem:[#allocation36_spill] sm:$0xff]  ;;  %v8056_v4 = vsel %vm1548_vm3, %v1549_v42, %v1547_v1  ;;  %vm1560_vm6 = vcmp.eq.f32.partialorder %v12611_v27, inf  ;;  %vm1562_vm7 = vcmp.eq.f32.partialorder %v12611_v27, 0.0  ;;  %v752_v1 = vmul.f32 %v175_v2, %v175_v2  ;;  %v12619_v2 = vld [vmem:[#allocation45_spill] sm:$0xff] }
 0x16e   :  { %12609 = vst [vmem:[#allocation76_spill] sm:$0xff] %v8026_v7  ;;  %v8030_v15 = vpop.eup %5660  ;;  %v8035_v61 = vadd.f32 1e-09, %v2158_v41  ;;  %v1552_v35 = vmul.f32 %v12615_v55, %v12614_v40  ;;  %v176_v41 = vld [vmem:[%s12085_s1 + $0xc8] sm:$0xff]  ;;  %v177_v24 = vld [vmem:[%s12085_s1 + $0xd0] sm:$0xff]  ;;  %v1561_v42 = vsel %vm1560_vm6, %v12611_v27, %v1559_v0  ;;  %vm1553_vm8 = vcmp.eq.f32.partialorder %v12614_v40, inf }
 0x16f   :  { %12610 = vst [vmem:[#allocation77_spill] sm:$0xff] %v8030_v15  ;;  %v8042_v20 = vpop.eup %5662  ;;  %v753_v16 = vmul.f32 %v176_v41, %v176_v41  ;;  %v754_v60 = vmul.f32 %v177_v24, %v177_v24  ;;  %v1563_v3 = vand.u32 2147483648, %v12611_v27  ;;  %v755_v59 = vmul.f32 %v178_v44, %v178_v44  ;;  %v12620_v15 = vld [vmem:[#allocation2_spill] sm:$0xff] }
 0x170   :  { %12613 = vst [vmem:[#allocation12_spill] sm:$0xff] %v8042_v20  ;;  %5676 = vrsqrt.f32 %v8035_v61  ;;  %v8064_v55 = vpop.eup %5664  ;;  %v871_v20 = vsel %vm792_vm1, %v752_v1, 0.0  ;;  %v1556_v47 = vand.u32 2147483648, %v12614_v40  ;;  %vm1555_vm9 = vcmp.eq.f32.partialorder %v12614_v40, 0.0  ;;  %v12622_v24 = vld [vmem:[#allocation46_spill] sm:$0xff] }
 0x171   :  { %12616 = vst [vmem:[#allocation31_spill] sm:$0xff] %v8064_v55  ;;  %v8073_v32 = vpop.eup %5666  ;;  %v1554_v55 = vsel %vm1553_vm8, %v12614_v40, %v1552_v35  ;;  %v872_v0 = vsel %vm792_vm1, %v753_v16, 0.0  ;;  %v874_v57 = vsel %vm792_vm1, %v754_v60, 0.0  ;;  %v12623_v35 = vld [vmem:[#allocation29_spill] sm:$0xff]  ;;  %v1564_v16 = vsel %vm1562_vm7, %v1563_v3, %v1561_v42 }
 0x172   :  { %12617 = vst [vmem:[#allocation16_spill] sm:$0xff] %v8073_v32  ;;  %v8077_v48 = vpop.eup %5668  ;;  %v1573_v32 = vmul.f32 %v12620_v15, %v12619_v2  ;;  %v1587_v44 = vmul.f32 %v7564_v6, %v12623_v35  ;;  %v873_v1 = vadd.f32 %v872_v0, %v871_v20  ;;  %v1543_v15 = vsel %vm1541_vm5, %v1542_v22, %v1540_v12  ;;  %v8131_v0 = vpop.xlane.xlu1 %588 }
 0x173   :  { %12618 = vst [vmem:[#allocation36_spill] sm:$0xff] %v8077_v48  ;;  %v8087_v41 = vpop.eup %5670  ;;  %v1566_v48 = vmul.f32 %v7513_v5, %v12622_v24  ;;  %v1557_v60 = vsel %vm1555_vm9, %v1556_v47, %v1554_v55  ;;  %v8106_v5 = vpop.xlane.xlu0 %579  ;;  %vm1574_vm10 = vcmp.eq.f32.partialorder %v12619_v2, inf  ;;  %vm1576_vm11 = vcmp.eq.f32.partialorder %v12619_v2, 0.0 }
 0x174   :  { %12621 = vst [vmem:[#allocation45_spill] sm:$0xff] %v8087_v41  ;;  %v8094_v7 = vpop.eup %5672  ;;  %v1580_v41 = vmul.f32 %v7738_v19, %v7466_v11  ;;  %v875_v6 = vadd.f32 %v874_v57, %v873_v1  ;;  %v876_v63 = vsel %vm792_vm1, %v755_v59, 0.0  ;;  %v1575_v22 = vsel %vm1574_vm10, %v12619_v2, %v1573_v32 }
 0x175   :  { %12624 = vst [vmem:[#allocation2_spill] sm:$0xff] %v8094_v7  ;;  %v8102_v40 = vpop.eup %5674  ;;  %v1577_v47 = vand.u32 2147483648, %v12619_v2  ;;  %vm1567_vm12 = vcmp.eq.f32.partialorder %v12622_v24, inf  ;;  %vm1588_vm13 = vcmp.eq.f32.partialorder %v12623_v35, inf  ;;  %v1570_v3 = vand.u32 2147483648, %v12622_v24 }
 0x176   :  { %12625 = vst [vmem:[#allocation46_spill] sm:$0xff] %v8102_v40  ;;  %v1568_v19 = vsel %vm1567_vm12, %v12622_v24, %v1566_v48  ;;  %v1589_v27 = vsel %vm1588_vm13, %v12623_v35, %v1587_v44  ;;  %vm2222_vm15 = vcmp.eq.f32.partialorder %v8035_v61, inf  ;;  %v2225_v57 = vand.u32 2147483648, %v8035_v61 }
 0x177   :  { %v1582_v59 = vsel %vm1581_vm14, %v7466_v11, %v1580_v41  ;;  %v877_v12 = vadd.f32 %v876_v63, %v875_v6  ;;  %vm2224_vm0 = vcmp.eq.f32.partialorder %v8035_v61, 0.0  ;;  %v1591_v48 = vand.u32 2147483648, %v12623_v35  ;;  %v8133_v41 = vpop.xlane.xlu0 %585 }
 0x178   :  { %v1584_v32 = vand.u32 2147483648, %v7466_v11  ;;  %v1578_v42 = vsel %vm1576_vm11, %v1577_v47, %v1575_v22  ;;  %vm1569_vm2 = vcmp.eq.f32.partialorder %v12622_v24, 0.0  ;;  %vm1590_vm3 = vcmp.eq.f32.partialorder %v12623_v35, 0.0 }
 0x179   :  { %vm1583_vm4 = vcmp.eq.f32.partialorder %v7466_v11, 0.0  ;;  %v1571_v1 = vsel %vm1569_vm2, %v1570_v3, %v1568_v19  ;;  %v1592_v6 = vsel %vm1590_vm3, %v1591_v48, %v1589_v27  ;;  %v1077_v2 = vmax.f32 %v8068_v25, 0.0 }
 0x17a   :  { %v5677_v20 = vpop.eup %5676  ;;  %v1585_v63 = vsel %vm1583_vm4, %v1584_v32, %v1582_v59  ;;  %v878_v47 = vrot.slane %v877_v12, 4  ;;  %5678 = vrsqrt.f32 %v8032_v36  ;;  %vm1602_vm5 = vcmp.eq.f32.partialorder %v7674_v9, inf }
 0x17b   :  { %v2221_v55 = vmul.f32 %v5677_v20, %v8035_v61  ;;  %v1078_v20 = vmax.f32 %v8066_v33, 0.0  ;;  %5680 = vrsqrt.f32 %v8044_v18  ;;  %vm1604_vm6 = vcmp.eq.f32.partialorder %v7674_v9, 0.0 }
 0x17c   :  { %vm1595_vm7 = vcmp.eq.f32.partialorder %v7707_v45, inf  ;;  %vm1597_vm8 = vcmp.eq.f32.partialorder %v7707_v45, 0.0  ;;  %vm1616_vm9 = vcmp.eq.f32.partialorder %v7709_v56, inf  ;;  %vm1609_vm10 = vcmp.eq.f32.partialorder %v7712_v46, inf }
 0x17d   :  { %v2223_v44 = vsel %vm2222_vm15, %v8035_v61, %v2221_v55  ;;  %v8167_v48 = vadd.f32 1e-09, %v1078_v20  ;;  %vm1618_vm11 = vcmp.eq.f32.partialorder %v7709_v56, 0.0  ;;  %vm1611_vm12 = vcmp.eq.f32.partialorder %v7712_v46, 0.0 }
 0x17e   :  { %v2226_v22 = vsel %vm2224_vm0, %v2225_v57, %v2223_v44  ;;  %v8175_v44 = vadd.f32 1e-09, %v1077_v2  ;;  %vm1630_vm13 = vcmp.eq.f32.partialorder %v7731_v49, inf  ;;  %vm1632_vm14 = vcmp.eq.f32.partialorder %v7731_v49, 0.0 }
 0x17f   :  { %v2338_v24 = vsub.f32 %v8056_v4, %v2226_v22  ;;  %v2337_v35 = vsub.f32 %v1543_v15, %v2226_v22  ;;  %v2340_v40 = vsub.f32 %v1564_v16, %v2226_v22  ;;  %v2339_v11 = vsub.f32 %v1557_v60, %v2226_v22  ;;  %v8153_v16 = vpop.xlane.xlu1 %594  ;;  %v8155_v60 = vpop.xlane.xlu0 %591 }
 0x180   :  { %v2342_v7 = vsub.f32 %v1578_v42, %v2226_v22  ;;  %v2341_v21 = vsub.f32 %v1571_v1, %v2226_v22  ;;  %v2344_v10 = vsub.f32 %v1592_v6, %v2226_v22  ;;  %v2343_v14 = vsub.f32 %v1585_v63, %v2226_v22 }
 0x181   :  { %v8140_v61 = vadd.f32 0.2, %v2338_v24  ;;  %v8142_v19 = vadd.f32 0.2, %v2337_v35  ;;  %v8144_v33 = vadd.f32 0.2, %v2340_v40  ;;  %v879_v24 = vadd.f32 %v878_v47, %v877_v12 }
 0x182   :  { %v8147_v25 = vadd.f32 0.2, %v2339_v11  ;;  %v8149_v4 = vadd.f32 0.2, %v2342_v7  ;;  %v8151_v15 = vadd.f32 0.2, %v2341_v21  ;;  %5682 = vrsqrt.f32 %v8167_v48 }
 0x183   :  { %12626 = vst [vmem:[#allocation29_spill] sm:$0xff] %v8140_v61  ;;  %12627 = vst [vmem:[#allocation78_spill] sm:$0xff] %v8142_v19  ;;  %v12243_v3 = vmax.f32 %v8140_v61, 0.0  ;;  %v12242_v27 = vmax.f32 %v8142_v19, 0.0  ;;  %v12236_v57 = vmax.f32 %v8144_v33, 0.0  ;;  %v1080_v1 = vmax.f32 %v8104_v28, 0.0  ;;  %v601_v11 = vpop.xlane.xlu1 %600 }
 0x184   :  { %12628 = vst [vmem:[#allocation79_spill] sm:$0xff] %v8144_v33  ;;  %12629 = vst [vmem:[#allocation80_spill] sm:$0xff] %v8147_v25  ;;  %v8160_v40 = vadd.f32 0.2, %v2344_v10  ;;  %v12237_v59 = vmax.f32 %v8147_v25, 0.0  ;;  %v12241_v55 = vmax.f32 %v8149_v4, 0.0  ;;  %5684 = vrsqrt.f32 %v8175_v44 }
 0x185   :  { %12630 = vst [vmem:[#allocation81_spill] sm:$0xff] %v8149_v4  ;;  %12631 = vst [vmem:[#allocation82_spill] sm:$0xff] %v8151_v15  ;;  %v12238_v7 = vmax.f32 %v8151_v15, 0.0  ;;  %v8165_v21 = vadd.f32 0.2, %v2343_v14  ;;  %v2730_v32 = vmul.f32 16.0, %v12243_v3 }
 0x186   :  { %12632 = vst [vmem:[#allocation83_spill] sm:$0xff] %v8160_v40  ;;  %v2729_v42 = vmul.f32 16.0, %v12242_v27  ;;  %v2732_v10 = vmul.f32 16.0, %v12236_v57  ;;  %v1079_v6 = vmax.f32 %v8106_v5, 0.0  ;;  %v2731_v14 = vmul.f32 16.0, %v12237_v59  ;;  %v598_v57 = vpop.xlane.xlu0 %597 }
 0x187   :  { %12633 = vst [vmem:[#allocation84_spill] sm:$0xff] %v8165_v21  ;;  %v1082_v63 = vmax.f32 %v8131_v0, 0.0  ;;  %v2858_v20 = vmul.f32 %v7943_v31, %v2730_v32  ;;  %v2734_v35 = vmul.f32 16.0, %v12241_v55  ;;  %v2733_v2 = vmul.f32 16.0, %v12238_v7 }
 0x188   :  { %v2857_v22 = vmul.f32 %v7653_v58, %v2729_v42  ;;  %v12240_v28 = vmax.f32 %v8160_v40, 0.0  ;;  %v12239_v5 = vmax.f32 %v8165_v21, 0.0  ;;  %v2860_v32 = vmul.f32 %v7686_v52, %v2732_v10  ;;  %v8198_v42 = vpop.eup %5678  ;;  %v12645_v40 = vld [vmem:[#allocation10_spill] sm:$0xff] }
 0x189   :  { %v3580_v59 = vsel %vm792_vm1, %v2858_v20, 0.0  ;;  %v2859_v58 = vmul.f32 %v7692_v30, %v2731_v14  ;;  %v8195_v12 = vadd.f32 1e-09, %v1080_v1  ;;  %v1081_v47 = vmax.f32 %v8133_v41, 0.0 }
 0x18a   :  { %v3577_v0 = vsel %vm792_vm1, %v2857_v22, 0.0  ;;  %3581 = vadd.xlane.f32.xlu1 %v3580_v59  ;;  %v8201_v7 = vadd.f32 1e-09, %v1079_v6  ;;  %v880_v20 = vrot.slane %v879_v24, 2  ;;  %v8203_v22 = vpop.eup %5680  ;;  %v8205_v52 = vadd.f32 1e-09, %v1082_v63 }
 0x18b   :  { %3578 = vadd.xlane.f32.xlu0 %v3577_v0  ;;  %v2862_v30 = vmul.f32 %v7722_v37, %v2734_v35  ;;  %v2861_v10 = vmul.f32 %v7972_v39, %v2733_v2  ;;  %v2736_v41 = vmul.f32 16.0, %v12240_v28  ;;  %v3586_v59 = vsel %vm792_vm1, %v2860_v32, 0.0  ;;  %v8221_v2 = vpop.xlane.xlu1 %606  ;;  %v8223_v32 = vpop.xlane.xlu0 %603 }
 0x18c   :  { %12634 = vst [vmem:[#allocation85_spill] sm:$0xff] %v8201_v7  ;;  %12635 = vst [vmem:[#allocation86_spill] sm:$0xff] %v8205_v52  ;;  %v3583_v1 = vsel %vm792_vm1, %v2859_v58, 0.0  ;;  %v2735_v6 = vmul.f32 16.0, %v12239_v5  ;;  %v881_v14 = vadd.f32 %v880_v20, %v879_v24  ;;  %5686 = vrsqrt.f32 %v8195_v12 }
 0x18d   :  { %v8216_v0 = vadd.f32 1e-09, %v1081_v47  ;;  %v1084_v63 = vmax.f32 %v8153_v16, 0.0  ;;  %v1083_v37 = vmax.f32 %v8155_v60, 0.0  ;;  %5688 = vrsqrt.f32 %v8201_v7 }
 0x18e   :  { %3587 = vadd.xlane.f32.xlu1 %v3586_v59  ;;  %v1086_v35 = vmax.f32 %v601_v11, 0.0  ;;  %v882_v58 = vrot.slane %v881_v14, 1  ;;  %5690 = vrsqrt.f32 %v8205_v52  ;;  %v1085_v24 = vmax.f32 %v598_v57, 0.0  ;;  %v179_v57 = vld [vmem:[%s12085_s1 + $0xe0] sm:$0xff] }
 0x18f   :  { %12636 = vst [vmem:[#allocation87_spill] sm:$0xff] %v8216_v0  ;;  %3584 = vadd.xlane.f32.xlu0 %v3583_v1  ;;  %v2864_v47 = vmul.f32 %v7995_v29, %v2736_v41  ;;  %v1601_v16 = vmul.f32 %v7755_v50, %v7674_v9  ;;  %v3592_v60 = vsel %vm792_vm1, %v2862_v30, 0.0  ;;  %v3589_v20 = vsel %vm792_vm1, %v2861_v10, 0.0  ;;  %v180_v50 = vld [vmem:[%s12085_s1 + $0xe8] sm:$0xff] }
 0x190   :  { %v2863_v59 = vmul.f32 %v8003_v13, %v2735_v6  ;;  %v883_v11 = vadd.f32 %v882_v58, %v881_v14  ;;  %5692 = vrsqrt.f32 %v8216_v0  ;;  %v8233_v1 = vadd.f32 1e-09, %v1084_v63  ;;  %v181_v6 = vld [vmem:[%s12085_s1 + $0xf0] sm:$0xff]  ;;  %v182_v14 = vld [vmem:[%s12085_s1 + $0xf8] sm:$0xff]  ;;  %v8254_v63 = vpop.eup %5682 }
 0x191   :  { %v8235_v5 = vadd.f32 1e-09, %v1083_v37  ;;  %v8243_v30 = vadd.f32 1e-09, %v1086_v35  ;;  %v1594_v41 = vmul.f32 %v7768_v54, %v7707_v45  ;;  %v8256_v37 = vadd.f32 1e-09, %v1085_v24  ;;  %v8263_v54 = vpop.xlane.xlu1 %612 }
 0x192   :  { %12637 = vst [vmem:[#allocation88_spill] sm:$0xff] %v8233_v1  ;;  %3593 = vadd.xlane.f32.xlu1 %v3592_v60  ;;  %v2159_v10 = vmax.f32 %v883_v11, 0.0  ;;  %v3598_v35 = vsel %vm792_vm1, %v2864_v47, 0.0  ;;  %v1603_v58 = vsel %vm1602_vm5, %v7674_v9, %v1601_v16  ;;  %v8261_v60 = vpop.eup %5684  ;;  %v3595_v11 = vsel %vm792_vm1, %v2863_v59, 0.0 }
 0x193   :  { %12638 = vst [vmem:[#allocation89_spill] sm:$0xff] %v8235_v5  ;;  %3590 = vadd.xlane.f32.xlu0 %v3589_v20  ;;  %12639 = vst [vmem:[#allocation90_spill] sm:$0xff] %v8243_v30  ;;  %v8265_v20 = vpop.xlane.xlu0 %609  ;;  %v756_v55 = vmul.f32 %v179_v57, %v179_v57  ;;  %v757_v27 = vmul.f32 %v180_v50, %v180_v50  ;;  %v1615_v24 = vmul.f32 %v7773_v43, %v7709_v56 }
 0x194   :  { %12640 = vst [vmem:[#allocation91_spill] sm:$0xff] %v8256_v37  ;;  %v8268_v28 = vadd.f32 1e-09, %v2159_v10  ;;  %v758_v47 = vmul.f32 %v181_v6, %v181_v6  ;;  %v759_v16 = vmul.f32 %v182_v14, %v182_v14  ;;  %v1605_v3 = vand.u32 2147483648, %v7674_v9 }
 0x195   :  { %v1596_v21 = vsel %vm1595_vm7, %v7707_v45, %v1594_v41  ;;  %v1608_v59 = vmul.f32 %v7777_v17, %v7712_v46  ;;  %v1598_v50 = vand.u32 2147483648, %v7707_v45  ;;  %v884_v10 = vsel %vm792_vm1, %v756_v55, 0.0 }
 0x196   :  { %3599 = vadd.xlane.f32.xlu1 %v3598_v35  ;;  %5694 = vrsqrt.f32 %v8268_v28  ;;  %v8278_v57 = vpop.eup %5686  ;;  %v885_v35 = vsel %vm792_vm1, %v757_v27, 0.0  ;;  %v887_v43 = vsel %vm792_vm1, %v758_v47, 0.0  ;;  %v8288_v14 = vsel %vm1604_vm6, %v1605_v3, %v1603_v58  ;;  %v8299_v47 = vpop.xlane.xlu1 %618 }
 0x197   :  { %3596 = vadd.xlane.f32.xlu0 %v3595_v11  ;;  %v8284_v6 = vpop.eup %5688  ;;  %v886_v17 = vadd.f32 %v885_v35, %v884_v10  ;;  %v8294_v11 = vsel %vm1597_vm8, %v1598_v50, %v1596_v21  ;;  %v1617_v55 = vsel %vm1616_vm9, %v7709_v56, %v1615_v24  ;;  %v889_v27 = vsel %vm792_vm1, %v759_v16, 0.0  ;;  %v8301_v9 = vpop.xlane.xlu0 %615 }
 0x198   :  { %12641 = vst [vmem:[#allocation92_spill] sm:$0xff] %v8284_v6  ;;  %v8292_v41 = vpop.eup %5690  ;;  %v1619_v3 = vand.u32 2147483648, %v7709_v56  ;;  %v1610_v45 = vsel %vm1609_vm10, %v7712_v46, %v1608_v59  ;;  %v1629_v58 = vmul.f32 %v7787_v62, %v7731_v49  ;;  %v1612_v24 = vand.u32 2147483648, %v7712_v46  ;;  %v12644_v59 = vld [vmem:[#allocation24_spill] sm:$0xff] }
 0x199   :  { %12642 = vst [vmem:[#allocation93_spill] sm:$0xff] %v8292_v41  ;;  %v888_v10 = vadd.f32 %v887_v43, %v886_v17  ;;  %v1622_v16 = vmul.f32 %v7796_v8, %v7735_v34  ;;  %v1643_v50 = vmul.f32 %v7804_v53, %v7741_v23  ;;  %v1636_v15 = vmul.f32 %v12645_v40, %v12644_v59 }
 0x19a   :  { %v8307_v21 = vpop.eup %5692  ;;  %v1620_v35 = vsel %vm1618_vm11, %v1619_v3, %v1617_v55  ;;  %v1613_v43 = vsel %vm1611_vm12, %v1612_v24, %v1610_v45  ;;  %v1633_v56 = vand.u32 2147483648, %v7731_v49  ;;  %v1631_v17 = vsel %vm1630_vm13, %v7731_v49, %v1629_v58 }
 0x19b   :  { %12643 = vst [vmem:[#allocation94_spill] sm:$0xff] %v8307_v21  ;;  %v890_v62 = vadd.f32 %v889_v27, %v888_v10  ;;  %vm1623_vm15 = vcmp.eq.f32.partialorder %v7735_v34, inf  ;;  %vm1644_vm0 = vcmp.eq.f32.partialorder %v7741_v23, inf  ;;  %v1626_v8 = vand.u32 2147483648, %v7735_v34  ;;  %v8328_v27 = vpop.xlane.xlu1 %624  ;;  %v8330_v3 = vpop.xlane.xlu0 %621 }
 0x19c   :  { %v1624_v46 = vsel %vm1623_vm15, %v7735_v34, %v1622_v16  ;;  %v1645_v40 = vsel %vm1644_vm0, %v7741_v23, %v1643_v50  ;;  %vm1637_vm2 = vcmp.eq.f32.partialorder %v12644_v59, inf  ;;  %vm2229_vm3 = vcmp.eq.f32.partialorder %v8268_v28, inf }
 0x19d   :  { %v891_v53 = vrot.slane %v890_v62, 4  ;;  %v2232_v45 = vand.u32 2147483648, %v8268_v28  ;;  %v1638_v58 = vsel %vm1637_vm2, %v12644_v59, %v1636_v15  ;;  %vm2231_vm4 = vcmp.eq.f32.partialorder %v8268_v28, 0.0 }
 0x19e   :  { %v1647_v16 = vand.u32 2147483648, %v7741_v23  ;;  %v1640_v50 = vand.u32 2147483648, %v12644_v59  ;;  %v1634_v4 = vsel %vm1632_vm14, %v1633_v56, %v1631_v17  ;;  %vm1625_vm5 = vcmp.eq.f32.partialorder %v7735_v34, 0.0 }
 0x19f   :  { %v892_v10 = vadd.f32 %v891_v53, %v890_v62  ;;  %vm1646_vm6 = vcmp.eq.f32.partialorder %v7741_v23, 0.0  ;;  %vm1639_vm7 = vcmp.eq.f32.partialorder %v12644_v59, 0.0  ;;  %v1627_v62 = vsel %vm1625_vm5, %v1626_v8, %v1624_v46  ;;  %v8349_v23 = vpop.xlane.xlu1 %630  ;;  %v8351_v59 = vpop.xlane.xlu0 %627 }
 0x1a0   :  { %v5695_v55 = vpop.eup %5694  ;;  %v1648_v53 = vsel %vm1646_vm6, %v1647_v16, %v1645_v40  ;;  %v1088_v25 = vmax.f32 %v8221_v2, 0.0  ;;  %v1087_v33 = vmax.f32 %v8223_v32, 0.0  ;;  %5696 = vrsqrt.f32 %v8233_v1 }
 0x1a1   :  { %v2228_v24 = vmul.f32 %v5695_v55, %v8268_v28  ;;  %v1641_v55 = vsel %vm1639_vm7, %v1640_v50, %v1638_v58  ;;  %v893_v61 = vrot.slane %v892_v10, 2  ;;  %5698 = vrsqrt.f32 %v8235_v5 }
 0x1a2   :  { %5700 = vrsqrt.f32 %v8243_v30  ;;  %vm1693_vm5 = vcmp.eq.f32.partialorder %v7801_v51, inf }
 0x1a3   :  { %v2230_v15 = vsel %vm2229_vm3, %v8268_v28, %v2228_v24  ;;  %5702 = vrsqrt.f32 %v8256_v37 }
 0x1a4   :  { %v2233_v19 = vsel %vm2231_vm4, %v2232_v45, %v2230_v15  ;;  %vm1700_vm4 = vcmp.eq.f32.partialorder %v7799_v26, inf }
 0x1a5   :  { %v2346_v49 = vsub.f32 %v8288_v14, %v2233_v19  ;;  %v2345_v56 = vsub.f32 %v8294_v11, %v2233_v19  ;;  %v2348_v34 = vsub.f32 %v1620_v35, %v2233_v19  ;;  %v2347_v17 = vsub.f32 %v1613_v43, %v2233_v19 }
 0x1a6   :  { %v2350_v28 = vsub.f32 %v1634_v4, %v2233_v19  ;;  %v2349_v46 = vsub.f32 %v1627_v62, %v2233_v19  ;;  %v2352_v8 = vsub.f32 %v1648_v53, %v2233_v19  ;;  %v2351_v40 = vsub.f32 %v1641_v55, %v2233_v19 }
 0x1a7   :  { %v8354_v2 = vadd.f32 0.2, %v2346_v49  ;;  %v8356_v32 = vadd.f32 0.2, %v2345_v56  ;;  %v8358_v45 = vadd.f32 0.2, %v2348_v34  ;;  %v8389_v34 = vpop.xlane.xlu1 %636 }
 0x1a8   :  { %v8361_v14 = vadd.f32 0.2, %v2347_v17  ;;  %v8363_v11 = vadd.f32 0.2, %v2350_v28  ;;  %v8365_v35 = vadd.f32 0.2, %v2349_v46  ;;  %v8391_v17 = vpop.xlane.xlu0 %633 }
 0x1a9   :  { %12646 = vst [vmem:[#allocation24_spill] sm:$0xff] %v8354_v2  ;;  %12647 = vst [vmem:[#allocation10_spill] sm:$0xff] %v8356_v32  ;;  %v12254_v4 = vmax.f32 %v8354_v2, 0.0  ;;  %v12253_v19 = vmax.f32 %v8356_v32, 0.0  ;;  %v12252_v43 = vmax.f32 %v8358_v45, 0.0 }
 0x1aa   :  { %12648 = vst [vmem:[#allocation95_spill] sm:$0xff] %v8358_v45  ;;  %12649 = vst [vmem:[#allocation96_spill] sm:$0xff] %v8361_v14  ;;  %v8370_v58 = vadd.f32 0.2, %v2352_v8  ;;  %v12256_v24 = vmax.f32 %v8361_v14, 0.0  ;;  %v12259_v16 = vmax.f32 %v8363_v11, 0.0 }
 0x1ab   :  { %12650 = vst [vmem:[#allocation97_spill] sm:$0xff] %v8363_v11  ;;  %12651 = vst [vmem:[#allocation98_spill] sm:$0xff] %v8365_v35  ;;  %v12258_v50 = vmax.f32 %v8365_v35, 0.0  ;;  %v8375_v15 = vadd.f32 0.2, %v2351_v40  ;;  %v2738_v62 = vmul.f32 16.0, %v12254_v4  ;;  %v8436_v32 = vpop.xlane.xlu1 %642 }
 0x1ac   :  { %12652 = vst [vmem:[#allocation99_spill] sm:$0xff] %v8370_v58  ;;  %v2737_v53 = vmul.f32 16.0, %v12253_v19  ;;  %v2740_v55 = vmul.f32 16.0, %v12252_v43  ;;  %v8385_v49 = vadd.f32 1e-09, %v1088_v25  ;;  %v2739_v28 = vmul.f32 16.0, %v12256_v24 }
 0x1ad   :  { %12653 = vst [vmem:[#allocation100_spill] sm:$0xff] %v8375_v15  ;;  %v8387_v56 = vadd.f32 1e-09, %v1087_v33  ;;  %v2866_v46 = vmul.f32 %v7943_v31, %v2738_v62  ;;  %v8399_v8 = vld [vmem:[%s12086_s2] sm:$0xff]  ;;  %v894_v25 = vadd.f32 %v893_v61, %v892_v10  ;;  %v12656_v43 = vld [vmem:[#allocation17_spill] sm:$0xff]  ;;  %v2742_v4 = vmul.f32 16.0, %v12259_v16  ;;  %v8428_v16 = vpop.eup %5696 }
 0x1ae   :  { %12654 = vst [vmem:[#allocation101_spill] sm:$0xff] %v8385_v49  ;;  %v2865_v40 = vmul.f32 %v8399_v8, %v2737_v53  ;;  %v12657_v33 = vld [vmem:[#allocation14_spill] sm:$0xff]  ;;  %v2741_v14 = vmul.f32 16.0, %v12258_v50  ;;  %v8415_v61 = vld [vmem:[%s12086_s2 + $0x18] sm:$0xff]  ;;  %v8421_v53 = vld [vmem:[%s12086_s2 + $0x10] sm:$0xff]  ;;  %5704 = vrsqrt.f32 %v8385_v49  ;;  %v1092_v50 = vmax.f32 %v8299_v47, 0.0  ;;  %v8434_v11 = vpop.eup %5698 }
 0x1af   :  { %12655 = vst [vmem:[#allocation102_spill] sm:$0xff] %v8387_v56  ;;  %v1657_v19 = vmul.f32 %v12657_v33, %v12656_v43  ;;  %v3604_v62 = vsel %vm792_vm1, %v2866_v46, 0.0  ;;  %v2868_v10 = vmul.f32 %v8415_v61, %v2740_v55  ;;  %v2867_v33 = vmul.f32 %v8421_v53, %v2739_v28  ;;  %12658 = vst [vmem:[#allocation17_spill] sm:$0xff] %v8428_v16  ;;  %v12659_v24 = vld [vmem:[#allocation19_spill] sm:$0xff] }
 0x1b0   :  { %v3601_v45 = vsel %vm792_vm1, %v2865_v40, 0.0  ;;  %v1090_v46 = vmax.f32 %v8263_v54, 0.0  ;;  %v1089_v40 = vmax.f32 %v8265_v20, 0.0  ;;  %3605 = vadd.xlane.f32.xlu1 %v3604_v62  ;;  %v1091_v55 = vmax.f32 %v8301_v9, 0.0  ;;  %v12660_v35 = vld [vmem:[#allocation39_spill] sm:$0xff]  ;;  %12661 = vst [vmem:[#allocation14_spill] sm:$0xff] %v8434_v11  ;;  %v8438_v54 = vpop.xlane.xlu0 %639 }
 0x1b1   :  { %3602 = vadd.xlane.f32.xlu0 %v3601_v45  ;;  %v895_v31 = vrot.slane %v894_v25, 1  ;;  %vm1658_vm8 = vcmp.eq.f32.partialorder %v12656_v43, inf  ;;  %v1650_v28 = vmul.f32 %v12660_v35, %v12659_v24  ;;  %v8443_v20 = vld [vmem:[%s12086_s2 + $0x28] sm:$0xff]  ;;  %v2869_v9 = vmul.f32 %v7972_v39, %v2741_v14  ;;  %v8460_v14 = vpop.eup %5700 }
 0x1b2   :  { %v2870_v47 = vmul.f32 %v8443_v20, %v2742_v4  ;;  %v12662_v45 = vmax.f32 %v8370_v58, 0.0  ;;  %v1659_v35 = vsel %vm1658_vm8, %v12656_v43, %v1657_v19  ;;  %v3610_v2 = vsel %vm792_vm1, %v2868_v10, 0.0  ;;  %12666 = vst [vmem:[#allocation103_spill] sm:$0xff] %v8460_v14 }
 0x1b3   :  { %v3607_v49 = vsel %vm792_vm1, %v2867_v33, 0.0  ;;  %v12663_v37 = vmax.f32 %v8375_v15, 0.0  ;;  %v896_v11 = vadd.f32 %v895_v31, %v894_v25  ;;  %5706 = vrsqrt.f32 %v8387_v56  ;;  %v8469_v25 = vpop.eup %5702 }
 0x1b4   :  { %v2744_v62 = vmul.f32 16.0, %v12662_v45  ;;  %v8455_v5 = vadd.f32 1e-09, %v1090_v46  ;;  %v8457_v4 = vadd.f32 1e-09, %v1089_v40  ;;  %3611 = vadd.xlane.f32.xlu1 %v3610_v2  ;;  %v1661_v39 = vand.u32 2147483648, %v12656_v43  ;;  %v8487_v45 = vpop.xlane.xlu0 %645 }
 0x1b5   :  { %v2743_v30 = vmul.f32 16.0, %v12663_v37  ;;  %3608 = vadd.xlane.f32.xlu0 %v3607_v49  ;;  %v8462_v19 = vadd.f32 1e-09, %v1092_v50  ;;  %vm1660_vm9 = vcmp.eq.f32.partialorder %v12656_v43, 0.0  ;;  %v2160_v10 = vmax.f32 %v896_v11, 0.0  ;;  %v183_v37 = vld [vmem:[%s12085_s1 + $0x100] sm:$0xff] }
 0x1b6   :  { %12664 = vst [vmem:[#allocation19_spill] sm:$0xff] %v8455_v5  ;;  %12665 = vst [vmem:[#allocation39_spill] sm:$0xff] %v8457_v4  ;;  %vm1651_vm10 = vcmp.eq.f32.partialorder %v12659_v24, inf  ;;  %v8471_v31 = vadd.f32 1e-09, %v1091_v55  ;;  %v2872_v2 = vmul.f32 %v7995_v29, %v2744_v62  ;;  %v8474_v49 = vsel %vm1660_vm9, %v1661_v39, %v1659_v35  ;;  %v184_v40 = vld [vmem:[%s12085_s1 + $0x108] sm:$0xff]  ;;  %v8485_v55 = vpop.xlane.xlu1 %648 }
 0x1b7   :  { %12667 = vst [vmem:[#allocation104_spill] sm:$0xff] %v8462_v19  ;;  %12668 = vst [vmem:[#allocation105_spill] sm:$0xff] %v8469_v25  ;;  %v1652_v50 = vsel %vm1651_vm10, %v12659_v24, %v1650_v28  ;;  %v3616_v33 = vsel %vm792_vm1, %v2870_v47, 0.0  ;;  %v3613_v11 = vsel %vm792_vm1, %v2869_v9, 0.0  ;;  %v2871_v43 = vmul.f32 %v8003_v13, %v2743_v30  ;;  %v12670_v29 = vld [vmem:[#allocation51_spill] sm:$0xff]  ;;  %v12671_v28 = vld [vmem:[#allocation41_spill] sm:$0xff] }
 0x1b8   :  { %12669 = vst [vmem:[#allocation106_spill] sm:$0xff] %v8471_v31  ;;  %v8480_v46 = vadd.f32 1e-09, %v2160_v10  ;;  %3617 = vadd.xlane.f32.xlu1 %v3616_v33  ;;  %vm1653_vm11 = vcmp.eq.f32.partialorder %v12659_v24, 0.0  ;;  %v1671_v47 = vmul.f32 %v12671_v28, %v12670_v29  ;;  %v12672_v9 = vld [vmem:[#allocation52_spill] sm:$0xff]  ;;  %v12673_v62 = vld [vmem:[#allocation43_spill] sm:$0xff]  ;;  %v760_v39 = vmul.f32 %v183_v37, %v183_v37  ;;  %v8504_v33 = vpop.eup %5704 }
 0x1b9   :  { %3614 = vadd.xlane.f32.xlu0 %v3613_v11  ;;  %v1664_v13 = vmul.f32 %v12673_v62, %v12672_v9  ;;  %v185_v30 = vld [vmem:[%s12085_s1 + $0x110] sm:$0xff]  ;;  %v186_v35 = vld [vmem:[%s12085_s1 + $0x118] sm:$0xff]  ;;  %v1654_v10 = vand.u32 2147483648, %v12659_v24  ;;  %vm1672_vm12 = vcmp.eq.f32.partialorder %v12670_v29, inf  ;;  %vm1674_vm13 = vcmp.eq.f32.partialorder %v12670_v29, 0.0  ;;  %12674 = vst [vmem:[#allocation51_spill] sm:$0xff] %v8504_v33 }
 0x1ba   :  { %5708 = vrsqrt.f32 %v8480_v46  ;;  %v3622_v11 = vsel %vm792_vm1, %v2872_v2, 0.0  ;;  %vm1665_vm14 = vcmp.eq.f32.partialorder %v12672_v9, inf  ;;  %v12675_v28 = vld [vmem:[#allocation53_spill] sm:$0xff]  ;;  %v12676_v62 = vld [vmem:[#allocation44_spill] sm:$0xff]  ;;  %v761_v58 = vmul.f32 %v184_v40, %v184_v40 }
 0x1bb   :  { %v1685_v15 = vmul.f32 %v12676_v62, %v12675_v28  ;;  %v3619_v37 = vsel %vm792_vm1, %v2871_v43, 0.0  ;;  %v762_v56 = vmul.f32 %v185_v30, %v185_v30  ;;  %v763_v25 = vmul.f32 %v186_v35, %v186_v35  ;;  %v8521_v35 = vpop.xlane.xlu1 %654  ;;  %v12679_v62 = vld [vmem:[#allocation55_spill] sm:$0xff] }
 0x1bc   :  { %v897_v14 = vsel %vm792_vm1, %v760_v39, 0.0  ;;  %3623 = vadd.xlane.f32.xlu1 %v3622_v11  ;;  %v1673_v16 = vsel %vm1672_vm12, %v12670_v29, %v1671_v47  ;;  %v1675_v33 = vand.u32 2147483648, %v12670_v29  ;;  %v1666_v2 = vsel %vm1665_vm14, %v12672_v9, %v1664_v13  ;;  %v8523_v39 = vpop.xlane.xlu0 %651  ;;  %v12678_v11 = vld [vmem:[#allocation54_spill] sm:$0xff] }
 0x1bd   :  { %3620 = vadd.xlane.f32.xlu0 %v3619_v37  ;;  %v898_v1 = vsel %vm792_vm1, %v761_v58, 0.0  ;;  %v1668_v21 = vand.u32 2147483648, %v12672_v9  ;;  %vm1686_vm15 = vcmp.eq.f32.partialorder %v12675_v28, inf  ;;  %v900_v43 = vsel %vm792_vm1, %v762_v56, 0.0  ;;  %v8519_v30 = vpop.eup %5706  ;;  %v12680_v56 = vld [vmem:[#allocation70_spill] sm:$0xff] }
 0x1be   :  { %v899_v40 = vadd.f32 %v898_v1, %v897_v14  ;;  %12677 = vst [vmem:[#allocation41_spill] sm:$0xff] %v8519_v30  ;;  %v1687_v47 = vsel %vm1686_vm15, %v12675_v28, %v1685_v15  ;;  %v1678_v13 = vmul.f32 %v12679_v62, %v12678_v11  ;;  %v1699_v58 = vmul.f32 %v7961_v38, %v7799_v26 }
 0x1bf   :  { %v902_v37 = vsel %vm792_vm1, %v763_v25, 0.0  ;;  %vm1667_vm0 = vcmp.eq.f32.partialorder %v12672_v9, 0.0  ;;  %v1689_v1 = vand.u32 2147483648, %v12675_v28  ;;  %v1692_v14 = vmul.f32 %v12680_v56, %v7801_v51  ;;  %v8549_v29 = vpop.xlane.xlu1 %660 }
 0x1c0   :  { %v901_v30 = vadd.f32 %v900_v43, %v899_v40  ;;  %v1655_v0 = vsel %vm1653_vm11, %v1654_v10, %v1652_v50  ;;  %v1676_v15 = vsel %vm1674_vm13, %v1675_v33, %v1673_v16  ;;  %v1669_v62 = vsel %vm1667_vm0, %v1668_v21, %v1666_v2  ;;  %v8551_v10 = vpop.xlane.xlu0 %657 }
 0x1c1   :  { %vm1688_vm2 = vcmp.eq.f32.partialorder %v12675_v28, 0.0  ;;  %vm1679_vm3 = vcmp.eq.f32.partialorder %v12678_v11, inf  ;;  %v1682_v56 = vand.u32 2147483648, %v12678_v11  ;;  %v1701_v40 = vsel %vm1700_vm4, %v7799_v26, %v1699_v58 }
 0x1c2   :  { %v1690_v38 = vsel %vm1688_vm2, %v1689_v1, %v1687_v47  ;;  %v903_v25 = vadd.f32 %v902_v37, %v901_v30  ;;  %v1680_v9 = vsel %vm1679_vm3, %v12678_v11, %v1678_v13  ;;  %vm2236_vm6 = vcmp.eq.f32.partialorder %v8480_v46, inf }
 0x1c3   :  { %v2239_v21 = vand.u32 2147483648, %v8480_v46  ;;  %v1694_v16 = vsel %vm1693_vm5, %v7801_v51, %v1692_v14  ;;  %vm2238_vm7 = vcmp.eq.f32.partialorder %v8480_v46, 0.0  ;;  %v1703_v28 = vand.u32 2147483648, %v7799_v26 }
 0x1c4   :  { %v5709_v24 = vpop.eup %5708  ;;  %v904_v50 = vrot.slane %v903_v25, 4  ;;  %v1696_v2 = vand.u32 2147483648, %v7801_v51  ;;  %vm1681_vm8 = vcmp.eq.f32.partialorder %v12678_v11, 0.0  ;;  %vm1702_vm9 = vcmp.eq.f32.partialorder %v7799_v26, 0.0 }
 0x1c5   :  { %v2235_v33 = vmul.f32 %v5709_v24, %v8480_v46  ;;  %vm1695_vm10 = vcmp.eq.f32.partialorder %v7801_v51, 0.0  ;;  %v1683_v47 = vsel %vm1681_vm8, %v1682_v56, %v1680_v9  ;;  %v1704_v13 = vsel %vm1702_vm9, %v1703_v28, %v1701_v40  ;;  %v8567_v9 = vpop.xlane.xlu0 %663 }
 0x1c6   :  { %v905_v43 = vadd.f32 %v904_v50, %v903_v25  ;;  %v1697_v58 = vsel %vm1695_vm10, %v1696_v2, %v1694_v16  ;;  %v1094_v37 = vmax.f32 %v8328_v27, 0.0  ;;  %v1093_v1 = vmax.f32 %v8330_v3, 0.0 }
 0x1c7   :  { %v2237_v30 = vsel %vm2236_vm6, %v8480_v46, %v2235_v33  ;;  %5710 = vrsqrt.f32 %v8455_v5  ;;  %v8565_v46 = vpop.xlane.xlu1 %666  ;;  %v1096_v2 = vmax.f32 %v8349_v23, 0.0 }
 0x1c8   :  { %v2240_v14 = vsel %vm2238_vm7, %v2239_v21, %v2237_v30  ;;  %v906_v24 = vrot.slane %v905_v43, 2  ;;  %5712 = vrsqrt.f32 %v8457_v4  ;;  %v8600_v28 = vadd.f32 1e-09, %v1094_v37  ;;  %v12717_v4 = vld [vmem:[#allocation36_spill] sm:$0xff] }
 0x1c9   :  { %v2354_v41 = vsub.f32 %v8474_v49, %v2240_v14  ;;  %v2353_v52 = vsub.f32 %v1655_v0, %v2240_v14  ;;  %v2356_v11 = vsub.f32 %v1676_v15, %v2240_v14  ;;  %v2355_v6 = vsub.f32 %v1669_v62, %v2240_v14 }
 0x1ca   :  { %v2358_v26 = vsub.f32 %v1690_v38, %v2240_v14  ;;  %v2357_v7 = vsub.f32 %v1683_v47, %v2240_v14  ;;  %v2360_v51 = vsub.f32 %v1704_v13, %v2240_v14  ;;  %v2359_v25 = vsub.f32 %v1697_v58, %v2240_v14  ;;  %12689 = vst [vmem:[#allocation108_spill] sm:$0xff] %v8600_v28  ;;  %v8609_v58 = vpop.xlane.xlu0 %669  ;;  %v8614_v14 = vld [vmem:[%s12086_s2 + $0x8] sm:$0xff] }
 0x1cb   :  { %v8569_v27 = vadd.f32 0.2, %v2354_v41  ;;  %v8571_v3 = vadd.f32 0.2, %v2353_v52  ;;  %v8573_v56 = vadd.f32 0.2, %v2356_v11  ;;  %5714 = vrsqrt.f32 %v8462_v19  ;;  %v8607_v13 = vpop.xlane.xlu1 %672 }
 0x1cc   :  { %v8576_v0 = vadd.f32 0.2, %v2355_v6  ;;  %v8578_v49 = vadd.f32 0.2, %v2358_v26  ;;  %v8580_v15 = vadd.f32 0.2, %v2357_v7  ;;  %5716 = vrsqrt.f32 %v8471_v31 }
 0x1cd   :  { %12681 = vst [vmem:[#allocation52_spill] sm:$0xff] %v8569_v27  ;;  %12682 = vst [vmem:[#allocation43_spill] sm:$0xff] %v8571_v3  ;;  %v12289_v62 = vmax.f32 %v8569_v27, 0.0  ;;  %v12286_v38 = vmax.f32 %v8571_v3, 0.0  ;;  %v12285_v40 = vmax.f32 %v8573_v56, 0.0  ;;  %v907_v26 = vadd.f32 %v906_v24, %v905_v43 }
 0x1ce   :  { %12683 = vst [vmem:[#allocation53_spill] sm:$0xff] %v8573_v56  ;;  %12684 = vst [vmem:[#allocation44_spill] sm:$0xff] %v8576_v0  ;;  %v8585_v41 = vadd.f32 0.2, %v2360_v51  ;;  %v12284_v52 = vmax.f32 %v8576_v0, 0.0  ;;  %v12288_v21 = vmax.f32 %v8578_v49, 0.0  ;;  %5718 = vrsqrt.f32 %v8600_v28 }
 0x1cf   :  { %12685 = vst [vmem:[#allocation54_spill] sm:$0xff] %v8578_v49  ;;  %12686 = vst [vmem:[#allocation55_spill] sm:$0xff] %v8580_v15  ;;  %v12287_v16 = vmax.f32 %v8580_v15, 0.0  ;;  %v8590_v6 = vadd.f32 0.2, %v2359_v25  ;;  %v2746_v7 = vmul.f32 16.0, %v12289_v62  ;;  %v8652_v15 = vpop.xlane.xlu1 %678 }
 0x1d0   :  { %12687 = vst [vmem:[#allocation70_spill] sm:$0xff] %v8585_v41  ;;  %v2745_v50 = vmul.f32 16.0, %v12286_v38  ;;  %v2748_v33 = vmul.f32 16.0, %v12285_v40  ;;  %v2747_v30 = vmul.f32 16.0, %v12284_v52  ;;  %v8605_v47 = vadd.f32 1e-09, %v1093_v1 }
 0x1d1   :  { %12688 = vst [vmem:[#allocation107_spill] sm:$0xff] %v8590_v6  ;;  %v2874_v11 = vmul.f32 %v8614_v14, %v2746_v7  ;;  %v2750_v23 = vmul.f32 16.0, %v12288_v21  ;;  %v2749_v1 = vmul.f32 16.0, %v12287_v16  ;;  %v12295_v51 = vmax.f32 %v8585_v41, 0.0  ;;  %v8633_v16 = vpop.eup %5710  ;;  %v12694_v21 = vld [vmem:[#allocation74_spill] sm:$0xff] }
 0x1d2   :  { %12690 = vst [vmem:[#allocation109_spill] sm:$0xff] %v8605_v47  ;;  %v2873_v37 = vmul.f32 %v8399_v8, %v2745_v50  ;;  %v2876_v38 = vmul.f32 %v8415_v61, %v2748_v33  ;;  %v2875_v7 = vmul.f32 %v8421_v53, %v2747_v30  ;;  %v8629_v43 = vadd.f32 1e-09, %v1096_v2  ;;  %12692 = vst [vmem:[#allocation111_spill] sm:$0xff] %v8633_v16  ;;  %v12693_v33 = vld [vmem:[#allocation64_spill] sm:$0xff]  ;;  %v8639_v62 = vpop.eup %5712 }
 0x1d3   :  { %v3628_v52 = vsel %vm792_vm1, %v2874_v11, 0.0  ;;  %v1095_v24 = vmax.f32 %v8351_v59, 0.0  ;;  %v1098_v50 = vmax.f32 %v8389_v34, 0.0  ;;  %5720 = vrsqrt.f32 %v8605_v47  ;;  %12695 = vst [vmem:[#allocation64_spill] sm:$0xff] %v8639_v62  ;;  %v8645_v59 = vld [vmem:[%s12086_s2 + $0x20] sm:$0xff]  ;;  %12698 = vst [vmem:[#allocation74_spill] sm:$0xff] %v8652_v15 }
 0x1d4   :  { %v3625_v40 = vsel %vm792_vm1, %v2873_v37, 0.0  ;;  %12691 = vst [vmem:[#allocation110_spill] sm:$0xff] %v8629_v43  ;;  %3629 = vadd.xlane.f32.xlu1 %v3628_v52  ;;  %v1097_v11 = vmax.f32 %v8391_v17, 0.0  ;;  %v908_v37 = vrot.slane %v907_v26, 1  ;;  %v1713_v30 = vmul.f32 %v12694_v21, %v12693_v33  ;;  %v12696_v52 = vld [vmem:[#allocation65_spill] sm:$0xff]  ;;  %v12697_v17 = vld [vmem:[#allocation76_spill] sm:$0xff]  ;;  %v8654_v21 = vpop.xlane.xlu0 %675 }
 0x1d5   :  { %3626 = vadd.xlane.f32.xlu0 %v3625_v40  ;;  %v2878_v2 = vmul.f32 %v8443_v20, %v2750_v23  ;;  %v2877_v34 = vmul.f32 %v8645_v59, %v2749_v1  ;;  %v2752_v40 = vmul.f32 16.0, %v12295_v51  ;;  %v1706_v25 = vmul.f32 %v12697_v17, %v12696_v52  ;;  %12699 = vst [vmem:[#allocation65_spill] sm:$0xff] %v8654_v21  ;;  %v8666_v17 = vpop.eup %5714  ;;  %v12716_v62 = vld [vmem:[#allocation71_spill] sm:$0xff] }
 0x1d6   :  { %v3634_v49 = vsel %vm792_vm1, %v2876_v38, 0.0  ;;  %v3631_v23 = vsel %vm792_vm1, %v2875_v7, 0.0  ;;  %v12700_v0 = vmax.f32 %v8590_v6, 0.0  ;;  %v909_v3 = vadd.f32 %v908_v37, %v907_v26  ;;  %12701 = vst [vmem:[#allocation76_spill] sm:$0xff] %v8666_v17  ;;  %v8677_v26 = vld [vmem:[%s12086_s2 + $0x38] sm:$0xff]  ;;  %v8689_v6 = vld [vmem:[%s12086_s2 + $0x30] sm:$0xff] }
 0x1d7   :  { %5722 = vrsqrt.f32 %v8629_v43  ;;  %v8661_v1 = vadd.f32 1e-09, %v1095_v24  ;;  %v8663_v51 = vadd.f32 1e-09, %v1098_v50  ;;  %vm1714_vm11 = vcmp.eq.f32.partialorder %v12693_v33, inf  ;;  %v12704_v37 = vld [vmem:[#allocation77_spill] sm:$0xff] }
 0x1d8   :  { %v2751_v56 = vmul.f32 16.0, %v12700_v0  ;;  %3635 = vadd.xlane.f32.xlu1 %v3634_v49  ;;  %v8668_v41 = vadd.f32 1e-09, %v1097_v11  ;;  %v1715_v38 = vsel %vm1714_vm11, %v12693_v33, %v1713_v30  ;;  %v2161_v7 = vmax.f32 %v909_v3, 0.0  ;;  %v8672_v0 = vpop.eup %5716  ;;  %v12703_v11 = vld [vmem:[#allocation66_spill] sm:$0xff] }
 0x1d9   :  { %3632 = vadd.xlane.f32.xlu0 %v3631_v23  ;;  %vm1707_vm12 = vcmp.eq.f32.partialorder %v12696_v52, inf  ;;  %12702 = vst [vmem:[#allocation112_spill] sm:$0xff] %v8672_v0  ;;  %v2880_v49 = vmul.f32 %v8677_v26, %v2752_v40  ;;  %v1717_v24 = vand.u32 2147483648, %v12693_v33  ;;  %v1727_v23 = vmul.f32 %v12704_v37, %v12703_v11  ;;  %v8709_v37 = vpop.xlane.xlu0 %681  ;;  %v190_v40 = vld [vmem:[%s12085_s1 + $0x138] sm:$0xff]  ;;  %v8720_v47 = vpop.eup %5718 }
 0x1da   :  { %v1708_v50 = vsel %vm1707_vm12, %v12696_v52, %v1706_v25  ;;  %v3640_v3 = vsel %vm792_vm1, %v2878_v2, 0.0  ;;  %v3637_v30 = vsel %vm792_vm1, %v2877_v34, 0.0  ;;  %v2879_v27 = vmul.f32 %v8689_v6, %v2751_v56  ;;  %v187_v25 = vld [vmem:[%s12085_s1 + $0x120] sm:$0xff]  ;;  %v188_v56 = vld [vmem:[%s12085_s1 + $0x128] sm:$0xff]  ;;  %v189_v34 = vld [vmem:[%s12085_s1 + $0x130] sm:$0xff]  ;;  %12706 = vst [vmem:[#allocation77_spill] sm:$0xff] %v8709_v37 }
 0x1db   :  { %v8692_v43 = vadd.f32 1e-09, %v2161_v7  ;;  %vm1716_vm13 = vcmp.eq.f32.partialorder %v12693_v33, 0.0  ;;  %vm1709_vm14 = vcmp.eq.f32.partialorder %v12696_v52, 0.0  ;;  %v1710_v2 = vand.u32 2147483648, %v12696_v52  ;;  %v8707_v7 = vpop.xlane.xlu1 %684  ;;  %v12707_v33 = vld [vmem:[#allocation67_spill] sm:$0xff] }
 0x1dc   :  { %3641 = vadd.xlane.f32.xlu1 %v3640_v3  ;;  %12705 = vst [vmem:[#allocation66_spill] sm:$0xff] %v8707_v7  ;;  %v8711_v3 = vsel %vm1716_vm13, %v1717_v24, %v1715_v38  ;;  %vm1728_vm15 = vcmp.eq.f32.partialorder %v12703_v11, inf  ;;  %v12708_v52 = vld [vmem:[#allocation12_spill] sm:$0xff]  ;;  %12709 = vst [vmem:[#allocation67_spill] sm:$0xff] %v8720_v47  ;;  %v3646_v28 = vsel %vm792_vm1, %v2880_v49, 0.0  ;;  %vm1730_vm0 = vcmp.eq.f32.partialorder %v12703_v11, 0.0 }
 0x1dd   :  { %3638 = vadd.xlane.f32.xlu0 %v3637_v30  ;;  %5724 = vrsqrt.f32 %v8692_v43  ;;  %v1720_v30 = vmul.f32 %v12708_v52, %v12707_v33  ;;  %v8723_v7 = vsel %vm1709_vm14, %v1710_v2, %v1708_v50  ;;  %v1729_v38 = vsel %vm1728_vm15, %v12703_v11, %v1727_v23  ;;  %v8727_v24 = vpop.eup %5720  ;;  %v12711_v49 = vld [vmem:[#allocation68_spill] sm:$0xff]  ;;  %v12712_v50 = vld [vmem:[#allocation31_spill] sm:$0xff] }
 0x1de   :  { %12710 = vst [vmem:[#allocation12_spill] sm:$0xff] %v8727_v24  ;;  %v3643_v37 = vsel %vm792_vm1, %v2879_v27, 0.0  ;;  %v764_v0 = vmul.f32 %v187_v25, %v187_v25  ;;  %v765_v52 = vmul.f32 %v188_v56, %v188_v56  ;;  %v766_v31 = vmul.f32 %v189_v34, %v189_v34  ;;  %v12714_v56 = vld [vmem:[#allocation69_spill] sm:$0xff]  ;;  %v12715_v34 = vld [vmem:[#allocation16_spill] sm:$0xff] }
 0x1df   :  { %v1731_v17 = vand.u32 2147483648, %v12703_v11  ;;  %vm1721_vm2 = vcmp.eq.f32.partialorder %v12707_v33, inf  ;;  %v1741_v2 = vmul.f32 %v12712_v50, %v12711_v49  ;;  %v767_v47 = vmul.f32 %v190_v40, %v190_v40  ;;  %v8745_v40 = vpop.xlane.xlu1 %690 }
 0x1e0   :  { %3647 = vadd.xlane.f32.xlu1 %v3646_v28  ;;  %v1722_v23 = vsel %vm1721_vm2, %v12707_v33, %v1720_v30  ;;  %v910_v19 = vsel %vm792_vm1, %v764_v0, 0.0  ;;  %v911_v24 = vsel %vm792_vm1, %v765_v52, 0.0  ;;  %v913_v27 = vsel %vm792_vm1, %v766_v31, 0.0  ;;  %12718 = vst [vmem:[#allocation31_spill] sm:$0xff] %v8745_v40  ;;  %v8747_v30 = vpop.xlane.xlu0 %687  ;;  %v12720_v31 = vld [vmem:[#allocation72_spill] sm:$0xff]  ;;  %v12721_v52 = vld [vmem:[#allocation45_spill] sm:$0xff] }
 0x1e1   :  { %3644 = vadd.xlane.f32.xlu0 %v3643_v37  ;;  %v8738_v25 = vpop.eup %5722  ;;  %v1724_v28 = vand.u32 2147483648, %v12707_v33  ;;  %v1734_v37 = vmul.f32 %v12715_v34, %v12714_v56  ;;  %v1755_v16 = vmul.f32 %v12717_v4, %v12716_v62  ;;  %v912_v50 = vadd.f32 %v911_v24, %v910_v19  ;;  %12719 = vst [vmem:[#allocation69_spill] sm:$0xff] %v8747_v30 }
 0x1e2   :  { %12713 = vst [vmem:[#allocation68_spill] sm:$0xff] %v8738_v25  ;;  %v1732_v0 = vsel %vm1730_vm0, %v1731_v17, %v1729_v38  ;;  %vm1723_vm3 = vcmp.eq.f32.partialorder %v12707_v33, 0.0  ;;  %vm1742_vm4 = vcmp.eq.f32.partialorder %v12711_v49, inf  ;;  %v1748_v25 = vmul.f32 %v12721_v52, %v12720_v31 }
 0x1e3   :  { %v1725_v5 = vsel %vm1723_vm3, %v1724_v28, %v1722_v23  ;;  %v1743_v34 = vsel %vm1742_vm4, %v12711_v49, %v1741_v2  ;;  %v914_v21 = vadd.f32 %v913_v27, %v912_v50  ;;  %v915_v4 = vsel %vm792_vm1, %v767_v47, 0.0 }
 0x1e4   :  { %vm1744_vm5 = vcmp.eq.f32.partialorder %v12711_v49, 0.0  ;;  %v1745_v19 = vand.u32 2147483648, %v12711_v49  ;;  %vm1735_vm6 = vcmp.eq.f32.partialorder %v12714_v56, inf  ;;  %vm1756_vm7 = vcmp.eq.f32.partialorder %v12716_v62, inf }
 0x1e5   :  { %v1736_v17 = vsel %vm1735_vm6, %v12714_v56, %v1734_v37  ;;  %v1738_v11 = vand.u32 2147483648, %v12714_v56  ;;  %v1757_v33 = vsel %vm1756_vm7, %v12716_v62, %v1755_v16  ;;  %vm1749_vm8 = vcmp.eq.f32.partialorder %v12720_v31, inf  ;;  %v8772_v37 = vpop.xlane.xlu1 %696  ;;  %v8774_v16 = vpop.xlane.xlu0 %693 }
 0x1e6   :  { %vm2243_vm9 = vcmp.eq.f32.partialorder %v8692_v43, inf  ;;  %v2246_v47 = vand.u32 2147483648, %v8692_v43  ;;  %v1750_v24 = vsel %vm1749_vm8, %v12720_v31, %v1748_v25  ;;  %v916_v2 = vadd.f32 %v915_v4, %v914_v21  ;;  %12722 = vst [vmem:[#allocation16_spill] sm:$0xff] %v8772_v37  ;;  %12723 = vst [vmem:[#allocation71_spill] sm:$0xff] %v8774_v16 }
 0x1e7   :  { %v5725_v38 = vpop.eup %5724  ;;  %vm2245_vm10 = vcmp.eq.f32.partialorder %v8692_v43, 0.0  ;;  %v1759_v27 = vand.u32 2147483648, %v12716_v62  ;;  %v1752_v28 = vand.u32 2147483648, %v12720_v31  ;;  %v1746_v50 = vsel %vm1744_vm5, %v1745_v19, %v1743_v34 }
 0x1e8   :  { %v2242_v23 = vmul.f32 %v5725_v38, %v8692_v43  ;;  %vm1737_vm11 = vcmp.eq.f32.partialorder %v12714_v56, 0.0  ;;  %vm1758_vm12 = vcmp.eq.f32.partialorder %v12716_v62, 0.0  ;;  %vm1751_vm13 = vcmp.eq.f32.partialorder %v12720_v31, 0.0 }
 0x1e9   :  { %v1739_v25 = vsel %vm1737_vm11, %v1738_v11, %v1736_v17  ;;  %v1760_v52 = vsel %vm1758_vm12, %v1759_v27, %v1757_v33  ;;  %v1753_v4 = vsel %vm1751_vm13, %v1752_v28, %v1750_v24  ;;  %v1099_v38 = vmax.f32 %v8438_v54, 0.0 }
 0x1ea   :  { %v2244_v21 = vsel %vm2243_vm9, %v8692_v43, %v2242_v23  ;;  %v1102_v37 = vmax.f32 %v8485_v55, 0.0  ;;  %v917_v16 = vrot.slane %v916_v2, 4  ;;  %5726 = vrsqrt.f32 %v8661_v1  ;;  %v8794_v55 = vpop.xlane.xlu1 %702 }
 0x1eb   :  { %v2247_v30 = vsel %vm2245_vm10, %v2246_v47, %v2244_v21  ;;  %5728 = vrsqrt.f32 %v8663_v51  ;;  %vm1784_vm3 = vcmp.eq.f32.partialorder %v8032_v36, inf  ;;  %vm1777_vm4 = vcmp.eq.f32.partialorder %v8044_v18, inf }
 0x1ec   :  { %v2362_v49 = vsub.f32 %v8711_v3, %v2247_v30  ;;  %v2361_v34 = vsub.f32 %v8723_v7, %v2247_v30  ;;  %v2364_v56 = vsub.f32 %v1732_v0, %v2247_v30  ;;  %v2363_v19 = vsub.f32 %v1725_v5, %v2247_v30  ;;  %v8796_v3 = vpop.xlane.xlu0 %699 }
 0x1ed   :  { %v2366_v62 = vsub.f32 %v1746_v50, %v2247_v30  ;;  %v2365_v40 = vsub.f32 %v1739_v25, %v2247_v30  ;;  %v2368_v31 = vsub.f32 %v1760_v52, %v2247_v30  ;;  %v2367_v15 = vsub.f32 %v1753_v4, %v2247_v30 }
 0x1ee   :  { %v8787_v43 = vadd.f32 0.2, %v2362_v49  ;;  %v8789_v17 = vadd.f32 0.2, %v2361_v34  ;;  %v8791_v54 = vadd.f32 0.2, %v2364_v56  ;;  %5730 = vrsqrt.f32 %v8668_v41 }
 0x1ef   :  { %v8798_v7 = vadd.f32 0.2, %v2363_v19  ;;  %v8800_v5 = vadd.f32 0.2, %v2366_v62  ;;  %v8802_v0 = vadd.f32 0.2, %v2365_v40  ;;  %v918_v62 = vadd.f32 %v917_v16, %v916_v2 }
 0x1f0   :  { %12724 = vst [vmem:[#allocation36_spill] sm:$0xff] %v8787_v43  ;;  %12725 = vst [vmem:[#allocation72_spill] sm:$0xff] %v8789_v17  ;;  %v12320_v30 = vmax.f32 %v8787_v43, 0.0  ;;  %v12319_v11 = vmax.f32 %v8789_v17, 0.0  ;;  %v12313_v33 = vmax.f32 %v8791_v54, 0.0  ;;  %v12732_v25 = vmax.f32 %v8436_v32, 0.0 }
 0x1f1   :  { %12726 = vst [vmem:[#allocation45_spill] sm:$0xff] %v8791_v54  ;;  %12727 = vst [vmem:[#allocation113_spill] sm:$0xff] %v8798_v7  ;;  %v8807_v47 = vadd.f32 0.2, %v2368_v31  ;;  %v12318_v24 = vmax.f32 %v8798_v7, 0.0  ;;  %v12315_v23 = vmax.f32 %v8800_v5, 0.0  ;;  %v8834_v31 = vpop.xlane.xlu1 %708 }
 0x1f2   :  { %12728 = vst [vmem:[#allocation114_spill] sm:$0xff] %v8800_v5  ;;  %12729 = vst [vmem:[#allocation115_spill] sm:$0xff] %v8802_v0  ;;  %v12314_v27 = vmax.f32 %v8802_v0, 0.0  ;;  %v8812_v28 = vadd.f32 0.2, %v2367_v15  ;;  %v2754_v40 = vmul.f32 16.0, %v12320_v30 }
 0x1f3   :  { %12730 = vst [vmem:[#allocation116_spill] sm:$0xff] %v8807_v47  ;;  %v2753_v50 = vmul.f32 16.0, %v12319_v11  ;;  %v2756_v21 = vmul.f32 16.0, %v12313_v33  ;;  %v8823_v52 = vadd.f32 1e-09, %v12732_v25  ;;  %v1101_v15 = vmax.f32 %v8487_v45, 0.0  ;;  %v8836_v33 = vpop.xlane.xlu0 %705 }
 0x1f4   :  { %12731 = vst [vmem:[#allocation117_spill] sm:$0xff] %v8812_v28  ;;  %v8825_v4 = vadd.f32 1e-09, %v1099_v38  ;;  %v2755_v49 = vmul.f32 16.0, %v12318_v24  ;;  %v8830_v34 = vadd.f32 1e-09, %v1102_v37  ;;  %v2882_v56 = vmul.f32 %v8614_v14, %v2754_v40 }
 0x1f5   :  { %v2881_v19 = vmul.f32 %v8399_v8, %v2753_v50  ;;  %12733 = vst [vmem:[#allocation118_spill] sm:$0xff] %v8834_v31  ;;  %12734 = vst [vmem:[#allocation119_spill] sm:$0xff] %v8836_v33  ;;  %v2758_v32 = vmul.f32 16.0, %v12315_v23  ;;  %v2757_v45 = vmul.f32 16.0, %v12314_v27  ;;  %v12317_v38 = vmax.f32 %v8807_v47, 0.0  ;;  %v8851_v50 = vpop.eup %5726 }
 0x1f6   :  { %v12316_v37 = vmax.f32 %v8812_v28, 0.0  ;;  %v3652_v25 = vsel %vm792_vm1, %v2882_v56, 0.0  ;;  %v2884_v8 = vmul.f32 %v8415_v61, %v2756_v21  ;;  %v2883_v2 = vmul.f32 %v8421_v53, %v2755_v49  ;;  %v8855_v56 = vpop.eup %5728 }
 0x1f7   :  { %v3649_v40 = vsel %vm792_vm1, %v2881_v19, 0.0  ;;  %5732 = vrsqrt.f32 %v8823_v52  ;;  %v8849_v16 = vadd.f32 1e-09, %v1101_v15  ;;  %3653 = vadd.xlane.f32.xlu1 %v3652_v25  ;;  %v1104_v27 = vmax.f32 %v8521_v35, 0.0  ;;  %v191_v25 = vld [vmem:[%s12085_s1 + $0x140] sm:$0xff] }
 0x1f8   :  { %3650 = vadd.xlane.f32.xlu0 %v3649_v40  ;;  %5734 = vrsqrt.f32 %v8825_v4  ;;  %v919_v23 = vrot.slane %v918_v62, 2  ;;  %v2886_v61 = vmul.f32 %v8443_v20, %v2758_v32  ;;  %v2885_v53 = vmul.f32 %v8645_v59, %v2757_v45  ;;  %v192_v20 = vld [vmem:[%s12085_s1 + $0x148] sm:$0xff]  ;;  %v8873_v32 = vpop.xlane.xlu1 %714  ;;  %v8875_v45 = vpop.xlane.xlu0 %711 }
 0x1f9   :  { %5736 = vrsqrt.f32 %v8830_v34  ;;  %v2760_v21 = vmul.f32 16.0, %v12317_v38  ;;  %v3658_v15 = vsel %vm792_vm1, %v2884_v8, 0.0  ;;  %v3655_v49 = vsel %vm792_vm1, %v2883_v2, 0.0  ;;  %12735 = vst [vmem:[#allocation120_spill] sm:$0xff] %v8873_v32  ;;  %12736 = vst [vmem:[#allocation121_spill] sm:$0xff] %v8875_v45  ;;  %v194_v38 = vld [vmem:[%s12085_s1 + $0x158] sm:$0xff] }
 0x1fa   :  { %v2759_v19 = vmul.f32 16.0, %v12316_v37  ;;  %v920_v35 = vadd.f32 %v919_v23, %v918_v62  ;;  %5738 = vrsqrt.f32 %v8849_v16  ;;  %v193_v23 = vld [vmem:[%s12085_s1 + $0x150] sm:$0xff]  ;;  %v8880_v62 = vpop.eup %5730  ;;  %v8882_v40 = vadd.f32 1e-09, %v1104_v27  ;;  %v12782_v32 = vld [vmem:[#allocation41_spill] sm:$0xff] }
 0x1fb   :  { %3659 = vadd.xlane.f32.xlu1 %v3658_v15  ;;  %v1103_v8 = vmax.f32 %v8523_v39, 0.0  ;;  %v1106_v2 = vmax.f32 %v8549_v29, 0.0  ;;  %v3664_v15 = vsel %vm792_vm1, %v2886_v61, 0.0  ;;  %v768_v24 = vmul.f32 %v191_v25, %v191_v25  ;;  %v12737_v39 = vld [vmem:[#allocation73_spill] sm:$0xff]  ;;  %v12738_v29 = vld [vmem:[#allocation2_spill] sm:$0xff] }
 0x1fc   :  { %3656 = vadd.xlane.f32.xlu0 %v3655_v49  ;;  %v921_v37 = vrot.slane %v920_v35, 1  ;;  %v2888_v49 = vmul.f32 %v8677_v26, %v2760_v21  ;;  %v769_v11 = vmul.f32 %v192_v20, %v192_v20  ;;  %v3661_v30 = vsel %vm792_vm1, %v2885_v53, 0.0 }
 0x1fd   :  { %v2887_v27 = vmul.f32 %v8689_v6, %v2759_v19  ;;  %v770_v47 = vmul.f32 %v193_v23, %v193_v23  ;;  %v1769_v0 = vmul.f32 %v12738_v29, %v12737_v39  ;;  %v771_v5 = vmul.f32 %v194_v38, %v194_v38  ;;  %v8906_v19 = vpop.xlane.xlu0 %717 }
 0x1fe   :  { %v922_v28 = vadd.f32 %v921_v37, %v920_v35  ;;  %v923_v7 = vsel %vm792_vm1, %v768_v24, 0.0  ;;  %v924_v61 = vsel %vm792_vm1, %v769_v11, 0.0  ;;  %v1105_v21 = vmax.f32 %v8551_v10, 0.0  ;;  %12740 = vst [vmem:[#allocation2_spill] sm:$0xff] %v8906_v19 }
 0x1ff   :  { %3665 = vadd.xlane.f32.xlu1 %v3664_v15  ;;  %v925_v20 = vadd.f32 %v924_v61, %v923_v7  ;;  %v926_v53 = vsel %vm792_vm1, %v770_v47, 0.0  ;;  %5740 = vrsqrt.f32 %v8882_v40  ;;  %v8902_v37 = vadd.f32 1e-09, %v1103_v8  ;;  %v12741_v8 = vld [vmem:[#allocation75_spill] sm:$0xff]  ;;  %v12742_v15 = vld [vmem:[#allocation46_spill] sm:$0xff] }
 0x200   :  { %3662 = vadd.xlane.f32.xlu0 %v3661_v30  ;;  %v2162_v25 = vmax.f32 %v922_v28, 0.0  ;;  %v8904_v30 = vpop.xlane.xlu1 %720  ;;  %v3670_v24 = vsel %vm792_vm1, %v2888_v49, 0.0  ;;  %vm1770_vm14 = vcmp.eq.f32.partialorder %v12737_v39, inf  ;;  %v3667_v10 = vsel %vm792_vm1, %v2887_v27, 0.0 }
 0x201   :  { %v8899_v54 = vpop.eup %5732  ;;  %12739 = vst [vmem:[#allocation73_spill] sm:$0xff] %v8904_v30  ;;  %v927_v47 = vadd.f32 %v926_v53, %v925_v20  ;;  %v928_v28 = vsel %vm792_vm1, %v771_v5, 0.0  ;;  %v8918_v35 = vadd.f32 1e-09, %v1106_v2  ;;  %v1771_v23 = vsel %vm1770_vm14, %v12737_v39, %v1769_v0 }
 0x202   :  { %v8910_v11 = vpop.eup %5734  ;;  %v8913_v7 = vadd.f32 1e-09, %v2162_v25  ;;  %v1762_v49 = vmul.f32 %v12742_v15, %v12741_v8  ;;  %v1783_v29 = vmul.f32 %v8198_v42, %v8032_v36  ;;  %v8925_v27 = vadd.f32 1e-09, %v1105_v21 }
 0x203   :  { %v8916_v38 = vpop.eup %5736  ;;  %3671 = vadd.xlane.f32.xlu1 %v3670_v24  ;;  %v1773_v61 = vand.u32 2147483648, %v12737_v39  ;;  %v1776_v5 = vmul.f32 %v8203_v22, %v8044_v18  ;;  %v1108_v25 = vmax.f32 %v8565_v46, 0.0  ;;  %vm1772_vm15 = vcmp.eq.f32.partialorder %v12737_v39, 0.0  ;;  %v8943_v22 = vpop.xlane.xlu0 %723 }
 0x204   :  { %3668 = vadd.xlane.f32.xlu0 %v3667_v10  ;;  %5742 = vrsqrt.f32 %v8913_v7  ;;  %v8931_v2 = vpop.eup %5738  ;;  %vm1763_vm0 = vcmp.eq.f32.partialorder %v12741_v8, inf  ;;  %v929_v0 = vadd.f32 %v928_v28, %v927_v47  ;;  %vm1765_vm2 = vcmp.eq.f32.partialorder %v12741_v8, 0.0  ;;  %v8941_v21 = vpop.xlane.xlu1 %726  ;;  %12744 = vst [vmem:[#allocation46_spill] sm:$0xff] %v8943_v22 }
 0x205   :  { %v8936_v20 = vsel %vm1772_vm15, %v1773_v61, %v1771_v23  ;;  %v1766_v42 = vand.u32 2147483648, %v12741_v8  ;;  %12743 = vst [vmem:[#allocation75_spill] sm:$0xff] %v8941_v21  ;;  %v1764_v53 = vsel %vm1763_vm0, %v12741_v8, %v1762_v49  ;;  %v1785_v46 = vsel %vm1784_vm3, %v8032_v36, %v1783_v29 }
 0x206   :  { %v930_v39 = vrot.slane %v929_v0, 4  ;;  %vm1786_vm5 = vcmp.eq.f32.partialorder %v8032_v36, 0.0  ;;  %v1787_v24 = vand.u32 2147483648, %v8032_v36  ;;  %v1778_v10 = vsel %vm1777_vm4, %v8044_v18, %v1776_v5  ;;  %v12745_v36 = vld [vmem:[#allocation85_spill] sm:$0xff]  ;;  %v12746_v5 = vld [vmem:[#allocation92_spill] sm:$0xff] }
 0x207   :  { %v1797_v47 = vmul.f32 %v8254_v63, %v8167_v48  ;;  %v1780_v28 = vand.u32 2147483648, %v8044_v18  ;;  %v1790_v23 = vmul.f32 %v8261_v60, %v8175_v44  ;;  %v1811_v15 = vmul.f32 %v8278_v57, %v8195_v12  ;;  %v8973_v8 = vpop.xlane.xlu0 %3458 }
 0x208   :  { %v931_v49 = vadd.f32 %v930_v39, %v929_v0  ;;  %v1767_v29 = vsel %vm1765_vm2, %v1766_v42, %v1764_v53  ;;  %v1788_v61 = vsel %vm1786_vm5, %v1787_v24, %v1785_v46  ;;  %vm1779_vm6 = vcmp.eq.f32.partialorder %v8044_v18, 0.0  ;;  %v8971_v18 = vpop.xlane.xlu1 %3461  ;;  %12748 = vst [vmem:[#allocation92_spill] sm:$0xff] %v8973_v8 }
 0x209   :  { %v1804_v17 = vmul.f32 %v12746_v5, %v12745_v36  ;;  %v8963_v43 = vpop.eup %5740  ;;  %v1781_v63 = vsel %vm1779_vm6, %v1780_v28, %v1778_v10  ;;  %vm1798_vm7 = vcmp.eq.f32.partialorder %v8167_v48, inf  ;;  %vm1800_vm8 = vcmp.eq.f32.partialorder %v8167_v48, 0.0  ;;  %12747 = vst [vmem:[#allocation85_spill] sm:$0xff] %v8971_v18 }
 0x20a   :  { %v932_v60 = vrot.slane %v931_v49, 2  ;;  %v1799_v57 = vsel %vm1798_vm7, %v8167_v48, %v1797_v47  ;;  %v1801_v0 = vand.u32 2147483648, %v8167_v48  ;;  %vm1791_vm9 = vcmp.eq.f32.partialorder %v8175_v44, inf }
 0x20b   :  { %vm1812_vm10 = vcmp.eq.f32.partialorder %v8195_v12, inf  ;;  %v1792_v42 = vsel %vm1791_vm9, %v8175_v44, %v1790_v23  ;;  %v1794_v53 = vand.u32 2147483648, %v8175_v44  ;;  %vm1805_vm11 = vcmp.eq.f32.partialorder %v12745_v36, inf }
 0x20c   :  { %v1813_v46 = vsel %vm1812_vm10, %v8195_v12, %v1811_v15  ;;  %vm2250_vm12 = vcmp.eq.f32.partialorder %v8913_v7, inf  ;;  %v2253_v24 = vand.u32 2147483648, %v8913_v7  ;;  %v1806_v10 = vsel %vm1805_vm11, %v12745_v36, %v1804_v17 }
 0x20d   :  { %v933_v47 = vadd.f32 %v932_v60, %v931_v49  ;;  %vm2252_vm13 = vcmp.eq.f32.partialorder %v8913_v7, 0.0  ;;  %v1815_v23 = vand.u32 2147483648, %v8195_v12  ;;  %v1808_v5 = vand.u32 2147483648, %v12745_v36 }
 0x20e   :  { %v5743_v39 = vpop.eup %5742  ;;  %v1802_v15 = vsel %vm1800_vm8, %v1801_v0, %v1799_v57  ;;  %vm1793_vm14 = vcmp.eq.f32.partialorder %v8175_v44, 0.0  ;;  %vm1814_vm15 = vcmp.eq.f32.partialorder %v8195_v12, 0.0  ;;  %vm1807_vm0 = vcmp.eq.f32.partialorder %v12745_v36, 0.0  ;;  %v8996_v0 = vpop.xlane.xlu1 %3467 }
 0x20f   :  { %v2249_v28 = vmul.f32 %v5743_v39, %v8913_v7  ;;  %v1795_v49 = vsel %vm1793_vm14, %v1794_v53, %v1792_v42  ;;  %v1816_v60 = vsel %vm1814_vm15, %v1815_v23, %v1813_v46  ;;  %v1809_v39 = vsel %vm1807_vm0, %v1808_v5, %v1806_v10  ;;  %12749 = vst [vmem:[#allocation122_spill] sm:$0xff] %v8996_v0  ;;  %v8998_v44 = vpop.xlane.xlu0 %3464 }
 0x210   :  { %v8992_v18 = vadd.f32 1e-09, %v1108_v25  ;;  %v1107_v8 = vmax.f32 %v8567_v9, 0.0  ;;  %v934_v21 = vrot.slane %v933_v47, 1  ;;  %12750 = vst [vmem:[#allocation123_spill] sm:$0xff] %v8998_v44  ;;  %5744 = vrsqrt.f32 %v8902_v37 }
 0x211   :  { %v2251_v17 = vsel %vm2250_vm12, %v8913_v7, %v2249_v28 }
 0x212   :  { %v2254_v22 = vsel %vm2252_vm13, %v2253_v24, %v2251_v17 }
 0x213   :  { %v2370_v48 = vsub.f32 %v8936_v20, %v2254_v22  ;;  %v2369_v57 = vsub.f32 %v1767_v29, %v2254_v22  ;;  %v2372_v12 = vsub.f32 %v1788_v61, %v2254_v22  ;;  %v2371_v36 = vsub.f32 %v1781_v63, %v2254_v22  ;;  %v12757_v61 = vld [vmem:[#allocation86_spill] sm:$0xff]  ;;  %v12758_v63 = vld [vmem:[#allocation93_spill] sm:$0xff] }
 0x214   :  { %v2374_v19 = vsub.f32 %v1802_v15, %v2254_v22  ;;  %v2373_v7 = vsub.f32 %v1795_v49, %v2254_v22  ;;  %v2376_v42 = vsub.f32 %v1816_v60, %v2254_v22  ;;  %v2375_v53 = vsub.f32 %v1809_v39, %v2254_v22 }
 0x215   :  { %v9001_v25 = vadd.f32 0.2, %v2370_v48  ;;  %v9003_v9 = vadd.f32 0.2, %v2369_v57  ;;  %v9005_v46 = vadd.f32 0.2, %v2372_v12  ;;  %v1825_v10 = vmul.f32 %v12758_v63, %v12757_v61  ;;  %v9031_v57 = vpop.xlane.xlu1 %3473  ;;  %v9033_v12 = vpop.xlane.xlu0 %3470 }
 0x216   :  { %v9007_v20 = vadd.f32 0.2, %v2371_v36  ;;  %v9009_v29 = vadd.f32 0.2, %v2374_v19  ;;  %v9011_v24 = vadd.f32 0.2, %v2373_v7 }
 0x217   :  { %12751 = vst [vmem:[#allocation124_spill] sm:$0xff] %v9001_v25  ;;  %12752 = vst [vmem:[#allocation125_spill] sm:$0xff] %v9003_v9  ;;  %v12332_v28 = vmax.f32 %v9001_v25, 0.0  ;;  %v12331_v22 = vmax.f32 %v9003_v9, 0.0  ;;  %v12330_v23 = vmax.f32 %v9005_v46, 0.0  ;;  %vm1826_vm2 = vcmp.eq.f32.partialorder %v12757_v61, inf }
 0x218   :  { %12753 = vst [vmem:[#allocation126_spill] sm:$0xff] %v9005_v46  ;;  %12754 = vst [vmem:[#allocation127_spill] sm:$0xff] %v9007_v20  ;;  %v9018_v5 = vadd.f32 0.2, %v2376_v42  ;;  %v12333_v15 = vmax.f32 %v9007_v20, 0.0  ;;  %v12334_v17 = vmax.f32 %v9009_v29, 0.0  ;;  %v935_v42 = vadd.f32 %v934_v21, %v933_v47 }
 0x219   :  { %12755 = vst [vmem:[#allocation128_spill] sm:$0xff] %v9009_v29  ;;  %12756 = vst [vmem:[#allocation129_spill] sm:$0xff] %v9011_v24  ;;  %v12335_v19 = vmax.f32 %v9011_v24, 0.0  ;;  %v9023_v49 = vadd.f32 0.2, %v2375_v53  ;;  %v2762_v60 = vmul.f32 16.0, %v12332_v28  ;;  %v1827_v53 = vsel %vm1826_vm2, %v12757_v61, %v1825_v10 }
 0x21a   :  { %12759 = vst [vmem:[#allocation86_spill] sm:$0xff] %v9018_v5  ;;  %v2761_v39 = vmul.f32 16.0, %v12331_v22  ;;  %v2764_v48 = vmul.f32 16.0, %v12330_v23  ;;  %12761 = vst [vmem:[#allocation130_spill] sm:$0xff] %v9031_v57  ;;  %v2763_v36 = vmul.f32 16.0, %v12333_v15  ;;  %v195_v63 = vld [vmem:[%s12085_s1 + $0x160] sm:$0xff]  ;;  %v9087_v9 = vpop.eup %5744 }
 0x21b   :  { %12760 = vst [vmem:[#allocation93_spill] sm:$0xff] %v9023_v49  ;;  %12762 = vst [vmem:[#allocation131_spill] sm:$0xff] %v9033_v12  ;;  %v2890_v23 = vmul.f32 %v8614_v14, %v2762_v60  ;;  %v9047_v22 = vld [vmem:[%s12086_s2] sm:$0xff]  ;;  %v2766_v15 = vmul.f32 16.0, %v12334_v17  ;;  %v2765_v21 = vmul.f32 16.0, %v12335_v19  ;;  %v9057_v47 = vld [vmem:[%s12086_s2 + $0x18] sm:$0xff] }
 0x21c   :  { %v2889_v28 = vmul.f32 %v9047_v22, %v2761_v39  ;;  %v2892_v10 = vmul.f32 %v9057_v47, %v2764_v48  ;;  %vm1828_vm3 = vcmp.eq.f32.partialorder %v12757_v61, 0.0  ;;  %v1829_v7 = vand.u32 2147483648, %v12757_v61  ;;  %v9068_v19 = vld [vmem:[%s12086_s2 + $0x10] sm:$0xff]  ;;  %v196_v48 = vld [vmem:[%s12085_s1 + $0x168] sm:$0xff]  ;;  %v12764_v20 = vld [vmem:[#allocation94_spill] sm:$0xff] }
 0x21d   :  { %v3676_v39 = vsel %vm792_vm1, %v2890_v23, 0.0  ;;  %v2891_v24 = vmul.f32 %v9068_v19, %v2763_v36  ;;  %v197_v60 = vld [vmem:[%s12085_s1 + $0x170] sm:$0xff]  ;;  %v772_v61 = vmul.f32 %v195_v63, %v195_v63  ;;  %v9077_v29 = vadd.f32 1e-09, %v1107_v8  ;;  %v12763_v23 = vld [vmem:[#allocation87_spill] sm:$0xff]  ;;  %v198_v36 = vld [vmem:[%s12085_s1 + $0x178] sm:$0xff] }
 0x21e   :  { %v3673_v17 = vsel %vm792_vm1, %v2889_v28, 0.0  ;;  %3677 = vadd.xlane.f32.xlu1 %v3676_v39  ;;  %v9079_v28 = vsel %vm1828_vm3, %v1829_v7, %v1827_v53  ;;  %v1818_v46 = vmul.f32 %v12764_v20, %v12763_v23  ;;  %vm1819_vm4 = vcmp.eq.f32.partialorder %v12763_v23, inf  ;;  %v9092_v8 = vld [vmem:[%s12086_s2 + $0x28] sm:$0xff]  ;;  %v9096_v53 = vpop.xlane.xlu1 %3479  ;;  %v9098_v20 = vpop.xlane.xlu0 %3476 }
 0x21f   :  { %3674 = vadd.xlane.f32.xlu0 %v3673_v17  ;;  %v2894_v17 = vmul.f32 %v9092_v8, %v2766_v15  ;;  %v2893_v7 = vmul.f32 %v8645_v59, %v2765_v21  ;;  %12765 = vst [vmem:[#allocation87_spill] sm:$0xff] %v9096_v53  ;;  %12766 = vst [vmem:[#allocation94_spill] sm:$0xff] %v9098_v20  ;;  %v12767_v63 = vmax.f32 %v9018_v5, 0.0  ;;  %v2163_v25 = vmax.f32 %v935_v42, 0.0  ;;  %v12780_v20 = vld [vmem:[#allocation51_spill] sm:$0xff] }
 0x220   :  { %v3682_v57 = vsel %vm792_vm1, %v2892_v10, 0.0  ;;  %v12768_v12 = vmax.f32 %v9023_v49, 0.0  ;;  %v773_v44 = vmul.f32 %v196_v48, %v196_v48  ;;  %v774_v30 = vmul.f32 %v197_v60, %v197_v60  ;;  %v12769_v10 = vld [vmem:[#allocation88_spill] sm:$0xff]  ;;  %v12772_v48 = vld [vmem:[#allocation14_spill] sm:$0xff] }
 0x221   :  { %v2768_v39 = vmul.f32 16.0, %v12767_v63  ;;  %v3679_v45 = vsel %vm792_vm1, %v2891_v24, 0.0  ;;  %v9106_v15 = vadd.f32 1e-09, %v2163_v25  ;;  %v775_v21 = vmul.f32 %v198_v36, %v198_v36  ;;  %v12770_v63 = vld [vmem:[#allocation17_spill] sm:$0xff] }
 0x222   :  { %v2767_v0 = vmul.f32 16.0, %v12768_v12  ;;  %v936_v53 = vsel %vm792_vm1, %v772_v61, 0.0  ;;  %3683 = vadd.xlane.f32.xlu1 %v3682_v57  ;;  %v1820_v42 = vsel %vm1819_vm4, %v12763_v23, %v1818_v46  ;;  %vm1821_vm5 = vcmp.eq.f32.partialorder %v12763_v23, 0.0  ;;  %v12771_v24 = vld [vmem:[#allocation89_spill] sm:$0xff]  ;;  %v9127_v49 = vpop.xlane.xlu1 %3485  ;;  %v9129_v5 = vpop.xlane.xlu0 %3482 }
 0x223   :  { %3680 = vadd.xlane.f32.xlu0 %v3679_v45  ;;  %v1839_v12 = vmul.f32 %v12770_v63, %v12769_v10  ;;  %v937_v60 = vsel %vm792_vm1, %v773_v44, 0.0  ;;  %5746 = vrsqrt.f32 %v9106_v15  ;;  %v1822_v25 = vand.u32 2147483648, %v12763_v23  ;;  %12773 = vst [vmem:[#allocation88_spill] sm:$0xff] %v9127_v49  ;;  %12774 = vst [vmem:[#allocation17_spill] sm:$0xff] %v9129_v5  ;;  %v12778_v23 = vld [vmem:[#allocation105_spill] sm:$0xff]  ;;  %v12781_v5 = vld [vmem:[#allocation102_spill] sm:$0xff] }
 0x224   :  { %v1832_v61 = vmul.f32 %v12772_v48, %v12771_v24  ;;  %v939_v45 = vsel %vm792_vm1, %v774_v30, 0.0  ;;  %v2896_v57 = vmul.f32 %v8677_v26, %v2768_v39  ;;  %vm1840_vm6 = vcmp.eq.f32.partialorder %v12769_v10, inf  ;;  %v12775_v39 = vld [vmem:[#allocation90_spill] sm:$0xff] }
 0x225   :  { %vm1842_vm7 = vcmp.eq.f32.partialorder %v12769_v10, 0.0  ;;  %v938_v46 = vadd.f32 %v937_v60, %v936_v53  ;;  %v3688_v36 = vsel %vm792_vm1, %v2894_v17, 0.0  ;;  %v3685_v44 = vsel %vm792_vm1, %v2893_v7, 0.0  ;;  %v12776_v60 = vld [vmem:[#allocation103_spill] sm:$0xff] }
 0x226   :  { %v2895_v63 = vmul.f32 %v8689_v6, %v2767_v0  ;;  %v941_v48 = vsel %vm792_vm1, %v775_v21, 0.0  ;;  %3689 = vadd.xlane.f32.xlu1 %v3688_v36  ;;  %v9134_v30 = vsel %vm1821_vm5, %v1822_v25, %v1820_v42  ;;  %v1841_v53 = vsel %vm1840_vm6, %v12769_v10, %v1839_v12  ;;  %v12779_v25 = vld [vmem:[#allocation101_spill] sm:$0xff] }
 0x227   :  { %3686 = vadd.xlane.f32.xlu0 %v3685_v44  ;;  %vm1833_vm8 = vcmp.eq.f32.partialorder %v12771_v24, inf  ;;  %v940_v17 = vadd.f32 %v939_v45, %v938_v46  ;;  %v1843_v7 = vand.u32 2147483648, %v12769_v10  ;;  %vm1835_vm9 = vcmp.eq.f32.partialorder %v12771_v24, 0.0  ;;  %v12777_v44 = vld [vmem:[#allocation91_spill] sm:$0xff] }
 0x228   :  { %v1834_v0 = vsel %vm1833_vm8, %v12771_v24, %v1832_v61  ;;  %v1853_v21 = vmul.f32 %v12776_v60, %v12775_v39  ;;  %v1836_v36 = vand.u32 2147483648, %v12771_v24  ;;  %v1846_v42 = vmul.f32 %v12778_v23, %v12777_v44 }
 0x229   :  { %v1867_v12 = vmul.f32 %v12780_v20, %v12779_v25  ;;  %v942_v49 = vadd.f32 %v941_v48, %v940_v17  ;;  %v3694_v45 = vsel %vm792_vm1, %v2896_v57, 0.0  ;;  %v3691_v46 = vsel %vm792_vm1, %v2895_v63, 0.0  ;;  %v9156_v20 = vpop.xlane.xlu1 %3491  ;;  %v9158_v48 = vpop.xlane.xlu0 %3488 }
 0x22a   :  { %v1844_v61 = vsel %vm1842_vm7, %v1843_v7, %v1841_v53  ;;  %v1860_v33 = vmul.f32 %v12782_v32, %v12781_v5  ;;  %3695 = vadd.xlane.f32.xlu1 %v3694_v45  ;;  %v1837_v24 = vsel %vm1835_vm9, %v1836_v36, %v1834_v0  ;;  %vm1854_vm10 = vcmp.eq.f32.partialorder %v12775_v39, inf  ;;  %12783 = vst [vmem:[#allocation89_spill] sm:$0xff] %v9156_v20 }
 0x22b   :  { %3692 = vadd.xlane.f32.xlu0 %v3691_v46  ;;  %vm1856_vm11 = vcmp.eq.f32.partialorder %v12775_v39, 0.0  ;;  %v943_v60 = vrot.slane %v942_v49, 4  ;;  %12784 = vst [vmem:[#allocation14_spill] sm:$0xff] %v9158_v48  ;;  %v1855_v57 = vsel %vm1854_vm10, %v12775_v39, %v1853_v21  ;;  %v1857_v10 = vand.u32 2147483648, %v12775_v39 }
 0x22c   :  { %vm1847_vm12 = vcmp.eq.f32.partialorder %v12777_v44, inf  ;;  %vm1868_vm13 = vcmp.eq.f32.partialorder %v12779_v25, inf  ;;  %v1850_v63 = vand.u32 2147483648, %v12777_v44  ;;  %vm1861_vm14 = vcmp.eq.f32.partialorder %v12781_v5, inf }
 0x22d   :  { %v1848_v32 = vsel %vm1847_vm12, %v12777_v44, %v1846_v42  ;;  %v1869_v53 = vsel %vm1868_vm13, %v12779_v25, %v1867_v12  ;;  %v5747_v17 = vpop.eup %5746  ;;  %vm2257_vm15 = vcmp.eq.f32.partialorder %v9106_v15, inf  ;;  %v2260_v7 = vand.u32 2147483648, %v9106_v15  ;;  %v9183_v48 = vpop.xlane.xlu1 %3497 }
 0x22e   :  { %v1862_v0 = vsel %vm1861_vm14, %v12781_v5, %v1860_v33  ;;  %v944_v21 = vadd.f32 %v943_v60, %v942_v49  ;;  %v2256_v36 = vmul.f32 %v5747_v17, %v9106_v15  ;;  %vm2259_vm0 = vcmp.eq.f32.partialorder %v9106_v15, 0.0  ;;  %12785 = vst [vmem:[#allocation90_spill] sm:$0xff] %v9183_v48  ;;  %v9185_v39 = vpop.xlane.xlu0 %3494 }
 0x22f   :  { %v1871_v23 = vand.u32 2147483648, %v12779_v25  ;;  %v1864_v42 = vand.u32 2147483648, %v12781_v5  ;;  %v1858_v12 = vsel %vm1856_vm11, %v1857_v10, %v1855_v57  ;;  %vm1849_vm2 = vcmp.eq.f32.partialorder %v12777_v44, 0.0  ;;  %12786 = vst [vmem:[#allocation103_spill] sm:$0xff] %v9185_v39 }
 0x230   :  { %vm1870_vm3 = vcmp.eq.f32.partialorder %v12779_v25, 0.0  ;;  %vm1863_vm4 = vcmp.eq.f32.partialorder %v12781_v5, 0.0  ;;  %v2258_v33 = vsel %vm2257_vm15, %v9106_v15, %v2256_v36  ;;  %v1851_v49 = vsel %vm1849_vm2, %v1850_v63, %v1848_v32 }
 0x231   :  { %v1872_v45 = vsel %vm1870_vm3, %v1871_v23, %v1869_v53  ;;  %v1865_v46 = vsel %vm1863_vm4, %v1864_v42, %v1862_v0  ;;  %v1110_v60 = vmax.f32 %v8607_v13, 0.0  ;;  %v1109_v17 = vmax.f32 %v8609_v58, 0.0 }
 0x232   :  { %v2261_v20 = vsel %vm2259_vm0, %v2260_v7, %v2258_v33  ;;  %v945_v57 = vrot.slane %v944_v21, 2  ;;  %5748 = vrsqrt.f32 %v8918_v35  ;;  %v9211_v33 = vpop.xlane.xlu1 %3503  ;;  %vm1917_vm2 = vcmp.eq.f32.partialorder %v8661_v1, inf }
 0x233   :  { %v2378_v44 = vsub.f32 %v9079_v28, %v2261_v20  ;;  %v2377_v25 = vsub.f32 %v9134_v30, %v2261_v20  ;;  %v2380_v5 = vsub.f32 %v1844_v61, %v2261_v20  ;;  %v2379_v10 = vsub.f32 %v1837_v24, %v2261_v20  ;;  %12794 = vst [vmem:[#allocation133_spill] sm:$0xff] %v9211_v33  ;;  %v12808_v33 = vld [vmem:[#allocation64_spill] sm:$0xff] }
 0x234   :  { %v2382_v15 = vsub.f32 %v1858_v12, %v2261_v20  ;;  %v2381_v32 = vsub.f32 %v1851_v49, %v2261_v20  ;;  %v2384_v63 = vsub.f32 %v1872_v45, %v2261_v20  ;;  %v2383_v53 = vsub.f32 %v1865_v46, %v2261_v20  ;;  %v9213_v49 = vpop.xlane.xlu0 %3500 }
 0x235   :  { %v9190_v13 = vadd.f32 0.2, %v2378_v44  ;;  %v9192_v58 = vadd.f32 0.2, %v2377_v25  ;;  %v9194_v7 = vadd.f32 0.2, %v2380_v5  ;;  %5750 = vrsqrt.f32 %v8925_v27 }
 0x236   :  { %v9197_v0 = vadd.f32 0.2, %v2379_v10  ;;  %v9199_v28 = vadd.f32 0.2, %v2382_v15  ;;  %v9201_v30 = vadd.f32 0.2, %v2381_v32  ;;  %5752 = vrsqrt.f32 %v8992_v18 }
 0x237   :  { %12787 = vst [vmem:[#allocation91_spill] sm:$0xff] %v9190_v13  ;;  %12788 = vst [vmem:[#allocation105_spill] sm:$0xff] %v9192_v58  ;;  %v12344_v61 = vmax.f32 %v9190_v13, 0.0  ;;  %v12345_v24 = vmax.f32 %v9192_v58, 0.0  ;;  %v12346_v20 = vmax.f32 %v9194_v7, 0.0  ;;  %5754 = vrsqrt.f32 %v9077_v29 }
 0x238   :  { %12789 = vst [vmem:[#allocation101_spill] sm:$0xff] %v9194_v7  ;;  %12790 = vst [vmem:[#allocation51_spill] sm:$0xff] %v9197_v0  ;;  %v9206_v36 = vadd.f32 0.2, %v2384_v63  ;;  %v12349_v23 = vmax.f32 %v9197_v0, 0.0  ;;  %v12350_v42 = vmax.f32 %v9199_v28, 0.0 }
 0x239   :  { %12791 = vst [vmem:[#allocation102_spill] sm:$0xff] %v9199_v28  ;;  %12792 = vst [vmem:[#allocation41_spill] sm:$0xff] %v9201_v30  ;;  %v9215_v45 = vadd.f32 0.2, %v2383_v53  ;;  %v2770_v46 = vmul.f32 16.0, %v12344_v61  ;;  %v2769_v44 = vmul.f32 16.0, %v12345_v24  ;;  %v946_v61 = vadd.f32 %v945_v57, %v944_v21 }
 0x23a   :  { %12793 = vst [vmem:[#allocation132_spill] sm:$0xff] %v9206_v36  ;;  %12795 = vst [vmem:[#allocation134_spill] sm:$0xff] %v9213_v49  ;;  %v2772_v25 = vmul.f32 16.0, %v12346_v20  ;;  %v9225_v5 = vadd.f32 1e-09, %v1110_v60  ;;  %v2771_v15 = vmul.f32 16.0, %v12349_v23 }
 0x23b   :  { %12796 = vst [vmem:[#allocation135_spill] sm:$0xff] %v9215_v45  ;;  %v9227_v10 = vadd.f32 1e-09, %v1109_v17  ;;  %v2898_v32 = vmul.f32 %v8614_v14, %v2770_v46  ;;  %v2897_v63 = vmul.f32 %v9047_v22, %v2769_v44  ;;  %v12352_v53 = vmax.f32 %v9206_v36, 0.0  ;;  %v12799_v24 = vld [vmem:[#allocation74_spill] sm:$0xff]  ;;  %v12801_v21 = vld [vmem:[#allocation65_spill] sm:$0xff]  ;;  %v9248_v44 = vpop.xlane.xlu0 %3506 }
 0x23c   :  { %12797 = vst [vmem:[#allocation136_spill] sm:$0xff] %v9225_v5  ;;  %v1112_v12 = vmax.f32 %v12799_v24, 0.0  ;;  %v2774_v20 = vmul.f32 16.0, %v12350_v42  ;;  %v12800_v60 = vmax.f32 %v9201_v30, 0.0  ;;  %v2900_v14 = vmul.f32 %v9057_v47, %v2772_v25  ;;  %v9246_v24 = vpop.xlane.xlu1 %3509  ;;  %12803 = vst [vmem:[#allocation65_spill] sm:$0xff] %v9248_v44  ;;  %v12805_v42 = vld [vmem:[#allocation111_spill] sm:$0xff] }
 0x23d   :  { %12798 = vst [vmem:[#allocation137_spill] sm:$0xff] %v9227_v10  ;;  %v3700_v0 = vsel %vm792_vm1, %v2898_v32, 0.0  ;;  %v3697_v23 = vsel %vm792_vm1, %v2897_v63, 0.0  ;;  %v2899_v46 = vmul.f32 %v9068_v19, %v2771_v15  ;;  %5756 = vrsqrt.f32 %v9225_v5  ;;  %12802 = vst [vmem:[#allocation74_spill] sm:$0xff] %v9246_v24  ;;  %v9252_v32 = vpop.eup %5748  ;;  %v200_v36 = vld [vmem:[%s12085_s1 + $0x188] sm:$0xff] }
 0x23e   :  { %v2773_v7 = vmul.f32 16.0, %v12800_v60  ;;  %v1111_v57 = vmax.f32 %v12801_v21, 0.0  ;;  %3701 = vadd.xlane.f32.xlu1 %v3700_v0  ;;  %3698 = vadd.xlane.f32.xlu0 %v3697_v23  ;;  %v12804_v60 = vld [vmem:[#allocation19_spill] sm:$0xff]  ;;  %5758 = vrsqrt.f32 %v9227_v10  ;;  %v2776_v25 = vmul.f32 16.0, %v12352_v53  ;;  %v199_v0 = vld [vmem:[%s12085_s1 + $0x180] sm:$0xff]  ;;  %v12828_v10 = vld [vmem:[#allocation77_spill] sm:$0xff] }
 0x23f   :  { %v1881_v17 = vmul.f32 %v12805_v42, %v12804_v60  ;;  %v947_v15 = vrot.slane %v946_v61, 1  ;;  %v9260_v23 = vpop.eup %5750  ;;  %v9262_v63 = vadd.f32 1e-09, %v1112_v12  ;;  %v2902_v21 = vmul.f32 %v9092_v8, %v2774_v20  ;;  %v201_v20 = vld [vmem:[%s12085_s1 + $0x190] sm:$0xff] }
 0x240   :  { %v2901_v42 = vmul.f32 %v8645_v59, %v2773_v7  ;;  %vm1882_vm5 = vcmp.eq.f32.partialorder %v12804_v60, inf  ;;  %v3706_v53 = vsel %vm792_vm1, %v2900_v14, 0.0  ;;  %v3703_v30 = vsel %vm792_vm1, %v2899_v46, 0.0  ;;  %v202_v59 = vld [vmem:[%s12085_s1 + $0x198] sm:$0xff] }
 0x241   :  { %v12806_v28 = vmax.f32 %v9215_v45, 0.0  ;;  %v948_v13 = vadd.f32 %v947_v15, %v946_v61  ;;  %v9280_v7 = vadd.f32 1e-09, %v1111_v57  ;;  %v1883_v12 = vsel %vm1882_vm5, %v12804_v60, %v1881_v17  ;;  %v9284_v45 = vpop.eup %5752  ;;  %v12807_v15 = vld [vmem:[#allocation39_spill] sm:$0xff] }
 0x242   :  { %3707 = vadd.xlane.f32.xlu1 %v3706_v53  ;;  %3704 = vadd.xlane.f32.xlu0 %v3703_v30  ;;  %v1885_v14 = vand.u32 2147483648, %v12804_v60  ;;  %v776_v46 = vmul.f32 %v199_v0, %v199_v0  ;;  %v1874_v49 = vmul.f32 %v12808_v33, %v12807_v15  ;;  %v777_v48 = vmul.f32 %v200_v36, %v200_v36  ;;  %v9289_v39 = vpop.eup %5754  ;;  %v9292_v53 = vpop.xlane.xlu1 %3515  ;;  %v12811_v33 = vld [vmem:[#allocation104_spill] sm:$0xff] }
 0x243   :  { %v2775_v58 = vmul.f32 16.0, %v12806_v28  ;;  %v2904_v28 = vmul.f32 %v8677_v26, %v2776_v25  ;;  %v2164_v61 = vmax.f32 %v948_v13, 0.0  ;;  %v3712_v57 = vsel %vm792_vm1, %v2902_v21, 0.0  ;;  %12809 = vst [vmem:[#allocation19_spill] sm:$0xff] %v9292_v53  ;;  %v9294_v30 = vpop.xlane.xlu0 %3512  ;;  %v12812_v25 = vld [vmem:[#allocation76_spill] sm:$0xff] }
 0x244   :  { %12810 = vst [vmem:[#allocation111_spill] sm:$0xff] %v9294_v30  ;;  %v778_v17 = vmul.f32 %v201_v20, %v201_v20  ;;  %v779_v24 = vmul.f32 %v202_v59, %v202_v59  ;;  %v949_v0 = vsel %vm792_vm1, %v776_v46, 0.0  ;;  %v3709_v44 = vsel %vm792_vm1, %v2901_v42, 0.0  ;;  %v12813_v59 = vld [vmem:[#allocation106_spill] sm:$0xff] }
 0x245   :  { %v2903_v26 = vmul.f32 %v8689_v6, %v2775_v58  ;;  %v9299_v13 = vadd.f32 1e-09, %v2164_v61  ;;  %v950_v36 = vsel %vm792_vm1, %v777_v48, 0.0  ;;  %vm1875_vm6 = vcmp.eq.f32.partialorder %v12807_v15, inf  ;;  %v12814_v6 = vld [vmem:[#allocation112_spill] sm:$0xff] }
 0x246   :  { %3713 = vadd.xlane.f32.xlu1 %v3712_v57  ;;  %3710 = vadd.xlane.f32.xlu0 %v3709_v44  ;;  %v1895_v21 = vmul.f32 %v12812_v25, %v12811_v33  ;;  %v951_v53 = vadd.f32 %v950_v36, %v949_v0  ;;  %v952_v20 = vsel %vm792_vm1, %v778_v17, 0.0  ;;  %v1876_v42 = vsel %vm1875_vm6, %v12807_v15, %v1874_v49 }
 0x247   :  { %5760 = vrsqrt.f32 %v9299_v13  ;;  %v1888_v58 = vmul.f32 %v12814_v6, %v12813_v59  ;;  %v954_v46 = vsel %vm792_vm1, %v779_v24, 0.0  ;;  %v9311_v48 = vpop.eup %5756  ;;  %vm1884_vm7 = vcmp.eq.f32.partialorder %v12804_v60, 0.0  ;;  %v12822_v6 = vld [vmem:[#allocation12_spill] sm:$0xff] }
 0x248   :  { %12815 = vst [vmem:[#allocation39_spill] sm:$0xff] %v9311_v48  ;;  %vm1877_vm8 = vcmp.eq.f32.partialorder %v12807_v15, 0.0  ;;  %v1878_v44 = vand.u32 2147483648, %v12807_v15  ;;  %v953_v61 = vadd.f32 %v952_v20, %v951_v53  ;;  %v9316_v57 = vpop.eup %5758  ;;  %v3718_v17 = vsel %vm792_vm1, %v2904_v28, 0.0  ;;  %v9327_v15 = vpop.xlane.xlu1 %3521  ;;  %v12821_v20 = vld [vmem:[#allocation109_spill] sm:$0xff] }
 0x249   :  { %12816 = vst [vmem:[#allocation64_spill] sm:$0xff] %v9316_v57  ;;  %v3715_v49 = vsel %vm792_vm1, %v2903_v26, 0.0  ;;  %v9320_v0 = vsel %vm1884_vm7, %v1885_v14, %v1883_v12  ;;  %vm1896_vm9 = vcmp.eq.f32.partialorder %v12811_v33, inf  ;;  %vm1889_vm10 = vcmp.eq.f32.partialorder %v12813_v59, inf  ;;  %12817 = vst [vmem:[#allocation104_spill] sm:$0xff] %v9327_v15  ;;  %v9329_v53 = vpop.xlane.xlu0 %3518  ;;  %v12819_v14 = vld [vmem:[#allocation108_spill] sm:$0xff] }
 0x24a   :  { %3719 = vadd.xlane.f32.xlu1 %v3718_v17  ;;  %3716 = vadd.xlane.f32.xlu0 %v3715_v49  ;;  %v9323_v24 = vsel %vm1877_vm8, %v1878_v44, %v1876_v42  ;;  %v1897_v60 = vsel %vm1896_vm9, %v12811_v33, %v1895_v21  ;;  %12818 = vst [vmem:[#allocation76_spill] sm:$0xff] %v9329_v53  ;;  %v1899_v28 = vand.u32 2147483648, %v12811_v33  ;;  %v12820_v26 = vld [vmem:[#allocation67_spill] sm:$0xff]  ;;  %vm1898_vm11 = vcmp.eq.f32.partialorder %v12811_v33, 0.0  ;;  %v12823_v44 = vld [vmem:[#allocation110_spill] sm:$0xff]  ;;  %v12824_v17 = vld [vmem:[#allocation68_spill] sm:$0xff] }
 0x24b   :  { %v955_v36 = vadd.f32 %v954_v46, %v953_v61  ;;  %v1890_v12 = vsel %vm1889_vm10, %v12813_v59, %v1888_v58  ;;  %v1909_v25 = vmul.f32 %v12820_v26, %v12819_v14  ;;  %v1902_v42 = vmul.f32 %v12822_v6, %v12821_v20 }
 0x24c   :  { %v1892_v21 = vand.u32 2147483648, %v12813_v59  ;;  %v1923_v49 = vmul.f32 %v12824_v17, %v12823_v44  ;;  %v1900_v53 = vsel %vm1898_vm11, %v1899_v28, %v1897_v60  ;;  %vm1891_vm12 = vcmp.eq.f32.partialorder %v12813_v59, 0.0  ;;  %v9352_v60 = vpop.xlane.xlu1 %3527 }
 0x24d   :  { %v956_v15 = vrot.slane %v955_v36, 4  ;;  %vm1910_vm13 = vcmp.eq.f32.partialorder %v12819_v14, inf  ;;  %v1916_v58 = vmul.f32 %v8851_v50, %v8661_v1  ;;  %vm1912_vm14 = vcmp.eq.f32.partialorder %v12819_v14, 0.0  ;;  %12825 = vst [vmem:[#allocation106_spill] sm:$0xff] %v9352_v60  ;;  %v9354_v28 = vpop.xlane.xlu0 %3524 }
 0x24e   :  { %v1893_v46 = vsel %vm1891_vm12, %v1892_v21, %v1890_v12  ;;  %vm1903_vm15 = vcmp.eq.f32.partialorder %v12821_v20, inf  ;;  %v1911_v61 = vsel %vm1910_vm13, %v12819_v14, %v1909_v25  ;;  %v1913_v26 = vand.u32 2147483648, %v12819_v14  ;;  %12826 = vst [vmem:[#allocation112_spill] sm:$0xff] %v9354_v28 }
 0x24f   :  { %v957_v33 = vadd.f32 %v956_v15, %v955_v36  ;;  %v1904_v6 = vsel %vm1903_vm15, %v12821_v20, %v1902_v42  ;;  %vm1924_vm0 = vcmp.eq.f32.partialorder %v12823_v44, inf  ;;  %v1906_v59 = vand.u32 2147483648, %v12821_v20 }
 0x250   :  { %v1925_v50 = vsel %vm1924_vm0, %v12823_v44, %v1923_v49  ;;  %vm2264_vm3 = vcmp.eq.f32.partialorder %v9299_v13, inf  ;;  %v2267_v36 = vand.u32 2147483648, %v9299_v13  ;;  %v1927_v25 = vand.u32 2147483648, %v12823_v44 }
 0x251   :  { %v958_v12 = vrot.slane %v957_v33, 2  ;;  %v5761_v15 = vpop.eup %5760  ;;  %v1918_v42 = vsel %vm1917_vm2, %v8661_v1, %v1916_v58  ;;  %vm2266_vm4 = vcmp.eq.f32.partialorder %v9299_v13, 0.0  ;;  %v1920_v17 = vand.u32 2147483648, %v8661_v1 }
 0x252   :  { %v2263_v21 = vmul.f32 %v5761_v15, %v9299_v13  ;;  %v1914_v49 = vsel %vm1912_vm14, %v1913_v26, %v1911_v61  ;;  %vm1905_vm5 = vcmp.eq.f32.partialorder %v12821_v20, 0.0  ;;  %vm1926_vm6 = vcmp.eq.f32.partialorder %v12823_v44, 0.0  ;;  %v12827_v15 = vld [vmem:[#allocation66_spill] sm:$0xff]  ;;  %v9375_v44 = vpop.xlane.xlu1 %3533 }
 0x253   :  { %v959_v60 = vadd.f32 %v958_v12, %v957_v33  ;;  %vm1919_vm7 = vcmp.eq.f32.partialorder %v8661_v1, 0.0  ;;  %v1907_v30 = vsel %vm1905_vm5, %v1906_v59, %v1904_v6  ;;  %v1928_v58 = vsel %vm1926_vm6, %v1927_v25, %v1925_v50  ;;  %v9377_v1 = vpop.xlane.xlu0 %3530 }
 0x254   :  { %v2265_v28 = vsel %vm2264_vm3, %v9299_v13, %v2263_v21  ;;  %v1921_v31 = vsel %vm1919_vm7, %v1920_v17, %v1918_v42  ;;  %v1114_v57 = vmax.f32 %v12827_v15, 0.0  ;;  %v1113_v48 = vmax.f32 %v12828_v10, 0.0 }
 0x255   :  { %v2268_v5 = vsel %vm2266_vm4, %v2267_v36, %v2265_v28  ;;  %v960_v33 = vrot.slane %v959_v60, 1  ;;  %5762 = vrsqrt.f32 %v9262_v63  ;;  %vm1938_vm8 = vcmp.eq.f32.partialorder %v8663_v51, inf }
 0x256   :  { %v2386_v14 = vsub.f32 %v9320_v0, %v2268_v5  ;;  %v2385_v61 = vsub.f32 %v9323_v24, %v2268_v5  ;;  %v2388_v20 = vsub.f32 %v1900_v53, %v2268_v5  ;;  %v2387_v26 = vsub.f32 %v1893_v46, %v2268_v5  ;;  %v9411_v15 = vpop.xlane.xlu1 %3539 }
 0x257   :  { %v2390_v13 = vsub.f32 %v1914_v49, %v2268_v5  ;;  %v2389_v6 = vsub.f32 %v1907_v30, %v2268_v5  ;;  %v2392_v59 = vsub.f32 %v1928_v58, %v2268_v5  ;;  %v2391_v50 = vsub.f32 %v1921_v31, %v2268_v5 }
 0x258   :  { %v9380_v12 = vadd.f32 0.2, %v2386_v14  ;;  %v9382_v10 = vadd.f32 0.2, %v2385_v61  ;;  %v9384_v28 = vadd.f32 0.2, %v2388_v20  ;;  %v1937_v46 = vmul.f32 %v8855_v56, %v8663_v51  ;;  %v9413_v14 = vpop.xlane.xlu0 %3536 }
 0x259   :  { %v9386_v0 = vadd.f32 0.2, %v2387_v26  ;;  %v9388_v24 = vadd.f32 0.2, %v2390_v13  ;;  %v9390_v53 = vadd.f32 0.2, %v2389_v6 }
 0x25a   :  { %12829 = vst [vmem:[#allocation108_spill] sm:$0xff] %v9380_v12  ;;  %12830 = vst [vmem:[#allocation67_spill] sm:$0xff] %v9382_v10  ;;  %v12365_v30 = vmax.f32 %v9380_v12, 0.0  ;;  %v12364_v31 = vmax.f32 %v9382_v10, 0.0  ;;  %v12362_v5 = vmax.f32 %v9384_v28, 0.0  ;;  %v1939_v26 = vsel %vm1938_vm8, %v8663_v51, %v1937_v46  ;;  %v9424_v6 = vld [vmem:[%s12086_s2 + $0x8] sm:$0xff] }
 0x25b   :  { %12831 = vst [vmem:[#allocation109_spill] sm:$0xff] %v9384_v28  ;;  %12832 = vst [vmem:[#allocation12_spill] sm:$0xff] %v9386_v0  ;;  %v9397_v36 = vadd.f32 0.2, %v2392_v59  ;;  %v12363_v25 = vmax.f32 %v9386_v0, 0.0  ;;  %v12368_v42 = vmax.f32 %v9388_v24, 0.0 }
 0x25c   :  { %12833 = vst [vmem:[#allocation110_spill] sm:$0xff] %v9388_v24  ;;  %12834 = vst [vmem:[#allocation68_spill] sm:$0xff] %v9390_v53  ;;  %v12367_v21 = vmax.f32 %v9390_v53, 0.0  ;;  %v9402_v17 = vadd.f32 0.2, %v2391_v50  ;;  %v2778_v49 = vmul.f32 16.0, %v12365_v30 }
 0x25d   :  { %12835 = vst [vmem:[#allocation66_spill] sm:$0xff] %v9397_v36  ;;  %v2777_v56 = vmul.f32 16.0, %v12364_v31  ;;  %v2780_v58 = vmul.f32 16.0, %v12362_v5  ;;  %v9415_v61 = vadd.f32 1e-09, %v1114_v57  ;;  %v2779_v20 = vmul.f32 16.0, %v12363_v25 }
 0x25e   :  { %12836 = vst [vmem:[#allocation77_spill] sm:$0xff] %v9402_v17  ;;  %v1941_v13 = vand.u32 2147483648, %v8663_v51  ;;  %v2906_v59 = vmul.f32 %v9424_v6, %v2778_v49  ;;  %v961_v5 = vadd.f32 %v960_v33, %v959_v60  ;;  %v1930_v57 = vmul.f32 %v8880_v62, %v8668_v41 }
 0x25f   :  { %v2905_v50 = vmul.f32 %v9047_v22, %v2777_v56  ;;  %v2782_v25 = vmul.f32 16.0, %v12368_v42  ;;  %v2781_v46 = vmul.f32 16.0, %v12367_v21  ;;  %v12372_v31 = vmax.f32 %v9397_v36, 0.0  ;;  %v9445_v21 = vpop.eup %5762 }
 0x260   :  { %v3724_v0 = vsel %vm792_vm1, %v2906_v59, 0.0  ;;  %v2908_v56 = vmul.f32 %v9057_v47, %v2780_v58  ;;  %v2907_v60 = vmul.f32 %v9068_v19, %v2779_v20  ;;  %v9440_v33 = vadd.f32 1e-09, %v1113_v48  ;;  %v203_v20 = vld [vmem:[%s12085_s1 + $0x1a0] sm:$0xff] }
 0x261   :  { %v3721_v49 = vsel %vm792_vm1, %v2905_v50, 0.0  ;;  %3725 = vadd.xlane.f32.xlu1 %v3724_v0  ;;  %vm1940_vm9 = vcmp.eq.f32.partialorder %v8663_v51, 0.0  ;;  %vm1931_vm10 = vcmp.eq.f32.partialorder %v8668_v41, inf  ;;  %v1934_v62 = vand.u32 2147483648, %v8668_v41  ;;  %v9454_v0 = vpop.xlane.xlu1 %3545  ;;  %v9456_v51 = vpop.xlane.xlu0 %3542 }
 0x262   :  { %3722 = vadd.xlane.f32.xlu0 %v3721_v49  ;;  %v9447_v42 = vsel %vm1940_vm9, %v1941_v13, %v1939_v26  ;;  %v2165_v59 = vmax.f32 %v961_v5, 0.0  ;;  %vm1933_vm11 = vcmp.eq.f32.partialorder %v8668_v41, 0.0  ;;  %v1951_v58 = vmul.f32 %v8899_v54, %v8823_v52  ;;  %v204_v5 = vld [vmem:[%s12085_s1 + $0x1a8] sm:$0xff]  ;;  %v9468_v54 = vld [vmem:[%s12086_s2 + $0x20] sm:$0xff]  ;;  %v205_v49 = vld [vmem:[%s12085_s1 + $0x1b0] sm:$0xff] }
 0x263   :  { %v1944_v48 = vmul.f32 %v8910_v11, %v8825_v4  ;;  %v2910_v26 = vmul.f32 %v9092_v8, %v2782_v25  ;;  %v2909_v11 = vmul.f32 %v9468_v54, %v2781_v46  ;;  %v2784_v13 = vmul.f32 16.0, %v12372_v31  ;;  %v206_v46 = vld [vmem:[%s12085_s1 + $0x1b8] sm:$0xff] }
 0x264   :  { %v1932_v50 = vsel %vm1931_vm10, %v8668_v41, %v1930_v57  ;;  %v3730_v25 = vsel %vm792_vm1, %v2908_v56, 0.0  ;;  %v3727_v30 = vsel %vm792_vm1, %v2907_v60, 0.0  ;;  %v12837_v53 = vmax.f32 %v9402_v17, 0.0  ;;  %v9497_v60 = vld [vmem:[%s12086_s2 + $0x38] sm:$0xff] }
 0x265   :  { %v9483_v28 = vadd.f32 1e-09, %v2165_v59  ;;  %3731 = vadd.xlane.f32.xlu1 %v3730_v25  ;;  %vm1952_vm12 = vcmp.eq.f32.partialorder %v8823_v52, inf  ;;  %vm1945_vm13 = vcmp.eq.f32.partialorder %v8825_v4, inf  ;;  %v780_v57 = vmul.f32 %v203_v20, %v203_v20  ;;  %v9509_v17 = vpop.xlane.xlu1 %3551  ;;  %v9511_v10 = vpop.xlane.xlu0 %3548 }
 0x266   :  { %v2783_v24 = vmul.f32 16.0, %v12837_v53  ;;  %3728 = vadd.xlane.f32.xlu0 %v3727_v30  ;;  %v781_v31 = vmul.f32 %v204_v5, %v204_v5  ;;  %v1953_v56 = vsel %vm1952_vm12, %v8823_v52, %v1951_v58  ;;  %vm1954_vm14 = vcmp.eq.f32.partialorder %v8823_v52, 0.0  ;;  %v9506_v58 = vld [vmem:[%s12086_s2 + $0x30] sm:$0xff]  ;;  %12838 = vst [vmem:[#allocation138_spill] sm:$0xff] %v9509_v17 }
 0x267   :  { %5764 = vrsqrt.f32 %v9483_v28  ;;  %v1946_v53 = vsel %vm1945_vm13, %v8825_v4, %v1944_v48  ;;  %v2912_v30 = vmul.f32 %v9497_v60, %v2784_v13  ;;  %v782_v59 = vmul.f32 %v205_v49, %v205_v49 }
 0x268   :  { %v783_v25 = vmul.f32 %v206_v46, %v206_v46  ;;  %v962_v20 = vsel %vm792_vm1, %v780_v57, 0.0  ;;  %v3736_v5 = vsel %vm792_vm1, %v2910_v26, 0.0  ;;  %v3733_v36 = vsel %vm792_vm1, %v2909_v11, 0.0 }
 0x269   :  { %v2911_v48 = vmul.f32 %v9506_v58, %v2783_v24  ;;  %v963_v13 = vsel %vm792_vm1, %v781_v31, 0.0  ;;  %3737 = vadd.xlane.f32.xlu1 %v3736_v5  ;;  %v1955_v49 = vand.u32 2147483648, %v8823_v52  ;;  %v1948_v26 = vand.u32 2147483648, %v8825_v4 }
 0x26a   :  { %3734 = vadd.xlane.f32.xlu0 %v3733_v36  ;;  %v964_v11 = vadd.f32 %v963_v13, %v962_v20  ;;  %v965_v46 = vsel %vm792_vm1, %v782_v59, 0.0  ;;  %vm1947_vm15 = vcmp.eq.f32.partialorder %v8825_v4, 0.0  ;;  %v1965_v24 = vmul.f32 %v8916_v38, %v8830_v34 }
 0x26b   :  { %v1958_v57 = vmul.f32 %v8931_v2, %v8849_v16  ;;  %v967_v12 = vsel %vm792_vm1, %v783_v25, 0.0  ;;  %v1935_v31 = vsel %vm1933_vm11, %v1934_v62, %v1932_v50  ;;  %v1956_v36 = vsel %vm1954_vm14, %v1955_v49, %v1953_v56  ;;  %v9540_v56 = vpop.xlane.xlu1 %3557 }
 0x26c   :  { %v1949_v5 = vsel %vm1947_vm15, %v1948_v26, %v1946_v53  ;;  %v966_v20 = vadd.f32 %v965_v46, %v964_v11  ;;  %v3742_v59 = vsel %vm792_vm1, %v2912_v30, 0.0  ;;  %v3739_v4 = vsel %vm792_vm1, %v2911_v48, 0.0 }
 0x26d   :  { %v1979_v38 = vmul.f32 %v8963_v43, %v8882_v40  ;;  %v1972_v2 = vmul.f32 %v9087_v9, %v8902_v37  ;;  %3743 = vadd.xlane.f32.xlu1 %v3742_v59  ;;  %vm1966_vm0 = vcmp.eq.f32.partialorder %v8830_v34, inf  ;;  %vm1968_vm2 = vcmp.eq.f32.partialorder %v8830_v34, 0.0  ;;  %v9542_v9 = vpop.xlane.xlu0 %3554 }
 0x26e   :  { %3740 = vadd.xlane.f32.xlu0 %v3739_v4  ;;  %vm1959_vm3 = vcmp.eq.f32.partialorder %v8849_v16, inf  ;;  %v968_v41 = vadd.f32 %v967_v12, %v966_v20  ;;  %v1967_v52 = vsel %vm1966_vm0, %v8830_v34, %v1965_v24  ;;  %v1969_v62 = vand.u32 2147483648, %v8830_v34  ;;  %v12839_v4 = vld [vmem:[#allocation31_spill] sm:$0xff] }
 0x26f   :  { %v1960_v50 = vsel %vm1959_vm3, %v8849_v16, %v1958_v57  ;;  %v1962_v43 = vand.u32 2147483648, %v8849_v16  ;;  %vm1980_vm4 = vcmp.eq.f32.partialorder %v8882_v40, inf  ;;  %v1983_v53 = vand.u32 2147483648, %v8882_v40 }
 0x270   :  { %vm1973_vm5 = vcmp.eq.f32.partialorder %v8902_v37, inf  ;;  %v969_v30 = vrot.slane %v968_v41, 4  ;;  %vm2271_vm6 = vcmp.eq.f32.partialorder %v9483_v28, inf  ;;  %v2274_v25 = vand.u32 2147483648, %v9483_v28 }
 0x271   :  { %v5765_v12 = vpop.eup %5764  ;;  %v1981_v48 = vsel %vm1980_vm4, %v8882_v40, %v1979_v38  ;;  %v1974_v13 = vsel %vm1973_vm5, %v8902_v37, %v1972_v2  ;;  %vm2273_vm7 = vcmp.eq.f32.partialorder %v9483_v28, 0.0  ;;  %v1976_v26 = vand.u32 2147483648, %v8902_v37  ;;  %v12840_v2 = vld [vmem:[#allocation69_spill] sm:$0xff]  ;;  %v9564_v34 = vpop.xlane.xlu0 %3560 }
 0x272   :  { %v2270_v49 = vmul.f32 %v5765_v12, %v9483_v28  ;;  %v970_v11 = vadd.f32 %v969_v30, %v968_v41  ;;  %v1970_v46 = vsel %vm1968_vm2, %v1969_v62, %v1967_v52  ;;  %vm1961_vm8 = vcmp.eq.f32.partialorder %v8849_v16, 0.0  ;;  %v9562_v30 = vpop.xlane.xlu1 %3563 }
 0x273   :  { %vm1982_vm9 = vcmp.eq.f32.partialorder %v8882_v40, 0.0  ;;  %vm1975_vm10 = vcmp.eq.f32.partialorder %v8902_v37, 0.0  ;;  %v1963_v57 = vsel %vm1961_vm8, %v1962_v43, %v1960_v50  ;;  %v1116_v38 = vmax.f32 %v12839_v4, 0.0  ;;  %12841 = vst [vmem:[#allocation31_spill] sm:$0xff] %v9562_v30 }
 0x274   :  { %v2272_v24 = vsel %vm2271_vm6, %v9483_v28, %v2270_v49  ;;  %v1984_v20 = vsel %vm1982_vm9, %v1983_v53, %v1981_v48  ;;  %v1977_v59 = vsel %vm1975_vm10, %v1976_v26, %v1974_v13  ;;  %v1115_v12 = vmax.f32 %v12840_v2, 0.0 }
 0x275   :  { %v2275_v17 = vsel %vm2273_vm7, %v2274_v25, %v2272_v24  ;;  %v971_v41 = vrot.slane %v970_v11, 2  ;;  %5766 = vrsqrt.f32 %v9280_v7  ;;  %vm1994_vm11 = vcmp.eq.f32.partialorder %v8918_v35, inf }
 0x276   :  { %v2394_v16 = vsub.f32 %v9447_v42, %v2275_v17  ;;  %v2393_v40 = vsub.f32 %v1935_v31, %v2275_v17  ;;  %v2396_v52 = vsub.f32 %v1956_v36, %v2275_v17  ;;  %v2395_v37 = vsub.f32 %v1949_v5, %v2275_v17 }
 0x277   :  { %v2398_v62 = vsub.f32 %v1970_v46, %v2275_v17  ;;  %v2397_v28 = vsub.f32 %v1963_v57, %v2275_v17  ;;  %v2400_v50 = vsub.f32 %v1984_v20, %v2275_v17  ;;  %v2399_v43 = vsub.f32 %v1977_v59, %v2275_v17  ;;  %v9591_v20 = vpop.xlane.xlu1 %3569  ;;  %v9593_v59 = vpop.xlane.xlu0 %3566 }
 0x278   :  { %v9568_v53 = vadd.f32 0.2, %v2394_v16  ;;  %v9570_v48 = vadd.f32 0.2, %v2393_v40  ;;  %v9572_v25 = vadd.f32 0.2, %v2396_v52  ;;  %5768 = vrsqrt.f32 %v9415_v61 }
 0x279   :  { %v9575_v13 = vadd.f32 0.2, %v2395_v37  ;;  %v9577_v42 = vadd.f32 0.2, %v2398_v62  ;;  %v9579_v31 = vadd.f32 0.2, %v2397_v28  ;;  %5770 = vrsqrt.f32 %v9440_v33 }
 0x27a   :  { %12842 = vst [vmem:[#allocation69_spill] sm:$0xff] %v9568_v53  ;;  %12843 = vst [vmem:[#allocation139_spill] sm:$0xff] %v9570_v48  ;;  %v12377_v36 = vmax.f32 %v9568_v53, 0.0  ;;  %v12378_v17 = vmax.f32 %v9570_v48, 0.0  ;;  %v12379_v5 = vmax.f32 %v9572_v25, 0.0  ;;  %v12852_v37 = vld [vmem:[#allocation16_spill] sm:$0xff]  ;;  %v972_v24 = vadd.f32 %v971_v41, %v970_v11 }
 0x27b   :  { %12844 = vst [vmem:[#allocation140_spill] sm:$0xff] %v9572_v25  ;;  %12845 = vst [vmem:[#allocation141_spill] sm:$0xff] %v9575_v13  ;;  %v9584_v49 = vadd.f32 0.2, %v2400_v50  ;;  %v12382_v26 = vmax.f32 %v9575_v13, 0.0  ;;  %v1118_v62 = vmax.f32 %v12852_v37, 0.0  ;;  %v9623_v11 = vpop.xlane.xlu1 %3575  ;;  %v9625_v41 = vpop.xlane.xlu0 %3572 }
 0x27c   :  { %12846 = vst [vmem:[#allocation142_spill] sm:$0xff] %v9577_v42  ;;  %12847 = vst [vmem:[#allocation143_spill] sm:$0xff] %v9579_v31  ;;  %v9589_v57 = vadd.f32 0.2, %v2399_v43  ;;  %v2786_v4 = vmul.f32 16.0, %v12377_v36  ;;  %v2785_v2 = vmul.f32 16.0, %v12378_v17 }
 0x27d   :  { %12848 = vst [vmem:[#allocation144_spill] sm:$0xff] %v9584_v49  ;;  %12850 = vst [vmem:[#allocation146_spill] sm:$0xff] %v9591_v20  ;;  %v2788_v16 = vmul.f32 16.0, %v12379_v5  ;;  %v9602_v40 = vadd.f32 1e-09, %v1116_v38  ;;  %v2787_v28 = vmul.f32 16.0, %v12382_v26 }
 0x27e   :  { %12849 = vst [vmem:[#allocation145_spill] sm:$0xff] %v9589_v57  ;;  %12851 = vst [vmem:[#allocation147_spill] sm:$0xff] %v9593_v59  ;;  %v9604_v52 = vadd.f32 1e-09, %v1115_v12  ;;  %v2914_v50 = vmul.f32 %v9424_v6, %v2786_v4  ;;  %v2913_v43 = vmul.f32 %v9047_v22, %v2785_v2  ;;  %v12383_v36 = vmax.f32 %v9584_v49, 0.0  ;;  %v12853_v17 = vld [vmem:[#allocation71_spill] sm:$0xff] }
 0x27f   :  { %v1117_v46 = vmax.f32 %v12853_v17, 0.0  ;;  %v12854_v5 = vmax.f32 %v9577_v42, 0.0  ;;  %v12855_v12 = vmax.f32 %v9579_v31, 0.0  ;;  %v12384_v37 = vmax.f32 %v9589_v57, 0.0  ;;  %12856 = vst [vmem:[#allocation16_spill] sm:$0xff] %v9623_v11  ;;  %12857 = vst [vmem:[#allocation71_spill] sm:$0xff] %v9625_v41  ;;  %v9627_v17 = vpop.eup %5766 }
 0x280   :  { %v3748_v48 = vsel %vm792_vm1, %v2914_v50, 0.0  ;;  %v3745_v26 = vsel %vm792_vm1, %v2913_v43, 0.0  ;;  %v2916_v4 = vmul.f32 %v9057_v47, %v2788_v16  ;;  %v2915_v22 = vmul.f32 %v9068_v19, %v2787_v28  ;;  %v12867_v11 = vld [vmem:[#allocation118_spill] sm:$0xff] }
 0x281   :  { %v2790_v38 = vmul.f32 16.0, %v12854_v5  ;;  %v2789_v25 = vmul.f32 16.0, %v12855_v12  ;;  %5772 = vrsqrt.f32 %v9602_v40  ;;  %3749 = vadd.xlane.f32.xlu1 %v3748_v48  ;;  %3746 = vadd.xlane.f32.xlu0 %v3745_v26  ;;  %v2792_v5 = vmul.f32 16.0, %v12383_v36 }
 0x282   :  { %5774 = vrsqrt.f32 %v9604_v52  ;;  %v973_v2 = vrot.slane %v972_v24, 1  ;;  %v1993_v47 = vmul.f32 %v9252_v32, %v8918_v35  ;;  %v9634_v19 = vpop.eup %5768  ;;  %v9636_v16 = vadd.f32 1e-09, %v1118_v62  ;;  %v207_v32 = vld [vmem:[%s12085_s1 + $0x1c0] sm:$0xff]  ;;  %v9671_v62 = vpop.xlane.xlu0 %3578 }
 0x283   :  { %v9638_v48 = vadd.f32 1e-09, %v1117_v46  ;;  %v2918_v26 = vmul.f32 %v9092_v8, %v2790_v38  ;;  %v2917_v28 = vmul.f32 %v9468_v54, %v2789_v25  ;;  %v3754_v50 = vsel %vm792_vm1, %v2916_v4, 0.0  ;;  %v208_v46 = vld [vmem:[%s12085_s1 + $0x1c8] sm:$0xff]  ;;  %v209_v8 = vld [vmem:[%s12085_s1 + $0x1d0] sm:$0xff]  ;;  %v9662_v38 = vpop.eup %5770 }
 0x284   :  { %v3751_v43 = vsel %vm792_vm1, %v2915_v22, 0.0  ;;  %v2791_v12 = vmul.f32 16.0, %v12384_v37  ;;  %v974_v36 = vadd.f32 %v973_v2, %v972_v24  ;;  %vm1996_vm12 = vcmp.eq.f32.partialorder %v8918_v35, 0.0  ;;  %v210_v24 = vld [vmem:[%s12085_s1 + $0x1d8] sm:$0xff] }
 0x285   :  { %3755 = vadd.xlane.f32.xlu1 %v3754_v50  ;;  %3752 = vadd.xlane.f32.xlu0 %v3751_v43  ;;  %v2920_v4 = vmul.f32 %v9497_v60, %v2792_v5  ;;  %v1995_v22 = vsel %vm1994_vm11, %v8918_v35, %v1993_v47  ;;  %v1986_v37 = vmul.f32 %v9260_v23, %v8925_v27  ;;  %v3760_v50 = vsel %vm792_vm1, %v2918_v26, 0.0  ;;  %v9669_v43 = vpop.xlane.xlu1 %3581 }
 0x286   :  { %v2166_v2 = vmax.f32 %v974_v36, 0.0  ;;  %v784_v25 = vmul.f32 %v207_v32, %v207_v32  ;;  %v785_v49 = vmul.f32 %v208_v46, %v208_v46  ;;  %v786_v42 = vmul.f32 %v209_v8, %v209_v8 }
 0x287   :  { %v3757_v57 = vsel %vm792_vm1, %v2917_v28, 0.0  ;;  %v2919_v31 = vmul.f32 %v9506_v58, %v2791_v12  ;;  %v787_v47 = vmul.f32 %v210_v24, %v210_v24  ;;  %v1997_v23 = vand.u32 2147483648, %v8918_v35  ;;  %v12858_v35 = vld [vmem:[#allocation136_spill] sm:$0xff] }
 0x288   :  { %v9675_v5 = vadd.f32 1e-09, %v2166_v2  ;;  %vm1987_vm13 = vcmp.eq.f32.partialorder %v8925_v27, inf  ;;  %v975_v36 = vsel %vm792_vm1, %v784_v25, 0.0  ;;  %v976_v26 = vsel %vm792_vm1, %v785_v49, 0.0 }
 0x289   :  { %3761 = vadd.xlane.f32.xlu1 %v3760_v50  ;;  %3758 = vadd.xlane.f32.xlu0 %v3757_v57  ;;  %v2007_v28 = vmul.f32 %v9284_v45, %v8992_v18  ;;  %v2000_v12 = vmul.f32 %v9289_v39, %v9077_v29  ;;  %v978_v32 = vsel %vm792_vm1, %v786_v42, 0.0  ;;  %v9691_v57 = vsel %vm1996_vm12, %v1997_v23, %v1995_v22  ;;  %v9705_v50 = vpop.xlane.xlu1 %3587  ;;  %v9707_v23 = vpop.xlane.xlu0 %3584 }
 0x28a   :  { %5776 = vrsqrt.f32 %v9675_v5  ;;  %v1988_v8 = vsel %vm1987_vm13, %v8925_v27, %v1986_v37  ;;  %vm1989_vm14 = vcmp.eq.f32.partialorder %v8925_v27, 0.0  ;;  %v977_v49 = vadd.f32 %v976_v26, %v975_v36  ;;  %v12859_v37 = vld [vmem:[#allocation39_spill] sm:$0xff]  ;;  %12860 = vst [vmem:[#allocation136_spill] sm:$0xff] %v9705_v50  ;;  %v12862_v26 = vld [vmem:[#allocation137_spill] sm:$0xff] }
 0x28b   :  { %v9687_v46 = vpop.eup %5772  ;;  %v3766_v45 = vsel %vm792_vm1, %v2920_v4, 0.0  ;;  %v3763_v24 = vsel %vm792_vm1, %v2919_v31, 0.0  ;;  %v1990_v39 = vand.u32 2147483648, %v8925_v27  ;;  %v980_v42 = vsel %vm792_vm1, %v787_v47, 0.0  ;;  %12861 = vst [vmem:[#allocation39_spill] sm:$0xff] %v9707_v23 }
 0x28c   :  { %v9695_v25 = vpop.eup %5774  ;;  %vm2008_vm15 = vcmp.eq.f32.partialorder %v8992_v18, inf  ;;  %vm2001_vm0 = vcmp.eq.f32.partialorder %v9077_v29, inf  ;;  %v2021_v22 = vmul.f32 %v12859_v37, %v12858_v35  ;;  %v979_v2 = vadd.f32 %v978_v32, %v977_v49 }
 0x28d   :  { %3767 = vadd.xlane.f32.xlu1 %v3766_v45  ;;  %3764 = vadd.xlane.f32.xlu0 %v3763_v24  ;;  %v1991_v4 = vsel %vm1989_vm14, %v1990_v39, %v1988_v8  ;;  %v2009_v31 = vsel %vm2008_vm15, %v8992_v18, %v2007_v28  ;;  %v2011_v27 = vand.u32 2147483648, %v8992_v18  ;;  %v2002_v47 = vsel %vm2001_vm0, %v9077_v29, %v2000_v12  ;;  %v12863_v45 = vld [vmem:[#allocation64_spill] sm:$0xff] }
 0x28e   :  { %v2004_v36 = vand.u32 2147483648, %v9077_v29  ;;  %v2014_v24 = vmul.f32 %v12863_v45, %v12862_v26  ;;  %v2035_v37 = vmul.f32 %v9445_v21, %v9262_v63  ;;  %v981_v32 = vadd.f32 %v980_v42, %v979_v2  ;;  %v9733_v42 = vpop.xlane.xlu0 %3590 }
 0x28f   :  { %vm2010_vm2 = vcmp.eq.f32.partialorder %v8992_v18, 0.0  ;;  %vm2003_vm3 = vcmp.eq.f32.partialorder %v9077_v29, 0.0  ;;  %vm2022_vm4 = vcmp.eq.f32.partialorder %v12858_v35, inf  ;;  %v2028_v28 = vmul.f32 %v9627_v17, %v9280_v7  ;;  %v9731_v17 = vpop.xlane.xlu1 %3593  ;;  %12865 = vst [vmem:[#allocation64_spill] sm:$0xff] %v9733_v42 }
 0x290   :  { %v2012_v8 = vsel %vm2010_vm2, %v2011_v27, %v2009_v31  ;;  %v2005_v12 = vsel %vm2003_vm3, %v2004_v36, %v2002_v47  ;;  %v2023_v49 = vsel %vm2022_vm4, %v12858_v35, %v2021_v22  ;;  %v982_v39 = vrot.slane %v981_v32, 4  ;;  %12864 = vst [vmem:[#allocation137_spill] sm:$0xff] %v9731_v17 }
 0x291   :  { %vm2024_vm5 = vcmp.eq.f32.partialorder %v12858_v35, 0.0  ;;  %v2025_v45 = vand.u32 2147483648, %v12858_v35  ;;  %vm2015_vm6 = vcmp.eq.f32.partialorder %v12862_v26, inf  ;;  %vm2036_vm7 = vcmp.eq.f32.partialorder %v9262_v63, inf }
 0x292   :  { %v2016_v18 = vsel %vm2015_vm6, %v12862_v26, %v2014_v24  ;;  %v2018_v29 = vand.u32 2147483648, %v12862_v26  ;;  %v2037_v21 = vsel %vm2036_vm7, %v9262_v63, %v2035_v37  ;;  %vm2029_vm8 = vcmp.eq.f32.partialorder %v9280_v7, inf }
 0x293   :  { %vm2278_vm9 = vcmp.eq.f32.partialorder %v9675_v5, inf  ;;  %v2281_v2 = vand.u32 2147483648, %v9675_v5  ;;  %v2030_v31 = vsel %vm2029_vm8, %v9280_v7, %v2028_v28  ;;  %v983_v27 = vadd.f32 %v982_v39, %v981_v32  ;;  %v9754_v20 = vpop.xlane.xlu1 %3599 }
 0x294   :  { %v5777_v22 = vpop.eup %5776  ;;  %vm2280_vm10 = vcmp.eq.f32.partialorder %v9675_v5, 0.0  ;;  %v2039_v36 = vand.u32 2147483648, %v9262_v63  ;;  %v2032_v24 = vand.u32 2147483648, %v9280_v7  ;;  %v2026_v37 = vsel %vm2024_vm5, %v2025_v45, %v2023_v49  ;;  %12868 = vst [vmem:[#allocation118_spill] sm:$0xff] %v9754_v20 }
 0x295   :  { %v2277_v47 = vmul.f32 %v5777_v22, %v9675_v5  ;;  %vm2017_vm11 = vcmp.eq.f32.partialorder %v12862_v26, 0.0  ;;  %vm2038_vm12 = vcmp.eq.f32.partialorder %v9262_v63, 0.0  ;;  %vm2031_vm13 = vcmp.eq.f32.partialorder %v9280_v7, 0.0  ;;  %v9756_v7 = vpop.xlane.xlu0 %3596 }
 0x296   :  { %v2019_v32 = vsel %vm2017_vm11, %v2018_v29, %v2016_v18  ;;  %v2040_v39 = vsel %vm2038_vm12, %v2039_v36, %v2037_v21  ;;  %v2033_v22 = vsel %vm2031_vm13, %v2032_v24, %v2030_v31  ;;  %v12866_v13 = vmax.f32 %v8794_v55, 0.0  ;;  %12869 = vst [vmem:[#allocation148_spill] sm:$0xff] %v9756_v7 }
 0x297   :  { %v2279_v28 = vsel %vm2278_vm9, %v9675_v5, %v2277_v47  ;;  %v1122_v41 = vmax.f32 %v12867_v11, 0.0  ;;  %v984_v35 = vrot.slane %v983_v27, 2  ;;  %5778 = vrsqrt.f32 %v9636_v16 }
 0x298   :  { %v9750_v53 = vadd.f32 1e-09, %v12866_v13  ;;  %v2282_v17 = vsel %vm2280_vm10, %v2281_v2, %v2279_v28  ;;  %5780 = vrsqrt.f32 %v9638_v48  ;;  %v12878_v28 = vmax.f32 %v8796_v3, 0.0  ;;  %v12879_v3 = vld [vmem:[#allocation119_spill] sm:$0xff] }
 0x299   :  { %v2402_v49 = vsub.f32 %v9691_v57, %v2282_v17  ;;  %v2401_v26 = vsub.f32 %v1991_v4, %v2282_v17  ;;  %v2404_v45 = vsub.f32 %v2012_v8, %v2282_v17  ;;  %v2403_v63 = vsub.f32 %v2005_v12, %v2282_v17 }
 0x29a   :  { %v2406_v5 = vsub.f32 %v2026_v37, %v2282_v17  ;;  %v2405_v18 = vsub.f32 %v2019_v32, %v2282_v17  ;;  %v2408_v29 = vsub.f32 %v2040_v39, %v2282_v17  ;;  %v2407_v21 = vsub.f32 %v2033_v22, %v2282_v17 }
 0x29b   :  { %v9759_v55 = vadd.f32 0.2, %v2402_v49  ;;  %v9761_v13 = vadd.f32 0.2, %v2401_v26  ;;  %v9763_v11 = vadd.f32 0.2, %v2404_v45  ;;  %v9792_v26 = vpop.xlane.xlu1 %3605  ;;  %v9794_v45 = vpop.xlane.xlu0 %3602  ;;  %5782 = vrsqrt.f32 %v9750_v53 }
 0x29c   :  { %v9766_v57 = vadd.f32 0.2, %v2403_v63  ;;  %v9768_v4 = vadd.f32 0.2, %v2406_v5  ;;  %v9770_v8 = vadd.f32 0.2, %v2405_v18 }
 0x29d   :  { %12870 = vst [vmem:[#allocation149_spill] sm:$0xff] %v9759_v55  ;;  %12871 = vst [vmem:[#allocation150_spill] sm:$0xff] %v9761_v13  ;;  %v12393_v12 = vmax.f32 %v9759_v55, 0.0  ;;  %v12392_v17 = vmax.f32 %v9761_v13, 0.0  ;;  %v12391_v2 = vmax.f32 %v9763_v11, 0.0  ;;  %v1121_v5 = vmax.f32 %v12879_v3, 0.0 }
 0x29e   :  { %12872 = vst [vmem:[#allocation151_spill] sm:$0xff] %v9763_v11  ;;  %12873 = vst [vmem:[#allocation152_spill] sm:$0xff] %v9766_v57  ;;  %v9775_v31 = vadd.f32 0.2, %v2408_v29  ;;  %v12394_v47 = vmax.f32 %v9766_v57, 0.0  ;;  %v12398_v36 = vmax.f32 %v9768_v4, 0.0 }
 0x29f   :  { %12874 = vst [vmem:[#allocation153_spill] sm:$0xff] %v9768_v4  ;;  %12875 = vst [vmem:[#allocation154_spill] sm:$0xff] %v9770_v8  ;;  %v12397_v24 = vmax.f32 %v9770_v8, 0.0  ;;  %v9780_v37 = vadd.f32 0.2, %v2407_v21  ;;  %v2794_v39 = vmul.f32 16.0, %v12393_v12  ;;  %v9842_v13 = vpop.xlane.xlu1 %3611 }
 0x2a0   :  { %12876 = vst [vmem:[#allocation155_spill] sm:$0xff] %v9775_v31  ;;  %v9784_v32 = vadd.f32 1e-09, %v12878_v28  ;;  %v2793_v22 = vmul.f32 16.0, %v12392_v17  ;;  %v2796_v49 = vmul.f32 16.0, %v12391_v2  ;;  %v2795_v18 = vmul.f32 16.0, %v12394_v47 }
 0x2a1   :  { %12877 = vst [vmem:[#allocation156_spill] sm:$0xff] %v9780_v37  ;;  %v9797_v63 = vadd.f32 1e-09, %v1122_v41  ;;  %v2922_v29 = vmul.f32 %v9424_v6, %v2794_v39  ;;  %v9806_v21 = vld [vmem:[%s12086_s2] sm:$0xff]  ;;  %v985_v17 = vadd.f32 %v984_v35, %v983_v27  ;;  %v12880_v12 = vld [vmem:[#allocation120_spill] sm:$0xff]  ;;  %v2798_v3 = vmul.f32 16.0, %v12398_v36  ;;  %v9835_v2 = vpop.eup %5778 }
 0x2a2   :  { %v2921_v28 = vmul.f32 %v9806_v21, %v2793_v22  ;;  %v1124_v41 = vmax.f32 %v12880_v12, 0.0  ;;  %v2797_v47 = vmul.f32 16.0, %v12397_v24  ;;  %v9821_v22 = vld [vmem:[%s12086_s2 + $0x18] sm:$0xff]  ;;  %v9827_v35 = vld [vmem:[%s12086_s2 + $0x10] sm:$0xff]  ;;  %5784 = vrsqrt.f32 %v9784_v32  ;;  %12884 = vst [vmem:[#allocation119_spill] sm:$0xff] %v9842_v13  ;;  %v12887_v13 = vld [vmem:[#allocation2_spill] sm:$0xff] }
 0x2a3   :  { %v3772_v57 = vsel %vm792_vm1, %v2922_v29, 0.0  ;;  %v2924_v27 = vmul.f32 %v9821_v22, %v2796_v49  ;;  %v2923_v12 = vmul.f32 %v9827_v35, %v2795_v18  ;;  %v12881_v24 = vld [vmem:[#allocation121_spill] sm:$0xff]  ;;  %v2049_v39 = vmul.f32 %v9634_v19, %v9415_v61  ;;  %v9853_v19 = vld [vmem:[%s12086_s2 + $0x28] sm:$0xff]  ;;  %v9888_v23 = vpop.xlane.xlu1 %3617 }
 0x2a4   :  { %v3769_v11 = vsel %vm792_vm1, %v2921_v28, 0.0  ;;  %v1123_v29 = vmax.f32 %v12881_v24, 0.0  ;;  %v12882_v36 = vld [vmem:[#allocation73_spill] sm:$0xff]  ;;  %3773 = vadd.xlane.f32.xlu1 %v3772_v57  ;;  %5786 = vrsqrt.f32 %v9797_v63  ;;  %v9838_v49 = vadd.f32 1e-09, %v1121_v5  ;;  %v9844_v24 = vpop.xlane.xlu0 %3608  ;;  %12888 = vst [vmem:[#allocation121_spill] sm:$0xff] %v9888_v23 }
 0x2a5   :  { %v1126_v28 = vmax.f32 %v12882_v36, 0.0  ;;  %3770 = vadd.xlane.f32.xlu0 %v3769_v11  ;;  %v12883_v8 = vmax.f32 %v9775_v31, 0.0  ;;  %v986_v4 = vrot.slane %v985_v17, 1  ;;  %12885 = vst [vmem:[#allocation120_spill] sm:$0xff] %v9844_v24  ;;  %v9846_v36 = vpop.eup %5780  ;;  %v9848_v11 = vadd.f32 1e-09, %v1124_v41 }
 0x2a6   :  { %v2926_v57 = vmul.f32 %v9853_v19, %v2798_v3  ;;  %v2925_v5 = vmul.f32 %v9468_v54, %v2797_v47  ;;  %vm2050_vm14 = vcmp.eq.f32.partialorder %v9415_v61, inf  ;;  %v3778_v31 = vsel %vm792_vm1, %v2924_v27, 0.0  ;;  %v212_v3 = vld [vmem:[%s12085_s1 + $0x1e8] sm:$0xff]  ;;  %v213_v47 = vld [vmem:[%s12085_s1 + $0x1f0] sm:$0xff] }
 0x2a7   :  { %v2800_v18 = vmul.f32 16.0, %v12883_v8  ;;  %v211_v8 = vld [vmem:[%s12085_s1 + $0x1e0] sm:$0xff]  ;;  %v3775_v41 = vsel %vm792_vm1, %v2923_v12, 0.0  ;;  %v12886_v55 = vmax.f32 %v9780_v37, 0.0  ;;  %v987_v7 = vadd.f32 %v986_v4, %v985_v17 }
 0x2a8   :  { %v9871_v42 = vadd.f32 1e-09, %v1123_v29  ;;  %v9873_v59 = vadd.f32 1e-09, %v1126_v28  ;;  %3779 = vadd.xlane.f32.xlu1 %v3778_v31  ;;  %v2051_v12 = vsel %vm2050_vm14, %v9415_v61, %v2049_v39  ;;  %vm2052_vm15 = vcmp.eq.f32.partialorder %v9415_v61, 0.0  ;;  %v5783_v29 = vpop.eup %5782 }
 0x2a9   :  { %v2799_v20 = vmul.f32 16.0, %v12886_v55  ;;  %3776 = vadd.xlane.f32.xlu0 %v3775_v41  ;;  %v214_v55 = vld [vmem:[%s12085_s1 + $0x1f8] sm:$0xff]  ;;  %v2928_v4 = vmul.f32 %v9497_v60, %v2800_v18  ;;  %v2167_v17 = vmax.f32 %v987_v7, 0.0  ;;  %v788_v37 = vmul.f32 %v211_v8, %v211_v8  ;;  %v9890_v18 = vpop.xlane.xlu0 %3614 }
 0x2aa   :  { %v3784_v28 = vsel %vm792_vm1, %v2926_v57, 0.0  ;;  %v3781_v50 = vsel %vm792_vm1, %v2925_v5, 0.0  ;;  %v789_v27 = vmul.f32 %v212_v3, %v212_v3  ;;  %v790_v31 = vmul.f32 %v213_v47, %v213_v47  ;;  %12889 = vst [vmem:[#allocation73_spill] sm:$0xff] %v9890_v18 }
 0x2ab   :  { %v2927_v41 = vmul.f32 %v9506_v58, %v2799_v20  ;;  %v9885_v39 = vadd.f32 1e-09, %v2167_v17  ;;  %v791_v30 = vmul.f32 %v214_v55, %v214_v55  ;;  %v988_v24 = vsel %vm792_vm1, %v788_v37, 0.0 }
 0x2ac   :  { %3785 = vadd.xlane.f32.xlu1 %v3784_v28  ;;  %v2053_v7 = vand.u32 2147483648, %v9415_v61  ;;  %v2042_v57 = vmul.f32 %v9662_v38, %v9440_v33  ;;  %v2063_v5 = vmul.f32 %v9687_v46, %v9602_v40  ;;  %v989_v20 = vsel %vm792_vm1, %v789_v27, 0.0 }
 0x2ad   :  { %3782 = vadd.xlane.f32.xlu0 %v3781_v50  ;;  %5788 = vrsqrt.f32 %v9885_v39  ;;  %vm2043_vm0 = vcmp.eq.f32.partialorder %v9440_v33, inf  ;;  %v2056_v37 = vmul.f32 %v9695_v25, %v9604_v52  ;;  %v991_v8 = vsel %vm792_vm1, %v790_v31, 0.0  ;;  %v5785_v50 = vpop.eup %5784  ;;  %v9923_v31 = vpop.xlane.xlu1 %3623 }
 0x2ae   :  { %v9905_v3 = vsel %vm2052_vm15, %v2053_v7, %v2051_v12  ;;  %vm2045_vm2 = vcmp.eq.f32.partialorder %v9440_v33, 0.0  ;;  %v2046_v38 = vand.u32 2147483648, %v9440_v33  ;;  %v990_v46 = vadd.f32 %v989_v20, %v988_v24  ;;  %v9909_v47 = vpop.eup %5786  ;;  %12890 = vst [vmem:[#allocation2_spill] sm:$0xff] %v9923_v31 }
 0x2af   :  { %v3790_v27 = vsel %vm792_vm1, %v2928_v4, 0.0  ;;  %v3787_v55 = vsel %vm792_vm1, %v2927_v41, 0.0  ;;  %vm2064_vm3 = vcmp.eq.f32.partialorder %v9602_v40, inf  ;;  %v993_v25 = vsel %vm792_vm1, %v791_v30, 0.0  ;;  %v9925_v30 = vpop.xlane.xlu0 %3620 }
 0x2b0   :  { %3791 = vadd.xlane.f32.xlu1 %v3790_v27  ;;  %v2044_v61 = vsel %vm2043_vm0, %v9440_v33, %v2042_v57  ;;  %v2065_v12 = vsel %vm2064_vm3, %v9602_v40, %v2063_v5  ;;  %vm2057_vm4 = vcmp.eq.f32.partialorder %v9604_v52, inf  ;;  %v992_v17 = vadd.f32 %v991_v8, %v990_v46  ;;  %12891 = vst [vmem:[#allocation157_spill] sm:$0xff] %v9925_v30 }
 0x2b1   :  { %3788 = vadd.xlane.f32.xlu0 %v3787_v55  ;;  %vm2066_vm5 = vcmp.eq.f32.partialorder %v9602_v40, 0.0  ;;  %v2067_v24 = vand.u32 2147483648, %v9602_v40  ;;  %v2058_v4 = vsel %vm2057_vm4, %v9604_v52, %v2056_v37  ;;  %v2077_v28 = vmul.f32 %v9835_v2, %v9636_v16 }
 0x2b2   :  { %v2060_v41 = vand.u32 2147483648, %v9604_v52  ;;  %v2070_v7 = vmul.f32 %v9846_v36, %v9638_v48  ;;  %v2091_v57 = vmul.f32 %v5783_v29, %v9750_v53  ;;  %v994_v5 = vadd.f32 %v993_v25, %v992_v17  ;;  %v9948_v25 = vpop.xlane.xlu1 %3629 }
 0x2b3   :  { %v2047_v40 = vsel %vm2045_vm2, %v2046_v38, %v2044_v61  ;;  %v2068_v20 = vsel %vm2066_vm5, %v2067_v24, %v2065_v12  ;;  %vm2059_vm6 = vcmp.eq.f32.partialorder %v9604_v52, 0.0  ;;  %v2084_v2 = vmul.f32 %v5785_v50, %v9784_v32  ;;  %12892 = vst [vmem:[#allocation158_spill] sm:$0xff] %v9948_v25  ;;  %v9950_v61 = vpop.xlane.xlu0 %3626 }
 0x2b4   :  { %v2061_v37 = vsel %vm2059_vm6, %v2060_v41, %v2058_v4  ;;  %vm2078_vm7 = vcmp.eq.f32.partialorder %v9636_v16, inf  ;;  %vm2080_vm8 = vcmp.eq.f32.partialorder %v9636_v16, 0.0  ;;  %v995_v8 = vrot.slane %v994_v5, 4 }
 0x2b5   :  { %v2079_v46 = vsel %vm2078_vm7, %v9636_v16, %v2077_v28  ;;  %v2081_v36 = vand.u32 2147483648, %v9636_v16  ;;  %vm2071_vm9 = vcmp.eq.f32.partialorder %v9638_v48, inf  ;;  %vm2092_vm10 = vcmp.eq.f32.partialorder %v9750_v53, inf }
 0x2b6   :  { %v2072_v33 = vsel %vm2071_vm9, %v9638_v48, %v2070_v7  ;;  %v2074_v52 = vand.u32 2147483648, %v9638_v48  ;;  %v2093_v29 = vsel %vm2092_vm10, %v9750_v53, %v2091_v57  ;;  %vm2085_vm11 = vcmp.eq.f32.partialorder %v9784_v32, inf  ;;  %v9965_v25 = vpop.xlane.xlu1 %3635 }
 0x2b7   :  { %v5789_v50 = vpop.eup %5788  ;;  %vm2285_vm12 = vcmp.eq.f32.partialorder %v9885_v39, inf  ;;  %v2288_v38 = vand.u32 2147483648, %v9885_v39  ;;  %v2086_v27 = vsel %vm2085_vm11, %v9784_v32, %v2084_v2  ;;  %v996_v55 = vadd.f32 %v995_v8, %v994_v5  ;;  %v12893_v5 = vld [vmem:[#allocation75_spill] sm:$0xff]  ;;  %v12894_v8 = vld [vmem:[#allocation46_spill] sm:$0xff] }
 0x2b8   :  { %v2284_v12 = vmul.f32 %v5789_v50, %v9885_v39  ;;  %vm2287_vm13 = vcmp.eq.f32.partialorder %v9885_v39, 0.0  ;;  %v2095_v17 = vand.u32 2147483648, %v9750_v53  ;;  %v2088_v24 = vand.u32 2147483648, %v9784_v32 }
 0x2b9   :  { %v2082_v4 = vsel %vm2080_vm8, %v2081_v36, %v2079_v46  ;;  %vm2073_vm14 = vcmp.eq.f32.partialorder %v9638_v48, 0.0  ;;  %vm2094_vm15 = vcmp.eq.f32.partialorder %v9750_v53, 0.0  ;;  %vm2087_vm0 = vcmp.eq.f32.partialorder %v9784_v32, 0.0 }
 0x2ba   :  { %v2286_v28 = vsel %vm2285_vm12, %v9885_v39, %v2284_v12  ;;  %v2075_v41 = vsel %vm2073_vm14, %v2074_v52, %v2072_v33  ;;  %v2096_v7 = vsel %vm2094_vm15, %v2095_v17, %v2093_v29  ;;  %v2089_v57 = vsel %vm2087_vm0, %v2088_v24, %v2086_v27  ;;  %v9967_v39 = vpop.xlane.xlu0 %3632 }
 0x2bb   :  { %v1128_v2 = vmax.f32 %v12893_v5, 0.0  ;;  %v1127_v50 = vmax.f32 %v12894_v8, 0.0  ;;  %v2289_v31 = vsel %vm2287_vm13, %v2288_v38, %v2286_v28  ;;  %v997_v30 = vrot.slane %v996_v55, 2  ;;  %v10009_v8 = vpop.xlane.xlu1 %3641 }
 0x2bc   :  { %v2410_v16 = vsub.f32 %v9905_v3, %v2289_v31  ;;  %v2409_v46 = vsub.f32 %v2047_v40, %v2289_v31  ;;  %v2412_v36 = vsub.f32 %v2068_v20, %v2289_v31  ;;  %v2411_v48 = vsub.f32 %v2061_v37, %v2289_v31 }
 0x2bd   :  { %v2414_v23 = vsub.f32 %v2082_v4, %v2289_v31  ;;  %v2413_v53 = vsub.f32 %v2075_v41, %v2289_v31  ;;  %v2416_v18 = vsub.f32 %v2096_v7, %v2289_v31  ;;  %v2415_v32 = vsub.f32 %v2089_v57, %v2289_v31 }
 0x2be   :  { %5790 = vrsqrt.f32 %v9838_v49  ;;  %v9970_v33 = vadd.f32 0.2, %v2410_v16  ;;  %v9972_v52 = vadd.f32 0.2, %v2409_v46  ;;  %v9974_v29 = vadd.f32 0.2, %v2412_v36  ;;  %v10011_v16 = vpop.xlane.xlu0 %3638 }
 0x2bf   :  { %5792 = vrsqrt.f32 %v9848_v11  ;;  %v9977_v3 = vadd.f32 0.2, %v2411_v48  ;;  %v9979_v40 = vadd.f32 0.2, %v2414_v23  ;;  %v9981_v20 = vadd.f32 0.2, %v2413_v53 }
 0x2c0   :  { %12895 = vst [vmem:[#allocation75_spill] sm:$0xff] %v9970_v33  ;;  %12896 = vst [vmem:[#allocation46_spill] sm:$0xff] %v9972_v52  ;;  %v12411_v31 = vmax.f32 %v9970_v33, 0.0  ;;  %v12406_v37 = vmax.f32 %v9972_v52, 0.0  ;;  %v12405_v38 = vmax.f32 %v9974_v29, 0.0  ;;  %5794 = vrsqrt.f32 %v9871_v42 }
 0x2c1   :  { %12897 = vst [vmem:[#allocation159_spill] sm:$0xff] %v9974_v29  ;;  %12898 = vst [vmem:[#allocation160_spill] sm:$0xff] %v9977_v3  ;;  %v9986_v27 = vadd.f32 0.2, %v2416_v18  ;;  %v12409_v12 = vmax.f32 %v9977_v3, 0.0  ;;  %v12407_v17 = vmax.f32 %v9979_v40, 0.0  ;;  %5796 = vrsqrt.f32 %v9873_v59 }
 0x2c2   :  { %12899 = vst [vmem:[#allocation161_spill] sm:$0xff] %v9979_v40  ;;  %12900 = vst [vmem:[#allocation162_spill] sm:$0xff] %v9981_v20  ;;  %v12408_v24 = vmax.f32 %v9981_v20, 0.0  ;;  %v9991_v4 = vadd.f32 0.2, %v2415_v32  ;;  %v2802_v23 = vmul.f32 16.0, %v12411_v31  ;;  %v998_v53 = vadd.f32 %v997_v30, %v996_v55 }
 0x2c3   :  { %12901 = vst [vmem:[#allocation163_spill] sm:$0xff] %v9986_v27  ;;  %v2801_v28 = vmul.f32 16.0, %v12406_v37  ;;  %v2804_v18 = vmul.f32 16.0, %v12405_v38  ;;  %v12903_v41 = vmax.f32 %v12887_v13, 0.0  ;;  %v10005_v57 = vadd.f32 1e-09, %v1128_v2 }
 0x2c4   :  { %12902 = vst [vmem:[#allocation164_spill] sm:$0xff] %v9991_v4  ;;  %v2803_v5 = vmul.f32 16.0, %v12409_v12  ;;  %v10013_v46 = vadd.f32 1e-09, %v1127_v50  ;;  %v2930_v36 = vmul.f32 %v9424_v6, %v2802_v23  ;;  %v2806_v13 = vmul.f32 16.0, %v12407_v17 }
 0x2c5   :  { %v10003_v7 = vadd.f32 1e-09, %v12903_v41  ;;  %v2929_v48 = vmul.f32 %v9806_v21, %v2801_v28  ;;  %v2805_v2 = vmul.f32 16.0, %v12408_v24  ;;  %v12410_v32 = vmax.f32 %v9986_v27, 0.0 }
 0x2c6   :  { %v12413_v41 = vmax.f32 %v9991_v4, 0.0  ;;  %v3796_v38 = vsel %vm792_vm1, %v2930_v36, 0.0  ;;  %v2932_v37 = vmul.f32 %v9821_v22, %v2804_v18  ;;  %v2931_v6 = vmul.f32 %v9827_v35, %v2803_v5  ;;  %v10036_v5 = vpop.xlane.xlu0 %3644 }
 0x2c7   :  { %v3793_v50 = vsel %vm792_vm1, %v2929_v48, 0.0  ;;  %5798 = vrsqrt.f32 %v10003_v7  ;;  %3797 = vadd.xlane.f32.xlu1 %v3796_v38  ;;  %v999_v55 = vrot.slane %v998_v53, 1  ;;  %v2934_v28 = vmul.f32 %v9853_v19, %v2806_v13  ;;  %v10034_v48 = vpop.xlane.xlu1 %3647 }
 0x2c8   :  { %3794 = vadd.xlane.f32.xlu0 %v3793_v50  ;;  %v5791_v30 = vpop.eup %5790  ;;  %5800 = vrsqrt.f32 %v10005_v57  ;;  %v2933_v36 = vmul.f32 %v9468_v54, %v2805_v2  ;;  %v2808_v18 = vmul.f32 16.0, %v12410_v32  ;;  %12904 = vst [vmem:[#allocation165_spill] sm:$0xff] %v10034_v48  ;;  %v3802_v38 = vsel %vm792_vm1, %v2932_v37, 0.0 }
 0x2c9   :  { %v5793_v23 = vpop.eup %5792  ;;  %5802 = vrsqrt.f32 %v10013_v46  ;;  %v3799_v50 = vsel %vm792_vm1, %v2931_v6, 0.0  ;;  %v2807_v17 = vmul.f32 16.0, %v12413_v41  ;;  %v1000_v24 = vadd.f32 %v999_v55, %v998_v53 }
 0x2ca   :  { %v5795_v13 = vpop.eup %5794  ;;  %v2936_v2 = vmul.f32 %v9497_v60, %v2808_v18  ;;  %v2105_v32 = vmul.f32 %v9909_v47, %v9797_v63  ;;  %v3808_v31 = vsel %vm792_vm1, %v2934_v28, 0.0  ;;  %v3805_v37 = vsel %vm792_vm1, %v2933_v36, 0.0 }
 0x2cb   :  { %3803 = vadd.xlane.f32.xlu1 %v3802_v38  ;;  %v2168_v12 = vmax.f32 %v1000_v24, 0.0  ;;  %v5797_v54 = vpop.eup %5796  ;;  %v2935_v6 = vmul.f32 %v9506_v58, %v2807_v17  ;;  %vm2106_vm2 = vcmp.eq.f32.partialorder %v9797_v63, inf  ;;  %v10051_v53 = vpop.xlane.xlu1 %3653  ;;  %v2098_v60 = vmul.f32 %v5791_v30, %v9838_v49 }
 0x2cc   :  { %3800 = vadd.xlane.f32.xlu0 %v3799_v50  ;;  %v10053_v24 = vpop.xlane.xlu0 %3650  ;;  %v2119_v47 = vmul.f32 %v5793_v23, %v9848_v11  ;;  %v2112_v55 = vmul.f32 %v5795_v13, %v9871_v42  ;;  %v2107_v58 = vsel %vm2106_vm2, %v9797_v63, %v2105_v32  ;;  %vm2108_vm3 = vcmp.eq.f32.partialorder %v9797_v63, 0.0 }
 0x2cd   :  { %v10048_v27 = vadd.f32 1e-09, %v2168_v12  ;;  %v3814_v12 = vsel %vm792_vm1, %v2936_v2, 0.0  ;;  %v3811_v17 = vsel %vm792_vm1, %v2935_v6, 0.0  ;;  %v2109_v36 = vand.u32 2147483648, %v9797_v63 }
 0x2ce   :  { %vm2099_vm4 = vcmp.eq.f32.partialorder %v9838_v49, inf  ;;  %vm2101_vm5 = vcmp.eq.f32.partialorder %v9838_v49, 0.0  ;;  %v2102_v30 = vand.u32 2147483648, %v9838_v49  ;;  %vm2120_vm6 = vcmp.eq.f32.partialorder %v9848_v11, inf }
 0x2cf   :  { %3809 = vadd.xlane.f32.xlu1 %v3808_v31  ;;  %5804 = vrsqrt.f32 %v10048_v27  ;;  %vm2113_vm7 = vcmp.eq.f32.partialorder %v9871_v42, inf  ;;  %v2100_v32 = vsel %vm2099_vm4, %v9838_v49, %v2098_v60  ;;  %v2121_v23 = vsel %vm2120_vm6, %v9848_v11, %v2119_v47 }
 0x2d0   :  { %3806 = vadd.xlane.f32.xlu0 %v3805_v37  ;;  %v2114_v38 = vsel %vm2113_vm7, %v9871_v42, %v2112_v55  ;;  %v2133_v50 = vmul.f32 %v5797_v54, %v9873_v59  ;;  %v2110_v13 = vsel %vm2108_vm3, %v2109_v36, %v2107_v58  ;;  %v2123_v2 = vand.u32 2147483648, %v9848_v11 }
 0x2d1   :  { %v5799_v28 = vpop.eup %5798  ;;  %v2116_v37 = vand.u32 2147483648, %v9871_v42  ;;  %vm2122_vm8 = vcmp.eq.f32.partialorder %v9848_v11, 0.0  ;;  %vm2115_vm9 = vcmp.eq.f32.partialorder %v9871_v42, 0.0  ;;  %v2103_v63 = vsel %vm2101_vm5, %v2102_v30, %v2100_v32 }
 0x2d2   :  { %v5801_v31 = vpop.eup %5800  ;;  %v2126_v6 = vmul.f32 %v5799_v28, %v10003_v7  ;;  %v2124_v47 = vsel %vm2122_vm8, %v2123_v2, %v2121_v23  ;;  %vm2134_vm10 = vcmp.eq.f32.partialorder %v9873_v59, inf  ;;  %vm2136_vm11 = vcmp.eq.f32.partialorder %v9873_v59, 0.0 }
 0x2d3   :  { %v5803_v18 = vpop.eup %5802  ;;  %3815 = vadd.xlane.f32.xlu1 %v3814_v12  ;;  %v10078_v12 = vpop.xlane.xlu1 %3659  ;;  %v2147_v60 = vmul.f32 %v5801_v31, %v10005_v57  ;;  %v2117_v55 = vsel %vm2115_vm9, %v2116_v37, %v2114_v38  ;;  %v2135_v28 = vsel %vm2134_vm10, %v9873_v59, %v2133_v50  ;;  %v2137_v58 = vand.u32 2147483648, %v9873_v59 }
 0x2d4   :  { %3812 = vadd.xlane.f32.xlu0 %v3811_v17  ;;  %v10080_v17 = vpop.xlane.xlu0 %3656  ;;  %v2140_v54 = vmul.f32 %v5803_v18, %v10013_v46  ;;  %vm2127_vm12 = vcmp.eq.f32.partialorder %v10003_v7, inf  ;;  %v2130_v11 = vand.u32 2147483648, %v10003_v7  ;;  %vm2148_vm13 = vcmp.eq.f32.partialorder %v10005_v57, inf }
 0x2d5   :  { %v2128_v42 = vsel %vm2127_vm12, %v10003_v7, %v2126_v6  ;;  %vm2141_vm14 = vcmp.eq.f32.partialorder %v10013_v46, inf  ;;  %vm2292_vm15 = vcmp.eq.f32.partialorder %v10048_v27, inf  ;;  %v2295_v31 = vand.u32 2147483648, %v10048_v27 }
 0x2d6   :  { %v2149_v36 = vsel %vm2148_vm13, %v10005_v57, %v2147_v60  ;;  %v2142_v18 = vsel %vm2141_vm14, %v10013_v46, %v2140_v54  ;;  %vm2294_vm0 = vcmp.eq.f32.partialorder %v10048_v27, 0.0  ;;  %v2151_v32 = vand.u32 2147483648, %v10005_v57 }
 0x2d7   :  { %v2144_v23 = vand.u32 2147483648, %v10013_v46  ;;  %v10105_v38 = vpop.xlane.xlu1 %3665  ;;  %v2138_v2 = vsel %vm2136_vm11, %v2137_v58, %v2135_v28  ;;  %vm2129_vm2 = vcmp.eq.f32.partialorder %v10003_v7, 0.0  ;;  %vm2150_vm3 = vcmp.eq.f32.partialorder %v10005_v57, 0.0 }
 0x2d8   :  { %v10107_v50 = vpop.xlane.xlu0 %3662  ;;  %vm2143_vm4 = vcmp.eq.f32.partialorder %v10013_v46, 0.0  ;;  %v2131_v6 = vsel %vm2129_vm2, %v2130_v11, %v2128_v42  ;;  %v2152_v60 = vsel %vm2150_vm3, %v2151_v32, %v2149_v36 }
 0x2d9   :  { %v5805_v49 = vpop.eup %5804  ;;  %v2145_v54 = vsel %vm2143_vm4, %v2144_v23, %v2142_v18 }
 0x2da   :  { %v2291_v30 = vmul.f32 %v5805_v49, %v10048_v27 }
 0x2db   :  { %v10121_v46 = vpop.xlane.xlu1 %3671 }
 0x2dc   :  { %v2293_v37 = vsel %vm2292_vm15, %v10048_v27, %v2291_v30  ;;  %12908 = vst [vmem:[#allocation169_spill] sm:$0xff] %v10121_v46  ;;  %v10123_v27 = vpop.xlane.xlu0 %3668  ;;  %v10152_v30 = vld [vmem:[%s12086_s2 + $0x8] sm:$0xff]  ;;  %v13054_v46 = vld [vmem:[#allocation74_spill] sm:$0xff] }
 0x2dd   :  { %v2296_v49 = vsel %vm2294_vm0, %v2295_v31, %v2293_v37 }
 0x2de   :  { %v2418_v41 = vsub.f32 %v2110_v13, %v2296_v49  ;;  %v2417_v40 = vsub.f32 %v2103_v63, %v2296_v49  ;;  %v2420_v4 = vsub.f32 %v2124_v47, %v2296_v49  ;;  %v2419_v29 = vsub.f32 %v2117_v55, %v2296_v49 }
 0x2df   :  { %v2422_v20 = vsub.f32 %v2138_v2, %v2296_v49  ;;  %v2421_v52 = vsub.f32 %v2131_v6, %v2296_v49  ;;  %v2424_v59 = vsub.f32 %v2152_v60, %v2296_v49  ;;  %v2423_v28 = vsub.f32 %v2145_v54, %v2296_v49  ;;  %v10156_v2 = vpop.xlane.xlu1 %3677 }
 0x2e0   :  { %v10115_v58 = vadd.f32 0.2, %v2418_v41  ;;  %v10117_v7 = vadd.f32 0.2, %v2417_v40  ;;  %v10119_v57 = vadd.f32 0.2, %v2420_v4  ;;  %v10158_v37 = vpop.xlane.xlu0 %3674 }
 0x2e1   :  { %v10125_v42 = vadd.f32 0.2, %v2419_v29  ;;  %v10127_v13 = vadd.f32 0.2, %v2422_v20  ;;  %v10129_v63 = vadd.f32 0.2, %v2421_v52 }
 0x2e2   :  { %12905 = vst [vmem:[#allocation166_spill] sm:$0xff] %v10115_v58  ;;  %12906 = vst [vmem:[#allocation167_spill] sm:$0xff] %v10117_v7  ;;  %v12426_v47 = vmax.f32 %v10115_v58, 0.0  ;;  %v12423_v55 = vmax.f32 %v10117_v7, 0.0  ;;  %v12422_v41 = vmax.f32 %v10119_v57, 0.0  ;;  %v12931_v7 = vld [vmem:[#allocation33_spill] sm:$0xff] }
 0x2e3   :  { %12907 = vst [vmem:[#allocation168_spill] sm:$0xff] %v10119_v57  ;;  %12909 = vst [vmem:[#allocation170_spill] sm:$0xff] %v10125_v42  ;;  %v10134_v40 = vadd.f32 0.2, %v2424_v59  ;;  %v12419_v4 = vmax.f32 %v10125_v42, 0.0  ;;  %v12420_v11 = vmax.f32 %v10127_v13, 0.0 }
 0x2e4   :  { %12910 = vst [vmem:[#allocation171_spill] sm:$0xff] %v10127_v13  ;;  %12911 = vst [vmem:[#allocation172_spill] sm:$0xff] %v10129_v63  ;;  %v12421_v31 = vmax.f32 %v10129_v63, 0.0  ;;  %v10139_v29 = vadd.f32 0.2, %v2423_v28  ;;  %v2810_v52 = vmul.f32 16.0, %v12426_v47 }
 0x2e5   :  { %12912 = vst [vmem:[#allocation173_spill] sm:$0xff] %v10134_v40  ;;  %v2809_v20 = vmul.f32 16.0, %v12423_v55  ;;  %v2812_v36 = vmul.f32 16.0, %v12422_v41  ;;  %v2811_v18 = vmul.f32 16.0, %v12419_v4  ;;  %v2814_v6 = vmul.f32 16.0, %v12420_v11 }
 0x2e6   :  { %12913 = vst [vmem:[#allocation174_spill] sm:$0xff] %v10139_v29  ;;  %v2938_v32 = vmul.f32 %v10152_v30, %v2810_v52  ;;  %v2813_v60 = vmul.f32 16.0, %v12421_v31  ;;  %v12424_v54 = vmax.f32 %v10134_v40, 0.0  ;;  %v12425_v49 = vmax.f32 %v10139_v29, 0.0  ;;  %v12914_v31 = vld [vmem:[#allocation25_spill] sm:$0xff] }
 0x2e7   :  { %v2937_v23 = vmul.f32 %v9806_v21, %v2809_v20  ;;  %v2940_v52 = vmul.f32 %v9821_v22, %v2812_v36  ;;  %v2939_v20 = vmul.f32 %v9827_v35, %v2811_v18  ;;  %v2942_v4 = vmul.f32 %v9853_v19, %v2814_v6  ;;  %v10180_v36 = vld [vmem:[%s12086_s2 + $0x20] sm:$0xff]  ;;  %v10185_v6 = vpop.xlane.xlu1 %3683 }
 0x2e8   :  { %v3820_v59 = vsel %vm792_vm1, %v2938_v32, 0.0  ;;  %v2816_v11 = vmul.f32 16.0, %v12424_v54  ;;  %v12915_v41 = vmax.f32 %v12914_v31, 0.0  ;;  %v2941_v18 = vmul.f32 %v10180_v36, %v2813_v60  ;;  %v10197_v60 = vld [vmem:[%s12086_s2 + $0x38] sm:$0xff] }
 0x2e9   :  { %v3817_v28 = vsel %vm792_vm1, %v2937_v23, 0.0  ;;  %3821 = vadd.xlane.f32.xlu1 %v3820_v59  ;;  %v3826_v55 = vsel %vm792_vm1, %v2940_v52, 0.0  ;;  %v3823_v32 = vsel %vm792_vm1, %v2939_v20, 0.0  ;;  %v2815_v23 = vmul.f32 16.0, %v12425_v49  ;;  %v10187_v59 = vpop.xlane.xlu0 %3680 }
 0x2ea   :  { %3818 = vadd.xlane.f32.xlu0 %v3817_v28  ;;  %vm2946_vm5 = vcmp.gt.f32.partialorder %v12915_v41, 0.0  ;;  %v12916_v41 = vld [vmem:[#allocation20_spill] sm:$0xff]  ;;  %v12434_v28 = vmov 0.0   ;;  %v3832_v20 = vsel %vm792_vm1, %v2942_v4, 0.0  ;;  %v3829_v54 = vsel %vm792_vm1, %v2941_v18, 0.0 }
 0x2eb   :  { %v12917_v31 = vmax.f32 %v12916_v41, 0.0  ;;  %v5363_v52 = vsel %vm2946_vm5, 1.0, %v12434_v28  ;;  %v2944_v49 = vmul.f32 %v10197_v60, %v2816_v11  ;;  %v12918_v41 = vld [vmem:[#allocation22_spill] sm:$0xff]  ;;  %v10211_v40 = vpop.xlane.xlu1 %3689 }
 0x2ec   :  { %v12919_v18 = vmax.f32 %v12918_v41, 0.0  ;;  %v3330_v29 = vmul.f32 %v10152_v30, %v5363_v52 }
 0x2ed   :  { %3827 = vadd.xlane.f32.xlu1 %v3826_v55  ;;  %vm2945_vm6 = vcmp.gt.f32.partialorder %v12917_v31, 0.0  ;;  %v10203_v55 = vld [vmem:[%s12086_s2 + $0x30] sm:$0xff]  ;;  %v12920_v31 = vld [vmem:[#allocation18_spill] sm:$0xff]  ;;  %v10213_v11 = vpop.xlane.xlu0 %3686  ;;  %v3838_v63 = vsel %vm792_vm1, %v2944_v49, 0.0 }
 0x2ee   :  { %3824 = vadd.xlane.f32.xlu0 %v3823_v32  ;;  %v2943_v32 = vmul.f32 %v10203_v55, %v2815_v23  ;;  %v5362_v4 = vsel %vm2945_vm6, 1.0, %v12434_v28  ;;  %vm2948_vm7 = vcmp.gt.f32.partialorder %v12919_v18, 0.0  ;;  %v12921_v47 = vmax.f32 %v12920_v31, 0.0  ;;  %v12922_v18 = vld [vmem:[#allocation26_spill] sm:$0xff]  ;;  %v12924_v31 = vld [vmem:[#allocation27_spill] sm:$0xff] }
 0x2ef   :  { %v12925_v13 = vmax.f32 %v12924_v31, 0.0  ;;  %v4052_v49 = vsel %vm792_vm1, %v3330_v29, 0.0  ;;  %v10229_v42 = vpop.xlane.xlu1 %3695 }
 0x2f0   :  { %vm2947_vm8 = vcmp.gt.f32.partialorder %v12921_v47, 0.0  ;;  %v3835_v23 = vsel %vm792_vm1, %v2943_v32, 0.0  ;;  %v12923_v47 = vmax.f32 %v12922_v18, 0.0  ;;  %12926 = vst [vmem:[#allocation25_spill] sm:$0xff] %v10229_v42 }
 0x2f1   :  { %3833 = vadd.xlane.f32.xlu1 %v3832_v20  ;;  %v5365_v20 = vsel %vm2948_vm7, 1.0, %v12434_v28  ;;  %v5364_v41 = vsel %vm2947_vm8, 1.0, %v12434_v28  ;;  %vm2949_vm10 = vcmp.gt.f32.partialorder %v12925_v13, 0.0 }
 0x2f2   :  { %3830 = vadd.xlane.f32.xlu0 %v3829_v54  ;;  %v3329_v54 = vmul.f32 %v9806_v21, %v5362_v4  ;;  %vm2950_vm9 = vcmp.gt.f32.partialorder %v12923_v47, 0.0  ;;  %v3332_v52 = vmul.f32 %v9821_v22, %v5365_v20  ;;  %v3331_v4 = vmul.f32 %v9827_v35, %v5364_v41  ;;  %v12927_v47 = vld [vmem:[#allocation28_spill] sm:$0xff]  ;;  %v12929_v20 = vld [vmem:[#allocation30_spill] sm:$0xff] }
 0x2f3   :  { %v5366_v18 = vsel %vm2949_vm10, 1.0, %v12434_v28  ;;  %v12928_v13 = vmax.f32 %v12927_v47, 0.0  ;;  %v12930_v31 = vmax.f32 %v12929_v20, 0.0  ;;  %v12932_v47 = vmax.f32 %v12931_v7, 0.0 }
 0x2f4   :  { %v4049_v32 = vsel %vm792_vm1, %v3329_v54, 0.0  ;;  %v4058_v29 = vsel %vm792_vm1, %v3332_v52, 0.0  ;;  %v4055_v54 = vsel %vm792_vm1, %v3331_v4, 0.0  ;;  %v3333_v57 = vmul.f32 %v10180_v36, %v5366_v18 }
 0x2f5   :  { %3839 = vadd.xlane.f32.xlu1 %v3838_v63  ;;  %v10231_v63 = vpop.xlane.xlu0 %3692  ;;  %vm2952_vm11 = vcmp.gt.f32.partialorder %v12928_v13, 0.0  ;;  %vm2951_vm12 = vcmp.gt.f32.partialorder %v12930_v31, 0.0  ;;  %vm2954_vm13 = vcmp.gt.f32.partialorder %v12932_v47, 0.0  ;;  %v12933_v13 = vld [vmem:[#allocation5_spill] sm:$0xff]  ;;  %v10249_v31 = vpop.xlane.xlu1 %3701  ;;  %v12937_v47 = vld [vmem:[#allocation38_spill] sm:$0xff] }
 0x2f6   :  { %3836 = vadd.xlane.f32.xlu0 %v3835_v23  ;;  %v5367_v23 = vsel %vm2950_vm9, 1.0, %v12434_v28  ;;  %v12934_v20 = vmax.f32 %v12933_v13, 0.0  ;;  %12935 = vst [vmem:[#allocation20_spill] sm:$0xff] %v10249_v31  ;;  %v4061_v18 = vsel %vm792_vm1, %v3333_v57, 0.0  ;;  %v5371_v7 = vsel %vm2954_vm13, 1.0, %v12434_v28 }
 0x2f7   :  { %v3334_v41 = vmul.f32 %v9853_v19, %v5367_v23  ;;  %v12938_v13 = vmax.f32 %v12937_v47, 0.0  ;;  %v3338_v57 = vmul.f32 %v10152_v30, %v5371_v7 }
 0x2f8   :  { %vm2953_vm14 = vcmp.gt.f32.partialorder %v12934_v20, 0.0  ;;  %v12939_v20 = vld [vmem:[#allocation7_spill] sm:$0xff] }
 0x2f9   :  { %4053 = vadd.xlane.f32.xlu1 %v4052_v49  ;;  %v5369_v49 = vsel %vm2952_vm11, 1.0, %v12434_v28  ;;  %v10251_v52 = vpop.xlane.xlu0 %3698  ;;  %v4064_v23 = vsel %vm792_vm1, %v3334_v41, 0.0  ;;  %vm2956_vm15 = vcmp.gt.f32.partialorder %v12938_v13, 0.0  ;;  %v12940_v31 = vmax.f32 %v12939_v20, 0.0  ;;  %v12943_v13 = vld [vmem:[#allocation11_spill] sm:$0xff] }
 0x2fa   :  { %4050 = vadd.xlane.f32.xlu0 %v4049_v32  ;;  %v5368_v32 = vsel %vm2951_vm12, 1.0, %v12434_v28  ;;  %12936 = vst [vmem:[#allocation22_spill] sm:$0xff] %v10251_v52  ;;  %v3336_v4 = vmul.f32 %v10197_v60, %v5369_v49  ;;  %v4076_v7 = vsel %vm792_vm1, %v3338_v57, 0.0 }
 0x2fb   :  { %vm2955_vm0 = vcmp.gt.f32.partialorder %v12940_v31, 0.0  ;;  %v12944_v31 = vmax.f32 %v12943_v13, 0.0 }
 0x2fc   :  { %v4070_v49 = vsel %vm792_vm1, %v3336_v4, 0.0  ;;  %v5372_v47 = vsel %vm2955_vm0, 1.0, %v12434_v28  ;;  %v12945_v4 = vld [vmem:[#allocation40_spill] sm:$0xff] }
 0x2fd   :  { %4059 = vadd.xlane.f32.xlu1 %v4058_v29  ;;  %v3335_v29 = vmul.f32 %v10203_v55, %v5368_v32  ;;  %v10270_v52 = vpop.xlane.xlu0 %3704  ;;  %vm2958_vm2 = vcmp.gt.f32.partialorder %v12944_v31, 0.0  ;;  %v12946_v20 = vmax.f32 %v12945_v4, 0.0  ;;  %v12949_v31 = vld [vmem:[#allocation13_spill] sm:$0xff] }
 0x2fe   :  { %4056 = vadd.xlane.f32.xlu0 %v4055_v54  ;;  %v5370_v54 = vsel %vm2953_vm14, 1.0, %v12434_v28  ;;  %12942 = vst [vmem:[#allocation26_spill] sm:$0xff] %v10270_v52  ;;  %v12947_v52 = vld [vmem:[#allocation42_spill] sm:$0xff]  ;;  %v12950_v4 = vmax.f32 %v12949_v31, 0.0 }
 0x2ff   :  { %v4067_v41 = vsel %vm792_vm1, %v3335_v29, 0.0  ;;  %v3337_v32 = vmul.f32 %v9806_v21, %v5370_v54  ;;  %vm2957_vm3 = vcmp.gt.f32.partialorder %v12946_v20, 0.0  ;;  %v12948_v13 = vmax.f32 %v12947_v52, 0.0 }
 0x300   :  { %vm2959_vm5 = vcmp.gt.f32.partialorder %v12950_v4, 0.0  ;;  %v12955_v4 = vld [vmem:[#allocation47_spill] sm:$0xff] }
 0x301   :  { %4065 = vadd.xlane.f32.xlu1 %v4064_v23  ;;  %v5373_v23 = vsel %vm2956_vm15, 1.0, %v12434_v28  ;;  %v4073_v54 = vsel %vm792_vm1, %v3337_v32, 0.0  ;;  %vm2960_vm4 = vcmp.gt.f32.partialorder %v12948_v13, 0.0  ;;  %v5376_v52 = vsel %vm2959_vm5, 1.0, %v12434_v28  ;;  %v12953_v13 = vld [vmem:[#allocation15_spill] sm:$0xff] }
 0x302   :  { %4062 = vadd.xlane.f32.xlu0 %v4061_v18  ;;  %v10268_v18 = vpop.xlane.xlu1 %3707  ;;  %v3340_v29 = vmul.f32 %v9821_v22, %v5373_v23  ;;  %v10289_v23 = vpop.xlane.xlu0 %3710  ;;  %v12954_v31 = vmax.f32 %v12953_v13, 0.0 }
 0x303   :  { %12941 = vst [vmem:[#allocation18_spill] sm:$0xff] %v10268_v18  ;;  %v3339_v18 = vmul.f32 %v9827_v35, %v5372_v47  ;;  %12952 = vst [vmem:[#allocation28_spill] sm:$0xff] %v10289_v23 }
 0x304   :  { %v4082_v57 = vsel %vm792_vm1, %v3340_v29, 0.0  ;;  %vm2962_vm6 = vcmp.gt.f32.partialorder %v12954_v31, 0.0  ;;  %v12959_v31 = vld [vmem:[#allocation32_spill] sm:$0xff] }
 0x305   :  { %4071 = vadd.xlane.f32.xlu1 %v4070_v49  ;;  %v5375_v49 = vsel %vm2958_vm2, 1.0, %v12434_v28  ;;  %v4079_v32 = vsel %vm792_vm1, %v3339_v18, 0.0 }
 0x306   :  { %4068 = vadd.xlane.f32.xlu0 %v4067_v41  ;;  %v5374_v41 = vsel %vm2957_vm3, 1.0, %v12434_v28  ;;  %v10287_v20 = vpop.xlane.xlu1 %3713  ;;  %v3342_v47 = vmul.f32 %v9853_v19, %v5375_v49 }
 0x307   :  { %12951 = vst [vmem:[#allocation27_spill] sm:$0xff] %v10287_v20  ;;  %v12956_v20 = vmax.f32 %v12955_v4, 0.0 }
 0x308   :  { %v4088_v18 = vsel %vm792_vm1, %v3342_v47, 0.0 }
 0x309   :  { %4077 = vadd.xlane.f32.xlu1 %v4076_v7  ;;  %v3341_v7 = vmul.f32 %v10180_v36, %v5374_v41  ;;  %vm2961_vm7 = vcmp.gt.f32.partialorder %v12956_v20, 0.0  ;;  %v3343_v41 = vmul.f32 %v10203_v55, %v5376_v52  ;;  %v12960_v20 = vmax.f32 %v12959_v31, 0.0 }
 0x30a   :  { %4074 = vadd.xlane.f32.xlu0 %v4073_v54  ;;  %v5377_v54 = vsel %vm2960_vm4, 1.0, %v12434_v28  ;;  %v10305_v23 = vpop.xlane.xlu1 %3719  ;;  %v5378_v13 = vsel %vm2961_vm7, 1.0, %v12434_v28 }
 0x30b   :  { %v3344_v29 = vmul.f32 %v10197_v60, %v5377_v54  ;;  %v4085_v49 = vsel %vm792_vm1, %v3341_v7, 0.0  ;;  %12957 = vst [vmem:[#allocation30_spill] sm:$0xff] %v10305_v23  ;;  %vm2964_vm8 = vcmp.gt.f32.partialorder %v12960_v20, 0.0  ;;  %v12961_v54 = vld [vmem:[#allocation34_spill] sm:$0xff]  ;;  %v4091_v7 = vsel %vm792_vm1, %v3343_v41, 0.0  ;;  %v12965_v20 = vld [vmem:[#allocation9_spill] sm:$0xff] }
 0x30c   :  { %v12962_v4 = vmax.f32 %v12961_v54, 0.0  ;;  %v3345_v23 = vmul.f32 %v9806_v21, %v5378_v13  ;;  %v12966_v54 = vmax.f32 %v12965_v20, 0.0 }
 0x30d   :  { %4083 = vadd.xlane.f32.xlu1 %v4082_v57  ;;  %v10307_v57 = vpop.xlane.xlu0 %3716  ;;  %v4094_v47 = vsel %vm792_vm1, %v3344_v29, 0.0 }
 0x30e   :  { %4080 = vadd.xlane.f32.xlu0 %v4079_v32  ;;  %12958 = vst [vmem:[#allocation33_spill] sm:$0xff] %v10307_v57  ;;  %v5379_v32 = vsel %vm2962_vm6, 1.0, %v12434_v28  ;;  %vm2963_vm9 = vcmp.gt.f32.partialorder %v12962_v4, 0.0  ;;  %v12963_v57 = vld [vmem:[#allocation3_spill] sm:$0xff]  ;;  %vm2965_vm11 = vcmp.gt.f32.partialorder %v12966_v54, 0.0  ;;  %v10325_v4 = vpop.xlane.xlu1 %3725  ;;  %v4097_v13 = vsel %vm792_vm1, %v3345_v23, 0.0 }
 0x30f   :  { %v3346_v52 = vmul.f32 %v10152_v30, %v5379_v32  ;;  %v12964_v31 = vmax.f32 %v12963_v57, 0.0  ;;  %12967 = vst [vmem:[#allocation5_spill] sm:$0xff] %v10325_v4  ;;  %v12971_v54 = vld [vmem:[#allocation4_spill] sm:$0xff] }
 0x310   :  { %v12972_v4 = vmax.f32 %v12971_v54, 0.0 }
 0x311   :  { %4089 = vadd.xlane.f32.xlu1 %v4088_v18  ;;  %v5381_v18 = vsel %vm2964_vm8, 1.0, %v12434_v28  ;;  %vm2966_vm10 = vcmp.gt.f32.partialorder %v12964_v31, 0.0  ;;  %v10327_v29 = vpop.xlane.xlu0 %3722  ;;  %v4100_v32 = vsel %vm792_vm1, %v3346_v52, 0.0  ;;  %v12969_v31 = vld [vmem:[#allocation8_spill] sm:$0xff] }
 0x312   :  { %4086 = vadd.xlane.f32.xlu0 %v4085_v49  ;;  %v5380_v49 = vsel %vm2963_vm9, 1.0, %v12434_v28  ;;  %12968 = vst [vmem:[#allocation38_spill] sm:$0xff] %v10327_v29  ;;  %v3348_v41 = vmul.f32 %v9821_v22, %v5381_v18  ;;  %v5383_v57 = vsel %vm2966_vm10, 1.0, %v12434_v28  ;;  %v12970_v20 = vmax.f32 %v12969_v31, 0.0 }
 0x313   :  { %vm2967_vm13 = vcmp.gt.f32.partialorder %v12972_v4, 0.0  ;;  %v3350_v23 = vmul.f32 %v9853_v19, %v5383_v57 }
 0x314   :  { %vm2968_vm12 = vcmp.gt.f32.partialorder %v12970_v20, 0.0  ;;  %v4106_v18 = vsel %vm792_vm1, %v3348_v41, 0.0  ;;  %v5384_v31 = vsel %vm2967_vm13, 1.0, %v12434_v28  ;;  %v12975_v20 = vld [vmem:[#allocation6_spill] sm:$0xff]  ;;  %v12977_v41 = vld [vmem:[#allocation35_spill] sm:$0xff] }
 0x315   :  { %4095 = vadd.xlane.f32.xlu1 %v4094_v47  ;;  %v3347_v47 = vmul.f32 %v9827_v35, %v5380_v49  ;;  %v10346_v29 = vpop.xlane.xlu0 %3728  ;;  %v12976_v4 = vmax.f32 %v12975_v20, 0.0  ;;  %v12978_v54 = vmax.f32 %v12977_v41, 0.0  ;;  %v4112_v57 = vsel %vm792_vm1, %v3350_v23, 0.0 }
 0x316   :  { %4092 = vadd.xlane.f32.xlu0 %v4091_v7  ;;  %v5382_v7 = vsel %vm2965_vm11, 1.0, %v12434_v28  ;;  %12974 = vst [vmem:[#allocation11_spill] sm:$0xff] %v10346_v29  ;;  %v12979_v29 = vld [vmem:[#allocation23_spill] sm:$0xff] }
 0x317   :  { %v4103_v52 = vsel %vm792_vm1, %v3347_v47, 0.0  ;;  %v3349_v49 = vmul.f32 %v10180_v36, %v5382_v7  ;;  %vm2970_vm14 = vcmp.gt.f32.partialorder %v12976_v4, 0.0  ;;  %vm2969_vm15 = vcmp.gt.f32.partialorder %v12978_v54, 0.0  ;;  %v12981_v4 = vld [vmem:[#allocation37_spill] sm:$0xff] }
 0x318   :  { %v12980_v20 = vmax.f32 %v12979_v29, 0.0  ;;  %v12982_v41 = vmax.f32 %v12981_v4, 0.0 }
 0x319   :  { %4101 = vadd.xlane.f32.xlu1 %v4100_v32  ;;  %v5385_v32 = vsel %vm2968_vm12, 1.0, %v12434_v28  ;;  %v4109_v7 = vsel %vm792_vm1, %v3349_v49, 0.0 }
 0x31a   :  { %4098 = vadd.xlane.f32.xlu0 %v4097_v13  ;;  %v10344_v13 = vpop.xlane.xlu1 %3731  ;;  %v3352_v47 = vmul.f32 %v10197_v60, %v5385_v32  ;;  %vm2972_vm0 = vcmp.gt.f32.partialorder %v12980_v20, 0.0  ;;  %vm2971_vm2 = vcmp.gt.f32.partialorder %v12982_v41, 0.0  ;;  %v10365_v32 = vpop.xlane.xlu0 %3734  ;;  %v12985_v20 = vld [vmem:[#allocation48_spill] sm:$0xff]  ;;  %v12987_v41 = vld [vmem:[#allocation49_spill] sm:$0xff] }
 0x31b   :  { %12973 = vst [vmem:[#allocation7_spill] sm:$0xff] %v10344_v13  ;;  %v3351_v13 = vmul.f32 %v10203_v55, %v5384_v31  ;;  %12984 = vst [vmem:[#allocation42_spill] sm:$0xff] %v10365_v32  ;;  %v5388_v29 = vsel %vm2971_vm2, 1.0, %v12434_v28  ;;  %v12986_v4 = vmax.f32 %v12985_v20, 0.0 }
 0x31c   :  { %v4118_v23 = vsel %vm792_vm1, %v3352_v47, 0.0 }
 0x31d   :  { %4107 = vadd.xlane.f32.xlu1 %v4106_v18  ;;  %v5387_v18 = vsel %vm2970_vm14, 1.0, %v12434_v28  ;;  %v4115_v49 = vsel %vm792_vm1, %v3351_v13, 0.0  ;;  %vm2974_vm3 = vcmp.gt.f32.partialorder %v12986_v4, 0.0  ;;  %v12991_v4 = vld [vmem:[#allocation50_spill] sm:$0xff] }
 0x31e   :  { %4104 = vadd.xlane.f32.xlu0 %v4103_v52  ;;  %v5386_v52 = vsel %vm2969_vm15, 1.0, %v12434_v28  ;;  %v10363_v54 = vpop.xlane.xlu1 %3737  ;;  %v3354_v31 = vmul.f32 %v10152_v30, %v5387_v18 }
 0x31f   :  { %12983 = vst [vmem:[#allocation40_spill] sm:$0xff] %v10363_v54  ;;  %v12988_v54 = vmax.f32 %v12987_v41, 0.0 }
 0x320   :  { %v4124_v13 = vsel %vm792_vm1, %v3354_v31, 0.0 }
 0x321   :  { %4113 = vadd.xlane.f32.xlu1 %v4112_v57  ;;  %v3353_v57 = vmul.f32 %v9806_v21, %v5386_v52  ;;  %vm2973_vm4 = vcmp.gt.f32.partialorder %v12988_v54, 0.0  ;;  %v3355_v21 = vmul.f32 %v9827_v35, %v5388_v29  ;;  %v12992_v54 = vmax.f32 %v12991_v4, 0.0 }
 0x322   :  { %4110 = vadd.xlane.f32.xlu0 %v4109_v7  ;;  %v5389_v7 = vsel %vm2972_vm0, 1.0, %v12434_v28  ;;  %v10381_v52 = vpop.xlane.xlu1 %3743  ;;  %v5390_v20 = vsel %vm2973_vm4, 1.0, %v12434_v28 }
 0x323   :  { %v3356_v47 = vmul.f32 %v9821_v22, %v5389_v7  ;;  %v4121_v18 = vsel %vm792_vm1, %v3353_v57, 0.0  ;;  %12989 = vst [vmem:[#allocation13_spill] sm:$0xff] %v10381_v52  ;;  %vm2976_vm5 = vcmp.gt.f32.partialorder %v12992_v54, 0.0  ;;  %v12993_v22 = vld [vmem:[#allocation21_spill] sm:$0xff]  ;;  %v4127_v35 = vsel %vm792_vm1, %v3355_v21, 0.0 }
 0x324   :  { %v12994_v7 = vmax.f32 %v12993_v22, 0.0  ;;  %v3357_v29 = vmul.f32 %v10180_v36, %v5390_v20  ;;  %v5393_v41 = vsel %vm2976_vm5, 1.0, %v12434_v28  ;;  %v12997_v54 = vld [vmem:[#allocation57_spill] sm:$0xff] }
 0x325   :  { %4119 = vadd.xlane.f32.xlu1 %v4118_v23  ;;  %v10383_v23 = vpop.xlane.xlu0 %3740  ;;  %v4130_v31 = vsel %vm792_vm1, %v3356_v47, 0.0  ;;  %v12998_v22 = vmax.f32 %v12997_v54, 0.0  ;;  %v13003_v54 = vld [vmem:[#allocation59_spill] sm:$0xff] }
 0x326   :  { %4116 = vadd.xlane.f32.xlu0 %v4115_v49  ;;  %12990 = vst [vmem:[#allocation15_spill] sm:$0xff] %v10383_v23  ;;  %v5391_v49 = vsel %vm2974_vm3, 1.0, %v12434_v28  ;;  %vm2975_vm6 = vcmp.gt.f32.partialorder %v12994_v7, 0.0  ;;  %v10401_v7 = vpop.xlane.xlu1 %3749 }
 0x327   :  { %v3358_v57 = vmul.f32 %v9853_v19, %v5391_v49  ;;  %vm2977_vm8 = vcmp.gt.f32.partialorder %v12998_v22, 0.0  ;;  %12999 = vst [vmem:[#allocation47_spill] sm:$0xff] %v10401_v7  ;;  %v3360_v19 = vmul.f32 %v10197_v60, %v5393_v41  ;;  %v4133_v49 = vsel %vm792_vm1, %v3357_v29, 0.0 }
 0x328   :  { %v13004_v22 = vmax.f32 %v13003_v54, 0.0 }
 0x329   :  { %4125 = vadd.xlane.f32.xlu1 %v4124_v13  ;;  %v5392_v13 = vsel %vm2975_vm6, 1.0, %v12434_v28  ;;  %v10403_v47 = vpop.xlane.xlu0 %3746  ;;  %v4136_v21 = vsel %vm792_vm1, %v3358_v57, 0.0  ;;  %v4142_v41 = vsel %vm792_vm1, %v3360_v19, 0.0 }
 0x32a   :  { %4122 = vadd.xlane.f32.xlu0 %v4121_v18  ;;  %v12995_v18 = vld [vmem:[#allocation56_spill] sm:$0xff]  ;;  %13000 = vst [vmem:[#allocation32_spill] sm:$0xff] %v10403_v47  ;;  %v3359_v20 = vmul.f32 %v10203_v55, %v5392_v13  ;;  %vm2979_vm10 = vcmp.gt.f32.partialorder %v13004_v22, 0.0  ;;  %v10421_v13 = vld [vmem:[%s12086_s2] sm:$0xff] }
 0x32b   :  { %v12996_v4 = vmax.f32 %v12995_v18, 0.0  ;;  %v13001_v18 = vld [vmem:[#allocation58_spill] sm:$0xff]  ;;  %v5396_v19 = vsel %vm2979_vm10, 1.0, %v12434_v28 }
 0x32c   :  { %v4139_v57 = vsel %vm792_vm1, %v3359_v20, 0.0  ;;  %v13007_v20 = vld [vmem:[#allocation60_spill] sm:$0xff] }
 0x32d   :  { %4131 = vadd.xlane.f32.xlu1 %v4130_v31  ;;  %vm2978_vm7 = vcmp.gt.f32.partialorder %v12996_v4, 0.0  ;;  %v13002_v4 = vmax.f32 %v13001_v18, 0.0  ;;  %v10425_v18 = vpop.xlane.xlu1 %3755  ;;  %v13008_v54 = vmax.f32 %v13007_v20, 0.0 }
 0x32e   :  { %4128 = vadd.xlane.f32.xlu0 %v4127_v35  ;;  %v5395_v31 = vsel %vm2978_vm7, 1.0, %v12434_v28  ;;  %v5394_v35 = vsel %vm2977_vm8, 1.0, %v12434_v28  ;;  %13005 = vst [vmem:[#allocation34_spill] sm:$0xff] %v10425_v18 }
 0x32f   :  { %vm2980_vm9 = vcmp.gt.f32.partialorder %v13002_v4, 0.0  ;;  %v3362_v29 = vmul.f32 %v10152_v30, %v5395_v31  ;;  %v10427_v4 = vpop.xlane.xlu0 %3752  ;;  %vm2982_vm11 = vcmp.gt.f32.partialorder %v13008_v54, 0.0  ;;  %v13009_v31 = vld [vmem:[#allocation61_spill] sm:$0xff] }
 0x330   :  { %13006 = vst [vmem:[#allocation3_spill] sm:$0xff] %v10427_v4  ;;  %v13010_v22 = vmax.f32 %v13009_v31, 0.0  ;;  %v5399_v54 = vsel %vm2982_vm11, 1.0, %v12434_v28 }
 0x331   :  { %4137 = vadd.xlane.f32.xlu1 %v4136_v21  ;;  %v3361_v21 = vmul.f32 %v10421_v13, %v5394_v35  ;;  %v10437_v35 = vld [vmem:[%s12086_s2 + $0x18] sm:$0xff]  ;;  %v4148_v23 = vsel %vm792_vm1, %v3362_v29, 0.0 }
 0x332   :  { %4134 = vadd.xlane.f32.xlu0 %v4133_v49  ;;  %v5397_v49 = vsel %vm2980_vm9, 1.0, %v12434_v28  ;;  %vm2981_vm12 = vcmp.gt.f32.partialorder %v13010_v22, 0.0  ;;  %v13011_v22 = vld [vmem:[#allocation62_spill] sm:$0xff] }
 0x333   :  { %v3364_v52 = vmul.f32 %v10437_v35, %v5397_v49  ;;  %v5398_v31 = vsel %vm2981_vm12, 1.0, %v12434_v28  ;;  %v13012_v32 = vmax.f32 %v13011_v22, 0.0  ;;  %v13013_v49 = vld [vmem:[#allocation63_spill] sm:$0xff]  ;;  %v10456_v18 = vpop.xlane.xlu0 %3758 }
 0x334   :  { %v13014_v29 = vmax.f32 %v13013_v49, 0.0  ;;  %13016 = vst [vmem:[#allocation8_spill] sm:$0xff] %v10456_v18 }
 0x335   :  { %4143 = vadd.xlane.f32.xlu1 %v4142_v41  ;;  %v4145_v41 = vsel %vm792_vm1, %v3361_v21, 0.0  ;;  %vm2984_vm13 = vcmp.gt.f32.partialorder %v13012_v32, 0.0  ;;  %v10454_v21 = vpop.xlane.xlu1 %3761  ;;  %v4154_v4 = vsel %vm792_vm1, %v3364_v52, 0.0  ;;  %v3365_v32 = vmul.f32 %v10180_v36, %v5398_v31  ;;  %v13019_v52 = vld [vmem:[#allocation78_spill] sm:$0xff] }
 0x336   :  { %4140 = vadd.xlane.f32.xlu0 %v4139_v57  ;;  %v10445_v57 = vld [vmem:[%s12086_s2 + $0x10] sm:$0xff]  ;;  %vm2983_vm14 = vcmp.gt.f32.partialorder %v13014_v29, 0.0  ;;  %13015 = vst [vmem:[#allocation9_spill] sm:$0xff] %v10454_v21  ;;  %v5401_v22 = vsel %vm2984_vm13, 1.0, %v12434_v28  ;;  %v13017_v29 = vld [vmem:[#allocation29_spill] sm:$0xff] }
 0x337   :  { %v3363_v20 = vmul.f32 %v10445_v57, %v5396_v19  ;;  %v5400_v49 = vsel %vm2983_vm14, 1.0, %v12434_v28  ;;  %v13018_v21 = vmax.f32 %v13017_v29, 0.0  ;;  %v3368_v18 = vmul.f32 %v10197_v60, %v5401_v22  ;;  %v13024_v28 = vld [vmem:[#allocation85_spill] sm:$0xff]  ;;  %v13026_v22 = vld [vmem:[#allocation79_spill] sm:$0xff] }
 0x338   :  { %v3367_v31 = vmul.f32 %v10203_v55, %v5400_v49  ;;  %v13030_v49 = vld [vmem:[#allocation123_spill] sm:$0xff] }
 0x339   :  { %4149 = vadd.xlane.f32.xlu1 %v4148_v23  ;;  %v4151_v19 = vsel %vm792_vm1, %v3363_v20, 0.0  ;;  %v10463_v23 = vld [vmem:[%s12086_s2 + $0x28] sm:$0xff]  ;;  %vm2986_vm15 = vcmp.gt.f32.partialorder %v13018_v21, 0.0  ;;  %v13020_v20 = vmax.f32 %v13019_v52, 0.0  ;;  %v10477_v47 = vpop.xlane.xlu1 %3767  ;;  %v13025_v21 = vmov 0.0  }
 0x33a   :  { %4146 = vadd.xlane.f32.xlu0 %v4145_v41  ;;  %v3366_v41 = vmul.f32 %v10463_v23, %v5399_v54  ;;  %v4157_v54 = vsel %vm792_vm1, %v3365_v32, 0.0  ;;  %13021 = vst [vmem:[#allocation4_spill] sm:$0xff] %v10477_v47  ;;  %v5403_v29 = vsel %vm2986_vm15, 1.0, %v13025_v21  ;;  %v4166_v47 = vsel %vm792_vm1, %v3368_v18, 0.0 }
 0x33b   :  { %vm2985_vm0 = vcmp.gt.f32.partialorder %v13020_v20, 0.0  ;;  %v13027_v20 = vmax.f32 %v13026_v22, 0.0  ;;  %v13031_v22 = vld [vmem:[#allocation81_spill] sm:$0xff] }
 0x33c   :  { %v4160_v7 = vsel %vm792_vm1, %v3366_v41, 0.0  ;;  %v5402_v52 = vsel %vm2985_vm0, 1.0, %v13025_v21  ;;  %v13028_v41 = vld [vmem:[#allocation80_spill] sm:$0xff] }
 0x33d   :  { %4155 = vadd.xlane.f32.xlu1 %v4154_v4  ;;  %v10479_v4 = vpop.xlane.xlu0 %3764  ;;  %vm2988_vm2 = vcmp.gt.f32.partialorder %v13027_v20, 0.0  ;;  %v13029_v32 = vmax.f32 %v13028_v41, 0.0  ;;  %v13032_v20 = vmax.f32 %v13031_v22, 0.0  ;;  %v13033_v41 = vld [vmem:[#allocation82_spill] sm:$0xff] }
 0x33e   :  { %4152 = vadd.xlane.f32.xlu0 %v4151_v19  ;;  %13022 = vst [vmem:[#allocation6_spill] sm:$0xff] %v10479_v4  ;;  %v13023_v19 = vld [vmem:[#allocation92_spill] sm:$0xff]  ;;  %v4163_v4 = vsel %vm792_vm1, %v3367_v31, 0.0  ;;  %v5931_v31 = vmov 0  }
 0x33f   :  { %v3841_v3 = vadd.f32 %v13024_v28, %v13023_v19  ;;  %vm2987_vm3 = vcmp.gt.f32.partialorder %v13029_v32, 0.0  ;;  %v3370_v28 = vmul.f32 %v10152_v30, %v5403_v29  ;;  %vm2990_vm4 = vcmp.gt.f32.partialorder %v13032_v20, 0.0  ;;  %5516 = vset.pattern.permute.xlu1 %v5931_v31  ;;  %5517 = vset.pattern.permute.xlu0 %v5931_v31  ;;  %v13037_v29 = vld [vmem:[#allocation122_spill] sm:$0xff]  ;;  %v13040_v31 = vld [vmem:[#allocation84_spill] sm:$0xff] }
 0x340   :  { %v5404_v19 = vsel %vm2987_vm3, 1.0, %v13025_v21  ;;  %v13034_v32 = vmax.f32 %v13033_v41, 0.0  ;;  %v5407_v20 = vsel %vm2990_vm4, 1.0, %v13025_v21 }
 0x341   :  { %4161 = vadd.xlane.f32.xlu1 %v4160_v7  ;;  %v3842_v58 = vadd.f32 %v3841_v3, %v13030_v49  ;;  %v3369_v7 = vmul.f32 %v10421_v13, %v5402_v52  ;;  %v10500_v3 = vpop.xlane.xlu1 %3773  ;;  %v10502_v18 = vpop.xlane.xlu0 %3770  ;;  %v3371_v22 = vmul.f32 %v10445_v57, %v5404_v19 }
 0x342   :  { %4158 = vadd.xlane.f32.xlu0 %v4157_v54  ;;  %v5405_v54 = vsel %vm2988_vm2, 1.0, %v13025_v21  ;;  %vm2989_vm5 = vcmp.gt.f32.partialorder %v13034_v32, 0.0  ;;  %13035 = vst [vmem:[#allocation35_spill] sm:$0xff] %v10500_v3  ;;  %13036 = vst [vmem:[#allocation23_spill] sm:$0xff] %v10502_v18  ;;  %v13038_v32 = vld [vmem:[#allocation83_spill] sm:$0xff]  ;;  %v13041_v18 = vmax.f32 %v13040_v31, 0.0 }
 0x343   :  { %v3843_v52 = vadd.f32 %v3842_v58, %v13037_v29  ;;  %v4169_v49 = vsel %vm792_vm1, %v3369_v7, 0.0  ;;  %v5406_v41 = vsel %vm2989_vm5, 1.0, %v13025_v21  ;;  %v13039_v3 = vmax.f32 %v13038_v32, 0.0  ;;  %v13042_v58 = vld [vmem:[#allocation131_spill] sm:$0xff]  ;;  %v13043_v29 = vld [vmem:[#allocation17_spill] sm:$0xff] }
 0x344   :  { %vm2991_vm7 = vcmp.gt.f32.partialorder %v13041_v18, 0.0  ;;  %v4175_v19 = vsel %vm792_vm1, %v3371_v22, 0.0  ;;  %v13050_v22 = vld [vmem:[#allocation10_spill] sm:$0xff] }
 0x345   :  { %4167 = vadd.xlane.f32.xlu1 %v4166_v47  ;;  %v3372_v47 = vmul.f32 %v10437_v35, %v5405_v54  ;;  %vm2992_vm6 = vcmp.gt.f32.partialorder %v13039_v3, 0.0  ;;  %v3844_v54 = vadd.f32 %v3843_v52, %v13042_v58  ;;  %v10523_v32 = vpop.xlane.xlu1 %3779  ;;  %v10525_v3 = vpop.xlane.xlu0 %3776  ;;  %v5408_v18 = vsel %vm2991_vm7, 1.0, %v13025_v21  ;;  %v13047_v52 = vld [vmem:[#allocation14_spill] sm:$0xff]  ;;  %v13048_v58 = vld [vmem:[#allocation24_spill] sm:$0xff] }
 0x346   :  { %4164 = vadd.xlane.f32.xlu0 %v4163_v4  ;;  %v4172_v4 = vsel %vm792_vm1, %v3370_v28, 0.0  ;;  %v13044_v28 = vld [vmem:[#allocation88_spill] sm:$0xff]  ;;  %v5409_v42 = vsel %vm2992_vm6, 1.0, %v13025_v21  ;;  %13045 = vst [vmem:[#allocation37_spill] sm:$0xff] %v10523_v32  ;;  %13046 = vst [vmem:[#allocation48_spill] sm:$0xff] %v10525_v3 }
 0x347   :  { %v3854_v33 = vadd.f32 %v13044_v28, %v13043_v29  ;;  %v4178_v7 = vsel %vm792_vm1, %v3372_v47, 0.0  ;;  %v13049_v47 = vmax.f32 %v13048_v58, 0.0  ;;  %v13051_v29 = vmax.f32 %v13050_v22, 0.0  ;;  %v13055_v58 = vld [vmem:[#allocation95_spill] sm:$0xff]  ;;  %v13058_v22 = vld [vmem:[#allocation96_spill] sm:$0xff] }
 0x349   :  { %4173 = vadd.xlane.f32.xlu1 %v4172_v4  ;;  %v3374_v4 = vmul.f32 %v10463_v23, %v5407_v20  ;;  %v3855_v31 = vadd.f32 %v3854_v33, %v13047_v52  ;;  %vm2994_vm8 = vcmp.gt.f32.partialorder %v13049_v47, 0.0  ;;  %vm2993_vm9 = vcmp.gt.f32.partialorder %v13051_v29, 0.0  ;;  %v13062_v29 = vld [vmem:[#allocation111_spill] sm:$0xff] }
 0x34a   :  { %4170 = vadd.xlane.f32.xlu0 %v4169_v49  ;;  %v3373_v49 = vmul.f32 %v10180_v36, %v5406_v41  ;;  %v3376_v20 = vmul.f32 %v10197_v60, %v5409_v42  ;;  %v13052_v41 = vld [vmem:[#allocation130_spill] sm:$0xff]  ;;  %v5411_v33 = vsel %vm2994_vm8, 1.0, %v13025_v21  ;;  %v5410_v52 = vsel %vm2993_vm9, 1.0, %v13025_v21  ;;  %v13057_v42 = vld [vmem:[#allocation89_spill] sm:$0xff] }
 0x34b   :  { %v3845_v28 = vadd.f32 %v3844_v54, %v13052_v41  ;;  %v4184_v32 = vsel %vm792_vm1, %v3374_v4, 0.0  ;;  %v13056_v47 = vmax.f32 %v13055_v58, 0.0  ;;  %v3856_v54 = vadd.f32 %v3855_v31, %v13057_v42  ;;  %v13063_v31 = vld [vmem:[#allocation94_spill] sm:$0xff] }
 0x34c   :  { %v4181_v3 = vsel %vm792_vm1, %v3373_v49, 0.0  ;;  %v13059_v4 = vmax.f32 %v13058_v22, 0.0  ;;  %v10547_v49 = vpop.xlane.xlu1 %3785  ;;  %v3378_v41 = vmul.f32 %v10152_v30, %v5411_v33  ;;  %v13064_v22 = vld [vmem:[#allocation103_spill] sm:$0xff] }
 0x34d   :  { %4179 = vadd.xlane.f32.xlu1 %v4178_v7  ;;  %v3375_v7 = vmul.f32 %v10203_v55, %v5408_v18  ;;  %vm2996_vm10 = vcmp.gt.f32.partialorder %v13056_v47, 0.0  ;;  %13060 = vst [vmem:[#allocation49_spill] sm:$0xff] %v10547_v49  ;;  %v10549_v18 = vpop.xlane.xlu0 %3782  ;;  %v3846_v47 = vadd.f32 %v3845_v28, %v13063_v31  ;;  %v13065_v49 = vld [vmem:[#allocation97_spill] sm:$0xff]  ;;  %v13072_v31 = vld [vmem:[#allocation87_spill] sm:$0xff] }
 0x34e   :  { %4176 = vadd.xlane.f32.xlu0 %v4175_v19  ;;  %v13053_v19 = vld [vmem:[#allocation65_spill] sm:$0xff]  ;;  %vm2995_vm11 = vcmp.gt.f32.partialorder %v13059_v4, 0.0  ;;  %13061 = vst [vmem:[#allocation50_spill] sm:$0xff] %v10549_v18  ;;  %v5413_v58 = vsel %vm2996_vm10, 1.0, %v13025_v21  ;;  %v3857_v4 = vadd.f32 %v3856_v54, %v13064_v22  ;;  %v3880_v18 = vadd.f32 %v9375_v44, %v9377_v1  ;;  %v13075_v1 = vld [vmem:[#allocation90_spill] sm:$0xff] }
 0x34f   :  { %v3867_v48 = vadd.f32 %v13054_v46, %v13053_v19  ;;  %v3377_v19 = vmul.f32 %v10421_v13, %v5410_v52  ;;  %v5412_v42 = vsel %vm2995_vm11, 1.0, %v13025_v21  ;;  %v3380_v52 = vmul.f32 %v10437_v35, %v5413_v58 }
 0x350   :  { %v4196_v28 = vsel %vm792_vm1, %v3378_v41, 0.0  ;;  %v10571_v54 = vpop.xlane.xlu1 %3791  ;;  %v3847_v22 = vadd.f32 %v3846_v47, %v13072_v31  ;;  %v3858_v41 = vadd.f32 %v3857_v4, %v13075_v1 }
 0x351   :  { %4185 = vadd.xlane.f32.xlu1 %v4184_v32  ;;  %v3868_v46 = vadd.f32 %v3867_v48, %v13062_v29  ;;  %v4190_v32 = vsel %vm792_vm1, %v3376_v20, 0.0  ;;  %v13066_v48 = vmax.f32 %v13065_v49, 0.0  ;;  %v13067_v20 = vld [vmem:[#allocation98_spill] sm:$0xff]  ;;  %13070 = vst [vmem:[#allocation21_spill] sm:$0xff] %v10571_v54  ;;  %v10573_v49 = vpop.xlane.xlu0 %3788  ;;  %v4202_v47 = vsel %vm792_vm1, %v3380_v52, 0.0 }
 0x352   :  { %4182 = vadd.xlane.f32.xlu0 %v4181_v3  ;;  %v4187_v3 = vsel %vm792_vm1, %v3375_v7, 0.0  ;;  %v13068_v29 = vmax.f32 %v13067_v20, 0.0  ;;  %v13069_v7 = vld [vmem:[#allocation19_spill] sm:$0xff]  ;;  %13071 = vst [vmem:[#allocation56_spill] sm:$0xff] %v10573_v49  ;;  %v3893_v49 = vadd.f32 %v9540_v56, %v9542_v9  ;;  %v3906_v9 = vadd.f32 %v9669_v43, %v9671_v62 }
 0x353   :  { %vm2998_vm12 = vcmp.gt.f32.partialorder %v13066_v48, 0.0  ;;  %v3869_v33 = vadd.f32 %v3868_v46, %v13069_v7  ;;  %v13073_v48 = vld [vmem:[#allocation99_spill] sm:$0xff] }
 0x354   :  { %vm2997_vm13 = vcmp.gt.f32.partialorder %v13068_v29, 0.0  ;;  %v5415_v46 = vsel %vm2998_vm12, 1.0, %v13025_v21  ;;  %v13074_v44 = vmax.f32 %v13073_v48, 0.0  ;;  %v13078_v29 = vld [vmem:[#allocation76_spill] sm:$0xff]  ;;  %v3894_v56 = vadd.f32 %v3893_v49, %v9564_v34 }
 0x355   :  { %4191 = vadd.xlane.f32.xlu1 %v4190_v32  ;;  %v4193_v32 = vsel %vm792_vm1, %v3377_v19, 0.0  ;;  %v5414_v58 = vsel %vm2997_vm13, 1.0, %v13025_v21  ;;  %v3881_v19 = vadd.f32 %v3880_v18, %v9413_v14  ;;  %v3870_v7 = vadd.f32 %v3869_v33, %v13078_v29  ;;  %v13079_v18 = vld [vmem:[#allocation134_spill] sm:$0xff]  ;;  %v10593_v33 = vpop.xlane.xlu1 %3797  ;;  %v10595_v52 = vpop.xlane.xlu0 %3794  ;;  %v13106_v49 = vld [vmem:[#allocation36_spill] sm:$0xff] }
 0x356   :  { %4188 = vadd.xlane.f32.xlu0 %v4187_v3  ;;  %v3379_v3 = vmul.f32 %v10445_v57, %v5412_v42  ;;  %vm3000_vm14 = vcmp.gt.f32.partialorder %v13074_v44, 0.0  ;;  %v13076_v42 = vld [vmem:[#allocation100_spill] sm:$0xff]  ;;  %v3381_v31 = vmul.f32 %v10180_v36, %v5414_v58  ;;  %v3848_v44 = vrot.slane %v3847_v22, 4  ;;  %13080 = vst [vmem:[#allocation57_spill] sm:$0xff] %v10593_v33  ;;  %13081 = vst [vmem:[#allocation58_spill] sm:$0xff] %v10595_v52 }
 0x357   :  { %v13077_v20 = vmax.f32 %v13076_v42, 0.0  ;;  %v5417_v48 = vsel %vm3000_vm14, 1.0, %v13025_v21  ;;  %v3859_v4 = vadd.f32 %v3858_v41, %v13079_v18  ;;  %v3882_v1 = vadd.f32 %v3881_v19, %v9411_v15 }
 0x358   :  { %v4205_v41 = vsel %vm792_vm1, %v3381_v31, 0.0  ;;  %v3849_v19 = vadd.f32 %v3848_v44, %v3847_v22  ;;  %v13092_v31 = vld [vmem:[#allocation112_spill] sm:$0xff]  ;;  %v13107_v62 = vmax.f32 %v13106_v49, 0.0 }
 0x359   :  { %4197 = vadd.xlane.f32.xlu1 %v4196_v28  ;;  %vm2999_vm15 = vcmp.gt.f32.partialorder %v13077_v20, 0.0  ;;  %v4199_v28 = vsel %vm792_vm1, %v3379_v3, 0.0  ;;  %v13082_v3 = vld [vmem:[#allocation52_spill] sm:$0xff] }
 0x35a   :  { %4194 = vadd.xlane.f32.xlu0 %v4193_v32  ;;  %v3382_v32 = vmul.f32 %v10463_v23, %v5415_v46  ;;  %v5416_v14 = vsel %vm2999_vm15, 1.0, %v13025_v21  ;;  %v13083_v42 = vmax.f32 %v13082_v3, 0.0  ;;  %v13084_v46 = vld [vmem:[#allocation43_spill] sm:$0xff]  ;;  %v13086_v20 = vld [vmem:[#allocation104_spill] sm:$0xff]  ;;  %vm3010_vm9 = vcmp.gt.f32.partialorder %v13107_v62, 0.0 }
 0x35b   :  { %v13085_v58 = vmax.f32 %v13084_v46, 0.0  ;;  %v3871_v29 = vadd.f32 %v3870_v7, %v13086_v20  ;;  %v3383_v15 = vmul.f32 %v10203_v55, %v5416_v14  ;;  %v13090_v20 = vld [vmem:[#allocation44_spill] sm:$0xff] }
 0x35c   :  { %vm3002_vm0 = vcmp.gt.f32.partialorder %v13083_v42, 0.0  ;;  %v13087_v42 = vld [vmem:[#allocation53_spill] sm:$0xff] }
 0x35d   :  { %4203 = vadd.xlane.f32.xlu1 %v4202_v47  ;;  %vm3001_vm2 = vcmp.gt.f32.partialorder %v13085_v58, 0.0  ;;  %v3384_v47 = vmul.f32 %v10197_v60, %v5417_v48  ;;  %v5419_v18 = vsel %vm3002_vm0, 1.0, %v13025_v21  ;;  %v13088_v46 = vmax.f32 %v13087_v42, 0.0  ;;  %v13089_v58 = vld [vmem:[#allocation133_spill] sm:$0xff]  ;;  %v10621_v42 = vpop.xlane.xlu0 %3800 }
 0x35e   :  { %4200 = vadd.xlane.f32.xlu0 %v4199_v28  ;;  %v4208_v28 = vsel %vm792_vm1, %v3382_v32, 0.0  ;;  %v5418_v3 = vsel %vm3001_vm2, 1.0, %v13025_v21  ;;  %v3860_v7 = vadd.f32 %v3859_v4, %v13089_v58  ;;  %v3883_v48 = vadd.f32 %v3882_v1, %v9456_v51  ;;  %13094 = vst [vmem:[#allocation60_spill] sm:$0xff] %v10621_v42 }
 0x35f   :  { %vm3004_vm3 = vcmp.gt.f32.partialorder %v13088_v46, 0.0  ;;  %v13091_v32 = vmax.f32 %v13090_v20, 0.0  ;;  %v3872_v54 = vadd.f32 %v3871_v29, %v13092_v31  ;;  %v4214_v22 = vsel %vm792_vm1, %v3384_v47, 0.0  ;;  %v13095_v46 = vld [vmem:[#allocation54_spill] sm:$0xff] }
 0x360   :  { %v4211_v44 = vsel %vm792_vm1, %v3383_v15, 0.0  ;;  %v3386_v14 = vmul.f32 %v10152_v30, %v5419_v18  ;;  %v5421_v4 = vsel %vm3004_vm3, 1.0, %v13025_v21  ;;  %v3850_v51 = vrot.slane %v3849_v19, 2  ;;  %v13097_v18 = vld [vmem:[#allocation55_spill] sm:$0xff]  ;;  %v13099_v20 = vld [vmem:[#allocation106_spill] sm:$0xff] }
 0x361   :  { %4209 = vadd.xlane.f32.xlu1 %v4208_v28  ;;  %vm3003_vm4 = vcmp.gt.f32.partialorder %v13091_v32, 0.0  ;;  %v3385_v28 = vmul.f32 %v10421_v13, %v5418_v3  ;;  %v3861_v29 = vrot.slane %v3860_v7, 4  ;;  %v3884_v47 = vadd.f32 %v3883_v48, %v9454_v0 }
 0x362   :  { %4206 = vadd.xlane.f32.xlu0 %v4205_v41  ;;  %v10619_v41 = vpop.xlane.xlu1 %3803  ;;  %v5420_v1 = vsel %vm3003_vm4, 1.0, %v13025_v21  ;;  %v13096_v15 = vmax.f32 %v13095_v46, 0.0  ;;  %v13098_v58 = vmax.f32 %v13097_v18, 0.0  ;;  %v3388_v3 = vmul.f32 %v10437_v35, %v5421_v4  ;;  %v13100_v46 = vld [vmem:[#allocation70_spill] sm:$0xff] }
 0x363   :  { %13093 = vst [vmem:[#allocation59_spill] sm:$0xff] %v10619_v41  ;;  %v3873_v32 = vadd.f32 %v3872_v54, %v13099_v20  ;;  %v4220_v31 = vsel %vm792_vm1, %v3386_v14, 0.0  ;;  %v3851_v4 = vadd.f32 %v3850_v51, %v3849_v19  ;;  %v3862_v54 = vadd.f32 %v3861_v29, %v3860_v7  ;;  %v13279_v41 = vld [vmem:[#allocation142_spill] sm:$0xff] }
 0x364   :  { %vm3006_vm5 = vcmp.gt.f32.partialorder %v13096_v15, 0.0  ;;  %vm3005_vm6 = vcmp.gt.f32.partialorder %v13098_v58, 0.0  ;;  %v13101_v15 = vmax.f32 %v13100_v46, 0.0  ;;  %v3885_v14 = vadd.f32 %v3884_v47, %v9511_v10 }
 0x365   :  { %4215 = vadd.xlane.f32.xlu1 %v4214_v22  ;;  %v4217_v22 = vsel %vm792_vm1, %v3385_v28, 0.0  ;;  %v5423_v0 = vsel %vm3006_vm5, 1.0, %v13025_v21  ;;  %v5422_v48 = vsel %vm3005_vm6, 1.0, %v13025_v21  ;;  %v10644_v28 = vpop.xlane.xlu0 %3806  ;;  %v3919_v20 = vadd.f32 %v9792_v26, %v9794_v45  ;;  %v13108_v26 = vld [vmem:[#allocation39_spill] sm:$0xff] }
 0x366   :  { %4212 = vadd.xlane.f32.xlu0 %v4211_v44  ;;  %v3387_v44 = vmul.f32 %v10445_v57, %v5420_v1  ;;  %vm3008_vm7 = vcmp.gt.f32.partialorder %v13101_v15, 0.0  ;;  %v10642_v18 = vpop.xlane.xlu1 %3809  ;;  %13103 = vst [vmem:[#allocation62_spill] sm:$0xff] %v10644_v28  ;;  %v13104_v1 = vld [vmem:[#allocation107_spill] sm:$0xff]  ;;  %v4226_v19 = vsel %vm792_vm1, %v3388_v3, 0.0  ;;  %v3390_v10 = vmul.f32 %v10463_v23, %v5423_v0  ;;  %v13109_v3 = vld [vmem:[#allocation120_spill] sm:$0xff] }
 0x367   :  { %13102 = vst [vmem:[#allocation61_spill] sm:$0xff] %v10642_v18  ;;  %v13105_v58 = vmax.f32 %v13104_v1, 0.0  ;;  %v3389_v51 = vmul.f32 %v10180_v36, %v5422_v48  ;;  %v5425_v29 = vsel %vm3008_vm7, 1.0, %v13025_v21  ;;  %v3874_v47 = vrot.slane %v3873_v32, 4  ;;  %v13112_v48 = vld [vmem:[#allocation138_spill] sm:$0xff]  ;;  %v13113_v15 = vld [vmem:[#allocation31_spill] sm:$0xff] }
 0x368   :  { %v4223_v7 = vsel %vm792_vm1, %v3387_v44, 0.0  ;;  %v3852_v43 = vrot.slane %v3851_v4, 1  ;;  %v3907_v45 = vadd.f32 %v3906_v9, %v13108_v26  ;;  %v3863_v0 = vrot.slane %v3862_v54, 2 }
 0x369   :  { %4221 = vadd.xlane.f32.xlu1 %v4220_v31  ;;  %vm3007_vm8 = vcmp.gt.f32.partialorder %v13105_v58, 0.0  ;;  %v3920_v31 = vadd.f32 %v3919_v20, %v13109_v3  ;;  %v3886_v46 = vadd.f32 %v3885_v14, %v13112_v48  ;;  %v3895_v1 = vadd.f32 %v3894_v56, %v13113_v15  ;;  %v10672_v62 = vpop.xlane.xlu0 %3812  ;;  %v13116_v56 = vld [vmem:[#allocation136_spill] sm:$0xff] }
 0x36a   :  { %4218 = vadd.xlane.f32.xlu0 %v4217_v22  ;;  %v5424_v34 = vsel %vm3007_vm8, 1.0, %v13025_v21  ;;  %v13110_v22 = vld [vmem:[#allocation72_spill] sm:$0xff]  ;;  %v3392_v58 = vmul.f32 %v10197_v60, %v5425_v29  ;;  %v10670_v49 = vpop.xlane.xlu1 %3815  ;;  %13115 = vst [vmem:[#allocation29_spill] sm:$0xff] %v10672_v62  ;;  %v5427_v20 = vsel %vm3010_vm9, 1.0, %v13025_v21  ;;  %v3875_v26 = vadd.f32 %v3874_v47, %v3873_v32  ;;  %v13117_v29 = vld [vmem:[#allocation119_spill] sm:$0xff]  ;;  %v13267_v62 = vld [vmem:[#allocation154_spill] sm:$0xff] }
 0x36b   :  { %v13111_v44 = vmax.f32 %v13110_v22, 0.0  ;;  %13114 = vst [vmem:[#allocation63_spill] sm:$0xff] %v10670_v49  ;;  %v3391_v9 = vmul.f32 %v10203_v55, %v5424_v34  ;;  %v3908_v3 = vadd.f32 %v3907_v45, %v13116_v56  ;;  %v3921_v22 = vadd.f32 %v3920_v31, %v13117_v29  ;;  %v13122_v47 = vld [vmem:[#allocation147_spill] sm:$0xff]  ;;  %v13123_v56 = vld [vmem:[#allocation158_spill] sm:$0xff] }
 0x36c   :  { %v10683_v15 = vadd.f32 %v3852_v43, %v3851_v4  ;;  %v10685_v34 = vadd.f32 %v3863_v0, %v3862_v54  ;;  %v3887_v49 = vrot.slane %v3886_v46, 4  ;;  %v3394_v32 = vmul.f32 %v10152_v30, %v5427_v20  ;;  %v13124_v43 = vld [vmem:[#allocation114_spill] sm:$0xff] }
 0x36d   :  { %4227 = vadd.xlane.f32.xlu1 %v4226_v19  ;;  %vm3009_vm10 = vcmp.gt.f32.partialorder %v13111_v44, 0.0  ;;  %v4232_v19 = vsel %vm792_vm1, %v3390_v10, 0.0  ;;  %v13118_v10 = vld [vmem:[#allocation45_spill] sm:$0xff]  ;;  %v4235_v45 = vsel %vm792_vm1, %v3391_v9, 0.0  ;;  %v3932_v29 = vadd.f32 %v13123_v56, %v9950_v61 }
 0x36e   :  { %4224 = vadd.xlane.f32.xlu0 %v4223_v7  ;;  %v4229_v7 = vsel %vm792_vm1, %v3389_v51, 0.0  ;;  %v5426_v14 = vsel %vm3009_vm10, 1.0, %v13025_v21  ;;  %v13119_v44 = vmax.f32 %v13118_v10, 0.0  ;;  %v13120_v51 = vld [vmem:[#allocation113_spill] sm:$0xff]  ;;  %v13125_v0 = vmax.f32 %v13124_v43, 0.0 }
 0x36f   :  { %v13121_v48 = vmax.f32 %v13120_v51, 0.0  ;;  %v3393_v31 = vmul.f32 %v10421_v13, %v5426_v14  ;;  %v3876_v30 = vrot.slane %v3875_v26, 2  ;;  %v3933_v51 = vadd.f32 %v3932_v29, %v9967_v39  ;;  %v13132_v39 = vld [vmem:[#allocation146_spill] sm:$0xff] }
 0x370   :  { %vm3012_vm11 = vcmp.gt.f32.partialorder %v13119_v44, 0.0  ;;  %vm3014_vm13 = vcmp.gt.f32.partialorder %v13125_v0, 0.0  ;;  %v13130_v44 = vld [vmem:[#allocation115_spill] sm:$0xff]  ;;  %v3865_v43 = vrot.slane %v10685_v34, 1  ;;  %v3888_v0 = vadd.f32 %v3887_v49, %v3886_v46  ;;  %v13139_v46 = vld [vmem:[#allocation137_spill] sm:$0xff] }
 0x371   :  { %4233 = vadd.xlane.f32.xlu1 %v4232_v19  ;;  %vm3011_vm12 = vcmp.gt.f32.partialorder %v13121_v48, 0.0  ;;  %v3896_v19 = vadd.f32 %v3895_v1, %v13122_v47  ;;  %v5429_v4 = vsel %vm3012_vm11, 1.0, %v13025_v21  ;;  %v13126_v1 = vld [vmem:[#allocation64_spill] sm:$0xff]  ;;  %v13131_v61 = vmax.f32 %v13130_v44, 0.0 }
 0x372   :  { %4230 = vadd.xlane.f32.xlu0 %v4229_v7  ;;  %v4238_v7 = vsel %vm792_vm1, %v3392_v58, 0.0  ;;  %v5428_v54 = vsel %vm3011_vm12, 1.0, %v13025_v21  ;;  %v3909_v20 = vadd.f32 %v3908_v3, %v13126_v1  ;;  %v13127_v58 = vld [vmem:[#allocation73_spill] sm:$0xff]  ;;  %v3945_v48 = vadd.f32 %v10051_v53, %v10053_v24 }
 0x373   :  { %v3922_v10 = vadd.f32 %v3921_v22, %v13127_v58  ;;  %vm3013_vm14 = vcmp.gt.f32.partialorder %v13131_v61, 0.0  ;;  %v3958_v47 = vadd.f32 %v10156_v2, %v10158_v37  ;;  %v4241_v3 = vsel %vm792_vm1, %v3393_v31, 0.0  ;;  %v13135_v31 = vld [vmem:[#allocation116_spill] sm:$0xff] }
 0x374   :  { %v3396_v22 = vmul.f32 %v10437_v35, %v5429_v4  ;;  %v5431_v56 = vsel %vm3014_vm13, 1.0, %v13025_v21  ;;  %v3897_v29 = vadd.f32 %v3896_v19, %v13132_v39  ;;  %v5430_v53 = vsel %vm3013_vm14, 1.0, %v13025_v21  ;;  %v13140_v19 = vld [vmem:[#allocation121_spill] sm:$0xff] }
 0x375   :  { %4239 = vadd.xlane.f32.xlu1 %v4238_v7  ;;  %v4244_v7 = vsel %vm792_vm1, %v3394_v32, 0.0  ;;  %v3946_v24 = vadd.f32 %v3945_v48, %v10080_v17  ;;  %v3959_v2 = vadd.f32 %v3958_v47, %v10187_v59  ;;  %v13136_v4 = vmax.f32 %v13135_v31, 0.0 }
 0x376   :  { %4236 = vadd.xlane.f32.xlu0 %v4235_v45  ;;  %v10700_v9 = vpop.xlane.xlu1 %3821  ;;  %v3395_v45 = vmul.f32 %v10445_v57, %v5428_v54  ;;  %v13137_v54 = vld [vmem:[#allocation117_spill] sm:$0xff]  ;;  %v3910_v49 = vadd.f32 %v3909_v20, %v13139_v46  ;;  %v3923_v58 = vadd.f32 %v3922_v10, %v13140_v19  ;;  %v3934_v44 = vadd.f32 %v3933_v51, %v9965_v25  ;;  %v13142_v10 = vld [vmem:[#allocation124_spill] sm:$0xff] }
 0x377   :  { %13128 = vst [vmem:[#allocation78_spill] sm:$0xff] %v10700_v9  ;;  %v10702_v14 = vpop.xlane.xlu0 %3818  ;;  %vm3016_vm15 = vcmp.gt.f32.partialorder %v13136_v4, 0.0  ;;  %v13138_v1 = vmax.f32 %v13137_v54, 0.0  ;;  %v3398_v17 = vmul.f32 %v10463_v23, %v5431_v56  ;;  %v3877_v61 = vadd.f32 %v3876_v30, %v3875_v26  ;;  %v13148_v56 = vld [vmem:[#allocation148_spill] sm:$0xff] }
 0x378   :  { %13129 = vst [vmem:[#allocation92_spill] sm:$0xff] %v10702_v14  ;;  %v4250_v59 = vsel %vm792_vm1, %v3396_v22, 0.0  ;;  %v4247_v48 = vsel %vm792_vm1, %v3395_v45, 0.0  ;;  %v3397_v47 = vmul.f32 %v10180_v36, %v5430_v53  ;;  %v5433_v39 = vsel %vm3016_vm15, 1.0, %v13025_v21  ;;  %v13146_v36 = vld [vmem:[#allocation125_spill] sm:$0xff]  ;;  %v13150_v19 = vld [vmem:[#allocation16_spill] sm:$0xff] }
 0x379   :  { %4245 = vadd.xlane.f32.xlu1 %v4244_v7  ;;  %vm3015_vm0 = vcmp.gt.f32.partialorder %v13138_v1, 0.0  ;;  %v13141_v7 = vld [vmem:[#allocation71_spill] sm:$0xff]  ;;  %v13143_v31 = vmax.f32 %v13142_v10, 0.0  ;;  %v3889_v25 = vrot.slane %v3888_v0, 2  ;;  %v3947_v26 = vadd.f32 %v3946_v24, %v10078_v12  ;;  %v13149_v53 = vld [vmem:[#allocation157_spill] sm:$0xff] }
 0x37a   :  { %4242 = vadd.xlane.f32.xlu0 %v4241_v3  ;;  %v10721_v37 = vpop.xlane.xlu1 %3827  ;;  %v3898_v3 = vadd.f32 %v3897_v29, %v13141_v7  ;;  %v5432_v20 = vsel %vm3015_vm0, 1.0, %v13025_v21  ;;  %v3960_v30 = vadd.f32 %v3959_v2, %v10185_v6  ;;  %v13147_v45 = vmax.f32 %v13146_v36, 0.0 }
 0x37b   :  { %13133 = vst [vmem:[#allocation85_spill] sm:$0xff] %v10721_v37  ;;  %v10723_v32 = vpop.xlane.xlu0 %3824  ;;  %vm3018_vm2 = vcmp.gt.f32.partialorder %v13143_v31, 0.0  ;;  %v3911_v29 = vadd.f32 %v3910_v49, %v13148_v56  ;;  %v3924_v4 = vadd.f32 %v3923_v58, %v13149_v53  ;;  %v3935_v54 = vadd.f32 %v3934_v44, %v10011_v16  ;;  %v13151_v58 = vld [vmem:[#allocation126_spill] sm:$0xff] }
 0x37c   :  { %13134 = vst [vmem:[#allocation79_spill] sm:$0xff] %v10723_v32  ;;  %vm3017_vm3 = vcmp.gt.f32.partialorder %v13147_v45, 0.0  ;;  %v4256_v1 = vsel %vm792_vm1, %v3398_v17, 0.0  ;;  %v4253_v46 = vsel %vm792_vm1, %v3397_v47, 0.0  ;;  %v3400_v12 = vmul.f32 %v10197_v60, %v5433_v39  ;;  %v13155_v47 = vld [vmem:[#allocation127_spill] sm:$0xff] }
 0x37d   :  { %4251 = vadd.xlane.f32.xlu1 %v4250_v59  ;;  %v3399_v6 = vmul.f32 %v10203_v55, %v5432_v20  ;;  %v5435_v24 = vsel %vm3018_vm2, 1.0, %v13025_v21  ;;  %v3878_v2 = vrot.slane %v3877_v61, 1  ;;  %v3899_v59 = vadd.f32 %v3898_v3, %v13150_v19  ;;  %v13157_v3 = vld [vmem:[#allocation118_spill] sm:$0xff] }
 0x37e   :  { %4248 = vadd.xlane.f32.xlu0 %v4247_v48  ;;  %v10743_v51 = vpop.xlane.xlu1 %3833  ;;  %v5434_v49 = vsel %vm3017_vm3, 1.0, %v13025_v21  ;;  %v13152_v48 = vmax.f32 %v13151_v58, 0.0  ;;  %v3890_v16 = vadd.f32 %v3889_v25, %v3888_v0  ;;  %v3948_v44 = vadd.f32 %v3947_v26, %v10107_v50  ;;  %v13158_v20 = vld [vmem:[#allocation2_spill] sm:$0xff]  ;;  %v10775_v0 = vld [vmem:[%s12086_s2 + $0x8] sm:$0xff] }
 0x37f   :  { %13144 = vst [vmem:[#allocation80_spill] sm:$0xff] %v10743_v51  ;;  %v10745_v22 = vpop.xlane.xlu0 %3830  ;;  %v3961_v17 = vadd.f32 %v3960_v30, %v10213_v11  ;;  %v13156_v7 = vmax.f32 %v13155_v47, 0.0  ;;  %v3912_v39 = vadd.f32 %v3911_v29, %v13157_v3  ;;  %v3925_v10 = vadd.f32 %v3924_v4, %v13158_v20 }
 0x380   :  { %13145 = vst [vmem:[#allocation123_spill] sm:$0xff] %v10745_v22  ;;  %vm3020_vm4 = vcmp.gt.f32.partialorder %v13152_v48, 0.0  ;;  %v3936_v31 = vadd.f32 %v3935_v54, %v10009_v8  ;;  %v3402_v50 = vmul.f32 %v10775_v0, %v5435_v24  ;;  %v4262_v11 = vsel %vm792_vm1, %v3400_v12, 0.0  ;;  %v13161_v12 = vld [vmem:[#allocation129_spill] sm:$0xff] }
 0x381   :  { %4257 = vadd.xlane.f32.xlu1 %v4256_v1  ;;  %vm3019_vm5 = vcmp.gt.f32.partialorder %v13156_v7, 0.0  ;;  %v4259_v25 = vsel %vm792_vm1, %v3399_v6, 0.0  ;;  %v3401_v26 = vmul.f32 %v10421_v13, %v5434_v49  ;;  %v5437_v30 = vsel %vm3020_vm4, 1.0, %v13025_v21  ;;  %v13159_v1 = vld [vmem:[#allocation128_spill] sm:$0xff] }
 0x382   :  { %4254 = vadd.xlane.f32.xlu0 %v4253_v46  ;;  %v10763_v60 = vpop.xlane.xlu1 %3839  ;;  %v10783_v36 = vadd.f32 %v3865_v43, %v10685_v34  ;;  %v10785_v45 = vadd.f32 %v3878_v2, %v3877_v61  ;;  %v3900_v8 = vrot.slane %v3899_v59, 4  ;;  %v5436_v56 = vsel %vm3019_vm5, 1.0, %v13025_v21 }
 0x383   :  { %13153 = vst [vmem:[#allocation81_spill] sm:$0xff] %v10763_v60  ;;  %v10765_v55 = vpop.xlane.xlu0 %3836  ;;  %v3949_v29 = vadd.f32 %v3948_v44, %v10105_v38  ;;  %v3962_v53 = vadd.f32 %v3961_v17, %v10211_v40  ;;  %v13160_v46 = vmax.f32 %v13159_v1, 0.0  ;;  %v13162_v6 = vmax.f32 %v13161_v12, 0.0  ;;  %v13163_v44 = vld [vmem:[#allocation86_spill] sm:$0xff]  ;;  %v13168_v1 = vld [vmem:[#allocation169_spill] sm:$0xff] }
 0x384   :  { %13154 = vst [vmem:[#allocation82_spill] sm:$0xff] %v10765_v55  ;;  %v3891_v34 = vrot.slane %v3890_v16, 1  ;;  %v3913_v43 = vrot.slane %v3912_v39, 4  ;;  %v3937_v61 = vadd.f32 %v3936_v31, %v10036_v5  ;;  %v3404_v24 = vmul.f32 %v10437_v35, %v5437_v30  ;;  %v13165_v31 = vld [vmem:[#allocation93_spill] sm:$0xff]  ;;  %v13243_v55 = vld [vmem:[#allocation110_spill] sm:$0xff] }
 0x385   :  { %4263 = vadd.xlane.f32.xlu1 %v4262_v11  ;;  %vm3022_vm6 = vcmp.gt.f32.partialorder %v13160_v46, 0.0  ;;  %vm3021_vm7 = vcmp.gt.f32.partialorder %v13162_v6, 0.0  ;;  %v3926_v2 = vrot.slane %v3925_v10, 4  ;;  %v4268_v19 = vsel %vm792_vm1, %v3402_v50, 0.0  ;;  %v13169_v12 = vld [vmem:[#allocation25_spill] sm:$0xff] }
 0x386   :  { %4260 = vadd.xlane.f32.xlu0 %v4259_v25  ;;  %v4054_v4 = vpop.xlane.xlu1 %4053  ;;  %v4265_v38 = vsel %vm792_vm1, %v3401_v26, 0.0  ;;  %v3403_v40 = vmul.f32 %v10445_v57, %v5436_v56  ;;  %v5439_v58 = vsel %vm3022_vm6, 1.0, %v13025_v21  ;;  %v5438_v48 = vsel %vm3021_vm7, 1.0, %v13025_v21  ;;  %v13167_v25 = vld [vmem:[#allocation165_spill] sm:$0xff] }
 0x387   :  { %v4051_v54 = vpop.xlane.xlu0 %4050  ;;  %v13164_v17 = vmax.f32 %v13163_v44, 0.0  ;;  %v3901_v5 = vadd.f32 %v3900_v8, %v3899_v59  ;;  %v3950_v47 = vadd.f32 %v3949_v29, %v10123_v27  ;;  %v3963_v7 = vadd.f32 %v3962_v53, %v10231_v63  ;;  %v10814_v27 = vld [vmem:[%s12086_s2 + $0x20] sm:$0xff] }
 0x388   :  { %v4433_v49 = vadd.f32 %v4054_v4, %v4051_v54  ;;  %v13166_v50 = vmax.f32 %v13165_v31, 0.0  ;;  %v3914_v11 = vadd.f32 %v3913_v43, %v3912_v39  ;;  %v3938_v26 = vadd.f32 %v3937_v61, %v13167_v25  ;;  %v13174_v31 = vld [vmem:[#allocation101_spill] sm:$0xff] }
 0x389   :  { %4269 = vadd.xlane.f32.xlu1 %v4268_v19  ;;  %vm3024_vm8 = vcmp.gt.f32.partialorder %v13164_v17, 0.0  ;;  %v4274_v56 = vsel %vm792_vm1, %v3404_v24, 0.0  ;;  %v4271_v4 = vsel %vm792_vm1, %v3403_v40, 0.0  ;;  %v3406_v54 = vmul.f32 %v10463_v23, %v5439_v58  ;;  %v13170_v24 = vld [vmem:[#allocation91_spill] sm:$0xff]  ;;  %v10838_v17 = vld [vmem:[%s12086_s2 + $0x30] sm:$0xff] }
 0x38a   :  { %4266 = vadd.xlane.f32.xlu0 %v4265_v38  ;;  %v4060_v3 = vpop.xlane.xlu1 %4059  ;;  %vm3023_vm9 = vcmp.gt.f32.partialorder %v13166_v50, 0.0  ;;  %v3405_v63 = vmul.f32 %v10814_v27, %v5438_v48  ;;  %v5441_v59 = vsel %vm3024_vm8, 1.0, %v13025_v21  ;;  %v10818_v8 = vadd.f32 %v3891_v34, %v3890_v16  ;;  %v13172_v38 = vld [vmem:[#allocation105_spill] sm:$0xff] }
 0x38b   :  { %v4057_v20 = vpop.xlane.xlu0 %4056  ;;  %v3927_v39 = vadd.f32 %v3926_v2, %v3925_v10  ;;  %v5440_v53 = vsel %vm3023_vm9, 1.0, %v13025_v21  ;;  %v3951_v46 = vadd.f32 %v3950_v47, %v13168_v1  ;;  %v3964_v6 = vadd.f32 %v3963_v7, %v13169_v12  ;;  %v10830_v2 = vld [vmem:[%s12086_s2 + $0x38] sm:$0xff] }
 0x38c   :  { %v4434_v30 = vadd.f32 %v4433_v49, %v4057_v20  ;;  %v13171_v19 = vmax.f32 %v13170_v24, 0.0  ;;  %v13173_v40 = vmax.f32 %v13172_v38, 0.0  ;;  %v3902_v16 = vrot.slane %v3901_v5, 2 }
 0x38d   :  { %4275 = vadd.xlane.f32.xlu1 %v4274_v56  ;;  %v3939_v34 = vrot.slane %v3938_v26, 4  ;;  %v3408_v49 = vmul.f32 %v10830_v2, %v5441_v59  ;;  %v3915_v58 = vrot.slane %v3914_v11, 2  ;;  %v4280_v48 = vsel %vm792_vm1, %v3406_v54, 0.0 }
 0x38e   :  { %4272 = vadd.xlane.f32.xlu0 %v4271_v4  ;;  %v4435_v29 = vadd.f32 %v4434_v30, %v4060_v3  ;;  %v4066_v43 = vpop.xlane.xlu1 %4065  ;;  %vm3026_vm10 = vcmp.gt.f32.partialorder %v13171_v19, 0.0  ;;  %vm3025_vm11 = vcmp.gt.f32.partialorder %v13173_v40, 0.0  ;;  %v4277_v44 = vsel %vm792_vm1, %v3405_v63, 0.0  ;;  %v13176_v63 = vld [vmem:[#allocation51_spill] sm:$0xff] }
 0x38f   :  { %v4063_v61 = vpop.xlane.xlu0 %4062  ;;  %v3407_v47 = vmul.f32 %v10838_v17, %v5440_v53  ;;  %v5443_v3 = vsel %vm3026_vm10, 1.0, %v13025_v21  ;;  %v5442_v20 = vsel %vm3025_vm11, 1.0, %v13025_v21  ;;  %v13175_v50 = vmax.f32 %v13174_v31, 0.0 }
 0x390   :  { %v4436_v10 = vadd.f32 %v4435_v29, %v4063_v61  ;;  %v3928_v25 = vrot.slane %v3927_v39, 2  ;;  %v3952_v30 = vrot.slane %v3951_v46, 4  ;;  %v3965_v56 = vrot.slane %v3964_v6, 4 }
 0x391   :  { %4281 = vadd.xlane.f32.xlu1 %v4280_v48  ;;  %vm3028_vm12 = vcmp.gt.f32.partialorder %v13175_v50, 0.0  ;;  %v13177_v59 = vmax.f32 %v13176_v63, 0.0  ;;  %v3903_v29 = vadd.f32 %v3902_v16, %v3901_v5  ;;  %v3940_v53 = vadd.f32 %v3939_v34, %v3938_v26  ;;  %v13178_v48 = vld [vmem:[#allocation102_spill] sm:$0xff] }
 0x392   :  { %4278 = vadd.xlane.f32.xlu0 %v4277_v44  ;;  %v4437_v7 = vadd.f32 %v4436_v10, %v4066_v43  ;;  %v4072_v4 = vpop.xlane.xlu1 %4071  ;;  %v4286_v12 = vsel %vm792_vm1, %v3408_v49, 0.0  ;;  %v4283_v43 = vsel %vm792_vm1, %v3407_v47, 0.0  ;;  %v3410_v61 = vmul.f32 %v10775_v0, %v5443_v3  ;;  %v13180_v47 = vld [vmem:[#allocation41_spill] sm:$0xff] }
 0x393   :  { %v4069_v54 = vpop.xlane.xlu0 %4068  ;;  %vm3027_vm13 = vcmp.gt.f32.partialorder %v13177_v59, 0.0  ;;  %v3409_v24 = vmul.f32 %v10421_v13, %v5442_v20  ;;  %v5445_v19 = vsel %vm3028_vm12, 1.0, %v13025_v21  ;;  %v3916_v38 = vadd.f32 %v3915_v58, %v3914_v11 }
 0x394   :  { %v4438_v1 = vadd.f32 %v4437_v7, %v4069_v54  ;;  %v5444_v10 = vsel %vm3027_vm13, 1.0, %v13025_v21  ;;  %v13179_v5 = vmax.f32 %v13178_v48, 0.0  ;;  %v3929_v26 = vadd.f32 %v3928_v25, %v3927_v39 }
 0x395   :  { %4287 = vadd.xlane.f32.xlu1 %v4286_v12  ;;  %v3953_v16 = vadd.f32 %v3952_v30, %v3951_v46  ;;  %v3966_v34 = vadd.f32 %v3965_v56, %v3964_v6  ;;  %v13181_v7 = vmax.f32 %v13180_v47, 0.0  ;;  %v3904_v3 = vrot.slane %v3903_v29, 1  ;;  %v13182_v30 = vld [vmem:[#allocation135_spill] sm:$0xff] }
 0x396   :  { %v4439_v40 = vadd.f32 %v4438_v1, %v4072_v4  ;;  %4284 = vadd.xlane.f32.xlu0 %v4283_v43  ;;  %vm3030_vm14 = vcmp.gt.f32.partialorder %v13179_v5, 0.0  ;;  %v4078_v49 = vpop.xlane.xlu1 %4077  ;;  %v3941_v20 = vrot.slane %v3940_v53, 2  ;;  %v3412_v11 = vmul.f32 %v10437_v35, %v5445_v19 }
 0x397   :  { %v4075_v44 = vpop.xlane.xlu0 %4074  ;;  %vm3029_vm15 = vcmp.gt.f32.partialorder %v13181_v7, 0.0  ;;  %v4292_v58 = vsel %vm792_vm1, %v3410_v61, 0.0  ;;  %v4289_v50 = vsel %vm792_vm1, %v3409_v24, 0.0  ;;  %v3411_v4 = vmul.f32 %v10445_v57, %v5444_v10 }
 0x398   :  { %v4440_v31 = vrot.slane %v4439_v40, 4  ;;  %v5447_v39 = vsel %vm3030_vm14, 1.0, %v13025_v21  ;;  %v4446_v6 = vadd.f32 %v4078_v49, %v4075_v44  ;;  %v5446_v25 = vsel %vm3029_vm15, 1.0, %v13025_v21 }
 0x399   :  { %4293 = vadd.xlane.f32.xlu1 %v4292_v58  ;;  %v13183_v56 = vmax.f32 %v13182_v30, 0.0  ;;  %v3917_v54 = vrot.slane %v3916_v38, 1  ;;  %v3930_v63 = vrot.slane %v3929_v26, 1  ;;  %v3954_v35 = vrot.slane %v3953_v16, 2  ;;  %v13190_v30 = vld [vmem:[#allocation149_spill] sm:$0xff] }
 0x39a   :  { %v4441_v46 = vadd.f32 %v4440_v31, %v4439_v40  ;;  %4290 = vadd.xlane.f32.xlu0 %v4289_v50  ;;  %v3967_v59 = vrot.slane %v3966_v34, 2  ;;  %v4084_v1 = vpop.xlane.xlu1 %4083  ;;  %v3942_v43 = vadd.f32 %v3941_v20, %v3940_v53  ;;  %v4298_v19 = vsel %vm792_vm1, %v3412_v11, 0.0 }
 0x39b   :  { %vm3031_vm0 = vcmp.gt.f32.partialorder %v13183_v56, 0.0  ;;  %v4081_v12 = vpop.xlane.xlu0 %4080  ;;  %v4295_v40 = vsel %vm792_vm1, %v3411_v4, 0.0  ;;  %v3414_v10 = vmul.f32 %v10463_v23, %v5447_v39  ;;  %v3413_v48 = vmul.f32 %v10814_v27, %v5446_v25  ;;  %v13184_v39 = vld [vmem:[#allocation108_spill] sm:$0xff] }
 0x39c   :  { %v4442_v61 = vrot.slane %v4441_v46, 2  ;;  %v4447_v24 = vadd.f32 %v4446_v6, %v4081_v12  ;;  %v5448_v5 = vsel %vm3031_vm0, 1.0, %v13025_v21  ;;  %v10870_v49 = vadd.f32 %v3904_v3, %v3903_v29  ;;  %v13192_v12 = vld [vmem:[#allocation75_spill] sm:$0xff] }
 0x39d   :  { %4299 = vadd.xlane.f32.xlu1 %v4298_v19  ;;  %v10872_v7 = vadd.f32 %v3917_v54, %v3916_v38  ;;  %v10874_v53 = vadd.f32 %v3930_v63, %v3929_v26  ;;  %v3955_v20 = vadd.f32 %v3954_v35, %v3953_v16  ;;  %v3968_v31 = vadd.f32 %v3967_v59, %v3966_v34 }
 0x39e   :  { %v4443_v44 = vadd.f32 %v4442_v61, %v4441_v46  ;;  %4296 = vadd.xlane.f32.xlu0 %v4295_v40  ;;  %v4448_v47 = vadd.f32 %v4447_v24, %v4084_v1  ;;  %v4090_v11 = vpop.xlane.xlu1 %4089  ;;  %v3415_v4 = vmul.f32 %v10838_v17, %v5448_v5  ;;  %v13185_v6 = vmax.f32 %v13184_v39, 0.0  ;;  %v13188_v46 = vld [vmem:[#allocation69_spill] sm:$0xff] }
 0x39f   :  { %v4087_v58 = vpop.xlane.xlu0 %4086  ;;  %v3943_v3 = vrot.slane %v3942_v43, 1  ;;  %vm4721_vm3 = vcmask 0   ;;  %v4304_v38 = vsel %vm792_vm1, %v3414_v10, 0.0  ;;  %v4301_v26 = vsel %vm792_vm1, %v3413_v48, 0.0  ;;  %v13194_v10 = vld [vmem:[#allocation166_spill] sm:$0xff] }
 0x3a0   :  { %v4444_v50 = vrot.slane %v4443_v44, 1  ;;  %v4449_v23 = vadd.f32 %v4448_v47, %v4087_v58  ;;  %vm10879_vm2 = vcmp.gt.f32.partialorder %v13185_v6, 0.0  ;;  %v13189_v25 = vmax.f32 %v13188_v46, 0.0  ;;  %v13196_v47 = vld [vmem:[#allocation67_spill] sm:$0xff]  ;;  %v13198_v58 = vld [vmem:[#allocation141_spill] sm:$0xff] }
 0x3a1   :  { %4305 = vadd.xlane.f32.xlu1 %v4304_v38  ;;  %v13191_v56 = vmax.f32 %v13190_v30, 0.0  ;;  %v3956_v54 = vrot.slane %v3955_v20, 1  ;;  %v3969_v63 = vrot.slane %v3968_v31, 1  ;;  %v5451_v1 = vsel %vm10879_vm2, 1.0, %v13025_v21  ;;  %v13200_v6 = vld [vmem:[#allocation139_spill] sm:$0xff] }
 0x3a2   :  { %v10885_v16 = vadd.f32 %v4444_v50, %v4443_v44  ;;  %4302 = vadd.xlane.f32.xlu0 %v4301_v26  ;;  %v4450_v34 = vadd.f32 %v4449_v23, %v4090_v11  ;;  %vm3042_vm4 = vcmp.gt.f32.partialorder %v13189_v25, 0.0  ;;  %v4096_v35 = vpop.xlane.xlu1 %4095  ;;  %v13193_v61 = vmax.f32 %v13192_v12, 0.0 }
 0x3a3   :  { %vm3050_vm5 = vcmp.gt.f32.partialorder %v13191_v56, 0.0  ;;  %v4093_v59 = vpop.xlane.xlu0 %4092  ;;  %v4307_v40 = vsel %vm792_vm1, %v3415_v4, 0.0  ;;  %v13195_v48 = vmax.f32 %v13194_v10, 0.0  ;;  %v5459_v5 = vsel %vm3042_vm4, 1.0, %v13025_v21 }
 0x3a4   :  { %vm3058_vm6 = vcmp.gt.f32.partialorder %v13193_v61, 0.0  ;;  %v4657_v24 = vadd.f32 1e-09, %v10885_v16  ;;  %4738 = vst.msk [vmem:[%s12087_s6] sm:$0x1] %vm4721_vm3, %v10885_v16  ;;  %v4451_v19 = vadd.f32 %v4450_v34, %v4093_v59  ;;  %v5467_v44 = vsel %vm3050_vm5, 1.0, %v13025_v21 }
 0x3a5   :  { %vm3066_vm7 = vcmp.gt.f32.partialorder %v13195_v48, 0.0  ;;  %v13197_v11 = vmax.f32 %v13196_v47, 0.0  ;;  %v13199_v50 = vmax.f32 %v13198_v58, 0.0  ;;  %v5475_v39 = vsel %vm3058_vm6, 1.0, %v13025_v21 }
 0x3a6   :  { %5806 = vrcp.f32 %v4657_v24  ;;  %v4452_v23 = vadd.f32 %v4451_v19, %v4096_v35  ;;  %4308 = vadd.xlane.f32.xlu0 %v4307_v40  ;;  %v13201_v4 = vmax.f32 %v13200_v6, 0.0  ;;  %v10914_v29 = vadd.f32 %v3943_v3, %v3942_v43  ;;  %v4102_v26 = vpop.xlane.xlu1 %4101  ;;  %v13205_v24 = vld [vmem:[#allocation160_spill] sm:$0xff] }
 0x3a7   :  { %vm3033_vm8 = vcmp.gt.f32.partialorder %v13197_v11, 0.0  ;;  %vm3043_vm9 = vcmp.gt.f32.partialorder %v13199_v50, 0.0  ;;  %v10916_v38 = vadd.f32 %v3956_v54, %v3955_v20  ;;  %v4099_v34 = vpop.xlane.xlu0 %4098  ;;  %v3418_v46 = vmul.f32 %v10775_v0, %v5451_v1 }
 0x3a8   :  { %vm3041_vm10 = vcmp.gt.f32.partialorder %v13201_v4, 0.0  ;;  %13202 = vst [vmem:[#allocation122_spill] sm:$0xff] %v10914_v29  ;;  %v5483_v25 = vsel %vm3066_vm7, 1.0, %v13025_v21  ;;  %v10920_v30 = vadd.f32 %v3969_v63, %v3968_v31  ;;  %v4453_v56 = vrot.slane %v4452_v23, 4  ;;  %v13317_v29 = vld [vmem:[#allocation155_spill] sm:$0xff] }
 0x3a9   :  { %13203 = vst [vmem:[#allocation83_spill] sm:$0xff] %v10916_v38  ;;  %v5450_v35 = vsel %vm3033_vm8, 1.0, %v13025_v21  ;;  %v5460_v59 = vsel %vm3043_vm9, 1.0, %v13025_v21  ;;  %v3426_v12 = vmul.f32 %v10775_v0, %v5459_v5  ;;  %v3434_v43 = vmul.f32 %v10775_v0, %v5467_v44  ;;  %v13207_v5 = vld [vmem:[#allocation150_spill] sm:$0xff] }
 0x3aa   :  { %13204 = vst [vmem:[#allocation84_spill] sm:$0xff] %v10920_v30  ;;  %v3442_v20 = vmul.f32 %v10775_v0, %v5475_v39  ;;  %v5458_v3 = vsel %vm3041_vm10, 1.0, %v13025_v21  ;;  %v4454_v54 = vadd.f32 %v4453_v56, %v4452_v23  ;;  %v4459_v61 = vadd.f32 %v4102_v26, %v4099_v34  ;;  %v4108_v63 = vpop.xlane.xlu1 %4107 }
 0x3ab   :  { %v3450_v1 = vmul.f32 %v10775_v0, %v5483_v25  ;;  %v13206_v31 = vmax.f32 %v13205_v24, 0.0  ;;  %v4105_v19 = vpop.xlane.xlu0 %4104  ;;  %v10932_v40 = vsel %vm792_vm1, %v3418_v46, 0.0  ;;  %v3417_v10 = vmul.f32 %v10421_v13, %v5450_v35  ;;  %v13209_v0 = vld [vmem:[#allocation109_spill] sm:$0xff] }
 0x3ac   :  { %v3427_v48 = vmul.f32 %v10445_v57, %v5460_v59  ;;  %v13208_v44 = vmax.f32 %v13207_v5, 0.0  ;;  %v4455_v47 = vrot.slane %v4454_v54, 2  ;;  %v4460_v11 = vadd.f32 %v4459_v61, %v4105_v19  ;;  %v13215_v5 = vld [vmem:[#allocation151_spill] sm:$0xff] }
 0x3ad   :  { %vm3059_vm11 = vcmp.gt.f32.partialorder %v13206_v31, 0.0  ;;  %v3425_v58 = vmul.f32 %v10421_v13, %v5458_v3  ;;  %v13210_v50 = vmax.f32 %v13209_v0, 0.0  ;;  %v10942_v23 = vsel %vm792_vm1, %v3426_v12, 0.0  ;;  %v13211_v12 = vld [vmem:[#allocation46_spill] sm:$0xff]  ;;  %v10977_v31 = vld [vmem:[%s12086_s2 + $0x10] sm:$0xff] }
 0x3ae   :  { %vm3049_vm12 = vcmp.gt.f32.partialorder %v13208_v44, 0.0  ;;  %v10945_v39 = vsel %vm792_vm1, %v3434_v43, 0.0  ;;  %v10948_v6 = vsel %vm792_vm1, %v3442_v20, 0.0  ;;  %v5476_v57 = vsel %vm3059_vm11, 1.0, %v13025_v21  ;;  %v4114_v46 = vpop.xlane.xlu1 %4113 }
 0x3af   :  { %vm3036_vm13 = vcmp.gt.f32.partialorder %v13210_v50, 0.0  ;;  %v4456_v4 = vadd.f32 %v4455_v47, %v4454_v54  ;;  %v4461_v26 = vadd.f32 %v4460_v11, %v4108_v63  ;;  %v10952_v34 = vsel %vm792_vm1, %v3450_v1, 0.0  ;;  %v4111_v25 = vpop.xlane.xlu0 %4110  ;;  %v5490_v1 = vld [vmem:[%s12088_s4] ss:$0 sm:$0xff]  ;;  %v13219_v11 = vld [vmem:[#allocation167_spill] sm:$0xff] }
 0x3b0   :  { %v5466_v13 = vsel %vm3049_vm12, 1.0, %v13025_v21  ;;  %v10956_v56 = vsel %vm792_vm1, %v3417_v10, 0.0  ;;  %v10959_v35 = vsel %vm792_vm1, %v3427_v48, 0.0  ;;  %v5453_v59 = vsel %vm3036_vm13, 1.0, %v13025_v21  ;;  %v5807_v3 = vpop.eup %5806  ;;  %v5927_v10 = vld [vmem:[%s12086_s2] sm:$0xff] }
 0x3b1   :  { %v13212_v43 = vmax.f32 %v13211_v12, 0.0  ;;  %v4457_v54 = vrot.slane %v4456_v4, 1  ;;  %v4462_v61 = vadd.f32 %v4461_v26, %v4111_v25  ;;  %v10972_v24 = vsel %vm792_vm1, %v3425_v58, 0.0  ;;  %v11005_v12 = vld [vmem:[%s12086_s2 + $0x18] sm:$0xff] }
 0x3b2   :  { %v3443_v63 = vmul.f32 %v10977_v31, %v5476_v57  ;;  %v4674_v19 = vmul.f32 %v5807_v3, %v10683_v15  ;;  %v3433_v48 = vmul.f32 %v5927_v10, %v5466_v13  ;;  %v13216_v44 = vmax.f32 %v13215_v5, 0.0  ;;  %5047 = vperm.xlu1 %5516, %v5490_v1   ;;  %v4120_v13 = vpop.xlane.xlu1 %4119  ;;  %v13223_v3 = vld [vmem:[#allocation168_spill] sm:$0xff]  ;;  %v13227_v5 = vld [vmem:[#allocation143_spill] sm:$0xff] }
 0x3b3   :  { %vm10964_vm14 = vcmp.gt.f32.partialorder %v13212_v43, 0.0  ;;  %v13220_v58 = vmax.f32 %v13219_v11, 0.0  ;;  %vm4641_vm2 = vcmp.eq.f32.partialorder %v10885_v16, 0.0  ;;  %v10997_v15 = vadd.f32 %v4457_v54, %v4456_v4  ;;  %v4117_v25 = vpop.xlane.xlu0 %4116  ;;  %v13225_v4 = vld [vmem:[#allocation12_spill] sm:$0xff]  ;;  %v5492_v54 = vld [vmem:[%s12088_s4 + $0x2] ss:$0 sm:$0xff] }
 0x3b4   :  { %vm10986_vm15 = vcmp.gt.f32.partialorder %v13216_v44, 0.0  ;;  %v4463_v50 = vadd.f32 %v4462_v61, %v4114_v46  ;;  %v5474_v57 = vsel %vm10964_vm14, 1.0, %v13025_v21  ;;  %v4705_v26 = vsel %vm4641_vm2, 0.0, %v4674_v19 }
 0x3b5   :  { %vm10992_vm0 = vcmp.gt.f32.partialorder %v13220_v58, 0.0  ;;  %v3420_v43 = vmul.f32 %v11005_v12, %v5453_v59  ;;  %v13224_v16 = vmax.f32 %v13223_v3, 0.0  ;;  %v13226_v46 = vmax.f32 %v13225_v4, 0.0  ;;  %4722 = vst.msk [vmem:[%s12089_s5] sm:$0x1] %vm4721_vm3, %v4705_v26  ;;  %v13231_v58 = vld [vmem:[#allocation152_spill] sm:$0xff] }
 0x3b6   :  { %v4658_v20 = vadd.f32 1e-09, %v10997_v15  ;;  %4739 = vst.msk [vmem:[%s12087_s6 + $0x1] sm:$0x1] %vm4721_vm3, %v10997_v15  ;;  %v4464_v59 = vadd.f32 %v4463_v50, %v4117_v25  ;;  %v5469_v61 = vsel %vm10986_vm15, 1.0, %v13025_v21  ;;  %v5482_v1 = vsel %vm10992_vm0, 1.0, %v13025_v21  ;;  %5053 = vperm.xlu1 %5516, %v5492_v54   ;;  %v4126_v4 = vpop.xlane.xlu1 %4125 }
 0x3b7   :  { %vm3068_vm4 = vcmp.gt.f32.partialorder %v13224_v16, 0.0  ;;  %vm3035_vm5 = vcmp.gt.f32.partialorder %v13226_v46, 0.0  ;;  %v3441_v19 = vmul.f32 %v5927_v10, %v5474_v57  ;;  %v13228_v44 = vmax.f32 %v13227_v5, 0.0  ;;  %v13235_v25 = vld [vmem:[#allocation162_spill] sm:$0xff]  ;;  %v4123_v46 = vpop.xlane.xlu0 %4122 }
 0x3b8   :  { %v13232_v50 = vmax.f32 %v13231_v58, 0.0  ;;  %v13236_v47 = vmax.f32 %v13235_v25, 0.0  ;;  %5808 = vrcp.f32 %v4658_v20  ;;  %v4465_v0 = vadd.f32 %v4464_v59, %v4120_v13  ;;  %v5493_v13 = vld [vmem:[%s12088_s4 + $0x3] ss:$0 sm:$0xff] }
 0x3b9   :  { %vm11033_vm6 = vcmp.gt.f32.partialorder %v13228_v44, 0.0  ;;  %v5485_v57 = vsel %vm3068_vm4, 1.0, %v13025_v21  ;;  %v5452_v16 = vsel %vm3035_vm5, 1.0, %v13025_v21  ;;  %v11052_v5 = vsel %vm792_vm1, %v3443_v63, 0.0 }
 0x3ba   :  { %vm11039_vm7 = vcmp.gt.f32.partialorder %v13232_v50, 0.0  ;;  %vm11045_vm8 = vcmp.gt.f32.partialorder %v13236_v47, 0.0  ;;  %v11055_v44 = vsel %vm792_vm1, %v3433_v48, 0.0  ;;  %v3436_v58 = vmul.f32 %v11005_v12, %v5469_v61  ;;  %v13239_v47 = vld [vmem:[#allocation170_spill] sm:$0xff]  ;;  %5056 = vperm.xlu1 %5516, %v5493_v13  }
 0x3bb   :  { %v3449_v50 = vmul.f32 %v5927_v10, %v5482_v1  ;;  %v4466_v25 = vrot.slane %v4465_v0, 4  ;;  %v5462_v20 = vsel %vm11033_vm6, 1.0, %v13025_v21  ;;  %v5468_v63 = vsel %vm11039_vm7, 1.0, %v13025_v21  ;;  %v5491_v10 = vld [vmem:[%s12088_s4 + $0x1] ss:$0 sm:$0xff]  ;;  %v4129_v22 = vpop.xlane.xlu0 %4128 }
 0x3bc   :  { %v5478_v48 = vsel %vm11045_vm8, 1.0, %v13025_v21  ;;  %v11074_v59 = vsel %vm792_vm1, %v3420_v43, 0.0  ;;  %v11077_v54 = vsel %vm792_vm1, %v3441_v19, 0.0  ;;  %v3452_v61 = vmul.f32 %v11005_v12, %v5485_v57  ;;  %v4132_v19 = vpop.xlane.xlu1 %4131  ;;  %5050 = vperm.xlu0 %5517, %v5491_v10   ;;  %v13249_v10 = vld [vmem:[#allocation153_spill] sm:$0xff] }
 0x3bd   :  { %v3419_v1 = vmul.f32 %v10977_v31, %v5452_v16  ;;  %v4467_v11 = vadd.f32 %v4466_v25, %v4465_v0  ;;  %v4472_v26 = vadd.f32 %v4126_v4, %v4123_v46  ;;  %v13240_v60 = vmax.f32 %v13239_v47, 0.0  ;;  %v13247_v25 = vld [vmem:[#allocation140_spill] sm:$0xff] }
 0x3be   :  { %v13244_v51 = vmax.f32 %v13243_v55, 0.0  ;;  %v11094_v57 = vsel %vm792_vm1, %v3436_v58, 0.0  ;;  %v3429_v0 = vmul.f32 %v10814_v27, %v5462_v20  ;;  %v3435_v16 = vmul.f32 %v10977_v31, %v5468_v63 }
 0x3bf   :  { %vm11083_vm9 = vcmp.gt.f32.partialorder %v13240_v60, 0.0  ;;  %v3445_v60 = vmul.f32 %v10814_v27, %v5478_v48  ;;  %v4468_v4 = vrot.slane %v4467_v11, 2  ;;  %v4473_v46 = vadd.f32 %v4472_v26, %v4129_v22 }
 0x3c0   :  { %vm11089_vm10 = vcmp.gt.f32.partialorder %v13244_v51, 0.0  ;;  %v5494_v51 = vld [vmem:[%s12088_s4 + $0x4] ss:$0 sm:$0xff]  ;;  %v11103_v55 = vsel %vm792_vm1, %v3449_v50, 0.0  ;;  %v13248_v13 = vmax.f32 %v13247_v25, 0.0  ;;  %v11108_v58 = vsel %vm792_vm1, %v3452_v61, 0.0  ;;  %v4138_v3 = vpop.xlane.xlu1 %4137 }
 0x3c1   :  { %v11111_v20 = vsel %vm792_vm1, %v3419_v1, 0.0  ;;  %v5484_v22 = vsel %vm11083_vm9, 1.0, %v13025_v21  ;;  %v5455_v63 = vsel %vm11089_vm10, 1.0, %v13025_v21  ;;  %v4469_v48 = vadd.f32 %v4468_v4, %v4467_v11  ;;  %v13253_v61 = vld [vmem:[#allocation159_spill] sm:$0xff]  ;;  %5059 = vperm.xlu1 %5516, %v5494_v51   ;;  %v5495_v51 = vld [vmem:[%s12088_s4 + $0x5] ss:$0 sm:$0xff] }
 0x3c2   :  { %vm3044_vm11 = vcmp.gt.f32.partialorder %v13248_v13, 0.0  ;;  %v4474_v50 = vadd.f32 %v4473_v46, %v4132_v19  ;;  %v13250_v26 = vmax.f32 %v13249_v10, 0.0  ;;  %v13254_v25 = vmax.f32 %v13253_v61, 0.0  ;;  %v4135_v13 = vpop.xlane.xlu0 %4134  ;;  %v5809_v46 = vpop.eup %5808 }
 0x3c3   :  { %v11132_v43 = vsel %vm792_vm1, %v3429_v0, 0.0  ;;  %v11135_v11 = vsel %vm792_vm1, %v3435_v16, 0.0  ;;  %v11138_v19 = vsel %vm792_vm1, %v3445_v60, 0.0  ;;  %v5461_v4 = vsel %vm3044_vm11, 1.0, %v13025_v21  ;;  %v11148_v0 = vld [vmem:[%s12086_s2 + $0x28] sm:$0xff] }
 0x3c4   :  { %vm11121_vm12 = vcmp.gt.f32.partialorder %v13250_v26, 0.0  ;;  %vm11127_vm13 = vcmp.gt.f32.partialorder %v13254_v25, 0.0  ;;  %v4470_v10 = vrot.slane %v4469_v48, 1  ;;  %v4475_v26 = vadd.f32 %v4474_v50, %v4135_v13  ;;  %v13257_v13 = vld [vmem:[#allocation171_spill] sm:$0xff]  ;;  %v4144_v1 = vpop.xlane.xlu1 %4143 }
 0x3c5   :  { %v3451_v61 = vmul.f32 %v10977_v31, %v5484_v22  ;;  %v3422_v16 = vmul.f32 %v11148_v0, %v5455_v63  ;;  %v4676_v60 = vmul.f32 %v5809_v46, %v10783_v36  ;;  %v5471_v25 = vsel %vm11121_vm12, 1.0, %v13025_v21  ;;  %v13261_v36 = vld [vmem:[#allocation68_spill] sm:$0xff]  ;;  %5062 = vperm.xlu1 %5516, %v5495_v51  }
 0x3c6   :  { %v5477_v50 = vsel %vm11127_vm13, 1.0, %v13025_v21  ;;  %v13258_v37 = vmax.f32 %v13257_v13, 0.0  ;;  %vm4642_vm15 = vcmp.eq.f32.partialorder %v10997_v15, 0.0  ;;  %v11165_v22 = vadd.f32 %v4470_v10, %v4469_v48  ;;  %v4141_v9 = vpop.xlane.xlu0 %4140  ;;  %v13265_v13 = vld [vmem:[#allocation145_spill] sm:$0xff] }
 0x3c7   :  { %v4476_v63 = vadd.f32 %v4475_v26, %v4138_v3  ;;  %v13262_v46 = vmax.f32 %v13261_v36, 0.0  ;;  %v4706_v32 = vsel %vm4642_vm15, 0.0, %v4676_v60  ;;  %v13266_v14 = vmax.f32 %v13265_v13, 0.0  ;;  %v13269_v26 = vld [vmem:[#allocation164_spill] sm:$0xff] }
 0x3c8   :  { %vm11160_vm14 = vcmp.gt.f32.partialorder %v13258_v37, 0.0  ;;  %v3428_v37 = vmul.f32 %v11005_v12, %v5461_v4  ;;  %v13268_v15 = vmax.f32 %v13267_v62, 0.0  ;;  %4723 = vst.msk [vmem:[%s12089_s5 + $0x1] sm:$0x1] %vm4721_vm3, %v4706_v32  ;;  %v4659_v48 = vadd.f32 1e-09, %v11165_v22  ;;  %v4150_v36 = vpop.xlane.xlu1 %4149 }
 0x3c9   :  { %vm11169_vm0 = vcmp.gt.f32.partialorder %v13262_v46, 0.0  ;;  %vm3047_vm2 = vcmp.gt.f32.partialorder %v13266_v14, 0.0  ;;  %4740 = vst.msk [vmem:[%s12087_s6 + $0x2] sm:$0x1] %vm4721_vm3, %v11165_v22  ;;  %v4477_v3 = vadd.f32 %v4476_v63, %v4141_v9  ;;  %v5496_v14 = vld [vmem:[%s12088_s4 + $0x6] ss:$0 sm:$0xff]  ;;  %v3438_v62 = vmul.f32 %v11148_v0, %v5471_v25 }
 0x3ca   :  { %vm3053_vm4 = vcmp.gt.f32.partialorder %v13268_v15, 0.0  ;;  %v5487_v4 = vsel %vm11160_vm14, 1.0, %v13025_v21  ;;  %v3444_v32 = vmul.f32 %v11005_v12, %v5477_v50  ;;  %v5454_v10 = vsel %vm11169_vm0, 1.0, %v13025_v21  ;;  %v13273_v60 = vld [vmem:[#allocation172_spill] sm:$0xff]  ;;  %5065 = vperm.xlu1 %5516, %v5496_v14   ;;  %v4147_v46 = vpop.xlane.xlu0 %4146 }
 0x3cb   :  { %v13270_v51 = vmax.f32 %v13269_v26, 0.0  ;;  %v13274_v63 = vmax.f32 %v13273_v60, 0.0  ;;  %5810 = vrcp.f32 %v4659_v48  ;;  %v4478_v31 = vadd.f32 %v4477_v3, %v4144_v1  ;;  %v13277_v26 = vld [vmem:[#allocation132_spill] sm:$0xff]  ;;  %v5497_v48 = vld [vmem:[%s12088_s4 + $0x7] ss:$0 sm:$0xff] }
 0x3cc   :  { %v5464_v12 = vsel %vm3047_vm2, 1.0, %v13025_v21  ;;  %v5470_v50 = vsel %vm3053_vm4, 1.0, %v13025_v21  ;;  %v11214_v47 = vsel %vm792_vm1, %v3451_v61, 0.0  ;;  %v11217_v13 = vsel %vm792_vm1, %v3422_v16, 0.0  ;;  %v4156_v18 = vpop.xlane.xlu1 %4155 }
 0x3cd   :  { %vm11201_vm5 = vcmp.gt.f32.partialorder %v13270_v51, 0.0  ;;  %vm11207_vm6 = vcmp.gt.f32.partialorder %v13274_v63, 0.0  ;;  %v11220_v15 = vsel %vm792_vm1, %v3428_v37, 0.0  ;;  %v13278_v51 = vmax.f32 %v13277_v26, 0.0 }
 0x3ce   :  { %v4479_v1 = vrot.slane %v4478_v31, 4  ;;  %v3454_v3 = vmul.f32 %v11148_v0, %v5487_v4  ;;  %v5480_v61 = vsel %vm11201_vm5, 1.0, %v13025_v21  ;;  %v5486_v16 = vsel %vm11207_vm6, 1.0, %v13025_v21  ;;  %5068 = vperm.xlu1 %5516, %v5497_v48   ;;  %v4153_v25 = vpop.xlane.xlu0 %4152 }
 0x3cf   :  { %vm3032_vm7 = vcmp.gt.f32.partialorder %v13278_v51, 0.0  ;;  %v11235_v37 = vsel %vm792_vm1, %v3438_v62, 0.0  ;;  %v3421_v14 = vmul.f32 %v10814_v27, %v5454_v10  ;;  %v3431_v60 = vmul.f32 %v10838_v17, %v5464_v12  ;;  %v13281_v12 = vld [vmem:[#allocation144_spill] sm:$0xff] }
 0x3d0   :  { %v3437_v63 = vmul.f32 %v10814_v27, %v5470_v50  ;;  %v4480_v26 = vadd.f32 %v4479_v1, %v4478_v31  ;;  %v4485_v51 = vadd.f32 %v4150_v36, %v4147_v46  ;;  %v11241_v4 = vsel %vm792_vm1, %v3444_v32, 0.0  ;;  %v13283_v36 = vld [vmem:[#allocation161_spill] sm:$0xff] }
 0x3d1   :  { %v5449_v9 = vsel %vm3032_vm7, 1.0, %v13025_v21  ;;  %v3447_v28 = vmul.f32 %v10838_v17, %v5480_v61  ;;  %v3453_v62 = vmul.f32 %v10814_v27, %v5486_v16  ;;  %v13280_v10 = vmax.f32 %v13279_v41, 0.0 }
 0x3d2   :  { %v13282_v42 = vmax.f32 %v13281_v12, 0.0  ;;  %v4481_v31 = vrot.slane %v4480_v26, 2  ;;  %v4486_v50 = vadd.f32 %v4485_v51, %v4153_v25  ;;  %v11251_v32 = vsel %vm792_vm1, %v3454_v3, 0.0  ;;  %v4162_v51 = vpop.xlane.xlu1 %4161  ;;  %v4159_v25 = vpop.xlane.xlu0 %4158 }
 0x3d3   :  { %vm3046_vm8 = vcmp.gt.f32.partialorder %v13280_v10, 0.0  ;;  %v13284_v46 = vmax.f32 %v13283_v36, 0.0  ;;  %v11256_v1 = vsel %vm792_vm1, %v3421_v14, 0.0  ;;  %v11259_v48 = vsel %vm792_vm1, %v3431_v60, 0.0 }
 0x3d4   :  { %vm3048_vm9 = vcmp.gt.f32.partialorder %v13282_v42, 0.0  ;;  %13285 = vst [vmem:[#allocation131_spill] sm:$0xff] %v11256_v1  ;;  %13286 = vst [vmem:[#allocation17_spill] sm:$0xff] %v11259_v48  ;;  %v11262_v41 = vsel %vm792_vm1, %v3437_v63, 0.0  ;;  %v3416_v27 = vmul.f32 %v10830_v2, %v5449_v9  ;;  %v4482_v42 = vadd.f32 %v4481_v31, %v4480_v26  ;;  %v13290_v63 = vld [vmem:[#allocation163_spill] sm:$0xff]  ;;  %v13292_v31 = vld [vmem:[#allocation77_spill] sm:$0xff] }
 0x3d5   :  { %vm3062_vm10 = vcmp.gt.f32.partialorder %v13284_v46, 0.0  ;;  %13287 = vst [vmem:[#allocation88_spill] sm:$0xff] %v11262_v41  ;;  %v4487_v61 = vadd.f32 %v4486_v50, %v4156_v18  ;;  %v5463_v16 = vsel %vm3046_vm8, 1.0, %v13025_v21  ;;  %v5465_v3 = vsel %vm3048_vm9, 1.0, %v13025_v21  ;;  %v5811_v9 = vpop.eup %5810  ;;  %v13296_v46 = vld [vmem:[#allocation156_spill] sm:$0xff] }
 0x3d6   :  { %v11268_v10 = vsel %vm792_vm1, %v3447_v28, 0.0  ;;  %v11271_v14 = vsel %vm792_vm1, %v3453_v62, 0.0  ;;  %v5479_v60 = vsel %vm3062_vm10, 1.0, %v13025_v21  ;;  %v13291_v12 = vmax.f32 %v13290_v63, 0.0 }
 0x3d7   :  { %13288 = vst [vmem:[#allocation14_spill] sm:$0xff] %v11268_v10  ;;  %13289 = vst [vmem:[#allocation24_spill] sm:$0xff] %v11271_v14  ;;  %v4483_v26 = vrot.slane %v4482_v42, 1  ;;  %v4488_v18 = vadd.f32 %v4487_v61, %v4159_v25  ;;  %v13293_v50 = vmax.f32 %v13292_v31, 0.0  ;;  %v13297_v28 = vmax.f32 %v13296_v46, 0.0  ;;  %v4754_v25 = vld [vmem:[%s12090_s3] sm:$0xff]  ;;  %v4165_v46 = vpop.xlane.xlu0 %4164 }
 0x3d8   :  { %vm3064_vm11 = vcmp.gt.f32.partialorder %v13291_v12, 0.0  ;;  %v4678_v62 = vmul.f32 %v5811_v9, %v10785_v45  ;;  %v11290_v63 = vsel %vm792_vm1, %v3416_v27, 0.0  ;;  %v3430_v12 = vmul.f32 %v11148_v0, %v5463_v16  ;;  %v4755_v31 = vld [vmem:[%s12090_s3 + $0x8] sm:$0xff]  ;;  %v4758_v16 = vld [vmem:[%s12090_s3 + $0x20] sm:$0xff]  ;;  %v4168_v9 = vpop.xlane.xlu1 %4167 }
 0x3d9   :  { %vm11278_vm12 = vcmp.gt.f32.partialorder %v13293_v50, 0.0  ;;  %vm11284_vm13 = vcmp.gt.f32.partialorder %v13297_v28, 0.0  ;;  %13300 = vst [vmem:[#allocation10_spill] sm:$0xff] %v11290_v63  ;;  %v3432_v61 = vmul.f32 %v10830_v2, %v5465_v3  ;;  %vm4643_vm14 = vcmp.eq.f32.partialorder %v11165_v22, 0.0 }
 0x3da   :  { %v11301_v50 = vadd.f32 %v4483_v26, %v4482_v42  ;;  %v4489_v45 = vadd.f32 %v4488_v18, %v4162_v51  ;;  %v5481_v27 = vsel %vm3064_vm11, 1.0, %v13025_v21  ;;  %v4707_v3 = vsel %vm4643_vm14, 0.0, %v4678_v62  ;;  %v4759_v42 = vld [vmem:[%s12090_s3 + $0x28] sm:$0xff]  ;;  %v4756_v62 = vld [vmem:[%s12090_s3 + $0x10] sm:$0xff] }
 0x3db   :  { %v3446_v28 = vmul.f32 %v11148_v0, %v5479_v60  ;;  %v5456_v52 = vsel %vm11278_vm12, 1.0, %v13025_v21  ;;  %v5472_v22 = vsel %vm11284_vm13, 1.0, %v13025_v21  ;;  %4724 = vst.msk [vmem:[%s12089_s5 + $0x2] sm:$0x1] %vm4721_vm3, %v4707_v3  ;;  %v11327_v33 = vmul.f32 16.0, %v4754_v25  ;;  %4317 = vadd.xlane.f32.xlu0 %v10932_v40 }
 0x3dc   :  { %v4660_v51 = vadd.f32 1e-09, %v11301_v50  ;;  %4741 = vst.msk [vmem:[%s12087_s6 + $0x3] sm:$0x1] %vm4721_vm3, %v11301_v50  ;;  %v4490_v0 = vadd.f32 %v4489_v45, %v4165_v46  ;;  %v11329_v60 = vmul.f32 16.0, %v4755_v31  ;;  %v11332_v26 = vsel %vm792_vm1, %v3430_v12, 0.0  ;;  %v4174_v31 = vpop.xlane.xlu1 %4173 }
 0x3dd   :  { %13302 = vst [vmem:[#allocation65_spill] sm:$0xff] %v11332_v26  ;;  %v11335_v18 = vsel %vm792_vm1, %v3432_v61, 0.0  ;;  %vm4786_vm15 = vcmask 130048   ;;  %v11337_v36 = vmul.f32 16.0, %v4758_v16  ;;  %v3448_v25 = vmul.f32 %v10830_v2, %v5481_v27  ;;  %v4757_v12 = vld [vmem:[%s12090_s3 + $0x18] sm:$0xff]  ;;  %v4171_v61 = vpop.xlane.xlu0 %4170 }
 0x3de   :  { %13301 = vst [vmem:[#allocation130_spill] sm:$0xff] %v11329_v60  ;;  %13303 = vst [vmem:[#allocation74_spill] sm:$0xff] %v11335_v18  ;;  %5812 = vrcp.f32 %v4660_v51  ;;  %v4491_v3 = vadd.f32 %v4490_v0, %v4168_v9  ;;  %v11343_v45 = vmul.f32 16.0, %v4759_v42  ;;  %v11349_v46 = vsel %vm792_vm1, %v3446_v28, 0.0  ;;  %v13307_v51 = vld [vmem:[#allocation174_spill] sm:$0xff] }
 0x3df   :  { %13304 = vst [vmem:[#allocation95_spill] sm:$0xff] %v11337_v36  ;;  %13306 = vst [vmem:[#allocation96_spill] sm:$0xff] %v11349_v46  ;;  %v3423_v16 = vmul.f32 %v10838_v17, %v5456_v52  ;;  %v11353_v30 = vmul.f32 %v10838_v17, %v5472_v22  ;;  %v13308_v9 = vmax.f32 %v13307_v51, 0.0  ;;  %v11361_v0 = vmul.f32 16.0, %v4756_v62  ;;  %v13312_v46 = vld [vmem:[#allocation66_spill] sm:$0xff]  ;;  %4341 = vadd.xlane.f32.xlu0 %v10942_v23 }
 0x3e0   :  { %13305 = vst [vmem:[#allocation89_spill] sm:$0xff] %v11343_v45  ;;  %v4492_v42 = vrot.slane %v4491_v3, 4  ;;  %v4787_v38 = vsel %vm4786_vm15, %v11327_v33, -inf  ;;  %v4788_v28 = vsel %vm4786_vm15, %v11329_v60, -inf  ;;  %v13313_v52 = vmax.f32 %v13312_v46, 0.0  ;;  %v4180_v10 = vpop.xlane.xlu1 %4179 }
 0x3e1   :  { %vm11357_vm0 = vcmp.gt.f32.partialorder %v13308_v9, 0.0  ;;  %13311 = vst [vmem:[#allocation111_spill] sm:$0xff] %v11361_v0  ;;  %v11373_v51 = vmul.f32 16.0, %v4757_v12  ;;  %v4789_v9 = vmax.f32 %v4787_v38, %v4788_v28  ;;  %v4805_v18 = vsel %vm4786_vm15, %v11337_v36, -inf  ;;  %v4177_v46 = vpop.xlane.xlu0 %4176 }
 0x3e2   :  { %vm11369_vm2 = vcmp.gt.f32.partialorder %v13313_v52, 0.0  ;;  %v4493_v62 = vadd.f32 %v4492_v42, %v4491_v3  ;;  %v4498_v26 = vadd.f32 %v4174_v31, %v4171_v61  ;;  %v13318_v63 = vmax.f32 %v13317_v29, 0.0 }
 0x3e3   :  { %13316 = vst [vmem:[#allocation94_spill] sm:$0xff] %v11373_v51  ;;  %v4806_v14 = vsel %vm4786_vm15, %v11343_v45, -inf  ;;  %v11383_v52 = vsel %vm792_vm1, %v3448_v25, 0.0  ;;  %v5488_v38 = vsel %vm11357_vm0, 1.0, %v13025_v21  ;;  %v4790_v12 = vrot.slane %v4789_v9, 4  ;;  %4365 = vadd.xlane.f32.xlu0 %v10945_v39 }
 0x3e4   :  { %vm3056_vm4 = vcmp.gt.f32.partialorder %v13318_v63, 0.0  ;;  %13319 = vst [vmem:[#allocation103_spill] sm:$0xff] %v11383_v52  ;;  %v4807_v3 = vmax.f32 %v4805_v18, %v4806_v14  ;;  %v4494_v31 = vrot.slane %v4493_v62, 2  ;;  %v4499_v61 = vadd.f32 %v4498_v26, %v4177_v46  ;;  %v4186_v18 = vpop.xlane.xlu1 %4185  ;;  %v13321_v46 = vld [vmem:[#allocation173_spill] sm:$0xff] }
 0x3e5   :  { %v5457_v29 = vsel %vm11369_vm2, 1.0, %v13025_v21  ;;  %v4796_v63 = vsel %vm4786_vm15, %v11361_v0, -inf  ;;  %v5473_v40 = vsel %vm3056_vm4, 1.0, %v13025_v21  ;;  %v4791_v42 = vmax.f32 %v4789_v9, %v4790_v12  ;;  %v4183_v22 = vpop.xlane.xlu0 %4182 }
 0x3e6   :  { %v4808_v25 = vrot.slane %v4807_v3, 4  ;;  %v4797_v28 = vsel %vm4786_vm15, %v11373_v51, -inf  ;;  %v4495_v27 = vadd.f32 %v4494_v31, %v4493_v62  ;;  %v4500_v52 = vadd.f32 %v4499_v61, %v4180_v10 }
 0x3e7   :  { %v11397_v14 = vsel %vm792_vm1, %v3423_v16, 0.0  ;;  %v3455_v26 = vmul.f32 %v10838_v17, %v5488_v38  ;;  %v13322_v41 = vmax.f32 %v13321_v46, 0.0  ;;  %v4792_v9 = vrot.slane %v4791_v42, 2  ;;  %4389 = vadd.xlane.f32.xlu0 %v10948_v6 }
 0x3e8   :  { %13320 = vst [vmem:[#allocation97_spill] sm:$0xff] %v11397_v14  ;;  %v4809_v12 = vmax.f32 %v4807_v3, %v4808_v25  ;;  %v4798_v1 = vmax.f32 %v4796_v63, %v4797_v28  ;;  %v5813_v62 = vpop.eup %5812  ;;  %v4496_v10 = vrot.slane %v4495_v27, 1  ;;  %v4501_v31 = vadd.f32 %v4500_v52, %v4183_v22  ;;  %v4192_v52 = vpop.xlane.xlu1 %4191 }
 0x3e9   :  { %vm11403_vm5 = vcmp.gt.f32.partialorder %v13322_v41, 0.0  ;;  %v3424_v16 = vmul.f32 %v10830_v2, %v5457_v29  ;;  %v3440_v17 = vmul.f32 %v10830_v2, %v5473_v40  ;;  %v4680_v38 = vmul.f32 %v5813_v62, %v10818_v8  ;;  %v4189_v29 = vpop.xlane.xlu0 %4188 }
 0x3ea   :  { %v4793_v23 = vmax.f32 %v4791_v42, %v4792_v9  ;;  %v4810_v61 = vrot.slane %v4809_v12, 2  ;;  %v4799_v14 = vrot.slane %v4798_v1, 4  ;;  %vm4644_vm6 = vcmp.eq.f32.partialorder %v11301_v50, 0.0  ;;  %v4762_v42 = vld [vmem:[%s12090_s3 + $0x40] sm:$0xff] }
 0x3eb   :  { %v11411_v41 = vadd.f32 %v4496_v10, %v4495_v27  ;;  %v4502_v46 = vadd.f32 %v4501_v31, %v4186_v18  ;;  %v5489_v3 = vsel %vm11403_vm5, 1.0, %v13025_v21  ;;  %v4708_v63 = vsel %vm4644_vm6, 0.0, %v4680_v38  ;;  %4413 = vadd.xlane.f32.xlu0 %v10952_v34 }
 0x3ec   :  { %v4794_v40 = vrot.slane %v4793_v23, 1  ;;  %v4811_v25 = vmax.f32 %v4809_v12, %v4810_v61  ;;  %v4800_v8 = vmax.f32 %v4798_v1, %v4799_v14  ;;  %4725 = vst.msk [vmem:[%s12089_s5 + $0x3] sm:$0x1] %vm4721_vm3, %v4708_v63  ;;  %v11429_v39 = vsel %vm792_vm1, %v11353_v30, 0.0 }
 0x3ed   :  { %v4661_v50 = vadd.f32 1e-09, %v11411_v41  ;;  %4742 = vst.msk [vmem:[%s12087_s6 + $0x4] sm:$0x1] %vm4721_vm3, %v11411_v41  ;;  %v4503_v48 = vadd.f32 %v4502_v46, %v4189_v29  ;;  %v11432_v1 = vsel %vm792_vm1, %v3455_v26, 0.0  ;;  %v11438_v28 = vsel %vm792_vm1, %v3424_v16, 0.0  ;;  %v4198_v26 = vpop.xlane.xlu1 %4197  ;;  %v4195_v12 = vpop.xlane.xlu0 %4194 }
 0x3ee   :  { %13325 = vst [vmem:[#allocation98_spill] sm:$0xff] %v11438_v28  ;;  %v11440_v27 = vmax.f32 %v4793_v23, %v4794_v40  ;;  %v4812_v14 = vrot.slane %v4811_v25, 1  ;;  %v4801_v18 = vrot.slane %v4800_v8, 2  ;;  %v11443_v9 = vsel %vm792_vm1, %v3440_v17, 0.0 }
 0x3ef   :  { %5814 = vrcp.f32 %v4661_v50  ;;  %v4504_v22 = vadd.f32 %v4503_v48, %v4192_v52  ;;  %13326 = vst [vmem:[#allocation19_spill] sm:$0xff] %v11443_v9  ;;  %v11446_v30 = vmul.f32 %v10830_v2, %v5489_v3  ;;  %v11449_v62 = vmul.f32 16.0, %v4762_v42  ;;  %v4763_v2 = vld [vmem:[%s12090_s3 + $0x48] sm:$0xff]  ;;  %4344 = vadd.xlane.f32.xlu0 %v10959_v35 }
 0x3f0   :  { %v4859_v10 = vsub.f32 %v11327_v33, %v11440_v27  ;;  %v4860_v31 = vsub.f32 %v11329_v60, %v11440_v27  ;;  %v11455_v16 = vmax.f32 %v4811_v25, %v4812_v14  ;;  %v5206_v17 = vsel %vm4786_vm15, %v11327_v33, 0.0 }
 0x3f1   :  { %v4505_v38 = vrot.slane %v4504_v22, 4  ;;  %v5207_v6 = vsel %vm4786_vm15, %v11329_v60, 0.0  ;;  %v4802_v23 = vmax.f32 %v4800_v8, %v4801_v18  ;;  %v4511_v29 = vadd.f32 %v4198_v26, %v4195_v12  ;;  %v4204_v50 = vpop.xlane.xlu1 %4203  ;;  %v4201_v48 = vpop.xlane.xlu0 %4200 }
 0x3f2   :  { %v4875_v61 = vmul.f32 1.442695, %v4859_v10  ;;  %v4877_v46 = vmul.f32 1.442695, %v4860_v31  ;;  %v4863_v3 = vsub.f32 %v11337_v36, %v11455_v16  ;;  %v4864_v63 = vsub.f32 %v11343_v45, %v11455_v16  ;;  %4314 = vadd.xlane.f32.xlu1 %v10956_v56  ;;  %v4760_v56 = vld [vmem:[%s12090_s3 + $0x30] sm:$0xff] }
 0x3f3   :  { %v4506_v52 = vadd.f32 %v4505_v38, %v4504_v22  ;;  %v5003_v40 = vlaneseq  ;;  %v4803_v25 = vrot.slane %v4802_v23, 1  ;;  %v11469_v42 = vmul.f32 16.0, %v4763_v2  ;;  %4392 = vadd.xlane.f32.xlu0 %v11052_v5  ;;  %v4765_v5 = vld [vmem:[%s12090_s3 + $0x58] sm:$0xff] }
 0x3f4   :  { %5816 = vpow2.f32 %v4875_v61  ;;  %v4883_v8 = vmul.f32 1.442695, %v4863_v3  ;;  %v4885_v14 = vmul.f32 1.442695, %v4864_v63  ;;  %v4512_v10 = vadd.f32 %v4511_v29, %v4201_v48 }
 0x3f5   :  { %v4507_v18 = vrot.slane %v4506_v52, 2  ;;  %5818 = vpow2.f32 %v4877_v46  ;;  %v5208_v31 = vadd.f32 %v5207_v6, %v5206_v17  ;;  %v5224_v22 = vsel %vm4786_vm15, %v11337_v36, 0.0  ;;  %v4210_v61 = vpop.xlane.xlu1 %4209  ;;  %v4207_v17 = vpop.xlane.xlu0 %4206 }
 0x3f6   :  { %5820 = vpow2.f32 %v4883_v8  ;;  %v11473_v26 = vmax.f32 %v4802_v23, %v4803_v25  ;;  %v4823_v12 = vsel %vm4786_vm15, %v11449_v62, -inf  ;;  %v4513_v38 = vadd.f32 %v4512_v10, %v4204_v50  ;;  %v4761_v10 = vld [vmem:[%s12090_s3 + $0x38] sm:$0xff]  ;;  %4338 = vadd.xlane.f32.xlu1 %v10972_v24 }
 0x3f7   :  { %v4508_v34 = vadd.f32 %v4507_v18, %v4506_v52  ;;  %5822 = vpow2.f32 %v4885_v14  ;;  %v5225_v2 = vsel %vm4786_vm15, %v11343_v45, 0.0  ;;  %v11481_v6 = vshrl.u32 %v5003_v40, 7  ;;  %4323 = vadd.xlane.f32.xlu0 %v11074_v59 }
 0x3f8   :  { %v4861_v23 = vsub.f32 %v11361_v0, %v11473_v26  ;;  %v4862_v46 = vsub.f32 %v11373_v51, %v11473_v26  ;;  %v4824_v3 = vsel %vm4786_vm15, %v11469_v42, -inf  ;;  %v4514_v29 = vadd.f32 %v4513_v38, %v4207_v17  ;;  %v4764_v38 = vld [vmem:[%s12090_s3 + $0x50] sm:$0xff] }
 0x3f9   :  { %v5815_v63 = vpop.eup %5814  ;;  %v4509_v52 = vrot.slane %v4508_v34, 1  ;;  %v5209_v35 = vrot.slane %v5208_v31, 4  ;;  %v4825_v25 = vmax.f32 %v4823_v12, %v4824_v3  ;;  %v5226_v50 = vadd.f32 %v5225_v2, %v5224_v22  ;;  %v4216_v3 = vpop.xlane.xlu1 %4215 }
 0x3fa   :  { %v4682_v40 = vmul.f32 %v5815_v63, %v10870_v49  ;;  %v4879_v48 = vmul.f32 1.442695, %v4861_v23  ;;  %v4881_v8 = vmul.f32 1.442695, %v4862_v46  ;;  %vm4645_vm7 = vcmp.eq.f32.partialorder %v11411_v41, 0.0  ;;  %v4213_v49 = vpop.xlane.xlu0 %4212  ;;  %4362 = vadd.xlane.f32.xlu1 %v11055_v44 }
 0x3fb   :  { %v11494_v14 = vadd.f32 %v4509_v52, %v4508_v34  ;;  %v4515_v18 = vadd.f32 %v4514_v29, %v4210_v61  ;;  %v4826_v17 = vrot.slane %v4825_v25, 4  ;;  %v11504_v41 = vmul.f32 16.0, %v4760_v56  ;;  %v4767_v52 = vld [vmem:[%s12090_s3 + $0x68] sm:$0xff]  ;;  %v4768_v29 = vld [vmem:[%s12090_s3 + $0x70] sm:$0xff]  ;;  %4371 = vadd.xlane.f32.xlu0 %v11094_v57 }
 0x3fc   :  { %v4709_v12 = vsel %vm4645_vm7, 0.0, %v4682_v40  ;;  %v11508_v22 = vsel %vm792_vm1, %v11446_v30, 0.0  ;;  %5824 = vpow2.f32 %v4879_v48  ;;  %v4766_v30 = vld [vmem:[%s12090_s3 + $0x60] sm:$0xff]  ;;  %v5210_v2 = vadd.f32 %v5209_v35, %v5208_v31 }
 0x3fd   :  { %13327 = vst [vmem:[#allocation87_spill] sm:$0xff] %v11508_v22  ;;  %4726 = vst.msk [vmem:[%s12089_s5 + $0x4] sm:$0x1] %vm4721_vm3, %v4709_v12  ;;  %v4662_v34 = vadd.f32 1e-09, %v11494_v14  ;;  %v4516_v24 = vadd.f32 %v4515_v18, %v4213_v49  ;;  %5826 = vpow2.f32 %v4881_v8  ;;  %v11527_v23 = vadd.s32 8, %v11481_v6  ;;  %v4222_v18 = vpop.xlane.xlu1 %4221 }
 0x3fe   :  { %4743 = vst.msk [vmem:[%s12087_s6 + $0x5] sm:$0x1] %vm4721_vm3, %v11494_v14  ;;  %v5817_v61 = vpop.eup %5816  ;;  %v11529_v46 = vmul.f32 16.0, %v4761_v10  ;;  %v11531_v63 = vmul.f32 16.0, %v4764_v38  ;;  %v4827_v56 = vmax.f32 %v4825_v25, %v4826_v17  ;;  %v5227_v48 = vrot.slane %v5226_v50, 4  ;;  %v4219_v10 = vpop.xlane.xlu0 %4218  ;;  %4386 = vadd.xlane.f32.xlu1 %v11077_v54 }
 0x3ff   :  { %v5819_v40 = vpop.eup %5818  ;;  %5828 = vrcp.f32 %v4662_v34  ;;  %v4517_v31 = vadd.f32 %v4516_v24, %v4216_v3  ;;  %v4907_v35 = vsel %vm4786_vm15, %v5817_v61, 0.0  ;;  %v11542_v38 = vmul.f32 16.0, %v4765_v5  ;;  %4419 = vadd.xlane.f32.xlu0 %v11108_v58 }
 0x400   :  { %v5821_v8 = vpop.eup %5820  ;;  %v11544_v12 = vmul.f32 16.0, %v4766_v30  ;;  %v4908_v49 = vsel %vm4786_vm15, %v5819_v40, 0.0  ;;  %v4828_v25 = vrot.slane %v4827_v56, 2  ;;  %v11547_v3 = vmul.f32 16.0, %v4767_v52 }
 0x401   :  { %v5823_v17 = vpop.eup %5822  ;;  %v4518_v34 = vrot.slane %v4517_v31, 4  ;;  %v11549_v24 = vmul.f32 16.0, %v4768_v29  ;;  %v5211_v61 = vrot.slane %v5210_v2, 2  ;;  %v4909_v22 = vadd.f32 %v4908_v49, %v4907_v35  ;;  %v4228_v36 = vpop.xlane.xlu1 %4227 }
 0x402   :  { %v5215_v44 = vsel %vm4786_vm15, %v11361_v0, 0.0  ;;  %v5216_v59 = vsel %vm4786_vm15, %v11373_v51, 0.0  ;;  %v4829_v5 = vmax.f32 %v4827_v56, %v4828_v25  ;;  %v4524_v9 = vadd.f32 %v4222_v18, %v4219_v10  ;;  %v4225_v52 = vpop.xlane.xlu0 %4224  ;;  %4410 = vadd.xlane.f32.xlu1 %v11103_v55 }
 0x403   :  { %v4519_v30 = vadd.f32 %v4518_v34, %v4517_v31  ;;  %v5228_v45 = vadd.f32 %v5227_v48, %v5226_v50  ;;  %v4814_v40 = vsel %vm4786_vm15, %v11504_v41, -inf  ;;  %v4925_v29 = vsel %vm4786_vm15, %v5821_v8, 0.0  ;;  %4350 = vadd.xlane.f32.xlu0 %v11132_v43 }
 0x404   :  { %v4926_v35 = vsel %vm4786_vm15, %v5823_v17, 0.0  ;;  %v4830_v49 = vrot.slane %v4829_v5, 1  ;;  %v4815_v56 = vsel %vm4786_vm15, %v11529_v46, -inf  ;;  %v4525_v18 = vadd.f32 %v4524_v9, %v4225_v52 }
 0x405   :  { %v4520_v31 = vrot.slane %v4519_v30, 2  ;;  %v11563_v50 = vadd.f32 %v5211_v61, %v5210_v2  ;;  %v5217_v48 = vadd.f32 %v5216_v59, %v5215_v44  ;;  %v4910_v25 = vrot.slane %v4909_v22, 4  ;;  %v4234_v60 = vpop.xlane.xlu1 %4233 }
 0x406   :  { %v5825_v10 = vpop.eup %5824  ;;  %v11565_v34 = vmax.f32 %v4829_v5, %v4830_v49  ;;  %v5242_v54 = vsel %vm4786_vm15, %v11449_v62, 0.0  ;;  %v5243_v57 = vsel %vm4786_vm15, %v11469_v42, 0.0  ;;  %v4526_v51 = vadd.f32 %v4525_v18, %v4228_v36  ;;  %v4231_v9 = vpop.xlane.xlu0 %4230  ;;  %4320 = vadd.xlane.f32.xlu1 %v11111_v20 }
 0x407   :  { %v5827_v8 = vpop.eup %5826  ;;  %v4521_v17 = vadd.f32 %v4520_v31, %v4519_v30  ;;  %v4927_v0 = vadd.f32 %v4926_v35, %v4925_v29  ;;  %v4816_v28 = vmax.f32 %v4814_v40, %v4815_v56  ;;  %v4916_v2 = vsel %vm4786_vm15, %v5825_v10, 0.0  ;;  %4398 = vadd.xlane.f32.xlu0 %v11138_v19 }
 0x408   :  { %13328 = vst [vmem:[#allocation99_spill] sm:$0xff] %v11565_v34  ;;  %v4917_v61 = vsel %vm4786_vm15, %v5827_v8, 0.0  ;;  %v4867_v44 = vsub.f32 %v11449_v62, %v11565_v34  ;;  %v4868_v59 = vsub.f32 %v11469_v42, %v11565_v34  ;;  %v4527_v30 = vadd.f32 %v4526_v51, %v4231_v9 }
 0x409   :  { %v5829_v5 = vpop.eup %5828  ;;  %v4522_v36 = vrot.slane %v4521_v17, 1  ;;  %v5229_v40 = vrot.slane %v5228_v45, 2  ;;  %v5218_v52 = vrot.slane %v5217_v48, 4  ;;  %v4918_v29 = vadd.f32 %v4917_v61, %v4916_v2  ;;  %v4240_v10 = vpop.xlane.xlu1 %4239 }
 0x40a   :  { %v4684_v55 = vmul.f32 %v5829_v5, %v10872_v7  ;;  %v4891_v58 = vmul.f32 1.442695, %v4867_v44  ;;  %v5244_v35 = vadd.f32 %v5243_v57, %v5242_v54  ;;  %vm4646_vm1 = vcmp.eq.f32.partialorder %v11494_v14, 0.0  ;;  %v4237_v51 = vpop.xlane.xlu0 %4236  ;;  %4368 = vadd.xlane.f32.xlu1 %v11135_v11 }
 0x40b   :  { %v11581_v49 = vadd.f32 %v4522_v36, %v4521_v17  ;;  %v4528_v56 = vadd.f32 %v4527_v30, %v4234_v60  ;;  %v4817_v31 = vrot.slane %v4816_v28, 4  ;;  %v4911_v8 = vadd.f32 %v4910_v25, %v4909_v22  ;;  %4329 = vadd.xlane.f32.xlu0 %v11217_v13 }
 0x40c   :  { %v4710_v18 = vsel %vm4646_vm1, 0.0, %v4684_v55  ;;  %v4928_v9 = vrot.slane %v4927_v0, 4  ;;  %v4893_v34 = vmul.f32 1.442695, %v4868_v59  ;;  %v5213_v43 = vrot.slane %v11563_v50, 1 }
 0x40d   :  { %4727 = vst.msk [vmem:[%s12089_s5 + $0x5] sm:$0x1] %vm4721_vm3, %v4710_v18  ;;  %v4663_v7 = vadd.f32 1e-09, %v11581_v49  ;;  %4744 = vst.msk [vmem:[%s12087_s6 + $0x6] sm:$0x1] %vm4721_vm3, %v11581_v49  ;;  %v4529_v20 = vadd.f32 %v4528_v56, %v4237_v51  ;;  %v5230_v60 = vadd.f32 %v5229_v40, %v5228_v45  ;;  %v5219_v22 = vadd.f32 %v5218_v52, %v5217_v48  ;;  %v4246_v2 = vpop.xlane.xlu1 %4245 }
 0x40e   :  { %v4919_v14 = vrot.slane %v4918_v29, 4  ;;  %5830 = vpow2.f32 %v4891_v58  ;;  %v5233_v25 = vsel %vm4786_vm15, %v11504_v41, 0.0  ;;  %v4818_v57 = vmax.f32 %v4816_v28, %v4817_v31  ;;  %v4243_v61 = vpop.xlane.xlu0 %4242  ;;  %v4769_v28 = vld [vmem:[%s12090_s3 + $0x78] sm:$0xff]  ;;  %4416 = vadd.xlane.f32.xlu1 %v11214_v47 }
 0x40f   :  { %5832 = vrcp.f32 %v4663_v7  ;;  %v4530_v54 = vadd.f32 %v4529_v20, %v4240_v10  ;;  %v5234_v17 = vsel %vm4786_vm15, %v11529_v46, 0.0  ;;  %v4912_v44 = vrot.slane %v4911_v8, 2  ;;  %4377 = vadd.xlane.f32.xlu0 %v11235_v37 }
 0x410   :  { %v4929_v45 = vadd.f32 %v4928_v9, %v4927_v0  ;;  %5834 = vpow2.f32 %v4893_v34  ;;  %v5245_v48 = vrot.slane %v5244_v35, 4  ;;  %v5214_v5 = vadd.f32 %v5213_v43, %v11563_v50 }
 0x411   :  { %v4531_v59 = vrot.slane %v4530_v54, 4  ;;  %v5231_v36 = vrot.slane %v5230_v60, 1  ;;  %v4819_v30 = vrot.slane %v4818_v57, 2  ;;  %v4920_v40 = vadd.f32 %v4919_v14, %v4918_v29  ;;  %v4252_v56 = vpop.xlane.xlu1 %4251 }
 0x412   :  { %v5235_v52 = vadd.f32 %v5234_v17, %v5233_v25  ;;  %v4832_v11 = vsel %vm4786_vm15, %v11531_v63, -inf  ;;  %v4833_v19 = vsel %vm4786_vm15, %v11542_v38, -inf  ;;  %v4537_v34 = vadd.f32 %v4246_v2, %v4243_v61  ;;  %v4249_v50 = vpop.xlane.xlu0 %4248  ;;  %4347 = vadd.xlane.f32.xlu1 %v11220_v15 }
 0x413   :  { %v4532_v0 = vadd.f32 %v4531_v59, %v4530_v54  ;;  %v4820_v55 = vmax.f32 %v4818_v57, %v4819_v30  ;;  %v4834_v58 = vmax.f32 %v4832_v11, %v4833_v19  ;;  %v11612_v31 = vadd.f32 %v4912_v44, %v4911_v8  ;;  %4425 = vadd.xlane.f32.xlu0 %v11251_v32 }
 0x414   :  { %v4930_v29 = vrot.slane %v4929_v45, 2  ;;  %v5220_v18 = vrot.slane %v5219_v22, 2  ;;  %v5246_v10 = vadd.f32 %v5245_v48, %v5244_v35  ;;  %v4538_v9 = vadd.f32 %v4537_v34, %v4249_v50 }
 0x415   :  { %v4533_v51 = vrot.slane %v4532_v0, 2  ;;  %v11614_v7 = vmul.f32 16.0, %v4769_v28  ;;  %v4821_v20 = vrot.slane %v4820_v55, 1  ;;  %v11616_v43 = vmul.f32 0.0625, %v5214_v5  ;;  %v4258_v2 = vpop.xlane.xlu1 %4257 }
 0x416   :  { %v5232_v14 = vadd.f32 %v5231_v36, %v5230_v60  ;;  %v4921_v25 = vrot.slane %v4920_v40, 2  ;;  %v5236_v54 = vrot.slane %v5235_v52, 4  ;;  %v4539_v47 = vadd.f32 %v4538_v9, %v4252_v56  ;;  %v4255_v35 = vpop.xlane.xlu0 %4254  ;;  %4395 = vadd.xlane.f32.xlu1 %v11241_v4 }
 0x417   :  { %v4534_v57 = vadd.f32 %v4533_v51, %v4532_v0  ;;  %v11618_v17 = vmax.f32 %v4820_v55, %v4821_v20  ;;  %v4835_v13 = vrot.slane %v4834_v58, 4  ;;  %v4914_v61 = vrot.slane %v11612_v31, 1 }
 0x418   :  { %v5831_v8 = vpop.eup %5830  ;;  %v4931_v44 = vadd.f32 %v4930_v29, %v4929_v45  ;;  %v11623_v48 = vadd.f32 %v5220_v18, %v5219_v22  ;;  %v5247_v60 = vrot.slane %v5246_v10, 2  ;;  %vm4647_vm8 = vcmp.eq.f32.partialorder %v11581_v49, 0.0 }
 0x419   :  { %v5833_v59 = vpop.eup %5832  ;;  %v4535_v5 = vrot.slane %v4534_v57, 1  ;;  %v4540_v36 = vadd.f32 %v4539_v47, %v4255_v35  ;;  %v4865_v30 = vsub.f32 %v11504_v41, %v11618_v17  ;;  %v4922_v11 = vadd.f32 %v4921_v25, %v4920_v40  ;;  %v4264_v49 = vpop.xlane.xlu1 %4263  ;;  %v13330_v47 = vld [vmem:[#allocation17_spill] sm:$0xff] }
 0x41a   :  { %v5835_v28 = vpop.eup %5834  ;;  %v4686_v15 = vmul.f32 %v5833_v59, %v10874_v53  ;;  %v4866_v37 = vsub.f32 %v11529_v46, %v11618_v17  ;;  %v5237_v19 = vadd.f32 %v5236_v54, %v5235_v52  ;;  %v4836_v34 = vmax.f32 %v4834_v58, %v4835_v13  ;;  %v4261_v56 = vpop.xlane.xlu0 %4260  ;;  %4356 = vadd.xlane.f32.xlu0 %v13330_v47 }
 0x41b   :  { %v11631_v45 = vadd.f32 %v4535_v5, %v4534_v57  ;;  %v4541_v22 = vadd.f32 %v4540_v36, %v4258_v2  ;;  %v4887_v0 = vmul.f32 1.442695, %v4865_v30  ;;  %v4841_v53 = vsel %vm4786_vm15, %v11544_v12, -inf  ;;  %v13329_v57 = vld [vmem:[#allocation131_spill] sm:$0xff] }
 0x41c   :  { %v4711_v55 = vsel %vm4647_vm8, 0.0, %v4686_v15  ;;  %v4889_v50 = vmul.f32 1.442695, %v4866_v37  ;;  %v4842_v40 = vsel %vm4786_vm15, %v11547_v3, -inf  ;;  %v4943_v32 = vsel %vm4786_vm15, %v5831_v8, 0.0  ;;  %4326 = vadd.xlane.f32.xlu1 %v13329_v57  ;;  %v13334_v57 = vld [vmem:[#allocation10_spill] sm:$0xff] }
 0x41d   :  { %4728 = vst.msk [vmem:[%s12089_s5 + $0x6] sm:$0x1] %vm4721_vm3, %v4711_v55  ;;  %v4664_v52 = vadd.f32 1e-09, %v11631_v45  ;;  %4745 = vst.msk [vmem:[%s12087_s6 + $0x7] sm:$0x1] %vm4721_vm3, %v11631_v45  ;;  %v4542_v4 = vadd.f32 %v4541_v22, %v4261_v56  ;;  %v5248_v51 = vadd.f32 %v5247_v60, %v5246_v10  ;;  %5836 = vpow2.f32 %v4887_v0  ;;  %v4270_v54 = vpop.xlane.xlu1 %4269 }
 0x41e   :  { %v4944_v58 = vsel %vm4786_vm15, %v5835_v28, 0.0  ;;  %v4932_v29 = vrot.slane %v4931_v44, 1  ;;  %v11651_v18 = vmul.f32 0.0625, %v5232_v14  ;;  %v5238_v20 = vrot.slane %v5237_v19, 2  ;;  %v4267_v13 = vpop.xlane.xlu0 %4266  ;;  %v13332_v56 = vld [vmem:[#allocation14_spill] sm:$0xff] }
 0x41f   :  { %5838 = vrcp.f32 %v4664_v52  ;;  %v4543_v9 = vadd.f32 %v4542_v4, %v4264_v49  ;;  %v4837_v25 = vrot.slane %v4836_v34, 2  ;;  %v4923_v2 = vrot.slane %v4922_v11, 1  ;;  %v13331_v49 = vld [vmem:[#allocation88_spill] sm:$0xff]  ;;  %4404 = vadd.xlane.f32.xlu0 %v13332_v56 }
 0x420   :  { %v4945_v35 = vadd.f32 %v4944_v58, %v4943_v32  ;;  %5840 = vpow2.f32 %v4889_v50  ;;  %v4843_v8 = vmax.f32 %v4841_v53, %v4842_v40  ;;  %v4915_v14 = vadd.f32 %v4914_v61, %v11612_v31  ;;  %4374 = vadd.xlane.f32.xlu1 %v13331_v49  ;;  %v13337_v49 = vld [vmem:[#allocation74_spill] sm:$0xff] }
 0x421   :  { %v4544_v59 = vrot.slane %v4543_v9, 4  ;;  %v5222_v10 = vrot.slane %v11623_v48, 1  ;;  %v4838_v60 = vmax.f32 %v4836_v34, %v4837_v25  ;;  %v4933_v5 = vadd.f32 %v4932_v29, %v4931_v44  ;;  %v4276_v55 = vpop.xlane.xlu1 %4275 }
 0x422   :  { %v5249_v36 = vrot.slane %v5248_v51, 1  ;;  %v5251_v30 = vsel %vm4786_vm15, %v11531_v63, 0.0  ;;  %v4844_v28 = vrot.slane %v4843_v8, 4  ;;  %v4550_v37 = vadd.f32 %v4270_v54, %v4267_v13  ;;  %v4273_v31 = vpop.xlane.xlu0 %4272  ;;  %v13333_v54 = vld [vmem:[#allocation24_spill] sm:$0xff] }
 0x423   :  { %v4545_v15 = vadd.f32 %v4544_v59, %v4543_v9  ;;  %v4839_v22 = vrot.slane %v4838_v60, 1  ;;  %v5252_v0 = vsel %vm4786_vm15, %v11542_v38, 0.0  ;;  %v4924_v61 = vadd.f32 %v4923_v2, %v4922_v11  ;;  %4311 = vadd.xlane.f32.xlu0 %v13334_v57 }
 0x424   :  { %v4946_v34 = vrot.slane %v4945_v35, 4  ;;  %v5239_v44 = vadd.f32 %v5238_v20, %v5237_v19  ;;  %v4845_v50 = vmax.f32 %v4843_v8, %v4844_v28  ;;  %v4551_v40 = vadd.f32 %v4550_v37, %v4273_v31  ;;  %4422 = vadd.xlane.f32.xlu1 %v13333_v54 }
 0x425   :  { %v4546_v53 = vrot.slane %v4545_v15, 2  ;;  %5842 = vlog2.f32 %v4915_v14  ;;  %v11663_v52 = vmax.f32 %v4838_v60, %v4839_v22  ;;  %v5223_v4 = vadd.f32 %v5222_v10, %v11623_v48  ;;  %v4282_v20 = vpop.xlane.xlu1 %4281 }
 0x426   :  { %5844 = vlog2.f32 %v4933_v5  ;;  %v5250_v32 = vadd.f32 %v5249_v36, %v5248_v51  ;;  %v11666_v58 = vadd.f32 %v5252_v0, %v5251_v30  ;;  %v4552_v9 = vadd.f32 %v4551_v40, %v4276_v55  ;;  %v4279_v47 = vpop.xlane.xlu0 %4278  ;;  %v13335_v5 = vld [vmem:[#allocation122_spill] sm:$0xff]  ;;  %v13336_v55 = vld [vmem:[#allocation65_spill] sm:$0xff] }
 0x427   :  { %v4547_v29 = vadd.f32 %v4546_v53, %v4545_v15  ;;  %v4869_v25 = vsub.f32 %v11531_v63, %v11663_v52  ;;  %v4870_v11 = vsub.f32 %v11542_v38, %v11663_v52  ;;  %v5837_v19 = vpop.eup %5836  ;;  %5846 = vlog2.f32 %v4924_v61  ;;  %4359 = vadd.xlane.f32.xlu0 %v13337_v49  ;;  %v13340_v49 = vld [vmem:[#allocation97_spill] sm:$0xff] }
 0x428   :  { %v4947_v48 = vadd.f32 %v4946_v34, %v4945_v35  ;;  %v5240_v51 = vrot.slane %v5239_v44, 1  ;;  %v4846_v13 = vrot.slane %v4845_v50, 2  ;;  %v4553_v59 = vadd.f32 %v4552_v9, %v4279_v47  ;;  %4353 = vadd.xlane.f32.xlu1 %v13336_v55 }
 0x429   :  { %v5839_v2 = vpop.eup %5838  ;;  %v4548_v8 = vrot.slane %v4547_v29, 1  ;;  %v4934_v14 = vsel %vm4786_vm15, %v5837_v19, 0.0  ;;  %v4895_v10 = vmul.f32 1.442695, %v4869_v25  ;;  %vm4648_vm9 = vcmp.eq.f32.partialorder %v11631_v45, 0.0  ;;  %v4288_v0 = vpop.xlane.xlu1 %4287 }
 0x42a   :  { %v5841_v60 = vpop.eup %5840  ;;  %v4688_v36 = vmul.f32 %v5839_v2, %v13335_v5  ;;  %v4897_v30 = vmul.f32 1.442695, %v4870_v11  ;;  %v5254_v28 = vrot.slane %v11666_v58, 4  ;;  %v4554_v37 = vadd.f32 %v4553_v59, %v4282_v20  ;;  %v4285_v56 = vpop.xlane.xlu0 %4284  ;;  %v13339_v2 = vld [vmem:[#allocation103_spill] sm:$0xff] }
 0x42b   :  { %v11678_v15 = vadd.f32 %v4548_v8, %v4547_v29  ;;  %v4935_v35 = vsel %vm4786_vm15, %v5841_v60, 0.0  ;;  %5848 = vpow2.f32 %v4895_v10  ;;  %v4847_v45 = vmax.f32 %v4845_v50, %v4846_v13  ;;  %v13338_v13 = vld [vmem:[#allocation96_spill] sm:$0xff]  ;;  %4407 = vadd.xlane.f32.xlu0 %v13339_v2 }
 0x42c   :  { %v4712_v22 = vsel %vm4648_vm9, 0.0, %v4688_v36  ;;  %v4936_v31 = vadd.f32 %v4935_v35, %v4934_v14  ;;  %5850 = vpow2.f32 %v4897_v30  ;;  %v4555_v34 = vadd.f32 %v4554_v37, %v4285_v56  ;;  %4401 = vadd.xlane.f32.xlu1 %v13338_v13 }
 0x42d   :  { %4729 = vst.msk [vmem:[%s12089_s5 + $0x7] sm:$0x1] %vm4721_vm3, %v4712_v22  ;;  %v4665_v61 = vadd.f32 1e-09, %v11678_v15  ;;  %4746 = vst.msk [vmem:[%s12087_s6 + $0x8] sm:$0x1] %vm4721_vm3, %v11678_v15  ;;  %v5241_v9 = vadd.f32 %v5240_v51, %v5239_v44  ;;  %v4294_v47 = vpop.xlane.xlu1 %4293 }
 0x42e   :  { %v4948_v53 = vrot.slane %v4947_v48, 2  ;;  %v4850_v40 = vsel %vm4786_vm15, %v11549_v24, -inf  ;;  %v5279_v29 = vmul.f32 0.0625, %v5223_v4  ;;  %v4937_v50 = vrot.slane %v4936_v31, 4  ;;  %v4291_v8 = vpop.xlane.xlu0 %4290 }
 0x42f   :  { %v4851_v25 = vsel %vm4786_vm15, %v11614_v7, -inf  ;;  %v5843_v11 = vpop.eup %5842  ;;  %5852 = vrcp.f32 %v4665_v61  ;;  %v4556_v19 = vadd.f32 %v4555_v34, %v4288_v0  ;;  %v11698_v20 = vmul.f32 0.1, %v11616_v43 }
 0x430   :  { %v5282_v54 = vmul.f32 0.0625, %v5250_v32  ;;  %v5845_v57 = vpop.eup %5844  ;;  %v11703_v4 = vmul.f32 0.1, %v11651_v18  ;;  %v4938_v44 = vadd.f32 %v4937_v50, %v4936_v31  ;;  %v4848_v51 = vrot.slane %v4847_v45, 1  ;;  %4332 = vadd.xlane.f32.xlu1 %v13340_v49 }
 0x431   :  { %v4852_v59 = vmax.f32 %v4850_v40, %v4851_v25  ;;  %v4557_v14 = vrot.slane %v4556_v19, 4  ;;  %v4563_v10 = vadd.f32 %v4294_v47, %v4291_v8  ;;  %v4949_v60 = vadd.f32 %v4948_v53, %v4947_v48  ;;  %v5847_v5 = vpop.eup %5846  ;;  %v4300_v55 = vpop.xlane.xlu1 %4299 }
 0x432   :  { %v5255_v43 = vadd.f32 %v5254_v28, %v11666_v58  ;;  %v4980_v32 = vmul.f32 0.6931472, %v5843_v11  ;;  %v11706_v36 = vmul.f32 0.1, %v5279_v29  ;;  %v5281_v30 = vmul.f32 0.0625, %v5241_v9  ;;  %v4297_v48 = vpop.xlane.xlu0 %4296 }
 0x433   :  { %v4853_v37 = vrot.slane %v4852_v59, 4  ;;  %v4558_v35 = vadd.f32 %v4557_v14, %v4556_v19  ;;  %v11708_v22 = vmul.f32 0.1, %v5282_v54  ;;  %v5260_v18 = vsel %vm4786_vm15, %v11544_v12, 0.0 }
 0x434   :  { %v5261_v0 = vsel %vm4786_vm15, %v11547_v3, 0.0  ;;  %v4984_v58 = vmul.f32 0.6931472, %v5845_v57  ;;  %v4939_v28 = vrot.slane %v4938_v44, 2  ;;  %v11715_v56 = vmax.f32 %v4847_v45, %v4848_v51  ;;  %4380 = vadd.xlane.f32.xlu1 %v11429_v39 }
 0x435   :  { %v4854_v31 = vmax.f32 %v4852_v59, %v4853_v37  ;;  %v5849_v61 = vpop.eup %5848  ;;  %v4559_v34 = vrot.slane %v4558_v35, 2  ;;  %v4564_v53 = vadd.f32 %v4563_v10, %v4297_v48  ;;  %v4950_v40 = vrot.slane %v4949_v60, 1  ;;  %v4306_v13 = vpop.xlane.xlu1 %4305  ;;  %v13341_v37 = vld [vmem:[#allocation83_spill] sm:$0xff] }
 0x436   :  { %v5256_v29 = vrot.slane %v5255_v43, 2  ;;  %v5851_v50 = vpop.eup %5850  ;;  %v11718_v9 = vadd.f32 %v4980_v32, %v11440_v27  ;;  %v4982_v25 = vmul.f32 0.6931472, %v5847_v5  ;;  %v11720_v11 = vmul.f32 0.1, %v5281_v30  ;;  %v4303_v2 = vpop.xlane.xlu0 %4302 }
 0x437   :  { %v11722_v19 = vadd.f32 %v5261_v0, %v5260_v18  ;;  %v4560_v54 = vadd.f32 %v4559_v34, %v4558_v35  ;;  %v4565_v57 = vadd.f32 %v4564_v53, %v4300_v55  ;;  %v4952_v45 = vsel %vm4786_vm15, %v5849_v61, 0.0  ;;  %v13342_v53 = vld [vmem:[#allocation130_spill] sm:$0xff] }
 0x438   :  { %v4953_v47 = vsel %vm4786_vm15, %v5851_v50, 0.0  ;;  %v11728_v8 = vadd.f32 %v4984_v58, %v11455_v16  ;;  %v4940_v27 = vadd.f32 %v4939_v28, %v4938_v44  ;;  %v4871_v51 = vsub.f32 %v11544_v12, %v11715_v56  ;;  %4428 = vadd.xlane.f32.xlu1 %v11432_v1 }
 0x439   :  { %v4855_v59 = vrot.slane %v4854_v31, 2  ;;  %v5853_v14 = vpop.eup %5852  ;;  %v4561_v10 = vrot.slane %v4560_v54, 1  ;;  %v4566_v5 = vadd.f32 %v4565_v57, %v4303_v2  ;;  %v4951_v32 = vadd.f32 %v4950_v40, %v4949_v60  ;;  %v5048_v60 = vpop.permute.xlu1 %5047 }
 0x43a   :  { %v11732_v30 = vadd.f32 %v5256_v29, %v5255_v43  ;;  %v4690_v35 = vmul.f32 %v5853_v14, %v13341_v37  ;;  %v11736_v18 = vadd.f32 %v4982_v25, %v11473_v26  ;;  %v4954_v39 = vadd.f32 %v4953_v47, %v4952_v45  ;;  %v4309_v43 = vpop.xlane.xlu0 %4308  ;;  %v13343_v25 = vld [vmem:[#allocation98_spill] sm:$0xff]  ;;  %v13344_v14 = vld [vmem:[#allocation95_spill] sm:$0xff] }
 0x43b   :  { %v5263_v16 = vrot.slane %v11722_v19, 4  ;;  %vm4649_vm10 = vcmp.eq.f32.partialorder %v11678_v15, 0.0  ;;  %v11740_v44 = vadd.f32 %v4561_v10, %v4560_v54  ;;  %v4567_v0 = vadd.f32 %v4566_v5, %v4306_v13  ;;  %v13345_v10 = vld [vmem:[#allocation89_spill] sm:$0xff] }
 0x43c   :  { %v4872_v55 = vsub.f32 %v11547_v3, %v11715_v56  ;;  %v4713_v49 = vsel %vm4649_vm10, 0.0, %v4690_v35  ;;  %v4941_v48 = vrot.slane %v4940_v27, 1  ;;  %v4899_v58 = vmul.f32 1.442695, %v4871_v51  ;;  %4335 = vadd.xlane.f32.xlu1 %v13343_v25  ;;  %v13348_v25 = vld [vmem:[#allocation111_spill] sm:$0xff] }
 0x43d   :  { %v4856_v26 = vmax.f32 %v4854_v31, %v4855_v59  ;;  %4730 = vst.msk [vmem:[%s12089_s5 + $0x8] sm:$0x1] %vm4721_vm3, %v4713_v49  ;;  %v4666_v15 = vadd.f32 1e-09, %v11740_v44  ;;  %4747 = vst.msk [vmem:[%s12087_s6 + $0x9] sm:$0x1] %vm4721_vm3, %v11740_v44  ;;  %vm5070_vm11 = vcmp.eq.s32.totalorder %v11481_v6, %v5048_v60  ;;  %vm5071_vm12 = vcmp.eq.s32.totalorder %v11527_v23, %v5048_v60  ;;  %v5054_v50 = vpop.permute.xlu1 %5053 }
 0x43e   :  { %5854 = vlog2.f32 %v4951_v32  ;;  %v5498_v1 = vsel %vm5070_vm11, 1.0, %v13025_v21  ;;  %v5499_v28 = vsel %vm5071_vm12, 1.0, %v13025_v21  ;;  %v11759_v31 = vadd.f32 %v4567_v0, %v4309_v43  ;;  %v13346_v0 = vld [vmem:[#allocation19_spill] sm:$0xff] }
 0x43f   :  { %v4955_v61 = vrot.slane %v4954_v39, 4  ;;  %5856 = vrcp.f32 %v4666_v15  ;;  %v5118_v34 = vmul.f32 %v5498_v1, %v11327_v33  ;;  %v5119_v40 = vmul.f32 %v5499_v28, %v13342_v53 }
 0x440   :  { %v4901_v29 = vmul.f32 1.442695, %v4872_v55  ;;  %v4942_v54 = vadd.f32 %v4941_v48, %v4940_v27  ;;  %v5258_v57 = vrot.slane %v11732_v30, 1  ;;  %5858 = vpow2.f32 %v4899_v58  ;;  %4383 = vadd.xlane.f32.xlu1 %v13346_v0  ;;  %v5051_v55 = vpop.permute.xlu0 %5050 }
 0x441   :  { %v4857_v45 = vrot.slane %v4856_v26, 1  ;;  %v5134_v47 = vsel %vm4786_vm15, %v5118_v34, 0.0  ;;  %v5135_v13 = vsel %vm4786_vm15, %v5119_v40, 0.0  ;;  %vm5074_vm13 = vcmp.eq.s32.totalorder %v11481_v6, %v5054_v50  ;;  %v5057_v35 = vpop.permute.xlu1 %5056  ;;  %v13347_v40 = vld [vmem:[#allocation87_spill] sm:$0xff] }
 0x442   :  { %vm5075_vm14 = vcmp.eq.s32.totalorder %v11527_v23, %v5054_v50  ;;  %v5136_v33 = vadd.f32 %v5135_v13, %v5134_v47  ;;  %v5502_v2 = vsel %vm5074_vm13, 1.0, %v13025_v21  ;;  %v4956_v59 = vadd.f32 %v4955_v61, %v4954_v39  ;;  %v13350_v13 = vld [vmem:[#allocation84_spill] sm:$0xff] }
 0x443   :  { %v5503_v51 = vsel %vm5075_vm14, 1.0, %v13025_v21  ;;  %v5122_v27 = vmul.f32 %v5502_v2, %v13344_v14  ;;  %5860 = vpow2.f32 %v4901_v29  ;;  %v11774_v32 = vadd.f32 %v5263_v16, %v11722_v19 }
 0x444   :  { %v5123_v5 = vmul.f32 %v5503_v51, %v13345_v10  ;;  %vm4650_vm0 = vcmp.eq.f32.partialorder %v11740_v44, 0.0  ;;  %v5137_v37 = vrot.slane %v5136_v33, 4  ;;  %5862 = vlog2.f32 %v4942_v54  ;;  %4431 = vadd.xlane.f32.xlu1 %v13347_v40  ;;  %v13349_v54 = vld [vmem:[#allocation94_spill] sm:$0xff] }
 0x445   :  { %v11778_v49 = vmax.f32 %v4856_v26, %v4857_v45  ;;  %v5152_v39 = vsel %vm4786_vm15, %v5122_v27, 0.0  ;;  %vm5076_vm2 = vcmp.eq.s32.totalorder %v11481_v6, %v5057_v35  ;;  %vm5077_vm4 = vcmp.eq.s32.totalorder %v11527_v23, %v5057_v35  ;;  %v5060_v53 = vpop.permute.xlu1 %5059 }
 0x446   :  { %v5153_v60 = vsel %vm4786_vm15, %v5123_v5, 0.0  ;;  %v5504_v16 = vsel %vm5076_vm2, 1.0, %v13025_v21  ;;  %v5505_v43 = vsel %vm5077_vm4, 1.0, %v13025_v21  ;;  %v4957_v48 = vrot.slane %v4956_v59, 2 }
 0x447   :  { %v5154_v19 = vadd.f32 %v5153_v60, %v5152_v39  ;;  %v5124_v15 = vmul.f32 %v5504_v16, %v11504_v41  ;;  %v5125_v26 = vmul.f32 %v5505_v43, %v11529_v46  ;;  %vm5072_vm5 = vcmp.eq.s32.totalorder %v11481_v6, %v5051_v55 }
 0x448   :  { %v11786_v58 = vpop.eup %5854  ;;  %vm5073_vm6 = vcmp.eq.s32.totalorder %v11527_v23, %v5051_v55  ;;  %v5138_v1 = vadd.f32 %v5137_v37, %v5136_v33  ;;  %v5500_v61 = vsel %vm5072_vm5, 1.0, %v13025_v21  ;;  %vm5078_vm7 = vcmp.eq.s32.totalorder %v11481_v6, %v5060_v53 }
 0x449   :  { %v5155_v28 = vrot.slane %v5154_v19, 4  ;;  %v5501_v34 = vsel %vm5073_vm6, 1.0, %v13025_v21  ;;  %v5857_v29 = vpop.eup %5856  ;;  %v5161_v50 = vsel %vm4786_vm15, %v5124_v15, 0.0  ;;  %v5162_v41 = vsel %vm4786_vm15, %v5125_v26, 0.0  ;;  %v5063_v0 = vpop.permute.xlu1 %5062 }
 0x44a   :  { %v5120_v46 = vmul.f32 %v5500_v61, %v13348_v25  ;;  %v5121_v45 = vmul.f32 %v5501_v34, %v13349_v54  ;;  %v5859_v47 = vpop.eup %5858  ;;  %v4692_v33 = vmul.f32 %v5857_v29, %v13350_v13  ;;  %v5163_v51 = vadd.f32 %v5162_v41, %v5161_v50 }
 0x44b   :  { %v5156_v2 = vadd.f32 %v5155_v28, %v5154_v19  ;;  %vm5079_vm1 = vcmp.eq.s32.totalorder %v11527_v23, %v5060_v53  ;;  %v5506_v10 = vsel %vm5078_vm7, 1.0, %v13025_v21  ;;  %v5139_v37 = vrot.slane %v5138_v1, 2 }
 0x44c   :  { %v5143_v14 = vsel %vm4786_vm15, %v5120_v46, 0.0  ;;  %v5144_v27 = vsel %vm4786_vm15, %v5121_v45, 0.0  ;;  %v4714_v5 = vsel %vm4650_vm0, 0.0, %v4692_v33  ;;  %v4958_v55 = vadd.f32 %v4957_v48, %v4956_v59 }
 0x44d   :  { %v5145_v35 = vadd.f32 %v5144_v27, %v5143_v14  ;;  %v5861_v39 = vpop.eup %5860  ;;  %4731 = vst.msk [vmem:[%s12089_s5 + $0x9] sm:$0x1] %vm4721_vm3, %v4714_v5  ;;  %v5507_v60 = vsel %vm5079_vm1, 1.0, %v13025_v21  ;;  %v5126_v19 = vmul.f32 %v5506_v10, %v11449_v62  ;;  %vm5080_vm8 = vcmp.eq.s32.totalorder %v11481_v6, %v5063_v0  ;;  %v5066_v40 = vpop.permute.xlu1 %5065 }
 0x44e   :  { %vm5081_vm9 = vcmp.eq.s32.totalorder %v11527_v23, %v5063_v0  ;;  %v5863_v44 = vpop.eup %5862  ;;  %v5157_v16 = vrot.slane %v5156_v2, 2  ;;  %v5127_v15 = vmul.f32 %v5507_v60, %v11469_v42  ;;  %v5508_v59 = vsel %vm5080_vm8, 1.0, %v13025_v21 }
 0x44f   :  { %v5146_v43 = vrot.slane %v5145_v35, 4  ;;  %v5164_v48 = vrot.slane %v5163_v51, 4  ;;  %v5170_v26 = vsel %vm4786_vm15, %v5126_v19, 0.0  ;;  %v5509_v28 = vsel %vm5081_vm9, 1.0, %v13025_v21 }
 0x450   :  { %v5128_v61 = vmul.f32 %v5508_v59, %v11531_v63  ;;  %v5171_v62 = vsel %vm4786_vm15, %v5127_v15, 0.0  ;;  %v5129_v53 = vmul.f32 %v5509_v28, %v11542_v38  ;;  %v5140_v29 = vadd.f32 %v5139_v37, %v5138_v1 }
 0x451   :  { %v5147_v34 = vadd.f32 %v5146_v43, %v5145_v35  ;;  %v5172_v50 = vadd.f32 %v5171_v62, %v5170_v26  ;;  %vm5082_vm10 = vcmp.eq.s32.totalorder %v11481_v6, %v5066_v40  ;;  %vm5083_vm11 = vcmp.eq.s32.totalorder %v11527_v23, %v5066_v40 }
 0x452   :  { %v5179_v41 = vsel %vm4786_vm15, %v5128_v61, 0.0  ;;  %v5180_v25 = vsel %vm4786_vm15, %v5129_v53, 0.0  ;;  %v5510_v46 = vsel %vm5082_vm10, 1.0, %v13025_v21  ;;  %v5511_v63 = vsel %vm5083_vm11, 1.0, %v13025_v21 }
 0x453   :  { %v5148_v42 = vrot.slane %v5147_v34, 2  ;;  %v5173_v54 = vrot.slane %v5172_v50, 4  ;;  %v5181_v45 = vadd.f32 %v5180_v25, %v5179_v41  ;;  %v5130_v38 = vmul.f32 %v5510_v46, %v11544_v12 }
 0x454   :  { %v5131_v1 = vmul.f32 %v5511_v63, %v11547_v3  ;;  %v5165_v13 = vadd.f32 %v5164_v48, %v5163_v51  ;;  %v5141_v33 = vrot.slane %v5140_v29, 1  ;;  %v4988_v14 = vmul.f32 0.6931472, %v11786_v58 }
 0x455   :  { %v4961_v27 = vsel %vm4786_vm15, %v5859_v47, 0.0  ;;  %v5174_v10 = vadd.f32 %v5173_v54, %v5172_v50  ;;  %v5182_v5 = vrot.slane %v5181_v45, 4  ;;  %v5158_v37 = vadd.f32 %v5157_v16, %v5156_v2  ;;  %v13351_v47 = vld [vmem:[#allocation99_spill] sm:$0xff] }
 0x456   :  { %v5149_v35 = vadd.f32 %v5148_v42, %v5147_v34  ;;  %v5188_v0 = vsel %vm4786_vm15, %v5130_v38, 0.0  ;;  %v5189_v60 = vsel %vm4786_vm15, %v5131_v1, 0.0  ;;  %v5142_v19 = vadd.f32 %v5141_v33, %v5140_v29  ;;  %v5069_v42 = vpop.permute.xlu1 %5068 }
 0x457   :  { %v4959_v43 = vrot.slane %v4958_v55, 1  ;;  %v5175_v15 = vrot.slane %v5174_v10, 2  ;;  %v5183_v12 = vadd.f32 %v5182_v5, %v5181_v45  ;;  %v4962_v3 = vsel %vm4786_vm15, %v5861_v39, 0.0 }
 0x458   :  { %v4873_v51 = vsub.f32 %v11549_v24, %v11778_v49  ;;  %v5166_v58 = vrot.slane %v5165_v13, 2  ;;  %v5286_v59 = vmul.f32 0.9, %v5142_v19  ;;  %v4999_v48 = vadd.f32 %v4988_v14, %v13351_v47 }
 0x459   :  { %v4874_v2 = vsub.f32 %v11614_v7, %v11778_v49  ;;  %v5190_v16 = vadd.f32 %v5189_v60, %v5188_v0  ;;  %v5159_v26 = vrot.slane %v5158_v37, 1  ;;  %v5150_v28 = vrot.slane %v5149_v35, 1 }
 0x45a   :  { %v5176_v61 = vadd.f32 %v5175_v15, %v5174_v10  ;;  %v5184_v34 = vrot.slane %v5183_v12, 2  ;;  %v5294_v62 = vsub.f32 %v11718_v9, %v5286_v59  ;;  %v4960_v53 = vadd.f32 %v4959_v43, %v4958_v55 }
 0x45b   :  { %v4963_v40 = vadd.f32 %v4962_v3, %v4961_v27  ;;  %v5160_v39 = vadd.f32 %v5159_v26, %v5158_v37  ;;  %v5151_v29 = vadd.f32 %v5150_v28, %v5149_v35  ;;  %v4903_v41 = vmul.f32 1.442695, %v4873_v51 }
 0x45c   :  { %v5177_v50 = vrot.slane %v5176_v61, 1  ;;  %v5310_v25 = vsub.f32 %v5294_v62, %v11698_v20  ;;  %v4986_v46 = vmul.f32 0.6931472, %v5863_v44  ;;  %v5167_v63 = vadd.f32 %v5166_v58, %v5165_v13 }
 0x45d   :  { %v4905_v54 = vmul.f32 1.442695, %v4874_v2  ;;  %v5191_v45 = vrot.slane %v5190_v16, 4  ;;  %v5288_v38 = vmul.f32 0.9, %v5160_v39  ;;  %5864 = vlog2.f32 %v4960_v53 }
 0x45e   :  { %v5287_v1 = vmul.f32 0.9, %v5151_v29  ;;  %v5178_v33 = vadd.f32 %v5177_v50, %v5176_v61  ;;  %v5318_v14 = vsel %vm4786_vm15, %v5310_v25, 0.0  ;;  %v5168_v10 = vrot.slane %v5167_v63, 1 }
 0x45f   :  { %v5185_v9 = vadd.f32 %v5184_v34, %v5183_v12  ;;  %vm5084_vm12 = vcmp.eq.s32.totalorder %v11481_v6, %v5069_v42  ;;  %5319 = vadd.xlane.f32.xlu0 %v5318_v14  ;;  %v5296_v55 = vsub.f32 %v11728_v8, %v5288_v38  ;;  %vm5085_vm13 = vcmp.eq.s32.totalorder %v11527_v23, %v5069_v42 }
 0x460   :  { %v5295_v27 = vsub.f32 %v11736_v18, %v5287_v1  ;;  %v5290_v20 = vmul.f32 0.9, %v5178_v33  ;;  %v4998_v44 = vadd.f32 %v4986_v46, %v11618_v17  ;;  %v5169_v13 = vadd.f32 %v5168_v10, %v5167_v63 }
 0x461   :  { %v4964_v5 = vrot.slane %v4963_v40, 4  ;;  %v5312_v37 = vsub.f32 %v5296_v55, %v11703_v4  ;;  %v5186_v60 = vrot.slane %v5185_v9, 1  ;;  %v5192_v19 = vadd.f32 %v5191_v45, %v5190_v16 }
 0x462   :  { %v5311_v35 = vsub.f32 %v5295_v27, %v11706_v36  ;;  %v5298_v0 = vsub.f32 %v4999_v48, %v5290_v20  ;;  %v5289_v43 = vmul.f32 0.9, %v5169_v13  ;;  %v5259_v8 = vadd.f32 %v5258_v57, %v11732_v30 }
 0x463   :  { %v4965_v18 = vadd.f32 %v4964_v5, %v4963_v40  ;;  %v5324_v15 = vsel %vm4786_vm15, %v5312_v37, 0.0  ;;  %5866 = vpow2.f32 %v4903_v41  ;;  %v5512_v4 = vsel %vm5084_vm12, 1.0, %v13025_v21 }
 0x464   :  { %v5321_v12 = vsel %vm4786_vm15, %v5311_v35, 0.0  ;;  %v5314_v17 = vsub.f32 %v5298_v0, %v11708_v22  ;;  %v5513_v36 = vsel %vm5085_vm13, 1.0, %v13025_v21  ;;  %5325 = vadd.xlane.f32.xlu0 %v5324_v15  ;;  %v5297_v3 = vsub.f32 %v4998_v44, %v5289_v43 }
 0x465   :  { %5322 = vadd.xlane.f32.xlu1 %v5321_v12  ;;  %v4966_v30 = vrot.slane %v4965_v18, 2  ;;  %v5187_v51 = vadd.f32 %v5186_v60, %v5185_v9  ;;  %v5265_v58 = vrot.slane %v11774_v32, 2  ;;  %5868 = vpow2.f32 %v4905_v54 }
 0x466   :  { %v5330_v57 = vsel %vm4786_vm15, %v5314_v17, 0.0  ;;  %v5313_v22 = vsub.f32 %v5297_v3, %v11720_v11  ;;  %v5283_v59 = vmul.f32 0.0625, %v5259_v8  ;;  %v5193_v6 = vrot.slane %v5192_v19, 2 }
 0x467   :  { %v4967_v47 = vadd.f32 %v4966_v30, %v4965_v18  ;;  %v5132_v48 = vmul.f32 %v5512_v4, %v11549_v24  ;;  %v5133_v23 = vmul.f32 %v5513_v36, %v11614_v7  ;;  %v5865_v21 = vpop.eup %5864  ;;  %v5269_v26 = vsel %vm4786_vm15, %v11549_v24, 0.0 }
 0x468   :  { %5331 = vadd.xlane.f32.xlu0 %v5330_v57  ;;  %v5327_v2 = vsel %vm4786_vm15, %v5313_v22, 0.0  ;;  %v4990_v28 = vmul.f32 0.6931472, %v5865_v21  ;;  %v5291_v61 = vmul.f32 0.9, %v5187_v51  ;;  %v5266_v11 = vadd.f32 %v5265_v58, %v11774_v32 }
 0x469   :  { %v4968_v16 = vrot.slane %v4967_v47, 1  ;;  %5328 = vadd.xlane.f32.xlu1 %v5327_v2  ;;  %v5270_v34 = vsel %vm4786_vm15, %v11614_v7, 0.0  ;;  %v5307_v62 = vmul.f32 0.1, %v5283_v59  ;;  %v5197_v40 = vsel %vm4786_vm15, %v5132_v48, 0.0 }
 0x46a   :  { %v5198_v39 = vsel %vm4786_vm15, %v5133_v23, 0.0  ;;  %v5000_v29 = vadd.f32 %v4990_v28, %v11663_v52  ;;  %v5194_v50 = vadd.f32 %v5193_v6, %v5192_v19  ;;  %v5271_v41 = vadd.f32 %v5270_v34, %v5269_v26  ;;  %v11879_v52 = vpop.xlane.xlu0 %4317 }
 0x46b   :  { %v4969_v53 = vadd.f32 %v4968_v16, %v4967_v47  ;;  %v5267_v25 = vrot.slane %v5266_v11, 1  ;;  %v5199_v46 = vadd.f32 %v5198_v39, %v5197_v40 }
 0x46c   :  { %v5299_v42 = vsub.f32 %v5000_v29, %v5291_v61  ;;  %v5195_v7 = vrot.slane %v5194_v50, 1  ;;  %v5272_v38 = vrot.slane %v5271_v41, 4 }
 0x46d   :  { %5870 = vlog2.f32 %v4969_v53  ;;  %v5867_v24 = vpop.eup %5866  ;;  %v5268_v33 = vadd.f32 %v5267_v25, %v5266_v11  ;;  %v5200_v10 = vrot.slane %v5199_v46, 4 }
 0x46e   :  { %v4970_v32 = vsel %vm4786_vm15, %v5867_v24, 0.0  ;;  %v5315_v54 = vsub.f32 %v5299_v42, %v5307_v62  ;;  %v5196_v9 = vadd.f32 %v5195_v7, %v5194_v50  ;;  %v5273_v27 = vadd.f32 %v5272_v38, %v5271_v41  ;;  %v11881_v13 = vpop.xlane.xlu0 %4341 }
 0x46f   :  { %v5869_v63 = vpop.eup %5868  ;;  %v5284_v20 = vmul.f32 0.0625, %v5268_v33  ;;  %v5201_v37 = vadd.f32 %v5200_v10, %v5199_v46 }
 0x470   :  { %v4971_v45 = vsel %vm4786_vm15, %v5869_v63, 0.0  ;;  %v5333_v1 = vsel %vm4786_vm15, %v5315_v54, 0.0  ;;  %v5292_v0 = vmul.f32 0.9, %v5196_v9  ;;  %v5274_v19 = vrot.slane %v5273_v27, 2  ;;  %v13352_v63 = vld [vmem:[#allocation22_spill] sm:$0xff] }
 0x471   :  { %v4972_v14 = vadd.f32 %v4971_v45, %v4970_v32  ;;  %5334 = vadd.xlane.f32.xlu1 %v5333_v1  ;;  %v5308_v8 = vmul.f32 0.1, %v5284_v20  ;;  %v5202_v12 = vrot.slane %v5201_v37, 2  ;;  %v13353_v54 = vld [vmem:[#allocation20_spill] sm:$0xff]  ;;  %v13354_v45 = vld [vmem:[#allocation26_spill] sm:$0xff]  ;;  %v13357_v20 = vld [vmem:[#allocation47_spill] sm:$0xff] }
 0x472   :  { %v11884_v15 = vpop.xlane.xlu0 %4365  ;;  %v5275_v36 = vadd.f32 %v5274_v19, %v5273_v27  ;;  %v3971_v7 = vadd.f32 %v13353_v54, %v13352_v63  ;;  %v13356_v27 = vld [vmem:[#allocation32_spill] sm:$0xff]  ;;  %v13369_v54 = vld [vmem:[#allocation9_spill] sm:$0xff] }
 0x473   :  { %v4973_v55 = vrot.slane %v4972_v14, 4  ;;  %v5203_v51 = vadd.f32 %v5202_v12, %v5201_v37 }
 0x474   :  { %v5276_v22 = vrot.slane %v5275_v36, 1  ;;  %v3972_v38 = vadd.f32 %v3971_v7, %v13354_v45 }
 0x475   :  { %v4974_v44 = vadd.f32 %v4973_v55, %v4972_v14  ;;  %v13355_v14 = vld [vmem:[#allocation18_spill] sm:$0xff] }
 0x476   :  { %v4390_v57 = vpop.xlane.xlu0 %4389  ;;  %v5277_v47 = vadd.f32 %v5276_v22, %v5275_v36  ;;  %v3973_v10 = vadd.f32 %v3972_v38, %v13355_v14  ;;  %v13371_v38 = vld [vmem:[#allocation5_spill] sm:$0xff] }
 0x477   :  { %v5871_v5 = vpop.eup %5870  ;;  %v4975_v60 = vrot.slane %v4974_v44, 2 }
 0x478   :  { %v4992_v35 = vmul.f32 0.6931472, %v5871_v5  ;;  %v5285_v21 = vmul.f32 0.0625, %v5277_v47  ;;  %v13358_v5 = vld [vmem:[#allocation28_spill] sm:$0xff] }
 0x479   :  { %v4976_v18 = vadd.f32 %v4975_v60, %v4974_v44  ;;  %v3997_v44 = vadd.f32 %v13357_v20, %v13356_v27  ;;  %v3974_v37 = vadd.f32 %v3973_v10, %v13358_v5  ;;  %v13372_v20 = vld [vmem:[#allocation62_spill] sm:$0xff] }
 0x47a   :  { %v5001_v43 = vadd.f32 %v4992_v35, %v11715_v56  ;;  %v11887_v59 = vpop.xlane.xlu0 %4413  ;;  %v5204_v56 = vrot.slane %v5203_v51, 1  ;;  %v5309_v34 = vmul.f32 0.1, %v5285_v21  ;;  %v13359_v35 = vld [vmem:[#allocation3_spill] sm:$0xff] }
 0x47b   :  { %v4977_v4 = vrot.slane %v4976_v18, 1 }
 0x47c   :  { %v5300_v17 = vsub.f32 %v5001_v43, %v5292_v0  ;;  %v5205_v23 = vadd.f32 %v5204_v56, %v5203_v51  ;;  %v3998_v0 = vadd.f32 %v3997_v44, %v13359_v35  ;;  %v13360_v43 = vld [vmem:[#allocation27_spill] sm:$0xff]  ;;  %v13365_v56 = vld [vmem:[#allocation33_spill] sm:$0xff]  ;;  %v13374_v35 = vld [vmem:[#allocation6_spill] sm:$0xff] }
 0x47d   :  { %v4978_v30 = vadd.f32 %v4977_v4, %v4976_v18  ;;  %v13361_v18 = vld [vmem:[#allocation34_spill] sm:$0xff]  ;;  %v13363_v4 = vld [vmem:[#allocation57_spill] sm:$0xff] }
 0x47e   :  { %v5316_v3 = vsub.f32 %v5300_v17, %v5308_v8  ;;  %v4345_v48 = vpop.xlane.xlu0 %4344  ;;  %v5293_v61 = vmul.f32 0.9, %v5205_v23  ;;  %v3975_v8 = vadd.f32 %v3974_v37, %v13360_v43  ;;  %v3999_v12 = vadd.f32 %v3998_v0, %v13361_v18  ;;  %v13362_v17 = vld [vmem:[#allocation58_spill] sm:$0xff]  ;;  %v13366_v23 = vld [vmem:[#allocation8_spill] sm:$0xff] }
 0x47f   :  { %5872 = vlog2.f32 %v4978_v30  ;;  %v11889_v6 = vpop.xlane.xlu1 %4314  ;;  %v4023_v36 = vadd.f32 %v13363_v4, %v13362_v17 }
 0x480   :  { %v5336_v58 = vsel %vm4786_vm15, %v5316_v3, 0.0  ;;  %v3976_v47 = vadd.f32 %v3975_v8, %v13365_v56  ;;  %v4000_v21 = vadd.f32 %v3999_v12, %v13366_v23  ;;  %v13375_v12 = vld [vmem:[#allocation61_spill] sm:$0xff]  ;;  %v13377_v56 = vld [vmem:[#allocation4_spill] sm:$0xff]  ;;  %v13379_v23 = vld [vmem:[#allocation35_spill] sm:$0xff] }
 0x481   :  { %5337 = vadd.xlane.f32.xlu0 %v5336_v58  ;;  %v13364_v58 = vld [vmem:[#allocation60_spill] sm:$0xff] }
 0x482   :  { %v4393_v26 = vpop.xlane.xlu0 %4392  ;;  %v4024_v22 = vadd.f32 %v4023_v36, %v13364_v58  ;;  %v4001_v7 = vadd.f32 %v4000_v21, %v13369_v54  ;;  %v13376_v36 = vld [vmem:[#allocation7_spill] sm:$0xff]  ;;  %v4576_v21 = vadd.f32 %v11879_v52, %v11889_v6  ;;  %v13381_v54 = vld [vmem:[#allocation29_spill] sm:$0xff] }
 0x483   :  { %v4339_v16 = vpop.xlane.xlu1 %4338 }
 0x484   :  { %v4589_v51 = vadd.f32 %v11881_v13, %v4339_v16  ;;  %v13370_v16 = vld [vmem:[#allocation38_spill] sm:$0xff]  ;;  %v4002_v0 = vadd.f32 %v4001_v7, %v13374_v35  ;;  %v13387_v35 = vld [vmem:[#allocation79_spill] sm:$0xff] }
 0x485   :  { %v3984_v14 = vadd.f32 %v13371_v38, %v13370_v16  ;;  %v13382_v38 = vld [vmem:[#allocation42_spill] sm:$0xff] }
 0x486   :  { %v11894_v53 = vpop.xlane.xlu0 %4323 }
 0x487   :  { %v11892_v62 = vpop.xlane.xlu1 %4362 }
 0x489   :  { %v5873_v2 = vpop.eup %5872 }
 0x48a   :  { %v4994_v28 = vmul.f32 0.6931472, %v5873_v2  ;;  %v11896_v50 = vpop.xlane.xlu0 %4371 }
 0x48b   :  { %v4387_v29 = vpop.xlane.xlu1 %4386 }
 0x48c   :  { %v5002_v11 = vadd.f32 %v4994_v28, %v11778_v49 }
 0x48e   :  { %v5301_v40 = vsub.f32 %v5002_v11, %v5293_v61  ;;  %v11901_v42 = vpop.xlane.xlu0 %4419  ;;  %v4615_v61 = vadd.f32 %v4390_v57, %v4387_v29  ;;  %v4590_v11 = vadd.f32 %v4589_v51, %v4345_v48  ;;  %v13373_v57 = vld [vmem:[#allocation11_spill] sm:$0xff] }
 0x48f   :  { %v11899_v24 = vpop.xlane.xlu1 %4410  ;;  %v3985_v48 = vadd.f32 %v3984_v14, %v13373_v57  ;;  %v4602_v57 = vadd.f32 %v11884_v15, %v11892_v62 }
 0x490   :  { %v5317_v39 = vsub.f32 %v5301_v40, %v5309_v34  ;;  %v13367_v34 = vld [vmem:[#allocation59_spill] sm:$0xff]  ;;  %v4616_v10 = vadd.f32 %v4615_v61, %v4393_v26 }
 0x491   :  { %v4025_v40 = vadd.f32 %v4024_v22, %v13367_v34  ;;  %v3986_v26 = vadd.f32 %v3985_v48, %v13376_v36 }
 0x492   :  { %v5339_v41 = vsel %vm4786_vm15, %v5317_v39, 0.0  ;;  %v4351_v49 = vpop.xlane.xlu0 %4350 }
 0x493   :  { %5340 = vadd.xlane.f32.xlu1 %v5339_v41  ;;  %v11903_v25 = vpop.xlane.xlu1 %4320  ;;  %v13368_v41 = vld [vmem:[#allocation30_spill] sm:$0xff]  ;;  %v4026_v44 = vadd.f32 %v4025_v40, %v13372_v20  ;;  %v3987_v14 = vadd.f32 %v3986_v26, %v13382_v38  ;;  %v4628_v26 = vadd.f32 %v11887_v59, %v11899_v24  ;;  %v13394_v38 = vld [vmem:[#allocation13_spill] sm:$0xff] }
 0x494   :  { %v3977_v63 = vadd.f32 %v3976_v47, %v13368_v41  ;;  %v4003_v47 = vadd.f32 %v4002_v0, %v13377_v56  ;;  %v13384_v20 = vld [vmem:[#allocation78_spill] sm:$0xff] }
 0x495   :  { %v4027_v17 = vadd.f32 %v4026_v44, %v13375_v12 }
 0x496   :  { %v4399_v32 = vpop.xlane.xlu0 %4398  ;;  %v3978_v37 = vrot.slane %v3977_v63, 4 }
 0x497   :  { %v11905_v46 = vpop.xlane.xlu1 %4368  ;;  %v4028_v7 = vadd.f32 %v4027_v17, %v13381_v54  ;;  %v13388_v17 = vld [vmem:[#allocation40_spill] sm:$0xff] }
 0x498   :  { %v3979_v22 = vadd.f32 %v3978_v37, %v3977_v63  ;;  %v13386_v37 = vld [vmem:[#allocation63_spill] sm:$0xff] }
 0x49a   :  { %v11912_v33 = vpop.xlane.xlu0 %4329  ;;  %v3980_v16 = vrot.slane %v3979_v22, 2 }
 0x49b   :  { %v11910_v1 = vpop.xlane.xlu1 %4416 }
 0x49c   :  { %v3981_v12 = vadd.f32 %v3980_v16, %v3979_v22 }
 0x49e   :  { %v11915_v55 = vpop.xlane.xlu0 %4377 }
 0x49f   :  { %v4348_v9 = vpop.xlane.xlu1 %4347 }
 0x4a0   :  { %v4591_v39 = vadd.f32 %v4590_v11, %v4348_v9 }
 0x4a2   :  { %v11921_v19 = vpop.xlane.xlu0 %4425  ;;  %v4592_v9 = vadd.f32 %v4591_v39, %v4351_v49  ;;  %v13380_v39 = vld [vmem:[#allocation48_spill] sm:$0xff] }
 0x4a3   :  { %v4396_v60 = vpop.xlane.xlu1 %4395 }
 0x4a4   :  { %v4617_v29 = vadd.f32 %v4616_v10, %v4396_v60  ;;  %v13378_v60 = vld [vmem:[#allocation23_spill] sm:$0xff]  ;;  %v4004_v10 = vrot.slane %v4003_v47, 4 }
 0x4a5   :  { %v4010_v49 = vadd.f32 %v13379_v23, %v13378_v60  ;;  %v13390_v23 = vld [vmem:[#allocation85_spill] sm:$0xff] }
 0x4a6   :  { %v4618_v58 = vadd.f32 %v4617_v29, %v4399_v32  ;;  %v4005_v36 = vadd.f32 %v4004_v10, %v4003_v47 }
 0x4a7   :  { %v4357_v30 = vpop.xlane.xlu0 %4356  ;;  %v4011_v41 = vadd.f32 %v4010_v49, %v13380_v39 }
 0x4a8   :  { %v4006_v24 = vrot.slane %v4005_v36, 2 }
 0x4a9   :  { %v11927_v3 = vpop.xlane.xlu1 %4326 }
 0x4ac   :  { %v4405_v28 = vpop.xlane.xlu0 %4404 }
 0x4ad   :  { %v11933_v2 = vpop.xlane.xlu1 %4374 }
 0x4b0   :  { %v4312_v13 = vpop.xlane.xlu0 %4311 }
 0x4b1   :  { %v11938_v45 = vpop.xlane.xlu1 %4422  ;;  %v4569_v27 = vadd.f32 %v11759_v31, %v4312_v13 }
 0x4b3   :  { %v4570_v5 = vrot.slane %v4569_v27, 4 }
 0x4b4   :  { %v4360_v4 = vpop.xlane.xlu0 %4359 }
 0x4b5   :  { %v4354_v43 = vpop.xlane.xlu1 %4353  ;;  %v4571_v8 = vadd.f32 %v4570_v5, %v4569_v27  ;;  %v13383_v27 = vld [vmem:[#allocation92_spill] sm:$0xff] }
 0x4b6   :  { %v4593_v18 = vadd.f32 %v4592_v9, %v4354_v43  ;;  %v4036_v52 = vadd.f32 %v13384_v20, %v13383_v27 }
 0x4b7   :  { %v4572_v51 = vrot.slane %v4571_v8, 2 }
 0x4b8   :  { %v4594_v31 = vadd.f32 %v4593_v18, %v4357_v30  ;;  %v4577_v30 = vadd.f32 %v4576_v21, %v11903_v25  ;;  %v4408_v6 = vpop.xlane.xlu0 %4407  ;;  %v13385_v25 = vld [vmem:[#allocation37_spill] sm:$0xff]  ;;  %v4037_v0 = vadd.f32 %v4036_v52, %v13387_v35  ;;  %v4629_v21 = vadd.f32 %v4628_v26, %v11910_v1  ;;  %v13393_v1 = vld [vmem:[#allocation123_spill] sm:$0xff] }
 0x4b9   :  { %v4402_v61 = vpop.xlane.xlu1 %4401  ;;  %v4573_v11 = vadd.f32 %v4572_v51, %v4571_v8  ;;  %v4012_v9 = vadd.f32 %v4011_v41, %v13385_v25  ;;  %v4603_v8 = vadd.f32 %v4602_v57, %v11905_v46  ;;  %v13395_v57 = vld [vmem:[#allocation56_spill] sm:$0xff] }
 0x4ba   :  { %v4595_v34 = vadd.f32 %v4594_v31, %v4360_v4  ;;  %v4619_v40 = vadd.f32 %v4618_v58, %v4402_v61  ;;  %v4578_v43 = vadd.f32 %v4577_v30, %v11894_v53  ;;  %v3988_v4 = vadd.f32 %v3987_v14, %v13388_v17  ;;  %v13389_v58 = vld [vmem:[#allocation50_spill] sm:$0xff]  ;;  %v13396_v25 = vld [vmem:[#allocation80_spill] sm:$0xff] }
 0x4bb   :  { %v4574_v32 = vrot.slane %v4573_v11, 1  ;;  %v4013_v56 = vadd.f32 %v4012_v9, %v13389_v58  ;;  %v4038_v49 = vadd.f32 %v4037_v0, %v13390_v23  ;;  %v4604_v22 = vadd.f32 %v4603_v8, %v11896_v50 }
 0x4bc   :  { %v4596_v63 = vrot.slane %v4595_v34, 4  ;;  %v4620_v13 = vadd.f32 %v4619_v40, %v4405_v28  ;;  %v4029_v28 = vadd.f32 %v4028_v7, %v13386_v37  ;;  %v4579_v46 = vadd.f32 %v4578_v43, %v11927_v3  ;;  %v13392_v7 = vld [vmem:[#allocation49_spill] sm:$0xff] }
 0x4bd   :  { %v4333_v44 = vpop.xlane.xlu1 %4332  ;;  %v11961_v48 = vadd.f32 %v4574_v32, %v4573_v11  ;;  %v3982_v11 = vrot.slane %v3981_v12, 1  ;;  %v4605_v3 = vadd.f32 %v4604_v22, %v11933_v2  ;;  %v4014_v30 = vadd.f32 %v4013_v56, %v13392_v7 }
 0x4be   :  { %v4597_v29 = vadd.f32 %v4596_v63, %v4595_v34  ;;  %v4621_v5 = vadd.f32 %v4620_v13, %v4408_v6  ;;  %v4030_v60 = vrot.slane %v4029_v28, 4  ;;  %v13391_v34 = vld [vmem:[#allocation15_spill] sm:$0xff]  ;;  %v4580_v54 = vadd.f32 %v4579_v46, %v11912_v33 }
 0x4bf   :  { %v4667_v18 = vadd.f32 1e-09, %v11961_v48  ;;  %4748 = vst.msk [vmem:[%s12087_s6 + $0xa] sm:$0x1] %vm4721_vm3, %v11961_v48  ;;  %v3989_v59 = vadd.f32 %v3988_v4, %v13391_v34  ;;  %v4039_v63 = vadd.f32 %v4038_v49, %v13393_v1  ;;  %v4630_v50 = vadd.f32 %v4629_v21, %v11901_v42  ;;  %v13398_v4 = vld [vmem:[#allocation82_spill] sm:$0xff]  ;;  %v13399_v21 = vld [vmem:[#allocation81_spill] sm:$0xff] }
 0x4c0   :  { %v4598_v15 = vrot.slane %v4597_v29, 2  ;;  %v4622_v62 = vrot.slane %v4621_v5, 4  ;;  %v4031_v32 = vadd.f32 %v4030_v60, %v4029_v28  ;;  %v4581_v16 = vadd.f32 %v4580_v54, %v4333_v44 }
 0x4c1   :  { %v4381_v53 = vpop.xlane.xlu1 %4380  ;;  %5874 = vrcp.f32 %v4667_v18  ;;  %v3990_v14 = vadd.f32 %v3989_v59, %v13394_v38  ;;  %v4007_v33 = vadd.f32 %v4006_v24, %v4005_v36  ;;  %v4631_v10 = vadd.f32 %v4630_v50, %v11938_v45 }
 0x4c2   :  { %v4599_v51 = vadd.f32 %v4598_v15, %v4597_v29  ;;  %v4623_v31 = vadd.f32 %v4622_v62, %v4621_v5  ;;  %v4606_v42 = vadd.f32 %v4605_v3, %v11915_v55  ;;  %v3983_v6 = vadd.f32 %v3982_v11, %v3981_v12  ;;  %v13397_v62 = vld [vmem:[#allocation21_spill] sm:$0xff] }
 0x4c3   :  { %v4015_v29 = vadd.f32 %v4014_v30, %v13395_v57  ;;  %v4032_v5 = vrot.slane %v4031_v32, 2  ;;  %v4040_v9 = vadd.f32 %v4039_v63, %v13396_v25  ;;  %v3991_v35 = vrot.slane %v3990_v14, 4 }
 0x4c4   :  { %v4600_v61 = vrot.slane %v4599_v51, 1  ;;  %v4624_v47 = vrot.slane %v4623_v31, 2  ;;  %v4607_v45 = vadd.f32 %v4606_v42, %v4381_v53  ;;  %v4008_v55 = vrot.slane %v4007_v33, 1 }
 0x4c5   :  { %v4429_v40 = vpop.xlane.xlu1 %4428  ;;  %v4632_v43 = vadd.f32 %v4631_v10, %v11921_v19  ;;  %vm4651_vm15 = vcmp.eq.f32.partialorder %v11961_v48, 0.0  ;;  %v4016_v12 = vadd.f32 %v4015_v29, %v13397_v62  ;;  %v4033_v17 = vadd.f32 %v4032_v5, %v4031_v32 }
 0x4c6   :  { %v11984_v39 = vadd.f32 %v4600_v61, %v4599_v51  ;;  %v4625_v41 = vadd.f32 %v4624_v47, %v4623_v31  ;;  %v4041_v36 = vadd.f32 %v4040_v9, %v13398_v4  ;;  %v3992_v51 = vadd.f32 %v3991_v35, %v3990_v14 }
 0x4c7   :  { %v4633_v53 = vadd.f32 %v4632_v43, %v4429_v40  ;;  %v4009_v60 = vadd.f32 %v4008_v55, %v4007_v33  ;;  %v4017_v23 = vrot.slane %v4016_v12, 4  ;;  %v4034_v49 = vrot.slane %v4033_v17, 1 }
 0x4c8   :  { %v4669_v13 = vadd.f32 1e-09, %v11984_v39  ;;  %4750 = vst.msk [vmem:[%s12087_s6 + $0xc] sm:$0x1] %vm4721_vm3, %v11984_v39  ;;  %v4626_v2 = vrot.slane %v4625_v41, 1  ;;  %v4042_v22 = vadd.f32 %v4041_v36, %v13399_v21  ;;  %v3993_v59 = vrot.slane %v3992_v51, 2 }
 0x4c9   :  { %v4336_v27 = vpop.xlane.xlu1 %4335  ;;  %vm4653_vm14 = vcmp.eq.f32.partialorder %v11984_v39, 0.0  ;;  %v4018_v54 = vadd.f32 %v4017_v23, %v4016_v12  ;;  %v4035_v7 = vadd.f32 %v4034_v49, %v4033_v17 }
 0x4ca   :  { %5876 = vrcp.f32 %v4669_v13  ;;  %v11998_v20 = vadd.f32 %v4626_v2, %v4625_v41  ;;  %v4582_v52 = vadd.f32 %v4581_v16, %v4336_v27  ;;  %v4043_v30 = vrot.slane %v4042_v22, 4 }
 0x4cb   :  { %v5875_v37 = vpop.eup %5874  ;;  %v3994_v38 = vadd.f32 %v3993_v59, %v3992_v51  ;;  %v4019_v14 = vrot.slane %v4018_v54, 2 }
 0x4cc   :  { %v4671_v44 = vadd.f32 1e-09, %v11998_v20  ;;  %4752 = vst.msk [vmem:[%s12087_s6 + $0xe] sm:$0x1] %vm4721_vm3, %v11998_v20  ;;  %v4583_v28 = vrot.slane %v4582_v52, 4  ;;  %v4694_v0 = vmul.f32 %v5875_v37, %v3983_v6  ;;  %vm4655_vm0 = vcmp.eq.f32.partialorder %v11998_v20, 0.0 }
 0x4cd   :  { %v4384_v8 = vpop.xlane.xlu1 %4383  ;;  %v4044_v33 = vadd.f32 %v4043_v30, %v4042_v22  ;;  %v4020_v6 = vadd.f32 %v4019_v14, %v4018_v54 }
 0x4ce   :  { %5878 = vrcp.f32 %v4671_v44  ;;  %v4584_v18 = vadd.f32 %v4583_v28, %v4582_v52  ;;  %v4608_v15 = vadd.f32 %v4607_v45, %v4384_v8  ;;  %v4715_v26 = vsel %vm4651_vm15, 0.0, %v4694_v0 }
 0x4cf   :  { %4732 = vst.msk [vmem:[%s12089_s5 + $0xa] sm:$0x1] %vm4721_vm3, %v4715_v26  ;;  %v3995_v52 = vrot.slane %v3994_v38, 1  ;;  %v4045_v57 = vrot.slane %v4044_v33, 2  ;;  %v4021_v25 = vrot.slane %v4020_v6, 1 }
 0x4d0   :  { %v4585_v46 = vrot.slane %v4584_v18, 2  ;;  %v4609_v19 = vrot.slane %v4608_v15, 4 }
 0x4d1   :  { %v4432_v31 = vpop.xlane.xlu1 %4431  ;;  %v3996_v5 = vadd.f32 %v3995_v52, %v3994_v38  ;;  %v4046_v9 = vadd.f32 %v4045_v57, %v4044_v33  ;;  %v4022_v45 = vadd.f32 %v4021_v25, %v4020_v6 }
 0x4d2   :  { %v4586_v48 = vadd.f32 %v4585_v46, %v4584_v18  ;;  %v4610_v58 = vadd.f32 %v4609_v19, %v4608_v15  ;;  %v4634_v56 = vadd.f32 %v4633_v53, %v4432_v31 }
 0x4d3   :  { %v4047_v28 = vrot.slane %v4046_v9, 1 }
 0x4d4   :  { %v5877_v61 = vpop.eup %5876  ;;  %v4587_v47 = vrot.slane %v4586_v48, 1  ;;  %v4611_v11 = vrot.slane %v4610_v58, 2  ;;  %v4635_v34 = vrot.slane %v4634_v56, 4 }
 0x4d5   :  { %v4698_v24 = vmul.f32 %v5877_v61, %v4009_v60  ;;  %v4048_v8 = vadd.f32 %v4047_v28, %v4046_v9 }
 0x4d6   :  { %v4588_v40 = vadd.f32 %v4587_v47, %v4586_v48  ;;  %v4612_v3 = vadd.f32 %v4611_v11, %v4610_v58  ;;  %v4636_v41 = vadd.f32 %v4635_v34, %v4634_v56 }
 0x4d7   :  { %v4717_v32 = vsel %vm4653_vm14, 0.0, %v4698_v24 }
 0x4d8   :  { %v5879_v1 = vpop.eup %5878  ;;  %4734 = vst.msk [vmem:[%s12089_s5 + $0xc] sm:$0x1] %vm4721_vm3, %v4717_v32  ;;  %v4668_v63 = vadd.f32 1e-09, %v4588_v40  ;;  %4749 = vst.msk [vmem:[%s12087_s6 + $0xb] sm:$0x1] %vm4721_vm3, %v4588_v40 }
 0x4d9   :  { %v4613_v39 = vrot.slane %v4612_v3, 1  ;;  %v4637_v50 = vrot.slane %v4636_v41, 2  ;;  %v4702_v13 = vmul.f32 %v5879_v1, %v4035_v7  ;;  %vm4652_vm2 = vcmp.eq.f32.partialorder %v4588_v40, 0.0 }
 0x4da   :  { %5880 = vrcp.f32 %v4668_v63 }
 0x4db   :  { %v4614_v2 = vadd.f32 %v4613_v39, %v4612_v3  ;;  %v4638_v16 = vadd.f32 %v4637_v50, %v4636_v41  ;;  %v4719_v10 = vsel %vm4655_vm0, 0.0, %v4702_v13 }
 0x4dc   :  { %4736 = vst.msk [vmem:[%s12089_s5 + $0xe] sm:$0x1] %vm4721_vm3, %v4719_v10 }
 0x4dd   :  { %v4670_v27 = vadd.f32 1e-09, %v4614_v2  ;;  %4751 = vst.msk [vmem:[%s12087_s6 + $0xd] sm:$0x1] %vm4721_vm3, %v4614_v2  ;;  %v4639_v42 = vrot.slane %v4638_v16, 1  ;;  %vm4654_vm4 = vcmp.eq.f32.partialorder %v4614_v2, 0.0 }
 0x4df   :  { %5882 = vrcp.f32 %v4670_v27  ;;  %v4640_v20 = vadd.f32 %v4639_v42, %v4638_v16 }
 0x4e1   :  { %v4672_v29 = vadd.f32 1e-09, %v4640_v20  ;;  %4753 = vst.msk [vmem:[%s12087_s6 + $0xf] sm:$0x1] %vm4721_vm3, %v4640_v20  ;;  %vm4656_vm5 = vcmp.eq.f32.partialorder %v4640_v20, 0.0 }
 0x4e3   :  { %5884 = vrcp.f32 %v4672_v29 }
 0x4e4   :  { %v5881_v37 = vpop.eup %5880 }
 0x4e5   :  { %v4696_v44 = vmul.f32 %v5881_v37, %v3996_v5 }
 0x4e7   :  { %v4716_v35 = vsel %vm4652_vm2, 0.0, %v4696_v44 }
 0x4e8   :  { %4733 = vst.msk [vmem:[%s12089_s5 + $0xb] sm:$0x1] %vm4721_vm3, %v4716_v35 }
 0x4e9   :  { %v5883_v55 = vpop.eup %5882 }
 0x4ea   :  { %v4700_v43 = vmul.f32 %v5883_v55, %v4022_v45 }
 0x4ec   :  { %v5320_v0 = vpop.xlane.xlu0 %5319  ;;  %v4718_v18 = vsel %vm4654_vm4, 0.0, %v4700_v43 }
 0x4ed   :  { %5342 = vst.msk [vmem:[%s12091_s7] sm:$0x1] %vm4721_vm3, %v5320_v0  ;;  %v5885_v15 = vpop.eup %5884  ;;  %4735 = vst.msk [vmem:[%s12089_s5 + $0xd] sm:$0x1] %vm4721_vm3, %v4718_v18 }
 0x4ee   :  { %v4704_v62 = vmul.f32 %v5885_v15, %v4048_v8 }
 0x4f0   :  { %v4720_v4 = vsel %vm4656_vm5, 0.0, %v4704_v62 }
 0x4f1   :  { %v5326_v12 = vpop.xlane.xlu0 %5325  ;;  %4737 = vst.msk [vmem:[%s12089_s5 + $0xf] sm:$0x1] %vm4721_vm3, %v4720_v4 }
 0x4f2   :  { %v5323_v17 = vpop.xlane.xlu1 %5322  ;;  %5344 = vst.msk [vmem:[%s12091_s7 + $0x2] sm:$0x1] %vm4721_vm3, %v5326_v12 }
 0x4f3   :  { %5343 = vst.msk [vmem:[%s12091_s7 + $0x1] sm:$0x1] %vm4721_vm3, %v5323_v17 }
 0x4f5   :  { %v5332_v36 = vpop.xlane.xlu0 %5331 }
 0x4f6   :  { %v5329_v26 = vpop.xlane.xlu1 %5328  ;;  %5346 = vst.msk [vmem:[%s12091_s7 + $0x4] sm:$0x1] %vm4721_vm3, %v5332_v36 }
 0x4f7   :  { %5345 = vst.msk [vmem:[%s12091_s7 + $0x3] sm:$0x1] %vm4721_vm3, %v5329_v26 }
 0x4fe   :  { %v5335_v53 = vpop.xlane.xlu1 %5334 }
 0x4ff   :  { %5347 = vst.msk [vmem:[%s12091_s7 + $0x5] sm:$0x1] %vm4721_vm3, %v5335_v53 }
 0x50e   :  { %v5338_v46 = vpop.xlane.xlu0 %5337 }
 0x50f   :  { %5348 = vst.msk [vmem:[%s12091_s7 + $0x6] sm:$0x1] %vm4721_vm3, %v5338_v46 }
 0x520   :  { %v5341_v19 = vpop.xlane.xlu1 %5340 }
 0x521   :  { %5349 = vst.msk [vmem:[%s12091_s7 + $0x7] sm:$0x1] %vm4721_vm3, %v5341_v19 }

</bundles_post_ra>
